<compile_context>
chip_gen: v6e
topology: v6e:2x2x1
jax: 0.10.0
libtpu: 0.0.40
codegen_flags: <defaults>
</compile_context>

<pallas_src>
import jax
import jax.numpy as jnp
from jax import lax
from jax.experimental import pallas as pl
from jax.experimental.pallas import tpu as pltpu


# ----------------------------- kernel ---------------------------------------
def _encoder_kernel(lens_ref, x_ref, wlin_ref, blin_ref, wih_ref,
                    whhf_ref, whhb_ref, bias_ref,
                    out_ref,
                    proj_ref, gx_ref, hf_ref, cf_ref, hb_ref, cb_ref):
    T, Bt, E = x_ref.shape
    Hp = proj_ref.shape[-1]
    G = 4 * Hp

    # ---- one-shot MXU work, hoisted out of the recurrence ----
    # proj = x @ W_lin + b_lin   (residual path == LSTM input, residual=True)
    x2d = x_ref[...].reshape(T * Bt, E)
    proj2d = (jnp.dot(x2d, wlin_ref[...], preferred_element_type=jnp.float32)
              + blin_ref[...])
    proj_ref[...] = proj2d.reshape(T, Bt, Hp)

    # gates_x = proj @ [W_ih_fwd | W_ih_bwd] + [b_fwd | b_bwd]  for all timesteps at once
    gx2d = (jnp.dot(proj2d, wih_ref[...], preferred_element_type=jnp.float32)
            + bias_ref[...])
    gx_ref[...] = gx2d.reshape(T, Bt, 2 * G)

    hf_ref[...] = jnp.zeros_like(hf_ref)
    cf_ref[...] = jnp.zeros_like(cf_ref)
    hb_ref[...] = jnp.zeros_like(hb_ref)
    cb_ref[...] = jnp.zeros_like(cb_ref)

    lens = lens_ref[...]                      # (Bt, 1) int32, hoisted out of the loop

    def cell(gates, c_prev):
        # gate order [i, f, o, g]: one contiguous sigmoid slice, one tanh slice
        sg = jax.nn.sigmoid(gates[:, 0:3 * Hp])
        i_g = sg[:, 0:Hp]
        f_g = sg[:, Hp:2 * Hp]
        o_g = sg[:, 2 * Hp:3 * Hp]
        g_g = jnp.tanh(gates[:, 3 * Hp:4 * Hp])
        c_new = f_g * c_prev + i_g * g_g
        h_new = o_g * jnp.tanh(c_new)
        return h_new, c_new

    def body(t, carry):
        tb = T - 1 - t
        # --- forward direction, time t ---
        hf_prev = hf_ref[...]
        cf_prev = cf_ref[...]
        gf = gx_ref[t, :, 0:G] + jnp.dot(hf_prev, whhf_ref[...],
                                         preferred_element_type=jnp.float32)
        hf_new, cf_new = cell(gf, cf_prev)
        mf = t < lens                          # packed-sequence mask (Bt, 1)
        hf_ref[...] = jnp.where(mf, hf_new, hf_prev)   # inactive seqs keep state
        cf_ref[...] = jnp.where(mf, cf_new, cf_prev)
        # pad_packed_sequence: padded positions exactly 0; residual fused into store
        out_ref[0, t] = jnp.where(mf, hf_new, 0.0) + proj_ref[t]

        # --- backward direction, time T-1-t (independent chain, overlaps with fwd) ---
        hb_prev = hb_ref[...]
        cb_prev = cb_ref[...]
        gb = gx_ref[tb, :, G:2 * G] + jnp.dot(hb_prev, whhb_ref[...],
                                              preferred_element_type=jnp.float32)
        hb_new, cb_new = cell(gb, cb_prev)
        mb = tb < lens
        hb_ref[...] = jnp.where(mb, hb_new, hb_prev)
        cb_ref[...] = jnp.where(mb, cb_new, cb_prev)
        out_ref[1, tb] = jnp.where(mb, hb_new, 0.0) + proj_ref[tb]
        return carry

    lax.fori_loop(0, T, body, 0, unroll=True)


# ----------------------------- wrapper ---------------------------------------
def _pad_axis(x, target, axis):
    pad = target - x.shape[axis]
    if pad <= 0:
        return x
    widths = [(0, 0)] * x.ndim
    widths[axis] = (0, pad)
    return jnp.pad(x, widths)


def _reorder_pad_gates(w, H, Hp):
    """(..., 4H) in PyTorch gate order [i,f,g,o] -> (..., 4Hp) in kernel order [i,f,o,g]."""
    i = w[..., 0 * H:1 * H]
    f = w[..., 1 * H:2 * H]
    g = w[..., 2 * H:3 * H]
    o = w[..., 3 * H:4 * H]
    return jnp.concatenate([_pad_axis(p, Hp, -1) for p in (i, f, o, g)], axis=-1)


def encoder_forward(embedded, lengths, params):
    """embedded: (B, T, E) float32 batch-first; lengths: (B,) int32."""
    B, T, E = embedded.shape
    H = params["w_linear"].shape[1]

    # align to the vreg: batch -> multiple of 8 sublanes, hidden -> multiple of 128 lanes
    Hp = ((H + 127) // 128) * 128
    Bp = ((B + 7) // 8) * 8
    B_TILE = min(Bp, 64)
    Bp = ((Bp + B_TILE - 1) // B_TILE) * B_TILE
    G = 4 * Hp

    # time-major, batch-padded input; padded rows get length 0 (never active)
    x_tm = jnp.transpose(embedded.astype(jnp.float32), (1, 0, 2))         # (T, B, E)
    x_tm = jnp.pad(x_tm, ((0, 0), (0, Bp - B), (0, 0)))
    lens_p = jnp.pad(lengths.astype(jnp.int32), (0, Bp - B)).reshape(Bp, 1)

    # weights: reorder gate columns and zero-pad H -> Hp (padded lanes provably stay 0)
    wlin = _pad_axis(params["w_linear"].astype(jnp.float32), Hp, 1)        # (E, Hp)
    blin = _pad_axis(params["b_linear"].astype(jnp.float32), Hp, 1)        # (1, Hp)
    wih_f = _pad_axis(_reorder_pad_gates(params["w_ih_f"], H, Hp), Hp, 0)  # (Hp, 4Hp)
    whh_f = _pad_axis(_reorder_pad_gates(params["w_hh_f"], H, Hp), Hp, 0)
    wih_b = _pad_axis(_reorder_pad_gates(params["w_ih_b"], H, Hp), Hp, 0)
    whh_b = _pad_axis(_reorder_pad_gates(params["w_hh_b"], H, Hp), Hp, 0)
    b_f = _reorder_pad_gates(params["b_f"], H, Hp)                         # (1, 4Hp)
    b_b = _reorder_pad_gates(params["b_b"], H, Hp)
    wih_cat = jnp.concatenate([wih_f, wih_b], axis=1).astype(jnp.float32)  # (Hp, 8Hp)
    bias_cat = jnp.concatenate([b_f, b_b], axis=1).astype(jnp.float32)     # (1, 8Hp)
    whh_f = whh_f.astype(jnp.float32)
    whh_b = whh_b.astype(jnp.float32)

    grid = (Bp // B_TILE,)
    out = pl.pallas_call(
        _encoder_kernel,
        out_shape=jax.ShapeDtypeStruct((2, T, Bp, Hp), jnp.float32),
        grid_spec=pltpu.PrefetchScalarGridSpec(
            num_scalar_prefetch=0,
            grid=grid,
            in_specs=[
                pl.BlockSpec((B_TILE, 1), lambda b: (b, 0)),            # lengths
                pl.BlockSpec((T, B_TILE, E), lambda b: (0, b, 0)),      # x (time-major)
                pl.BlockSpec((E, Hp), lambda b: (0, 0)),                # W_lin
                pl.BlockSpec((1, Hp), lambda b: (0, 0)),                # b_lin
                pl.BlockSpec((Hp, 8 * Hp), lambda b: (0, 0)),           # [W_ih_f | W_ih_b]
                pl.BlockSpec((Hp, G), lambda b: (0, 0)),                # W_hh_f
                pl.BlockSpec((Hp, G), lambda b: (0, 0)),                # W_hh_b
                pl.BlockSpec((1, 8 * Hp), lambda b: (0, 0)),            # [b_f | b_b]
            ],
            out_specs=pl.BlockSpec((2, T, B_TILE, Hp), lambda b: (0, 0, b, 0)),
            scratch_shapes=[
                pltpu.VMEM((T, B_TILE, Hp), jnp.float32),        # proj (time-major)
                pltpu.VMEM((T, B_TILE, 8 * Hp), jnp.float32),    # hoisted input gates
                pltpu.VMEM((B_TILE, Hp), jnp.float32),           # h fwd
                pltpu.VMEM((B_TILE, Hp), jnp.float32),           # c fwd
                pltpu.VMEM((B_TILE, Hp), jnp.float32),           # h bwd
                pltpu.VMEM((B_TILE, Hp), jnp.float32),           # c bwd
            ]),
        compiler_params=pltpu.CompilerParams(
            dimension_semantics=("parallel",)),
    )(lens_p, x_tm, wlin, blin, wih_cat, whh_f, whh_b, bias_cat)

    out_f = out[0, :, :B, :H]                                   # (T, B, H)
    out_b = out[1, :, :B, :H]
    bilstm = jnp.transpose(jnp.concatenate([out_f, out_b], axis=-1), (1, 0, 2))  # (B, T, 2H)
    # Encoder returns a dict: pass-through embedding + BiLSTM output.
    return {"trained": embedded, "bilstm": bilstm}


# ----------------------- deterministic parameter init -----------------------
def _xavier_uniform(key, shape, fan_in, fan_out):
    limit = (6.0 / (fan_in + fan_out)) ** 0.5
    return jax.random.uniform(key, shape, jnp.float32, -limit, limit)


def init_params(key, emb_dim, hidden):
    ks = jax.random.split(key, 6)
    # nn.Linear(E, H): weight (H, E) xavier -> stored transposed (E, H)
    w_linear = _xavier_uniform(ks[0], (emb_dim, hidden), emb_dim, hidden)
    b_linear = jax.random.uniform(
        ks[1], (1, hidden), jnp.float32,
        -1.0 / (emb_dim ** 0.5), 1.0 / (emb_dim ** 0.5))
    # LSTM weights: xavier_uniform_; biases: constant 0.0 (per Encoder.__init__).
    # PyTorch weight_ih_l0: (4H, H_in) -> stored transposed (H_in, 4H); gate order [i, f, g, o].
    w_ih_f = _xavier_uniform(ks[2], (hidden, 4 * hidden), hidden, 4 * hidden)
    w_hh_f = _xavier_uniform(ks[3], (hidden, 4 * hidden), hidden, 4 * hidden)
    w_ih_b = _xavier_uniform(ks[4], (hidden, 4 * hidden), hidden, 4 * hidden)
    w_hh_b = _xavier_uniform(ks[5], (hidden, 4 * hidden), hidden, 4 * hidden)
    b_f = jnp.zeros((1, 4 * hidden), jnp.float32)   # b_ih + b_hh, both 0
    b_b = jnp.zeros((1, 4 * hidden), jnp.float32)
    return dict(w_linear=w_linear, b_linear=b_linear,
                w_ih_f=w_ih_f, w_hh_f=w_hh_f, b_f=b_f,
                w_ih_b=w_ih_b, w_hh_b=w_hh_b, b_b=b_b)


# ----------------------- pure-JAX reference (for checking) ------------------
def reference_forward(embedded, lengths, params):
    B, T, E = embedded.shape
    H = params["w_linear"].shape[1]
    proj = embedded @ params["w_linear"] + params["b_linear"]              # (B, T, H)

    def run_dir(wih, whh, b, reverse):
        def step(carry, t):
            h, c = carry
            xt = proj[:, t, :]
            m = (t < lengths).astype(jnp.float32)[:, None]
            gates = xt @ wih + h @ whh + b
            i = jax.nn.sigmoid(gates[:, :H])
            f = jax.nn.sigmoid(gates[:, H:2 * H])
            g = jnp.tanh(gates[:, 2 * H:3 * H])
            o = jax.nn.sigmoid(gates[:, 3 * H:])
            c_new = f * c + i * g
            h_new = o * jnp.tanh(c_new)
            return (m * h_new + (1 - m) * h, m * c_new + (1 - m) * c), m * h_new

        ts = jnp.arange(T)
        if reverse:
            ts = ts[::-1]
        init = (jnp.zeros((B, H), jnp.float32), jnp.zeros((B, H), jnp.float32))
        _, outs = lax.scan(step, init, ts)                                 # (T, B, H)
        if reverse:
            outs = outs[::-1]
        return jnp.transpose(outs, (1, 0, 2))                              # (B, T, H)

    out_f = run_dir(params["w_ih_f"], params["w_hh_f"], params["b_f"], False)
    out_b = run_dir(params["w_ih_b"], params["w_hh_b"], params["b_b"], True)
    bilstm = jnp.concatenate([out_f, out_b], axis=-1)
    return bilstm + jnp.concatenate([proj, proj], axis=-1)


if __name__ == "__main__":
    B, T, E, H = 2, 8, 32, 32          # batch, seq len, summed embedding dim, main_lstm_dim
    key = jax.random.PRNGKey(0)
    k_x, k_p = jax.random.split(key)
    embedded = jax.random.normal(k_x, (B, T, E), jnp.float32)   # output of the embedding modules
    lengths = jnp.array([8, 5], dtype=jnp.int32)
    params = init_params(k_p, E, H)

    results = encoder_forward(embedded, lengths, params)
    out = jax.block_until_ready(results["bilstm"])
    assert out.shape == (B, T, 2 * H)

    ref = reference_forward(embedded, lengths, params)
    max_err = float(jnp.max(jnp.abs(out - ref)))
    assert max_err < 1e-3, f"mismatch vs reference: {max_err}"
    print("KERNEL_OK")
</pallas_src>

<mosaic_0001>
module attributes {stable_mosaic.version = 11 : i64} {
  func.func @_encoder_kernel(%arg0: i32, %arg1: memref<8x1xi32, #tpu.memory_space<vmem>>, %arg2: memref<8x8x32xf32, #tpu.memory_space<vmem>>, %arg3: memref<32x128xf32, #tpu.memory_space<vmem>>, %arg4: memref<1x128xf32, #tpu.memory_space<vmem>>, %arg5: memref<128x1024xf32, #tpu.memory_space<vmem>>, %arg6: memref<128x512xf32, #tpu.memory_space<vmem>>, %arg7: memref<128x512xf32, #tpu.memory_space<vmem>>, %arg8: memref<1x1024xf32, #tpu.memory_space<vmem>>, %arg9: memref<2x8x8x128xf32, #tpu.memory_space<vmem>>, %arg10: memref<8x8x128xf32, #tpu.memory_space<vmem>>, %arg11: memref<8x8x1024xf32, #tpu.memory_space<vmem>>, %arg12: memref<8x128xf32, #tpu.memory_space<vmem>>, %arg13: memref<8x128xf32, #tpu.memory_space<vmem>>, %arg14: memref<8x128xf32, #tpu.memory_space<vmem>>, %arg15: memref<8x128xf32, #tpu.memory_space<vmem>>) attributes {dimension_semantics = [#tpu.dimension_semantics<parallel>], iteration_bounds = array<i64: 1>, scalar_prefetch = 0 : i64, scratch_operands = 6 : i64, tpu.core_type = #tpu.core_type<tc>, window_params = [{transform_indices = @transform_0, window_bounds = array<i64: 8, 1>}, {transform_indices = @transform_1, window_bounds = array<i64: 8, 8, 32>}, {pipeline_mode = #tpu.pipeline_mode<synchronous>, transform_indices = @transform_2, window_bounds = array<i64: 32, 128>}, {pipeline_mode = #tpu.pipeline_mode<synchronous>, transform_indices = @transform_3, window_bounds = array<i64: 1, 128>}, {pipeline_mode = #tpu.pipeline_mode<synchronous>, transform_indices = @transform_4, window_bounds = array<i64: 128, 1024>}, {pipeline_mode = #tpu.pipeline_mode<synchronous>, transform_indices = @transform_5, window_bounds = array<i64: 128, 512>}, {pipeline_mode = #tpu.pipeline_mode<synchronous>, transform_indices = @transform_6, window_bounds = array<i64: 128, 512>}, {pipeline_mode = #tpu.pipeline_mode<synchronous>, transform_indices = @transform_7, window_bounds = array<i64: 1, 1024>}, {transform_indices = @transform_8, window_bounds = array<i64: 2, 8, 8, 128>}]} {
    %c0 = arith.constant 0 : index
    %c0_0 = arith.constant 0 : index
    %c0_1 = arith.constant 0 : index
    %0 = vector.load %arg2[%c0, %c0_0, %c0_1] : memref<8x8x32xf32, #tpu.memory_space<vmem>>, vector<8x8x32xf32>
    %1 = vector.shape_cast %0 : vector<8x8x32xf32> to vector<64x32xf32>
    %c0_2 = arith.constant 0 : index
    %c0_3 = arith.constant 0 : index
    %2 = vector.load %arg3[%c0_2, %c0_3] : memref<32x128xf32, #tpu.memory_space<vmem>>, vector<32x128xf32>
    %cst = arith.constant dense<0.000000e+00> : vector<64x128xf32>
    %3 = tpu.matmul %1, %2, %cst {dimension_numbers = #tpu.dot_dimension_numbers<[1], [0], [0], [1], [0, 0, 1, 1], [], []>} : vector<64x32xf32>, vector<32x128xf32>, vector<64x128xf32> -> vector<64x128xf32>
    %c0_4 = arith.constant 0 : index
    %c0_5 = arith.constant 0 : index
    %4 = vector.load %arg4[%c0_4, %c0_5] : memref<1x128xf32, #tpu.memory_space<vmem>>, vector<1x128xf32>
    %5 = vector.broadcast %4 : vector<1x128xf32> to vector<64x128xf32>
    %6 = arith.addf %3, %5 : vector<64x128xf32>
    %7 = vector.shape_cast %6 : vector<64x128xf32> to vector<8x8x128xf32>
    %c0_6 = arith.constant 0 : index
    %c0_7 = arith.constant 0 : index
    %c0_8 = arith.constant 0 : index
    %8 = vector.load %arg10[%c0_6, %c0_7, %c0_8] : memref<8x8x128xf32, #tpu.memory_space<vmem>>, vector<8x8x128xf32>
    tpu.vector_store %arg10[%c0_6, %c0_7, %c0_8], %7 {strides = array<i32>} : memref<8x8x128xf32, #tpu.memory_space<vmem>>, vector<8x8x128xf32>,
    %c0_9 = arith.constant 0 : index
    %c0_10 = arith.constant 0 : index
    %9 = vector.load %arg5[%c0_9, %c0_10] : memref<128x1024xf32, #tpu.memory_space<vmem>>, vector<128x1024xf32>
    %cst_11 = arith.constant dense<0.000000e+00> : vector<64x1024xf32>
    %10 = tpu.matmul %6, %9, %cst_11 {dimension_numbers = #tpu.dot_dimension_numbers<[1], [0], [0], [1], [0, 0, 1, 1], [], []>} : vector<64x128xf32>, vector<128x1024xf32>, vector<64x1024xf32> -> vector<64x1024xf32>
    %c0_12 = arith.constant 0 : index
    %c0_13 = arith.constant 0 : index
    %11 = vector.load %arg8[%c0_12, %c0_13] : memref<1x1024xf32, #tpu.memory_space<vmem>>, vector<1x1024xf32>
    %12 = vector.broadcast %11 : vector<1x1024xf32> to vector<64x1024xf32>
    %13 = arith.addf %10, %12 : vector<64x1024xf32>
    %14 = vector.shape_cast %13 : vector<64x1024xf32> to vector<8x8x1024xf32>
    %c0_14 = arith.constant 0 : index
    %c0_15 = arith.constant 0 : index
    %c0_16 = arith.constant 0 : index
    %15 = vector.load %arg11[%c0_14, %c0_15, %c0_16] : memref<8x8x1024xf32, #tpu.memory_space<vmem>>, vector<8x8x1024xf32>
    tpu.vector_store %arg11[%c0_14, %c0_15, %c0_16], %14 {strides = array<i32>} : memref<8x8x1024xf32, #tpu.memory_space<vmem>>, vector<8x8x1024xf32>,
    %cst_17 = arith.constant 0.000000e+00 : f32
    %16 = vector.broadcast %cst_17 : f32 to vector<8x128xf32>
    %c0_18 = arith.constant 0 : index
    %c0_19 = arith.constant 0 : index
    %17 = vector.load %arg12[%c0_18, %c0_19] : memref<8x128xf32, #tpu.memory_space<vmem>>, vector<8x128xf32>
    tpu.vector_store %arg12[%c0_18, %c0_19], %16 {strides = array<i32>} : memref<8x128xf32, #tpu.memory_space<vmem>>, vector<8x128xf32>,
    %cst_20 = arith.constant 0.000000e+00 : f32
    %18 = vector.broadcast %cst_20 : f32 to vector<8x128xf32>
    %c0_21 = arith.constant 0 : index
    %c0_22 = arith.constant 0 : index
    %19 = vector.load %arg13[%c0_21, %c0_22] : memref<8x128xf32, #tpu.memory_space<vmem>>, vector<8x128xf32>
    tpu.vector_store %arg13[%c0_21, %c0_22], %18 {strides = array<i32>} : memref<8x128xf32, #tpu.memory_space<vmem>>, vector<8x128xf32>,
    %cst_23 = arith.constant 0.000000e+00 : f32
    %20 = vector.broadcast %cst_23 : f32 to vector<8x128xf32>
    %c0_24 = arith.constant 0 : index
    %c0_25 = arith.constant 0 : index
    %21 = vector.load %arg14[%c0_24, %c0_25] : memref<8x128xf32, #tpu.memory_space<vmem>>, vector<8x128xf32>
    tpu.vector_store %arg14[%c0_24, %c0_25], %20 {strides = array<i32>} : memref<8x128xf32, #tpu.memory_space<vmem>>, vector<8x128xf32>,
    %cst_26 = arith.constant 0.000000e+00 : f32
    %22 = vector.broadcast %cst_26 : f32 to vector<8x128xf32>
    %c0_27 = arith.constant 0 : index
    %c0_28 = arith.constant 0 : index
    %23 = vector.load %arg15[%c0_27, %c0_28] : memref<8x128xf32, #tpu.memory_space<vmem>>, vector<8x128xf32>
    tpu.vector_store %arg15[%c0_27, %c0_28], %22 {strides = array<i32>} : memref<8x128xf32, #tpu.memory_space<vmem>>, vector<8x128xf32>,
    %c0_29 = arith.constant 0 : index
    %c0_30 = arith.constant 0 : index
    %24 = vector.load %arg1[%c0_29, %c0_30] : memref<8x1xi32, #tpu.memory_space<vmem>>, vector<8x1xi32>
    %c0_i32 = arith.constant 0 : i32
    %c7_i32 = arith.constant 7 : i32
    %25 = arith.subi %c7_i32, %c0_i32 : i32
    %c0_31 = arith.constant 0 : index
    %c0_32 = arith.constant 0 : index
    %26 = vector.load %arg12[%c0_31, %c0_32] : memref<8x128xf32, #tpu.memory_space<vmem>>, vector<8x128xf32>
    %c0_33 = arith.constant 0 : index
    %c0_34 = arith.constant 0 : index
    %27 = vector.load %arg13[%c0_33, %c0_34] : memref<8x128xf32, #tpu.memory_space<vmem>>, vector<8x128xf32>
    %28 = arith.index_cast %c0_i32 : i32 to index
    %c0_35 = arith.constant 0 : index
    %c0_36 = arith.constant 0 : index
    %29 = vector.load %arg11[%28, %c0_35, %c0_36] : memref<8x8x1024xf32, #tpu.memory_space<vmem>>, vector<1x8x512xf32>
    %30 = vector.shape_cast %29 : vector<1x8x512xf32> to vector<8x512xf32>
    %c0_37 = arith.constant 0 : index
    %c0_38 = arith.constant 0 : index
    %31 = vector.load %arg6[%c0_37, %c0_38] : memref<128x512xf32, #tpu.memory_space<vmem>>, vector<128x512xf32>
    %cst_39 = arith.constant dense<0.000000e+00> : vector<8x512xf32>
    %32 = tpu.matmul %26, %31, %cst_39 {dimension_numbers = #tpu.dot_dimension_numbers<[1], [0], [0], [1], [0, 0, 1, 1], [], []>} : vector<8x128xf32>, vector<128x512xf32>, vector<8x512xf32> -> vector<8x512xf32>
    %33 = arith.addf %30, %32 : vector<8x512xf32>
    %34 = vector.extract_strided_slice %33 {offsets = [0, 0], sizes = [8, 384], strides = [1, 1]} : vector<8x512xf32> to vector<8x384xf32>
    %35 = arith.negf %34 : vector<8x384xf32>
    %36 = math.exp %35 : vector<8x384xf32>
    %cst_40 = arith.constant 1.000000e+00 : f32
    %37 = vector.broadcast %cst_40 : f32 to vector<8x384xf32>
    %38 = arith.addf %37, %36 : vector<8x384xf32>
    %39 = arith.divf %37, %38 : vector<8x384xf32>
    %40 = vector.extract_strided_slice %39 {offsets = [0, 0], sizes = [8, 128], strides = [1, 1]} : vector<8x384xf32> to vector<8x128xf32>
    %41 = vector.extract_strided_slice %39 {offsets = [0, 128], sizes = [8, 128], strides = [1, 1]} : vector<8x384xf32> to vector<8x128xf32>
    %42 = vector.extract_strided_slice %39 {offsets = [0, 256], sizes = [8, 128], strides = [1, 1]} : vector<8x384xf32> to vector<8x128xf32>
    %43 = vector.extract_strided_slice %33 {offsets = [0, 384], sizes = [8, 128], strides = [1, 1]} : vector<8x512xf32> to vector<8x128xf32>
    %44 = math.tanh %43 : vector<8x128xf32>
    %45 = arith.mulf %41, %27 : vector<8x128xf32>
    %46 = arith.mulf %40, %44 : vector<8x128xf32>
    %47 = arith.addf %45, %46 : vector<8x128xf32>
    %48 = math.tanh %47 : vector<8x128xf32>
    %49 = arith.mulf %42, %48 : vector<8x128xf32>
    %50 = vector.broadcast %c0_i32 : i32 to vector<8x1xi32>
    %51 = arith.cmpi slt, %50, %24 : vector<8x1xi32>
    %52 = vector.shape_cast %51 : vector<8x1xi1> to vector<8x1xi1>
    %53 = vector.broadcast %52 : vector<8x1xi1> to vector<8x128xi1>
    %54 = arith.select %53, %49, %26 : vector<8x128xi1>, vector<8x128xf32>
    %c0_41 = arith.constant 0 : index
    %c0_42 = arith.constant 0 : index
    %55 = vector.load %arg12[%c0_41, %c0_42] : memref<8x128xf32, #tpu.memory_space<vmem>>, vector<8x128xf32>
    tpu.vector_store %arg12[%c0_41, %c0_42], %54 {strides = array<i32>} : memref<8x128xf32, #tpu.memory_space<vmem>>, vector<8x128xf32>,
    %56 = vector.shape_cast %51 : vector<8x1xi1> to vector<8x1xi1>
    %57 = vector.broadcast %56 : vector<8x1xi1> to vector<8x128xi1>
    %58 = arith.select %57, %47, %27 : vector<8x128xi1>, vector<8x128xf32>
    %c0_43 = arith.constant 0 : index
    %c0_44 = arith.constant 0 : index
    %59 = vector.load %arg13[%c0_43, %c0_44] : memref<8x128xf32, #tpu.memory_space<vmem>>, vector<8x128xf32>
    tpu.vector_store %arg13[%c0_43, %c0_44], %58 {strides = array<i32>} : memref<8x128xf32, #tpu.memory_space<vmem>>, vector<8x128xf32>,
    %cst_45 = arith.constant 0.000000e+00 : f32
    %60 = vector.shape_cast %51 : vector<8x1xi1> to vector<8x1xi1>
    %61 = vector.broadcast %60 : vector<8x1xi1> to vector<8x128xi1>
    %62 = vector.broadcast %cst_45 : f32 to vector<8x128xf32>
    %63 = arith.select %61, %49, %62 : vector<8x128xi1>, vector<8x128xf32>
    %64 = arith.index_cast %c0_i32 : i32 to index
    %c0_46 = arith.constant 0 : index
    %c0_47 = arith.constant 0 : index
    %65 = vector.load %arg10[%64, %c0_46, %c0_47] : memref<8x8x128xf32, #tpu.memory_space<vmem>>, vector<1x8x128xf32>
    %66 = vector.shape_cast %65 : vector<1x8x128xf32> to vector<8x128xf32>
    %67 = arith.addf %63, %66 : vector<8x128xf32>
    %c0_48 = arith.constant 0 : index
    %68 = arith.index_cast %c0_i32 : i32 to index
    %c0_49 = arith.constant 0 : index
    %c0_50 = arith.constant 0 : index
    %69 = vector.load %arg9[%c0_48, %68, %c0_49, %c0_50] : memref<2x8x8x128xf32, #tpu.memory_space<vmem>>, vector<1x1x8x128xf32>
    %70 = vector.shape_cast %69 : vector<1x1x8x128xf32> to vector<8x128xf32>
    %71 = vector.shape_cast %67 : vector<8x128xf32> to vector<1x1x8x128xf32>
    tpu.vector_store %arg9[%c0_48, %68, %c0_49, %c0_50], %71 {strides = array<i32>} : memref<2x8x8x128xf32, #tpu.memory_space<vmem>>, vector<1x1x8x128xf32>,
    %c0_51 = arith.constant 0 : index
    %c0_52 = arith.constant 0 : index
    %72 = vector.load %arg14[%c0_51, %c0_52] : memref<8x128xf32, #tpu.memory_space<vmem>>, vector<8x128xf32>
    %c0_53 = arith.constant 0 : index
    %c0_54 = arith.constant 0 : index
    %73 = vector.load %arg15[%c0_53, %c0_54] : memref<8x128xf32, #tpu.memory_space<vmem>>, vector<8x128xf32>
    %74 = arith.index_cast %25 : i32 to index
    %c0_55 = arith.constant 0 : index
    %c512 = arith.constant 512 : index
    %75 = vector.load %arg11[%74, %c0_55, %c512] : memref<8x8x1024xf32, #tpu.memory_space<vmem>>, vector<1x8x512xf32>
    %76 = vector.shape_cast %75 : vector<1x8x512xf32> to vector<8x512xf32>
    %c0_56 = arith.constant 0 : index
    %c0_57 = arith.constant 0 : index
    %77 = vector.load %arg7[%c0_56, %c0_57] : memref<128x512xf32, #tpu.memory_space<vmem>>, vector<128x512xf32>
    %cst_58 = arith.constant dense<0.000000e+00> : vector<8x512xf32>
    %78 = tpu.matmul %72, %77, %cst_58 {dimension_numbers = #tpu.dot_dimension_numbers<[1], [0], [0], [1], [0, 0, 1, 1], [], []>} : vector<8x128xf32>, vector<128x512xf32>, vector<8x512xf32> -> vector<8x512xf32>
    %79 = arith.addf %76, %78 : vector<8x512xf32>
    %80 = vector.extract_strided_slice %79 {offsets = [0, 0], sizes = [8, 384], strides = [1, 1]} : vector<8x512xf32> to vector<8x384xf32>
    %81 = arith.negf %80 : vector<8x384xf32>
    %82 = math.exp %81 : vector<8x384xf32>
    %cst_59 = arith.constant 1.000000e+00 : f32
    %83 = vector.broadcast %cst_59 : f32 to vector<8x384xf32>
    %84 = arith.addf %83, %82 : vector<8x384xf32>
    %85 = arith.divf %83, %84 : vector<8x384xf32>
    %86 = vector.extract_strided_slice %85 {offsets = [0, 0], sizes = [8, 128], strides = [1, 1]} : vector<8x384xf32> to vector<8x128xf32>
    %87 = vector.extract_strided_slice %85 {offsets = [0, 128], sizes = [8, 128], strides = [1, 1]} : vector<8x384xf32> to vector<8x128xf32>
    %88 = vector.extract_strided_slice %85 {offsets = [0, 256], sizes = [8, 128], strides = [1, 1]} : vector<8x384xf32> to vector<8x128xf32>
    %89 = vector.extract_strided_slice %79 {offsets = [0, 384], sizes = [8, 128], strides = [1, 1]} : vector<8x512xf32> to vector<8x128xf32>
    %90 = math.tanh %89 : vector<8x128xf32>
    %91 = arith.mulf %87, %73 : vector<8x128xf32>
    %92 = arith.mulf %86, %90 : vector<8x128xf32>
    %93 = arith.addf %91, %92 : vector<8x128xf32>
    %94 = math.tanh %93 : vector<8x128xf32>
    %95 = arith.mulf %88, %94 : vector<8x128xf32>
    %96 = vector.broadcast %25 : i32 to vector<8x1xi32>
    %97 = arith.cmpi slt, %96, %24 : vector<8x1xi32>
    %98 = vector.shape_cast %97 : vector<8x1xi1> to vector<8x1xi1>
    %99 = vector.broadcast %98 : vector<8x1xi1> to vector<8x128xi1>
    %100 = arith.select %99, %95, %72 : vector<8x128xi1>, vector<8x128xf32>
    %c0_60 = arith.constant 0 : index
    %c0_61 = arith.constant 0 : index
    %101 = vector.load %arg14[%c0_60, %c0_61] : memref<8x128xf32, #tpu.memory_space<vmem>>, vector<8x128xf32>
    tpu.vector_store %arg14[%c0_60, %c0_61], %100 {strides = array<i32>} : memref<8x128xf32, #tpu.memory_space<vmem>>, vector<8x128xf32>,
    %102 = vector.shape_cast %97 : vector<8x1xi1> to vector<8x1xi1>
    %103 = vector.broadcast %102 : vector<8x1xi1> to vector<8x128xi1>
    %104 = arith.select %103, %93, %73 : vector<8x128xi1>, vector<8x128xf32>
    %c0_62 = arith.constant 0 : index
    %c0_63 = arith.constant 0 : index
    %105 = vector.load %arg15[%c0_62, %c0_63] : memref<8x128xf32, #tpu.memory_space<vmem>>, vector<8x128xf32>
    tpu.vector_store %arg15[%c0_62, %c0_63], %104 {strides = array<i32>} : memref<8x128xf32, #tpu.memory_space<vmem>>, vector<8x128xf32>,
    %cst_64 = arith.constant 0.000000e+00 : f32
    %106 = vector.shape_cast %97 : vector<8x1xi1> to vector<8x1xi1>
    %107 = vector.broadcast %106 : vector<8x1xi1> to vector<8x128xi1>
    %108 = vector.broadcast %cst_64 : f32 to vector<8x128xf32>
    %109 = arith.select %107, %95, %108 : vector<8x128xi1>, vector<8x128xf32>
    %110 = arith.index_cast %25 : i32 to index
    %c0_65 = arith.constant 0 : index
    %c0_66 = arith.constant 0 : index
    %111 = vector.load %arg10[%110, %c0_65, %c0_66] : memref<8x8x128xf32, #tpu.memory_space<vmem>>, vector<1x8x128xf32>
    %112 = vector.shape_cast %111 : vector<1x8x128xf32> to vector<8x128xf32>
    %113 = arith.addf %109, %112 : vector<8x128xf32>
    %c1 = arith.constant 1 : index
    %114 = arith.index_cast %25 : i32 to index
    %c0_67 = arith.constant 0 : index
    %c0_68 = arith.constant 0 : index
    %115 = vector.load %arg9[%c1, %114, %c0_67, %c0_68] : memref<2x8x8x128xf32, #tpu.memory_space<vmem>>, vector<1x1x8x128xf32>
    %116 = vector.shape_cast %115 : vector<1x1x8x128xf32> to vector<8x128xf32>
    %117 = vector.shape_cast %113 : vector<8x128xf32> to vector<1x1x8x128xf32>
    tpu.vector_store %arg9[%c1, %114, %c0_67, %c0_68], %117 {strides = array<i32>} : memref<2x8x8x128xf32, #tpu.memory_space<vmem>>, vector<1x1x8x128xf32>,
    %c1_i32 = arith.constant 1 : i32
    %c7_i32_69 = arith.constant 7 : i32
    %118 = arith.subi %c7_i32_69, %c1_i32 : i32
    %c0_70 = arith.constant 0 : index
    %c0_71 = arith.constant 0 : index
    %119 = vector.load %arg12[%c0_70, %c0_71] : memref<8x128xf32, #tpu.memory_space<vmem>>, vector<8x128xf32>
    %c0_72 = arith.constant 0 : index
    %c0_73 = arith.constant 0 : index
    %120 = vector.load %arg13[%c0_72, %c0_73] : memref<8x128xf32, #tpu.memory_space<vmem>>, vector<8x128xf32>
    %121 = arith.index_cast %c1_i32 : i32 to index
    %c0_74 = arith.constant 0 : index
    %c0_75 = arith.constant 0 : index
    %122 = vector.load %arg11[%121, %c0_74, %c0_75] : memref<8x8x1024xf32, #tpu.memory_space<vmem>>, vector<1x8x512xf32>
    %123 = vector.shape_cast %122 : vector<1x8x512xf32> to vector<8x512xf32>
    %c0_76 = arith.constant 0 : index
    %c0_77 = arith.constant 0 : index
    %124 = vector.load %arg6[%c0_76, %c0_77] : memref<128x512xf32, #tpu.memory_space<vmem>>, vector<128x512xf32>
    %cst_78 = arith.constant dense<0.000000e+00> : vector<8x512xf32>
    %125 = tpu.matmul %119, %124, %cst_78 {dimension_numbers = #tpu.dot_dimension_numbers<[1], [0], [0], [1], [0, 0, 1, 1], [], []>} : vector<8x128xf32>, vector<128x512xf32>, vector<8x512xf32> -> vector<8x512xf32>
    %126 = arith.addf %123, %125 : vector<8x512xf32>
    %127 = vector.extract_strided_slice %126 {offsets = [0, 0], sizes = [8, 384], strides = [1, 1]} : vector<8x512xf32> to vector<8x384xf32>
    %128 = arith.negf %127 : vector<8x384xf32>
    %129 = math.exp %128 : vector<8x384xf32>
    %cst_79 = arith.constant 1.000000e+00 : f32
    %130 = vector.broadcast %cst_79 : f32 to vector<8x384xf32>
    %131 = arith.addf %130, %129 : vector<8x384xf32>
    %132 = arith.divf %130, %131 : vector<8x384xf32>
    %133 = vector.extract_strided_slice %132 {offsets = [0, 0], sizes = [8, 128], strides = [1, 1]} : vector<8x384xf32> to vector<8x128xf32>
    %134 = vector.extract_strided_slice %132 {offsets = [0, 128], sizes = [8, 128], strides = [1, 1]} : vector<8x384xf32> to vector<8x128xf32>
    %135 = vector.extract_strided_slice %132 {offsets = [0, 256], sizes = [8, 128], strides = [1, 1]} : vector<8x384xf32> to vector<8x128xf32>
    %136 = vector.extract_strided_slice %126 {offsets = [0, 384], sizes = [8, 128], strides = [1, 1]} : vector<8x512xf32> to vector<8x128xf32>
    %137 = math.tanh %136 : vector<8x128xf32>
    %138 = arith.mulf %134, %120 : vector<8x128xf32>
    %139 = arith.mulf %133, %137 : vector<8x128xf32>
    %140 = arith.addf %138, %139 : vector<8x128xf32>
    %141 = math.tanh %140 : vector<8x128xf32>
    %142 = arith.mulf %135, %141 : vector<8x128xf32>
    %143 = vector.broadcast %c1_i32 : i32 to vector<8x1xi32>
    %144 = arith.cmpi slt, %143, %24 : vector<8x1xi32>
    %145 = vector.shape_cast %144 : vector<8x1xi1> to vector<8x1xi1>
    %146 = vector.broadcast %145 : vector<8x1xi1> to vector<8x128xi1>
    %147 = arith.select %146, %142, %119 : vector<8x128xi1>, vector<8x128xf32>
    %c0_80 = arith.constant 0 : index
    %c0_81 = arith.constant 0 : index
    %148 = vector.load %arg12[%c0_80, %c0_81] : memref<8x128xf32, #tpu.memory_space<vmem>>, vector<8x128xf32>
    tpu.vector_store %arg12[%c0_80, %c0_81], %147 {strides = array<i32>} : memref<8x128xf32, #tpu.memory_space<vmem>>, vector<8x128xf32>,
    %149 = vector.shape_cast %144 : vector<8x1xi1> to vector<8x1xi1>
    %150 = vector.broadcast %149 : vector<8x1xi1> to vector<8x128xi1>
    %151 = arith.select %150, %140, %120 : vector<8x128xi1>, vector<8x128xf32>
    %c0_82 = arith.constant 0 : index
    %c0_83 = arith.constant 0 : index
    %152 = vector.load %arg13[%c0_82, %c0_83] : memref<8x128xf32, #tpu.memory_space<vmem>>, vector<8x128xf32>
    tpu.vector_store %arg13[%c0_82, %c0_83], %151 {strides = array<i32>} : memref<8x128xf32, #tpu.memory_space<vmem>>, vector<8x128xf32>,
    %cst_84 = arith.constant 0.000000e+00 : f32
    %153 = vector.shape_cast %144 : vector<8x1xi1> to vector<8x1xi1>
    %154 = vector.broadcast %153 : vector<8x1xi1> to vector<8x128xi1>
    %155 = vector.broadcast %cst_84 : f32 to vector<8x128xf32>
    %156 = arith.select %154, %142, %155 : vector<8x128xi1>, vector<8x128xf32>
    %157 = arith.index_cast %c1_i32 : i32 to index
    %c0_85 = arith.constant 0 : index
    %c0_86 = arith.constant 0 : index
    %158 = vector.load %arg10[%157, %c0_85, %c0_86] : memref<8x8x128xf32, #tpu.memory_space<vmem>>, vector<1x8x128xf32>
    %159 = vector.shape_cast %158 : vector<1x8x128xf32> to vector<8x128xf32>
    %160 = arith.addf %156, %159 : vector<8x128xf32>
    %c0_87 = arith.constant 0 : index
    %161 = arith.index_cast %c1_i32 : i32 to index
    %c0_88 = arith.constant 0 : index
    %c0_89 = arith.constant 0 : index
    %162 = vector.load %arg9[%c0_87, %161, %c0_88, %c0_89] : memref<2x8x8x128xf32, #tpu.memory_space<vmem>>, vector<1x1x8x128xf32>
    %163 = vector.shape_cast %162 : vector<1x1x8x128xf32> to vector<8x128xf32>
    %164 = vector.shape_cast %160 : vector<8x128xf32> to vector<1x1x8x128xf32>
    tpu.vector_store %arg9[%c0_87, %161, %c0_88, %c0_89], %164 {strides = array<i32>} : memref<2x8x8x128xf32, #tpu.memory_space<vmem>>, vector<1x1x8x128xf32>,
    %c0_90 = arith.constant 0 : index
    %c0_91 = arith.constant 0 : index
    %165 = vector.load %arg14[%c0_90, %c0_91] : memref<8x128xf32, #tpu.memory_space<vmem>>, vector<8x128xf32>
    %c0_92 = arith.constant 0 : index
    %c0_93 = arith.constant 0 : index
    %166 = vector.load %arg15[%c0_92, %c0_93] : memref<8x128xf32, #tpu.memory_space<vmem>>, vector<8x128xf32>
    %167 = arith.index_cast %118 : i32 to index
    %c0_94 = arith.constant 0 : index
    %c512_95 = arith.constant 512 : index
    %168 = vector.load %arg11[%167, %c0_94, %c512_95] : memref<8x8x1024xf32, #tpu.memory_space<vmem>>, vector<1x8x512xf32>
    %169 = vector.shape_cast %168 : vector<1x8x512xf32> to vector<8x512xf32>
    %c0_96 = arith.constant 0 : index
    %c0_97 = arith.constant 0 : index
    %170 = vector.load %arg7[%c0_96, %c0_97] : memref<128x512xf32, #tpu.memory_space<vmem>>, vector<128x512xf32>
    %cst_98 = arith.constant dense<0.000000e+00> : vector<8x512xf32>
    %171 = tpu.matmul %165, %170, %cst_98 {dimension_numbers = #tpu.dot_dimension_numbers<[1], [0], [0], [1], [0, 0, 1, 1], [], []>} : vector<8x128xf32>, vector<128x512xf32>, vector<8x512xf32> -> vector<8x512xf32>
    %172 = arith.addf %169, %171 : vector<8x512xf32>
    %173 = vector.extract_strided_slice %172 {offsets = [0, 0], sizes = [8, 384], strides = [1, 1]} : vector<8x512xf32> to vector<8x384xf32>
    %174 = arith.negf %173 : vector<8x384xf32>
    %175 = math.exp %174 : vector<8x384xf32>
    %cst_99 = arith.constant 1.000000e+00 : f32
    %176 = vector.broadcast %cst_99 : f32 to vector<8x384xf32>
    %177 = arith.addf %176, %175 : vector<8x384xf32>
    %178 = arith.divf %176, %177 : vector<8x384xf32>
    %179 = vector.extract_strided_slice %178 {offsets = [0, 0], sizes = [8, 128], strides = [1, 1]} : vector<8x384xf32> to vector<8x128xf32>
    %180 = vector.extract_strided_slice %178 {offsets = [0, 128], sizes = [8, 128], strides = [1, 1]} : vector<8x384xf32> to vector<8x128xf32>
    %181 = vector.extract_strided_slice %178 {offsets = [0, 256], sizes = [8, 128], strides = [1, 1]} : vector<8x384xf32> to vector<8x128xf32>
    %182 = vector.extract_strided_slice %172 {offsets = [0, 384], sizes = [8, 128], strides = [1, 1]} : vector<8x512xf32> to vector<8x128xf32>
    %183 = math.tanh %182 : vector<8x128xf32>
    %184 = arith.mulf %180, %166 : vector<8x128xf32>
    %185 = arith.mulf %179, %183 : vector<8x128xf32>
    %186 = arith.addf %184, %185 : vector<8x128xf32>
    %187 = math.tanh %186 : vector<8x128xf32>
    %188 = arith.mulf %181, %187 : vector<8x128xf32>
    %189 = vector.broadcast %118 : i32 to vector<8x1xi32>
    %190 = arith.cmpi slt, %189, %24 : vector<8x1xi32>
    %191 = vector.shape_cast %190 : vector<8x1xi1> to vector<8x1xi1>
    %192 = vector.broadcast %191 : vector<8x1xi1> to vector<8x128xi1>
    %193 = arith.select %192, %188, %165 : vector<8x128xi1>, vector<8x128xf32>
    %c0_100 = arith.constant 0 : index
    %c0_101 = arith.constant 0 : index
    %194 = vector.load %arg14[%c0_100, %c0_101] : memref<8x128xf32, #tpu.memory_space<vmem>>, vector<8x128xf32>
    tpu.vector_store %arg14[%c0_100, %c0_101], %193 {strides = array<i32>} : memref<8x128xf32, #tpu.memory_space<vmem>>, vector<8x128xf32>,
    %195 = vector.shape_cast %190 : vector<8x1xi1> to vector<8x1xi1>
    %196 = vector.broadcast %195 : vector<8x1xi1> to vector<8x128xi1>
    %197 = arith.select %196, %186, %166 : vector<8x128xi1>, vector<8x128xf32>
    %c0_102 = arith.constant 0 : index
    %c0_103 = arith.constant 0 : index
    %198 = vector.load %arg15[%c0_102, %c0_103] : memref<8x128xf32, #tpu.memory_space<vmem>>, vector<8x128xf32>
    tpu.vector_store %arg15[%c0_102, %c0_103], %197 {strides = array<i32>} : memref<8x128xf32, #tpu.memory_space<vmem>>, vector<8x128xf32>,
    %cst_104 = arith.constant 0.000000e+00 : f32
    %199 = vector.shape_cast %190 : vector<8x1xi1> to vector<8x1xi1>
    %200 = vector.broadcast %199 : vector<8x1xi1> to vector<8x128xi1>
    %201 = vector.broadcast %cst_104 : f32 to vector<8x128xf32>
    %202 = arith.select %200, %188, %201 : vector<8x128xi1>, vector<8x128xf32>
    %203 = arith.index_cast %118 : i32 to index
    %c0_105 = arith.constant 0 : index
    %c0_106 = arith.constant 0 : index
    %204 = vector.load %arg10[%203, %c0_105, %c0_106] : memref<8x8x128xf32, #tpu.memory_space<vmem>>, vector<1x8x128xf32>
    %205 = vector.shape_cast %204 : vector<1x8x128xf32> to vector<8x128xf32>
    %206 = arith.addf %202, %205 : vector<8x128xf32>
    %c1_107 = arith.constant 1 : index
    %207 = arith.index_cast %118 : i32 to index
    %c0_108 = arith.constant 0 : index
    %c0_109 = arith.constant 0 : index
    %208 = vector.load %arg9[%c1_107, %207, %c0_108, %c0_109] : memref<2x8x8x128xf32, #tpu.memory_space<vmem>>, vector<1x1x8x128xf32>
    %209 = vector.shape_cast %208 : vector<1x1x8x128xf32> to vector<8x128xf32>
    %210 = vector.shape_cast %206 : vector<8x128xf32> to vector<1x1x8x128xf32>
    tpu.vector_store %arg9[%c1_107, %207, %c0_108, %c0_109], %210 {strides = array<i32>} : memref<2x8x8x128xf32, #tpu.memory_space<vmem>>, vector<1x1x8x128xf32>,
    %c2_i32 = arith.constant 2 : i32
    %c7_i32_110 = arith.constant 7 : i32
    %211 = arith.subi %c7_i32_110, %c2_i32 : i32
    %c0_111 = arith.constant 0 : index
    %c0_112 = arith.constant 0 : index
    %212 = vector.load %arg12[%c0_111, %c0_112] : memref<8x128xf32, #tpu.memory_space<vmem>>, vector<8x128xf32>
    %c0_113 = arith.constant 0 : index
    %c0_114 = arith.constant 0 : index
    %213 = vector.load %arg13[%c0_113, %c0_114] : memref<8x128xf32, #tpu.memory_space<vmem>>, vector<8x128xf32>
    %214 = arith.index_cast %c2_i32 : i32 to index
    %c0_115 = arith.constant 0 : index
    %c0_116 = arith.constant 0 : index
    %215 = vector.load %arg11[%214, %c0_115, %c0_116] : memref<8x8x1024xf32, #tpu.memory_space<vmem>>, vector<1x8x512xf32>
    %216 = vector.shape_cast %215 : vector<1x8x512xf32> to vector<8x512xf32>
    %c0_117 = arith.constant 0 : index
    %c0_118 = arith.constant 0 : index
    %217 = vector.load %arg6[%c0_117, %c0_118] : memref<128x512xf32, #tpu.memory_space<vmem>>, vector<128x512xf32>
    %cst_119 = arith.constant dense<0.000000e+00> : vector<8x512xf32>
    %218 = tpu.matmul %212, %217, %cst_119 {dimension_numbers = #tpu.dot_dimension_numbers<[1], [0], [0], [1], [0, 0, 1, 1], [], []>} : vector<8x128xf32>, vector<128x512xf32>, vector<8x512xf32> -> vector<8x512xf32>
    %219 = arith.addf %216, %218 : vector<8x512xf32>
    %220 = vector.extract_strided_slice %219 {offsets = [0, 0], sizes = [8, 384], strides = [1, 1]} : vector<8x512xf32> to vector<8x384xf32>
    %221 = arith.negf %220 : vector<8x384xf32>
    %222 = math.exp %221 : vector<8x384xf32>
    %cst_120 = arith.constant 1.000000e+00 : f32
    %223 = vector.broadcast %cst_120 : f32 to vector<8x384xf32>
    %224 = arith.addf %223, %222 : vector<8x384xf32>
    %225 = arith.divf %223, %224 : vector<8x384xf32>
    %226 = vector.extract_strided_slice %225 {offsets = [0, 0], sizes = [8, 128], strides = [1, 1]} : vector<8x384xf32> to vector<8x128xf32>
    %227 = vector.extract_strided_slice %225 {offsets = [0, 128], sizes = [8, 128], strides = [1, 1]} : vector<8x384xf32> to vector<8x128xf32>
    %228 = vector.extract_strided_slice %225 {offsets = [0, 256], sizes = [8, 128], strides = [1, 1]} : vector<8x384xf32> to vector<8x128xf32>
    %229 = vector.extract_strided_slice %219 {offsets = [0, 384], sizes = [8, 128], strides = [1, 1]} : vector<8x512xf32> to vector<8x128xf32>
    %230 = math.tanh %229 : vector<8x128xf32>
    %231 = arith.mulf %227, %213 : vector<8x128xf32>
    %232 = arith.mulf %226, %230 : vector<8x128xf32>
    %233 = arith.addf %231, %232 : vector<8x128xf32>
    %234 = math.tanh %233 : vector<8x128xf32>
    %235 = arith.mulf %228, %234 : vector<8x128xf32>
    %236 = vector.broadcast %c2_i32 : i32 to vector<8x1xi32>
    %237 = arith.cmpi slt, %236, %24 : vector<8x1xi32>
    %238 = vector.shape_cast %237 : vector<8x1xi1> to vector<8x1xi1>
    %239 = vector.broadcast %238 : vector<8x1xi1> to vector<8x128xi1>
    %240 = arith.select %239, %235, %212 : vector<8x128xi1>, vector<8x128xf32>
    %c0_121 = arith.constant 0 : index
    %c0_122 = arith.constant 0 : index
    %241 = vector.load %arg12[%c0_121, %c0_122] : memref<8x128xf32, #tpu.memory_space<vmem>>, vector<8x128xf32>
    tpu.vector_store %arg12[%c0_121, %c0_122], %240 {strides = array<i32>} : memref<8x128xf32, #tpu.memory_space<vmem>>, vector<8x128xf32>,
    %242 = vector.shape_cast %237 : vector<8x1xi1> to vector<8x1xi1>
    %243 = vector.broadcast %242 : vector<8x1xi1> to vector<8x128xi1>
    %244 = arith.select %243, %233, %213 : vector<8x128xi1>, vector<8x128xf32>
    %c0_123 = arith.constant 0 : index
    %c0_124 = arith.constant 0 : index
    %245 = vector.load %arg13[%c0_123, %c0_124] : memref<8x128xf32, #tpu.memory_space<vmem>>, vector<8x128xf32>
    tpu.vector_store %arg13[%c0_123, %c0_124], %244 {strides = array<i32>} : memref<8x128xf32, #tpu.memory_space<vmem>>, vector<8x128xf32>,
    %cst_125 = arith.constant 0.000000e+00 : f32
    %246 = vector.shape_cast %237 : vector<8x1xi1> to vector<8x1xi1>
    %247 = vector.broadcast %246 : vector<8x1xi1> to vector<8x128xi1>
    %248 = vector.broadcast %cst_125 : f32 to vector<8x128xf32>
    %249 = arith.select %247, %235, %248 : vector<8x128xi1>, vector<8x128xf32>
    %250 = arith.index_cast %c2_i32 : i32 to index
    %c0_126 = arith.constant 0 : index
    %c0_127 = arith.constant 0 : index
    %251 = vector.load %arg10[%250, %c0_126, %c0_127] : memref<8x8x128xf32, #tpu.memory_space<vmem>>, vector<1x8x128xf32>
    %252 = vector.shape_cast %251 : vector<1x8x128xf32> to vector<8x128xf32>
    %253 = arith.addf %249, %252 : vector<8x128xf32>
    %c0_128 = arith.constant 0 : index
    %254 = arith.index_cast %c2_i32 : i32 to index
    %c0_129 = arith.constant 0 : index
    %c0_130 = arith.constant 0 : index
    %255 = vector.load %arg9[%c0_128, %254, %c0_129, %c0_130] : memref<2x8x8x128xf32, #tpu.memory_space<vmem>>, vector<1x1x8x128xf32>
    %256 = vector.shape_cast %255 : vector<1x1x8x128xf32> to vector<8x128xf32>
    %257 = vector.shape_cast %253 : vector<8x128xf32> to vector<1x1x8x128xf32>
    tpu.vector_store %arg9[%c0_128, %254, %c0_129, %c0_130], %257 {strides = array<i32>} : memref<2x8x8x128xf32, #tpu.memory_space<vmem>>, vector<1x1x8x128xf32>,
    %c0_131 = arith.constant 0 : index
    %c0_132 = arith.constant 0 : index
    %258 = vector.load %arg14[%c0_131, %c0_132] : memref<8x128xf32, #tpu.memory_space<vmem>>, vector<8x128xf32>
    %c0_133 = arith.constant 0 : index
    %c0_134 = arith.constant 0 : index
    %259 = vector.load %arg15[%c0_133, %c0_134] : memref<8x128xf32, #tpu.memory_space<vmem>>, vector<8x128xf32>
    %260 = arith.index_cast %211 : i32 to index
    %c0_135 = arith.constant 0 : index
    %c512_136 = arith.constant 512 : index
    %261 = vector.load %arg11[%260, %c0_135, %c512_136] : memref<8x8x1024xf32, #tpu.memory_space<vmem>>, vector<1x8x512xf32>
    %262 = vector.shape_cast %261 : vector<1x8x512xf32> to vector<8x512xf32>
    %c0_137 = arith.constant 0 : index
    %c0_138 = arith.constant 0 : index
    %263 = vector.load %arg7[%c0_137, %c0_138] : memref<128x512xf32, #tpu.memory_space<vmem>>, vector<128x512xf32>
    %cst_139 = arith.constant dense<0.000000e+00> : vector<8x512xf32>
    %264 = tpu.matmul %258, %263, %cst_139 {dimension_numbers = #tpu.dot_dimension_numbers<[1], [0], [0], [1], [0, 0, 1, 1], [], []>} : vector<8x128xf32>, vector<128x512xf32>, vector<8x512xf32> -> vector<8x512xf32>
    %265 = arith.addf %262, %264 : vector<8x512xf32>
    %266 = vector.extract_strided_slice %265 {offsets = [0, 0], sizes = [8, 384], strides = [1, 1]} : vector<8x512xf32> to vector<8x384xf32>
    %267 = arith.negf %266 : vector<8x384xf32>
    %268 = math.exp %267 : vector<8x384xf32>
    %cst_140 = arith.constant 1.000000e+00 : f32
    %269 = vector.broadcast %cst_140 : f32 to vector<8x384xf32>
    %270 = arith.addf %269, %268 : vector<8x384xf32>
    %271 = arith.divf %269, %270 : vector<8x384xf32>
    %272 = vector.extract_strided_slice %271 {offsets = [0, 0], sizes = [8, 128], strides = [1, 1]} : vector<8x384xf32> to vector<8x128xf32>
    %273 = vector.extract_strided_slice %271 {offsets = [0, 128], sizes = [8, 128], strides = [1, 1]} : vector<8x384xf32> to vector<8x128xf32>
    %274 = vector.extract_strided_slice %271 {offsets = [0, 256], sizes = [8, 128], strides = [1, 1]} : vector<8x384xf32> to vector<8x128xf32>
    %275 = vector.extract_strided_slice %265 {offsets = [0, 384], sizes = [8, 128], strides = [1, 1]} : vector<8x512xf32> to vector<8x128xf32>
    %276 = math.tanh %275 : vector<8x128xf32>
    %277 = arith.mulf %273, %259 : vector<8x128xf32>
    %278 = arith.mulf %272, %276 : vector<8x128xf32>
    %279 = arith.addf %277, %278 : vector<8x128xf32>
    %280 = math.tanh %279 : vector<8x128xf32>
    %281 = arith.mulf %274, %280 : vector<8x128xf32>
    %282 = vector.broadcast %211 : i32 to vector<8x1xi32>
    %283 = arith.cmpi slt, %282, %24 : vector<8x1xi32>
    %284 = vector.shape_cast %283 : vector<8x1xi1> to vector<8x1xi1>
    %285 = vector.broadcast %284 : vector<8x1xi1> to vector<8x128xi1>
    %286 = arith.select %285, %281, %258 : vector<8x128xi1>, vector<8x128xf32>
    %c0_141 = arith.constant 0 : index
    %c0_142 = arith.constant 0 : index
    %287 = vector.load %arg14[%c0_141, %c0_142] : memref<8x128xf32, #tpu.memory_space<vmem>>, vector<8x128xf32>
    tpu.vector_store %arg14[%c0_141, %c0_142], %286 {strides = array<i32>} : memref<8x128xf32, #tpu.memory_space<vmem>>, vector<8x128xf32>,
    %288 = vector.shape_cast %283 : vector<8x1xi1> to vector<8x1xi1>
    %289 = vector.broadcast %288 : vector<8x1xi1> to vector<8x128xi1>
    %290 = arith.select %289, %279, %259 : vector<8x128xi1>, vector<8x128xf32>
    %c0_143 = arith.constant 0 : index
    %c0_144 = arith.constant 0 : index
    %291 = vector.load %arg15[%c0_143, %c0_144] : memref<8x128xf32, #tpu.memory_space<vmem>>, vector<8x128xf32>
    tpu.vector_store %arg15[%c0_143, %c0_144], %290 {strides = array<i32>} : memref<8x128xf32, #tpu.memory_space<vmem>>, vector<8x128xf32>,
    %cst_145 = arith.constant 0.000000e+00 : f32
    %292 = vector.shape_cast %283 : vector<8x1xi1> to vector<8x1xi1>
    %293 = vector.broadcast %292 : vector<8x1xi1> to vector<8x128xi1>
    %294 = vector.broadcast %cst_145 : f32 to vector<8x128xf32>
    %295 = arith.select %293, %281, %294 : vector<8x128xi1>, vector<8x128xf32>
    %296 = arith.index_cast %211 : i32 to index
    %c0_146 = arith.constant 0 : index
    %c0_147 = arith.constant 0 : index
    %297 = vector.load %arg10[%296, %c0_146, %c0_147] : memref<8x8x128xf32, #tpu.memory_space<vmem>>, vector<1x8x128xf32>
    %298 = vector.shape_cast %297 : vector<1x8x128xf32> to vector<8x128xf32>
    %299 = arith.addf %295, %298 : vector<8x128xf32>
    %c1_148 = arith.constant 1 : index
    %300 = arith.index_cast %211 : i32 to index
    %c0_149 = arith.constant 0 : index
    %c0_150 = arith.constant 0 : index
    %301 = vector.load %arg9[%c1_148, %300, %c0_149, %c0_150] : memref<2x8x8x128xf32, #tpu.memory_space<vmem>>, vector<1x1x8x128xf32>
    %302 = vector.shape_cast %301 : vector<1x1x8x128xf32> to vector<8x128xf32>
    %303 = vector.shape_cast %299 : vector<8x128xf32> to vector<1x1x8x128xf32>
    tpu.vector_store %arg9[%c1_148, %300, %c0_149, %c0_150], %303 {strides = array<i32>} : memref<2x8x8x128xf32, #tpu.memory_space<vmem>>, vector<1x1x8x128xf32>,
    %c3_i32 = arith.constant 3 : i32
    %c7_i32_151 = arith.constant 7 : i32
    %304 = arith.subi %c7_i32_151, %c3_i32 : i32
    %c0_152 = arith.constant 0 : index
    %c0_153 = arith.constant 0 : index
    %305 = vector.load %arg12[%c0_152, %c0_153] : memref<8x128xf32, #tpu.memory_space<vmem>>, vector<8x128xf32>
    %c0_154 = arith.constant 0 : index
    %c0_155 = arith.constant 0 : index
    %306 = vector.load %arg13[%c0_154, %c0_155] : memref<8x128xf32, #tpu.memory_space<vmem>>, vector<8x128xf32>
    %307 = arith.index_cast %c3_i32 : i32 to index
    %c0_156 = arith.constant 0 : index
    %c0_157 = arith.constant 0 : index
    %308 = vector.load %arg11[%307, %c0_156, %c0_157] : memref<8x8x1024xf32, #tpu.memory_space<vmem>>, vector<1x8x512xf32>
    %309 = vector.shape_cast %308 : vector<1x8x512xf32> to vector<8x512xf32>
    %c0_158 = arith.constant 0 : index
    %c0_159 = arith.constant 0 : index
    %310 = vector.load %arg6[%c0_158, %c0_159] : memref<128x512xf32, #tpu.memory_space<vmem>>, vector<128x512xf32>
    %cst_160 = arith.constant dense<0.000000e+00> : vector<8x512xf32>
    %311 = tpu.matmul %305, %310, %cst_160 {dimension_numbers = #tpu.dot_dimension_numbers<[1], [0], [0], [1], [0, 0, 1, 1], [], []>} : vector<8x128xf32>, vector<128x512xf32>, vector<8x512xf32> -> vector<8x512xf32>
    %312 = arith.addf %309, %311 : vector<8x512xf32>
    %313 = vector.extract_strided_slice %312 {offsets = [0, 0], sizes = [8, 384], strides = [1, 1]} : vector<8x512xf32> to vector<8x384xf32>
    %314 = arith.negf %313 : vector<8x384xf32>
    %315 = math.exp %314 : vector<8x384xf32>
    %cst_161 = arith.constant 1.000000e+00 : f32
    %316 = vector.broadcast %cst_161 : f32 to vector<8x384xf32>
    %317 = arith.addf %316, %315 : vector<8x384xf32>
    %318 = arith.divf %316, %317 : vector<8x384xf32>
    %319 = vector.extract_strided_slice %318 {offsets = [0, 0], sizes = [8, 128], strides = [1, 1]} : vector<8x384xf32> to vector<8x128xf32>
    %320 = vector.extract_strided_slice %318 {offsets = [0, 128], sizes = [8, 128], strides = [1, 1]} : vector<8x384xf32> to vector<8x128xf32>
    %321 = vector.extract_strided_slice %318 {offsets = [0, 256], sizes = [8, 128], strides = [1, 1]} : vector<8x384xf32> to vector<8x128xf32>
    %322 = vector.extract_strided_slice %312 {offsets = [0, 384], sizes = [8, 128], strides = [1, 1]} : vector<8x512xf32> to vector<8x128xf32>
    %323 = math.tanh %322 : vector<8x128xf32>
    %324 = arith.mulf %320, %306 : vector<8x128xf32>
    %325 = arith.mulf %319, %323 : vector<8x128xf32>
    %326 = arith.addf %324, %325 : vector<8x128xf32>
    %327 = math.tanh %326 : vector<8x128xf32>
    %328 = arith.mulf %321, %327 : vector<8x128xf32>
    %329 = vector.broadcast %c3_i32 : i32 to vector<8x1xi32>
    %330 = arith.cmpi slt, %329, %24 : vector<8x1xi32>
    %331 = vector.shape_cast %330 : vector<8x1xi1> to vector<8x1xi1>
    %332 = vector.broadcast %331 : vector<8x1xi1> to vector<8x128xi1>
    %333 = arith.select %332, %328, %305 : vector<8x128xi1>, vector<8x128xf32>
    %c0_162 = arith.constant 0 : index
    %c0_163 = arith.constant 0 : index
    %334 = vector.load %arg12[%c0_162, %c0_163] : memref<8x128xf32, #tpu.memory_space<vmem>>, vector<8x128xf32>
    tpu.vector_store %arg12[%c0_162, %c0_163], %333 {strides = array<i32>} : memref<8x128xf32, #tpu.memory_space<vmem>>, vector<8x128xf32>,
    %335 = vector.shape_cast %330 : vector<8x1xi1> to vector<8x1xi1>
    %336 = vector.broadcast %335 : vector<8x1xi1> to vector<8x128xi1>
    %337 = arith.select %336, %326, %306 : vector<8x128xi1>, vector<8x128xf32>
    %c0_164 = arith.constant 0 : index
    %c0_165 = arith.constant 0 : index
    %338 = vector.load %arg13[%c0_164, %c0_165] : memref<8x128xf32, #tpu.memory_space<vmem>>, vector<8x128xf32>
    tpu.vector_store %arg13[%c0_164, %c0_165], %337 {strides = array<i32>} : memref<8x128xf32, #tpu.memory_space<vmem>>, vector<8x128xf32>,
    %cst_166 = arith.constant 0.000000e+00 : f32
    %339 = vector.shape_cast %330 : vector<8x1xi1> to vector<8x1xi1>
    %340 = vector.broadcast %339 : vector<8x1xi1> to vector<8x128xi1>
    %341 = vector.broadcast %cst_166 : f32 to vector<8x128xf32>
    %342 = arith.select %340, %328, %341 : vector<8x128xi1>, vector<8x128xf32>
    %343 = arith.index_cast %c3_i32 : i32 to index
    %c0_167 = arith.constant 0 : index
    %c0_168 = arith.constant 0 : index
    %344 = vector.load %arg10[%343, %c0_167, %c0_168] : memref<8x8x128xf32, #tpu.memory_space<vmem>>, vector<1x8x128xf32>
    %345 = vector.shape_cast %344 : vector<1x8x128xf32> to vector<8x128xf32>
    %346 = arith.addf %342, %345 : vector<8x128xf32>
    %c0_169 = arith.constant 0 : index
    %347 = arith.index_cast %c3_i32 : i32 to index
    %c0_170 = arith.constant 0 : index
    %c0_171 = arith.constant 0 : index
    %348 = vector.load %arg9[%c0_169, %347, %c0_170, %c0_171] : memref<2x8x8x128xf32, #tpu.memory_space<vmem>>, vector<1x1x8x128xf32>
    %349 = vector.shape_cast %348 : vector<1x1x8x128xf32> to vector<8x128xf32>
    %350 = vector.shape_cast %346 : vector<8x128xf32> to vector<1x1x8x128xf32>
    tpu.vector_store %arg9[%c0_169, %347, %c0_170, %c0_171], %350 {strides = array<i32>} : memref<2x8x8x128xf32, #tpu.memory_space<vmem>>, vector<1x1x8x128xf32>,
    %c0_172 = arith.constant 0 : index
    %c0_173 = arith.constant 0 : index
    %351 = vector.load %arg14[%c0_172, %c0_173] : memref<8x128xf32, #tpu.memory_space<vmem>>, vector<8x128xf32>
    %c0_174 = arith.constant 0 : index
    %c0_175 = arith.constant 0 : index
    %352 = vector.load %arg15[%c0_174, %c0_175] : memref<8x128xf32, #tpu.memory_space<vmem>>, vector<8x128xf32>
    %353 = arith.index_cast %304 : i32 to index
    %c0_176 = arith.constant 0 : index
    %c512_177 = arith.constant 512 : index
    %354 = vector.load %arg11[%353, %c0_176, %c512_177] : memref<8x8x1024xf32, #tpu.memory_space<vmem>>, vector<1x8x512xf32>
    %355 = vector.shape_cast %354 : vector<1x8x512xf32> to vector<8x512xf32>
    %c0_178 = arith.constant 0 : index
    %c0_179 = arith.constant 0 : index
    %356 = vector.load %arg7[%c0_178, %c0_179] : memref<128x512xf32, #tpu.memory_space<vmem>>, vector<128x512xf32>
    %cst_180 = arith.constant dense<0.000000e+00> : vector<8x512xf32>
    %357 = tpu.matmul %351, %356, %cst_180 {dimension_numbers = #tpu.dot_dimension_numbers<[1], [0], [0], [1], [0, 0, 1, 1], [], []>} : vector<8x128xf32>, vector<128x512xf32>, vector<8x512xf32> -> vector<8x512xf32>
    %358 = arith.addf %355, %357 : vector<8x512xf32>
    %359 = vector.extract_strided_slice %358 {offsets = [0, 0], sizes = [8, 384], strides = [1, 1]} : vector<8x512xf32> to vector<8x384xf32>
    %360 = arith.negf %359 : vector<8x384xf32>
    %361 = math.exp %360 : vector<8x384xf32>
    %cst_181 = arith.constant 1.000000e+00 : f32
    %362 = vector.broadcast %cst_181 : f32 to vector<8x384xf32>
    %363 = arith.addf %362, %361 : vector<8x384xf32>
    %364 = arith.divf %362, %363 : vector<8x384xf32>
    %365 = vector.extract_strided_slice %364 {offsets = [0, 0], sizes = [8, 128], strides = [1, 1]} : vector<8x384xf32> to vector<8x128xf32>
    %366 = vector.extract_strided_slice %364 {offsets = [0, 128], sizes = [8, 128], strides = [1, 1]} : vector<8x384xf32> to vector<8x128xf32>
    %367 = vector.extract_strided_slice %364 {offsets = [0, 256], sizes = [8, 128], strides = [1, 1]} : vector<8x384xf32> to vector<8x128xf32>
    %368 = vector.extract_strided_slice %358 {offsets = [0, 384], sizes = [8, 128], strides = [1, 1]} : vector<8x512xf32> to vector<8x128xf32>
    %369 = math.tanh %368 : vector<8x128xf32>
    %370 = arith.mulf %366, %352 : vector<8x128xf32>
    %371 = arith.mulf %365, %369 : vector<8x128xf32>
    %372 = arith.addf %370, %371 : vector<8x128xf32>
    %373 = math.tanh %372 : vector<8x128xf32>
    %374 = arith.mulf %367, %373 : vector<8x128xf32>
    %375 = vector.broadcast %304 : i32 to vector<8x1xi32>
    %376 = arith.cmpi slt, %375, %24 : vector<8x1xi32>
    %377 = vector.shape_cast %376 : vector<8x1xi1> to vector<8x1xi1>
    %378 = vector.broadcast %377 : vector<8x1xi1> to vector<8x128xi1>
    %379 = arith.select %378, %374, %351 : vector<8x128xi1>, vector<8x128xf32>
    %c0_182 = arith.constant 0 : index
    %c0_183 = arith.constant 0 : index
    %380 = vector.load %arg14[%c0_182, %c0_183] : memref<8x128xf32, #tpu.memory_space<vmem>>, vector<8x128xf32>
    tpu.vector_store %arg14[%c0_182, %c0_183], %379 {strides = array<i32>} : memref<8x128xf32, #tpu.memory_space<vmem>>, vector<8x128xf32>,
    %381 = vector.shape_cast %376 : vector<8x1xi1> to vector<8x1xi1>
    %382 = vector.broadcast %381 : vector<8x1xi1> to vector<8x128xi1>
    %383 = arith.select %382, %372, %352 : vector<8x128xi1>, vector<8x128xf32>
    %c0_184 = arith.constant 0 : index
    %c0_185 = arith.constant 0 : index
    %384 = vector.load %arg15[%c0_184, %c0_185] : memref<8x128xf32, #tpu.memory_space<vmem>>, vector<8x128xf32>
    tpu.vector_store %arg15[%c0_184, %c0_185], %383 {strides = array<i32>} : memref<8x128xf32, #tpu.memory_space<vmem>>, vector<8x128xf32>,
    %cst_186 = arith.constant 0.000000e+00 : f32
    %385 = vector.shape_cast %376 : vector<8x1xi1> to vector<8x1xi1>
    %386 = vector.broadcast %385 : vector<8x1xi1> to vector<8x128xi1>
    %387 = vector.broadcast %cst_186 : f32 to vector<8x128xf32>
    %388 = arith.select %386, %374, %387 : vector<8x128xi1>, vector<8x128xf32>
    %389 = arith.index_cast %304 : i32 to index
    %c0_187 = arith.constant 0 : index
    %c0_188 = arith.constant 0 : index
    %390 = vector.load %arg10[%389, %c0_187, %c0_188] : memref<8x8x128xf32, #tpu.memory_space<vmem>>, vector<1x8x128xf32>
    %391 = vector.shape_cast %390 : vector<1x8x128xf32> to vector<8x128xf32>
    %392 = arith.addf %388, %391 : vector<8x128xf32>
    %c1_189 = arith.constant 1 : index
    %393 = arith.index_cast %304 : i32 to index
    %c0_190 = arith.constant 0 : index
    %c0_191 = arith.constant 0 : index
    %394 = vector.load %arg9[%c1_189, %393, %c0_190, %c0_191] : memref<2x8x8x128xf32, #tpu.memory_space<vmem>>, vector<1x1x8x128xf32>
    %395 = vector.shape_cast %394 : vector<1x1x8x128xf32> to vector<8x128xf32>
    %396 = vector.shape_cast %392 : vector<8x128xf32> to vector<1x1x8x128xf32>
    tpu.vector_store %arg9[%c1_189, %393, %c0_190, %c0_191], %396 {strides = array<i32>} : memref<2x8x8x128xf32, #tpu.memory_space<vmem>>, vector<1x1x8x128xf32>,
    %c4_i32 = arith.constant 4 : i32
    %c7_i32_192 = arith.constant 7 : i32
    %397 = arith.subi %c7_i32_192, %c4_i32 : i32
    %c0_193 = arith.constant 0 : index
    %c0_194 = arith.constant 0 : index
    %398 = vector.load %arg12[%c0_193, %c0_194] : memref<8x128xf32, #tpu.memory_space<vmem>>, vector<8x128xf32>
    %c0_195 = arith.constant 0 : index
    %c0_196 = arith.constant 0 : index
    %399 = vector.load %arg13[%c0_195, %c0_196] : memref<8x128xf32, #tpu.memory_space<vmem>>, vector<8x128xf32>
    %400 = arith.index_cast %c4_i32 : i32 to index
    %c0_197 = arith.constant 0 : index
    %c0_198 = arith.constant 0 : index
    %401 = vector.load %arg11[%400, %c0_197, %c0_198] : memref<8x8x1024xf32, #tpu.memory_space<vmem>>, vector<1x8x512xf32>
    %402 = vector.shape_cast %401 : vector<1x8x512xf32> to vector<8x512xf32>
    %c0_199 = arith.constant 0 : index
    %c0_200 = arith.constant 0 : index
    %403 = vector.load %arg6[%c0_199, %c0_200] : memref<128x512xf32, #tpu.memory_space<vmem>>, vector<128x512xf32>
    %cst_201 = arith.constant dense<0.000000e+00> : vector<8x512xf32>
    %404 = tpu.matmul %398, %403, %cst_201 {dimension_numbers = #tpu.dot_dimension_numbers<[1], [0], [0], [1], [0, 0, 1, 1], [], []>} : vector<8x128xf32>, vector<128x512xf32>, vector<8x512xf32> -> vector<8x512xf32>
    %405 = arith.addf %402, %404 : vector<8x512xf32>
    %406 = vector.extract_strided_slice %405 {offsets = [0, 0], sizes = [8, 384], strides = [1, 1]} : vector<8x512xf32> to vector<8x384xf32>
    %407 = arith.negf %406 : vector<8x384xf32>
    %408 = math.exp %407 : vector<8x384xf32>
    %cst_202 = arith.constant 1.000000e+00 : f32
    %409 = vector.broadcast %cst_202 : f32 to vector<8x384xf32>
    %410 = arith.addf %409, %408 : vector<8x384xf32>
    %411 = arith.divf %409, %410 : vector<8x384xf32>
    %412 = vector.extract_strided_slice %411 {offsets = [0, 0], sizes = [8, 128], strides = [1, 1]} : vector<8x384xf32> to vector<8x128xf32>
    %413 = vector.extract_strided_slice %411 {offsets = [0, 128], sizes = [8, 128], strides = [1, 1]} : vector<8x384xf32> to vector<8x128xf32>
    %414 = vector.extract_strided_slice %411 {offsets = [0, 256], sizes = [8, 128], strides = [1, 1]} : vector<8x384xf32> to vector<8x128xf32>
    %415 = vector.extract_strided_slice %405 {offsets = [0, 384], sizes = [8, 128], strides = [1, 1]} : vector<8x512xf32> to vector<8x128xf32>
    %416 = math.tanh %415 : vector<8x128xf32>
    %417 = arith.mulf %413, %399 : vector<8x128xf32>
    %418 = arith.mulf %412, %416 : vector<8x128xf32>
    %419 = arith.addf %417, %418 : vector<8x128xf32>
    %420 = math.tanh %419 : vector<8x128xf32>
    %421 = arith.mulf %414, %420 : vector<8x128xf32>
    %422 = vector.broadcast %c4_i32 : i32 to vector<8x1xi32>
    %423 = arith.cmpi slt, %422, %24 : vector<8x1xi32>
    %424 = vector.shape_cast %423 : vector<8x1xi1> to vector<8x1xi1>
    %425 = vector.broadcast %424 : vector<8x1xi1> to vector<8x128xi1>
    %426 = arith.select %425, %421, %398 : vector<8x128xi1>, vector<8x128xf32>
    %c0_203 = arith.constant 0 : index
    %c0_204 = arith.constant 0 : index
    %427 = vector.load %arg12[%c0_203, %c0_204] : memref<8x128xf32, #tpu.memory_space<vmem>>, vector<8x128xf32>
    tpu.vector_store %arg12[%c0_203, %c0_204], %426 {strides = array<i32>} : memref<8x128xf32, #tpu.memory_space<vmem>>, vector<8x128xf32>,
    %428 = vector.shape_cast %423 : vector<8x1xi1> to vector<8x1xi1>
    %429 = vector.broadcast %428 : vector<8x1xi1> to vector<8x128xi1>
    %430 = arith.select %429, %419, %399 : vector<8x128xi1>, vector<8x128xf32>
    %c0_205 = arith.constant 0 : index
    %c0_206 = arith.constant 0 : index
    %431 = vector.load %arg13[%c0_205, %c0_206] : memref<8x128xf32, #tpu.memory_space<vmem>>, vector<8x128xf32>
    tpu.vector_store %arg13[%c0_205, %c0_206], %430 {strides = array<i32>} : memref<8x128xf32, #tpu.memory_space<vmem>>, vector<8x128xf32>,
    %cst_207 = arith.constant 0.000000e+00 : f32
    %432 = vector.shape_cast %423 : vector<8x1xi1> to vector<8x1xi1>
    %433 = vector.broadcast %432 : vector<8x1xi1> to vector<8x128xi1>
    %434 = vector.broadcast %cst_207 : f32 to vector<8x128xf32>
    %435 = arith.select %433, %421, %434 : vector<8x128xi1>, vector<8x128xf32>
    %436 = arith.index_cast %c4_i32 : i32 to index
    %c0_208 = arith.constant 0 : index
    %c0_209 = arith.constant 0 : index
    %437 = vector.load %arg10[%436, %c0_208, %c0_209] : memref<8x8x128xf32, #tpu.memory_space<vmem>>, vector<1x8x128xf32>
    %438 = vector.shape_cast %437 : vector<1x8x128xf32> to vector<8x128xf32>
    %439 = arith.addf %435, %438 : vector<8x128xf32>
    %c0_210 = arith.constant 0 : index
    %440 = arith.index_cast %c4_i32 : i32 to index
    %c0_211 = arith.constant 0 : index
    %c0_212 = arith.constant 0 : index
    %441 = vector.load %arg9[%c0_210, %440, %c0_211, %c0_212] : memref<2x8x8x128xf32, #tpu.memory_space<vmem>>, vector<1x1x8x128xf32>
    %442 = vector.shape_cast %441 : vector<1x1x8x128xf32> to vector<8x128xf32>
    %443 = vector.shape_cast %439 : vector<8x128xf32> to vector<1x1x8x128xf32>
    tpu.vector_store %arg9[%c0_210, %440, %c0_211, %c0_212], %443 {strides = array<i32>} : memref<2x8x8x128xf32, #tpu.memory_space<vmem>>, vector<1x1x8x128xf32>,
    %c0_213 = arith.constant 0 : index
    %c0_214 = arith.constant 0 : index
    %444 = vector.load %arg14[%c0_213, %c0_214] : memref<8x128xf32, #tpu.memory_space<vmem>>, vector<8x128xf32>
    %c0_215 = arith.constant 0 : index
    %c0_216 = arith.constant 0 : index
    %445 = vector.load %arg15[%c0_215, %c0_216] : memref<8x128xf32, #tpu.memory_space<vmem>>, vector<8x128xf32>
    %446 = arith.index_cast %397 : i32 to index
    %c0_217 = arith.constant 0 : index
    %c512_218 = arith.constant 512 : index
    %447 = vector.load %arg11[%446, %c0_217, %c512_218] : memref<8x8x1024xf32, #tpu.memory_space<vmem>>, vector<1x8x512xf32>
    %448 = vector.shape_cast %447 : vector<1x8x512xf32> to vector<8x512xf32>
    %c0_219 = arith.constant 0 : index
    %c0_220 = arith.constant 0 : index
    %449 = vector.load %arg7[%c0_219, %c0_220] : memref<128x512xf32, #tpu.memory_space<vmem>>, vector<128x512xf32>
    %cst_221 = arith.constant dense<0.000000e+00> : vector<8x512xf32>
    %450 = tpu.matmul %444, %449, %cst_221 {dimension_numbers = #tpu.dot_dimension_numbers<[1], [0], [0], [1], [0, 0, 1, 1], [], []>} : vector<8x128xf32>, vector<128x512xf32>, vector<8x512xf32> -> vector<8x512xf32>
    %451 = arith.addf %448, %450 : vector<8x512xf32>
    %452 = vector.extract_strided_slice %451 {offsets = [0, 0], sizes = [8, 384], strides = [1, 1]} : vector<8x512xf32> to vector<8x384xf32>
    %453 = arith.negf %452 : vector<8x384xf32>
    %454 = math.exp %453 : vector<8x384xf32>
    %cst_222 = arith.constant 1.000000e+00 : f32
    %455 = vector.broadcast %cst_222 : f32 to vector<8x384xf32>
    %456 = arith.addf %455, %454 : vector<8x384xf32>
    %457 = arith.divf %455, %456 : vector<8x384xf32>
    %458 = vector.extract_strided_slice %457 {offsets = [0, 0], sizes = [8, 128], strides = [1, 1]} : vector<8x384xf32> to vector<8x128xf32>
    %459 = vector.extract_strided_slice %457 {offsets = [0, 128], sizes = [8, 128], strides = [1, 1]} : vector<8x384xf32> to vector<8x128xf32>
    %460 = vector.extract_strided_slice %457 {offsets = [0, 256], sizes = [8, 128], strides = [1, 1]} : vector<8x384xf32> to vector<8x128xf32>
    %461 = vector.extract_strided_slice %451 {offsets = [0, 384], sizes = [8, 128], strides = [1, 1]} : vector<8x512xf32> to vector<8x128xf32>
    %462 = math.tanh %461 : vector<8x128xf32>
    %463 = arith.mulf %459, %445 : vector<8x128xf32>
    %464 = arith.mulf %458, %462 : vector<8x128xf32>
    %465 = arith.addf %463, %464 : vector<8x128xf32>
    %466 = math.tanh %465 : vector<8x128xf32>
    %467 = arith.mulf %460, %466 : vector<8x128xf32>
    %468 = vector.broadcast %397 : i32 to vector<8x1xi32>
    %469 = arith.cmpi slt, %468, %24 : vector<8x1xi32>
    %470 = vector.shape_cast %469 : vector<8x1xi1> to vector<8x1xi1>
    %471 = vector.broadcast %470 : vector<8x1xi1> to vector<8x128xi1>
    %472 = arith.select %471, %467, %444 : vector<8x128xi1>, vector<8x128xf32>
    %c0_223 = arith.constant 0 : index
    %c0_224 = arith.constant 0 : index
    %473 = vector.load %arg14[%c0_223, %c0_224] : memref<8x128xf32, #tpu.memory_space<vmem>>, vector<8x128xf32>
    tpu.vector_store %arg14[%c0_223, %c0_224], %472 {strides = array<i32>} : memref<8x128xf32, #tpu.memory_space<vmem>>, vector<8x128xf32>,
    %474 = vector.shape_cast %469 : vector<8x1xi1> to vector<8x1xi1>
    %475 = vector.broadcast %474 : vector<8x1xi1> to vector<8x128xi1>
    %476 = arith.select %475, %465, %445 : vector<8x128xi1>, vector<8x128xf32>
    %c0_225 = arith.constant 0 : index
    %c0_226 = arith.constant 0 : index
    %477 = vector.load %arg15[%c0_225, %c0_226] : memref<8x128xf32, #tpu.memory_space<vmem>>, vector<8x128xf32>
    tpu.vector_store %arg15[%c0_225, %c0_226], %476 {strides = array<i32>} : memref<8x128xf32, #tpu.memory_space<vmem>>, vector<8x128xf32>,
    %cst_227 = arith.constant 0.000000e+00 : f32
    %478 = vector.shape_cast %469 : vector<8x1xi1> to vector<8x1xi1>
    %479 = vector.broadcast %478 : vector<8x1xi1> to vector<8x128xi1>
    %480 = vector.broadcast %cst_227 : f32 to vector<8x128xf32>
    %481 = arith.select %479, %467, %480 : vector<8x128xi1>, vector<8x128xf32>
    %482 = arith.index_cast %397 : i32 to index
    %c0_228 = arith.constant 0 : index
    %c0_229 = arith.constant 0 : index
    %483 = vector.load %arg10[%482, %c0_228, %c0_229] : memref<8x8x128xf32, #tpu.memory_space<vmem>>, vector<1x8x128xf32>
    %484 = vector.shape_cast %483 : vector<1x8x128xf32> to vector<8x128xf32>
    %485 = arith.addf %481, %484 : vector<8x128xf32>
    %c1_230 = arith.constant 1 : index
    %486 = arith.index_cast %397 : i32 to index
    %c0_231 = arith.constant 0 : index
    %c0_232 = arith.constant 0 : index
    %487 = vector.load %arg9[%c1_230, %486, %c0_231, %c0_232] : memref<2x8x8x128xf32, #tpu.memory_space<vmem>>, vector<1x1x8x128xf32>
    %488 = vector.shape_cast %487 : vector<1x1x8x128xf32> to vector<8x128xf32>
    %489 = vector.shape_cast %485 : vector<8x128xf32> to vector<1x1x8x128xf32>
    tpu.vector_store %arg9[%c1_230, %486, %c0_231, %c0_232], %489 {strides = array<i32>} : memref<2x8x8x128xf32, #tpu.memory_space<vmem>>, vector<1x1x8x128xf32>,
    %c5_i32 = arith.constant 5 : i32
    %c7_i32_233 = arith.constant 7 : i32
    %490 = arith.subi %c7_i32_233, %c5_i32 : i32
    %c0_234 = arith.constant 0 : index
    %c0_235 = arith.constant 0 : index
    %491 = vector.load %arg12[%c0_234, %c0_235] : memref<8x128xf32, #tpu.memory_space<vmem>>, vector<8x128xf32>
    %c0_236 = arith.constant 0 : index
    %c0_237 = arith.constant 0 : index
    %492 = vector.load %arg13[%c0_236, %c0_237] : memref<8x128xf32, #tpu.memory_space<vmem>>, vector<8x128xf32>
    %493 = arith.index_cast %c5_i32 : i32 to index
    %c0_238 = arith.constant 0 : index
    %c0_239 = arith.constant 0 : index
    %494 = vector.load %arg11[%493, %c0_238, %c0_239] : memref<8x8x1024xf32, #tpu.memory_space<vmem>>, vector<1x8x512xf32>
    %495 = vector.shape_cast %494 : vector<1x8x512xf32> to vector<8x512xf32>
    %c0_240 = arith.constant 0 : index
    %c0_241 = arith.constant 0 : index
    %496 = vector.load %arg6[%c0_240, %c0_241] : memref<128x512xf32, #tpu.memory_space<vmem>>, vector<128x512xf32>
    %cst_242 = arith.constant dense<0.000000e+00> : vector<8x512xf32>
    %497 = tpu.matmul %491, %496, %cst_242 {dimension_numbers = #tpu.dot_dimension_numbers<[1], [0], [0], [1], [0, 0, 1, 1], [], []>} : vector<8x128xf32>, vector<128x512xf32>, vector<8x512xf32> -> vector<8x512xf32>
    %498 = arith.addf %495, %497 : vector<8x512xf32>
    %499 = vector.extract_strided_slice %498 {offsets = [0, 0], sizes = [8, 384], strides = [1, 1]} : vector<8x512xf32> to vector<8x384xf32>
    %500 = arith.negf %499 : vector<8x384xf32>
    %501 = math.exp %500 : vector<8x384xf32>
    %cst_243 = arith.constant 1.000000e+00 : f32
    %502 = vector.broadcast %cst_243 : f32 to vector<8x384xf32>
    %503 = arith.addf %502, %501 : vector<8x384xf32>
    %504 = arith.divf %502, %503 : vector<8x384xf32>
    %505 = vector.extract_strided_slice %504 {offsets = [0, 0], sizes = [8, 128], strides = [1, 1]} : vector<8x384xf32> to vector<8x128xf32>
    %506 = vector.extract_strided_slice %504 {offsets = [0, 128], sizes = [8, 128], strides = [1, 1]} : vector<8x384xf32> to vector<8x128xf32>
    %507 = vector.extract_strided_slice %504 {offsets = [0, 256], sizes = [8, 128], strides = [1, 1]} : vector<8x384xf32> to vector<8x128xf32>
    %508 = vector.extract_strided_slice %498 {offsets = [0, 384], sizes = [8, 128], strides = [1, 1]} : vector<8x512xf32> to vector<8x128xf32>
    %509 = math.tanh %508 : vector<8x128xf32>
    %510 = arith.mulf %506, %492 : vector<8x128xf32>
    %511 = arith.mulf %505, %509 : vector<8x128xf32>
    %512 = arith.addf %510, %511 : vector<8x128xf32>
    %513 = math.tanh %512 : vector<8x128xf32>
    %514 = arith.mulf %507, %513 : vector<8x128xf32>
    %515 = vector.broadcast %c5_i32 : i32 to vector<8x1xi32>
    %516 = arith.cmpi slt, %515, %24 : vector<8x1xi32>
    %517 = vector.shape_cast %516 : vector<8x1xi1> to vector<8x1xi1>
    %518 = vector.broadcast %517 : vector<8x1xi1> to vector<8x128xi1>
    %519 = arith.select %518, %514, %491 : vector<8x128xi1>, vector<8x128xf32>
    %c0_244 = arith.constant 0 : index
    %c0_245 = arith.constant 0 : index
    %520 = vector.load %arg12[%c0_244, %c0_245] : memref<8x128xf32, #tpu.memory_space<vmem>>, vector<8x128xf32>
    tpu.vector_store %arg12[%c0_244, %c0_245], %519 {strides = array<i32>} : memref<8x128xf32, #tpu.memory_space<vmem>>, vector<8x128xf32>,
    %521 = vector.shape_cast %516 : vector<8x1xi1> to vector<8x1xi1>
    %522 = vector.broadcast %521 : vector<8x1xi1> to vector<8x128xi1>
    %523 = arith.select %522, %512, %492 : vector<8x128xi1>, vector<8x128xf32>
    %c0_246 = arith.constant 0 : index
    %c0_247 = arith.constant 0 : index
    %524 = vector.load %arg13[%c0_246, %c0_247] : memref<8x128xf32, #tpu.memory_space<vmem>>, vector<8x128xf32>
    tpu.vector_store %arg13[%c0_246, %c0_247], %523 {strides = array<i32>} : memref<8x128xf32, #tpu.memory_space<vmem>>, vector<8x128xf32>,
    %cst_248 = arith.constant 0.000000e+00 : f32
    %525 = vector.shape_cast %516 : vector<8x1xi1> to vector<8x1xi1>
    %526 = vector.broadcast %525 : vector<8x1xi1> to vector<8x128xi1>
    %527 = vector.broadcast %cst_248 : f32 to vector<8x128xf32>
    %528 = arith.select %526, %514, %527 : vector<8x128xi1>, vector<8x128xf32>
    %529 = arith.index_cast %c5_i32 : i32 to index
    %c0_249 = arith.constant 0 : index
    %c0_250 = arith.constant 0 : index
    %530 = vector.load %arg10[%529, %c0_249, %c0_250] : memref<8x8x128xf32, #tpu.memory_space<vmem>>, vector<1x8x128xf32>
    %531 = vector.shape_cast %530 : vector<1x8x128xf32> to vector<8x128xf32>
    %532 = arith.addf %528, %531 : vector<8x128xf32>
    %c0_251 = arith.constant 0 : index
    %533 = arith.index_cast %c5_i32 : i32 to index
    %c0_252 = arith.constant 0 : index
    %c0_253 = arith.constant 0 : index
    %534 = vector.load %arg9[%c0_251, %533, %c0_252, %c0_253] : memref<2x8x8x128xf32, #tpu.memory_space<vmem>>, vector<1x1x8x128xf32>
    %535 = vector.shape_cast %534 : vector<1x1x8x128xf32> to vector<8x128xf32>
    %536 = vector.shape_cast %532 : vector<8x128xf32> to vector<1x1x8x128xf32>
    tpu.vector_store %arg9[%c0_251, %533, %c0_252, %c0_253], %536 {strides = array<i32>} : memref<2x8x8x128xf32, #tpu.memory_space<vmem>>, vector<1x1x8x128xf32>,
    %c0_254 = arith.constant 0 : index
    %c0_255 = arith.constant 0 : index
    %537 = vector.load %arg14[%c0_254, %c0_255] : memref<8x128xf32, #tpu.memory_space<vmem>>, vector<8x128xf32>
    %c0_256 = arith.constant 0 : index
    %c0_257 = arith.constant 0 : index
    %538 = vector.load %arg15[%c0_256, %c0_257] : memref<8x128xf32, #tpu.memory_space<vmem>>, vector<8x128xf32>
    %539 = arith.index_cast %490 : i32 to index
    %c0_258 = arith.constant 0 : index
    %c512_259 = arith.constant 512 : index
    %540 = vector.load %arg11[%539, %c0_258, %c512_259] : memref<8x8x1024xf32, #tpu.memory_space<vmem>>, vector<1x8x512xf32>
    %541 = vector.shape_cast %540 : vector<1x8x512xf32> to vector<8x512xf32>
    %c0_260 = arith.constant 0 : index
    %c0_261 = arith.constant 0 : index
    %542 = vector.load %arg7[%c0_260, %c0_261] : memref<128x512xf32, #tpu.memory_space<vmem>>, vector<128x512xf32>
    %cst_262 = arith.constant dense<0.000000e+00> : vector<8x512xf32>
    %543 = tpu.matmul %537, %542, %cst_262 {dimension_numbers = #tpu.dot_dimension_numbers<[1], [0], [0], [1], [0, 0, 1, 1], [], []>} : vector<8x128xf32>, vector<128x512xf32>, vector<8x512xf32> -> vector<8x512xf32>
    %544 = arith.addf %541, %543 : vector<8x512xf32>
    %545 = vector.extract_strided_slice %544 {offsets = [0, 0], sizes = [8, 384], strides = [1, 1]} : vector<8x512xf32> to vector<8x384xf32>
    %546 = arith.negf %545 : vector<8x384xf32>
    %547 = math.exp %546 : vector<8x384xf32>
    %cst_263 = arith.constant 1.000000e+00 : f32
    %548 = vector.broadcast %cst_263 : f32 to vector<8x384xf32>
    %549 = arith.addf %548, %547 : vector<8x384xf32>
    %550 = arith.divf %548, %549 : vector<8x384xf32>
    %551 = vector.extract_strided_slice %550 {offsets = [0, 0], sizes = [8, 128], strides = [1, 1]} : vector<8x384xf32> to vector<8x128xf32>
    %552 = vector.extract_strided_slice %550 {offsets = [0, 128], sizes = [8, 128], strides = [1, 1]} : vector<8x384xf32> to vector<8x128xf32>
    %553 = vector.extract_strided_slice %550 {offsets = [0, 256], sizes = [8, 128], strides = [1, 1]} : vector<8x384xf32> to vector<8x128xf32>
    %554 = vector.extract_strided_slice %544 {offsets = [0, 384], sizes = [8, 128], strides = [1, 1]} : vector<8x512xf32> to vector<8x128xf32>
    %555 = math.tanh %554 : vector<8x128xf32>
    %556 = arith.mulf %552, %538 : vector<8x128xf32>
    %557 = arith.mulf %551, %555 : vector<8x128xf32>
    %558 = arith.addf %556, %557 : vector<8x128xf32>
    %559 = math.tanh %558 : vector<8x128xf32>
    %560 = arith.mulf %553, %559 : vector<8x128xf32>
    %561 = vector.broadcast %490 : i32 to vector<8x1xi32>
    %562 = arith.cmpi slt, %561, %24 : vector<8x1xi32>
    %563 = vector.shape_cast %562 : vector<8x1xi1> to vector<8x1xi1>
    %564 = vector.broadcast %563 : vector<8x1xi1> to vector<8x128xi1>
    %565 = arith.select %564, %560, %537 : vector<8x128xi1>, vector<8x128xf32>
    %c0_264 = arith.constant 0 : index
    %c0_265 = arith.constant 0 : index
    %566 = vector.load %arg14[%c0_264, %c0_265] : memref<8x128xf32, #tpu.memory_space<vmem>>, vector<8x128xf32>
    tpu.vector_store %arg14[%c0_264, %c0_265], %565 {strides = array<i32>} : memref<8x128xf32, #tpu.memory_space<vmem>>, vector<8x128xf32>,
    %567 = vector.shape_cast %562 : vector<8x1xi1> to vector<8x1xi1>
    %568 = vector.broadcast %567 : vector<8x1xi1> to vector<8x128xi1>
    %569 = arith.select %568, %558, %538 : vector<8x128xi1>, vector<8x128xf32>
    %c0_266 = arith.constant 0 : index
    %c0_267 = arith.constant 0 : index
    %570 = vector.load %arg15[%c0_266, %c0_267] : memref<8x128xf32, #tpu.memory_space<vmem>>, vector<8x128xf32>
    tpu.vector_store %arg15[%c0_266, %c0_267], %569 {strides = array<i32>} : memref<8x128xf32, #tpu.memory_space<vmem>>, vector<8x128xf32>,
    %cst_268 = arith.constant 0.000000e+00 : f32
    %571 = vector.shape_cast %562 : vector<8x1xi1> to vector<8x1xi1>
    %572 = vector.broadcast %571 : vector<8x1xi1> to vector<8x128xi1>
    %573 = vector.broadcast %cst_268 : f32 to vector<8x128xf32>
    %574 = arith.select %572, %560, %573 : vector<8x128xi1>, vector<8x128xf32>
    %575 = arith.index_cast %490 : i32 to index
    %c0_269 = arith.constant 0 : index
    %c0_270 = arith.constant 0 : index
    %576 = vector.load %arg10[%575, %c0_269, %c0_270] : memref<8x8x128xf32, #tpu.memory_space<vmem>>, vector<1x8x128xf32>
    %577 = vector.shape_cast %576 : vector<1x8x128xf32> to vector<8x128xf32>
    %578 = arith.addf %574, %577 : vector<8x128xf32>
    %c1_271 = arith.constant 1 : index
    %579 = arith.index_cast %490 : i32 to index
    %c0_272 = arith.constant 0 : index
    %c0_273 = arith.constant 0 : index
    %580 = vector.load %arg9[%c1_271, %579, %c0_272, %c0_273] : memref<2x8x8x128xf32, #tpu.memory_space<vmem>>, vector<1x1x8x128xf32>
    %581 = vector.shape_cast %580 : vector<1x1x8x128xf32> to vector<8x128xf32>
    %582 = vector.shape_cast %578 : vector<8x128xf32> to vector<1x1x8x128xf32>
    tpu.vector_store %arg9[%c1_271, %579, %c0_272, %c0_273], %582 {strides = array<i32>} : memref<2x8x8x128xf32, #tpu.memory_space<vmem>>, vector<1x1x8x128xf32>,
    %c6_i32 = arith.constant 6 : i32
    %c7_i32_274 = arith.constant 7 : i32
    %583 = arith.subi %c7_i32_274, %c6_i32 : i32
    %c0_275 = arith.constant 0 : index
    %c0_276 = arith.constant 0 : index
    %584 = vector.load %arg12[%c0_275, %c0_276] : memref<8x128xf32, #tpu.memory_space<vmem>>, vector<8x128xf32>
    %c0_277 = arith.constant 0 : index
    %c0_278 = arith.constant 0 : index
    %585 = vector.load %arg13[%c0_277, %c0_278] : memref<8x128xf32, #tpu.memory_space<vmem>>, vector<8x128xf32>
    %586 = arith.index_cast %c6_i32 : i32 to index
    %c0_279 = arith.constant 0 : index
    %c0_280 = arith.constant 0 : index
    %587 = vector.load %arg11[%586, %c0_279, %c0_280] : memref<8x8x1024xf32, #tpu.memory_space<vmem>>, vector<1x8x512xf32>
    %588 = vector.shape_cast %587 : vector<1x8x512xf32> to vector<8x512xf32>
    %c0_281 = arith.constant 0 : index
    %c0_282 = arith.constant 0 : index
    %589 = vector.load %arg6[%c0_281, %c0_282] : memref<128x512xf32, #tpu.memory_space<vmem>>, vector<128x512xf32>
    %cst_283 = arith.constant dense<0.000000e+00> : vector<8x512xf32>
    %590 = tpu.matmul %584, %589, %cst_283 {dimension_numbers = #tpu.dot_dimension_numbers<[1], [0], [0], [1], [0, 0, 1, 1], [], []>} : vector<8x128xf32>, vector<128x512xf32>, vector<8x512xf32> -> vector<8x512xf32>
    %591 = arith.addf %588, %590 : vector<8x512xf32>
    %592 = vector.extract_strided_slice %591 {offsets = [0, 0], sizes = [8, 384], strides = [1, 1]} : vector<8x512xf32> to vector<8x384xf32>
    %593 = arith.negf %592 : vector<8x384xf32>
    %594 = math.exp %593 : vector<8x384xf32>
    %cst_284 = arith.constant 1.000000e+00 : f32
    %595 = vector.broadcast %cst_284 : f32 to vector<8x384xf32>
    %596 = arith.addf %595, %594 : vector<8x384xf32>
    %597 = arith.divf %595, %596 : vector<8x384xf32>
    %598 = vector.extract_strided_slice %597 {offsets = [0, 0], sizes = [8, 128], strides = [1, 1]} : vector<8x384xf32> to vector<8x128xf32>
    %599 = vector.extract_strided_slice %597 {offsets = [0, 128], sizes = [8, 128], strides = [1, 1]} : vector<8x384xf32> to vector<8x128xf32>
    %600 = vector.extract_strided_slice %597 {offsets = [0, 256], sizes = [8, 128], strides = [1, 1]} : vector<8x384xf32> to vector<8x128xf32>
    %601 = vector.extract_strided_slice %591 {offsets = [0, 384], sizes = [8, 128], strides = [1, 1]} : vector<8x512xf32> to vector<8x128xf32>
    %602 = math.tanh %601 : vector<8x128xf32>
    %603 = arith.mulf %599, %585 : vector<8x128xf32>
    %604 = arith.mulf %598, %602 : vector<8x128xf32>
    %605 = arith.addf %603, %604 : vector<8x128xf32>
    %606 = math.tanh %605 : vector<8x128xf32>
    %607 = arith.mulf %600, %606 : vector<8x128xf32>
    %608 = vector.broadcast %c6_i32 : i32 to vector<8x1xi32>
    %609 = arith.cmpi slt, %608, %24 : vector<8x1xi32>
    %610 = vector.shape_cast %609 : vector<8x1xi1> to vector<8x1xi1>
    %611 = vector.broadcast %610 : vector<8x1xi1> to vector<8x128xi1>
    %612 = arith.select %611, %607, %584 : vector<8x128xi1>, vector<8x128xf32>
    %c0_285 = arith.constant 0 : index
    %c0_286 = arith.constant 0 : index
    %613 = vector.load %arg12[%c0_285, %c0_286] : memref<8x128xf32, #tpu.memory_space<vmem>>, vector<8x128xf32>
    tpu.vector_store %arg12[%c0_285, %c0_286], %612 {strides = array<i32>} : memref<8x128xf32, #tpu.memory_space<vmem>>, vector<8x128xf32>,
    %614 = vector.shape_cast %609 : vector<8x1xi1> to vector<8x1xi1>
    %615 = vector.broadcast %614 : vector<8x1xi1> to vector<8x128xi1>
    %616 = arith.select %615, %605, %585 : vector<8x128xi1>, vector<8x128xf32>
    %c0_287 = arith.constant 0 : index
    %c0_288 = arith.constant 0 : index
    %617 = vector.load %arg13[%c0_287, %c0_288] : memref<8x128xf32, #tpu.memory_space<vmem>>, vector<8x128xf32>
    tpu.vector_store %arg13[%c0_287, %c0_288], %616 {strides = array<i32>} : memref<8x128xf32, #tpu.memory_space<vmem>>, vector<8x128xf32>,
    %cst_289 = arith.constant 0.000000e+00 : f32
    %618 = vector.shape_cast %609 : vector<8x1xi1> to vector<8x1xi1>
    %619 = vector.broadcast %618 : vector<8x1xi1> to vector<8x128xi1>
    %620 = vector.broadcast %cst_289 : f32 to vector<8x128xf32>
    %621 = arith.select %619, %607, %620 : vector<8x128xi1>, vector<8x128xf32>
    %622 = arith.index_cast %c6_i32 : i32 to index
    %c0_290 = arith.constant 0 : index
    %c0_291 = arith.constant 0 : index
    %623 = vector.load %arg10[%622, %c0_290, %c0_291] : memref<8x8x128xf32, #tpu.memory_space<vmem>>, vector<1x8x128xf32>
    %624 = vector.shape_cast %623 : vector<1x8x128xf32> to vector<8x128xf32>
    %625 = arith.addf %621, %624 : vector<8x128xf32>
    %c0_292 = arith.constant 0 : index
    %626 = arith.index_cast %c6_i32 : i32 to index
    %c0_293 = arith.constant 0 : index
    %c0_294 = arith.constant 0 : index
    %627 = vector.load %arg9[%c0_292, %626, %c0_293, %c0_294] : memref<2x8x8x128xf32, #tpu.memory_space<vmem>>, vector<1x1x8x128xf32>
    %628 = vector.shape_cast %627 : vector<1x1x8x128xf32> to vector<8x128xf32>
    %629 = vector.shape_cast %625 : vector<8x128xf32> to vector<1x1x8x128xf32>
    tpu.vector_store %arg9[%c0_292, %626, %c0_293, %c0_294], %629 {strides = array<i32>} : memref<2x8x8x128xf32, #tpu.memory_space<vmem>>, vector<1x1x8x128xf32>,
    %c0_295 = arith.constant 0 : index
    %c0_296 = arith.constant 0 : index
    %630 = vector.load %arg14[%c0_295, %c0_296] : memref<8x128xf32, #tpu.memory_space<vmem>>, vector<8x128xf32>
    %c0_297 = arith.constant 0 : index
    %c0_298 = arith.constant 0 : index
    %631 = vector.load %arg15[%c0_297, %c0_298] : memref<8x128xf32, #tpu.memory_space<vmem>>, vector<8x128xf32>
    %632 = arith.index_cast %583 : i32 to index
    %c0_299 = arith.constant 0 : index
    %c512_300 = arith.constant 512 : index
    %633 = vector.load %arg11[%632, %c0_299, %c512_300] : memref<8x8x1024xf32, #tpu.memory_space<vmem>>, vector<1x8x512xf32>
    %634 = vector.shape_cast %633 : vector<1x8x512xf32> to vector<8x512xf32>
    %c0_301 = arith.constant 0 : index
    %c0_302 = arith.constant 0 : index
    %635 = vector.load %arg7[%c0_301, %c0_302] : memref<128x512xf32, #tpu.memory_space<vmem>>, vector<128x512xf32>
    %cst_303 = arith.constant dense<0.000000e+00> : vector<8x512xf32>
    %636 = tpu.matmul %630, %635, %cst_303 {dimension_numbers = #tpu.dot_dimension_numbers<[1], [0], [0], [1], [0, 0, 1, 1], [], []>} : vector<8x128xf32>, vector<128x512xf32>, vector<8x512xf32> -> vector<8x512xf32>
    %637 = arith.addf %634, %636 : vector<8x512xf32>
    %638 = vector.extract_strided_slice %637 {offsets = [0, 0], sizes = [8, 384], strides = [1, 1]} : vector<8x512xf32> to vector<8x384xf32>
    %639 = arith.negf %638 : vector<8x384xf32>
    %640 = math.exp %639 : vector<8x384xf32>
    %cst_304 = arith.constant 1.000000e+00 : f32
    %641 = vector.broadcast %cst_304 : f32 to vector<8x384xf32>
    %642 = arith.addf %641, %640 : vector<8x384xf32>
    %643 = arith.divf %641, %642 : vector<8x384xf32>
    %644 = vector.extract_strided_slice %643 {offsets = [0, 0], sizes = [8, 128], strides = [1, 1]} : vector<8x384xf32> to vector<8x128xf32>
    %645 = vector.extract_strided_slice %643 {offsets = [0, 128], sizes = [8, 128], strides = [1, 1]} : vector<8x384xf32> to vector<8x128xf32>
    %646 = vector.extract_strided_slice %643 {offsets = [0, 256], sizes = [8, 128], strides = [1, 1]} : vector<8x384xf32> to vector<8x128xf32>
    %647 = vector.extract_strided_slice %637 {offsets = [0, 384], sizes = [8, 128], strides = [1, 1]} : vector<8x512xf32> to vector<8x128xf32>
    %648 = math.tanh %647 : vector<8x128xf32>
    %649 = arith.mulf %645, %631 : vector<8x128xf32>
    %650 = arith.mulf %644, %648 : vector<8x128xf32>
    %651 = arith.addf %649, %650 : vector<8x128xf32>
    %652 = math.tanh %651 : vector<8x128xf32>
    %653 = arith.mulf %646, %652 : vector<8x128xf32>
    %654 = vector.broadcast %583 : i32 to vector<8x1xi32>
    %655 = arith.cmpi slt, %654, %24 : vector<8x1xi32>
    %656 = vector.shape_cast %655 : vector<8x1xi1> to vector<8x1xi1>
    %657 = vector.broadcast %656 : vector<8x1xi1> to vector<8x128xi1>
    %658 = arith.select %657, %653, %630 : vector<8x128xi1>, vector<8x128xf32>
    %c0_305 = arith.constant 0 : index
    %c0_306 = arith.constant 0 : index
    %659 = vector.load %arg14[%c0_305, %c0_306] : memref<8x128xf32, #tpu.memory_space<vmem>>, vector<8x128xf32>
    tpu.vector_store %arg14[%c0_305, %c0_306], %658 {strides = array<i32>} : memref<8x128xf32, #tpu.memory_space<vmem>>, vector<8x128xf32>,
    %660 = vector.shape_cast %655 : vector<8x1xi1> to vector<8x1xi1>
    %661 = vector.broadcast %660 : vector<8x1xi1> to vector<8x128xi1>
    %662 = arith.select %661, %651, %631 : vector<8x128xi1>, vector<8x128xf32>
    %c0_307 = arith.constant 0 : index
    %c0_308 = arith.constant 0 : index
    %663 = vector.load %arg15[%c0_307, %c0_308] : memref<8x128xf32, #tpu.memory_space<vmem>>, vector<8x128xf32>
    tpu.vector_store %arg15[%c0_307, %c0_308], %662 {strides = array<i32>} : memref<8x128xf32, #tpu.memory_space<vmem>>, vector<8x128xf32>,
    %cst_309 = arith.constant 0.000000e+00 : f32
    %664 = vector.shape_cast %655 : vector<8x1xi1> to vector<8x1xi1>
    %665 = vector.broadcast %664 : vector<8x1xi1> to vector<8x128xi1>
    %666 = vector.broadcast %cst_309 : f32 to vector<8x128xf32>
    %667 = arith.select %665, %653, %666 : vector<8x128xi1>, vector<8x128xf32>
    %668 = arith.index_cast %583 : i32 to index
    %c0_310 = arith.constant 0 : index
    %c0_311 = arith.constant 0 : index
    %669 = vector.load %arg10[%668, %c0_310, %c0_311] : memref<8x8x128xf32, #tpu.memory_space<vmem>>, vector<1x8x128xf32>
    %670 = vector.shape_cast %669 : vector<1x8x128xf32> to vector<8x128xf32>
    %671 = arith.addf %667, %670 : vector<8x128xf32>
    %c1_312 = arith.constant 1 : index
    %672 = arith.index_cast %583 : i32 to index
    %c0_313 = arith.constant 0 : index
    %c0_314 = arith.constant 0 : index
    %673 = vector.load %arg9[%c1_312, %672, %c0_313, %c0_314] : memref<2x8x8x128xf32, #tpu.memory_space<vmem>>, vector<1x1x8x128xf32>
    %674 = vector.shape_cast %673 : vector<1x1x8x128xf32> to vector<8x128xf32>
    %675 = vector.shape_cast %671 : vector<8x128xf32> to vector<1x1x8x128xf32>
    tpu.vector_store %arg9[%c1_312, %672, %c0_313, %c0_314], %675 {strides = array<i32>} : memref<2x8x8x128xf32, #tpu.memory_space<vmem>>, vector<1x1x8x128xf32>,
    %c7_i32_315 = arith.constant 7 : i32
    %c7_i32_316 = arith.constant 7 : i32
    %676 = arith.subi %c7_i32_316, %c7_i32_315 : i32
    %c0_317 = arith.constant 0 : index
    %c0_318 = arith.constant 0 : index
    %677 = vector.load %arg12[%c0_317, %c0_318] : memref<8x128xf32, #tpu.memory_space<vmem>>, vector<8x128xf32>
    %c0_319 = arith.constant 0 : index
    %c0_320 = arith.constant 0 : index
    %678 = vector.load %arg13[%c0_319, %c0_320] : memref<8x128xf32, #tpu.memory_space<vmem>>, vector<8x128xf32>
    %679 = arith.index_cast %c7_i32_315 : i32 to index
    %c0_321 = arith.constant 0 : index
    %c0_322 = arith.constant 0 : index
    %680 = vector.load %arg11[%679, %c0_321, %c0_322] : memref<8x8x1024xf32, #tpu.memory_space<vmem>>, vector<1x8x512xf32>
    %681 = vector.shape_cast %680 : vector<1x8x512xf32> to vector<8x512xf32>
    %c0_323 = arith.constant 0 : index
    %c0_324 = arith.constant 0 : index
    %682 = vector.load %arg6[%c0_323, %c0_324] : memref<128x512xf32, #tpu.memory_space<vmem>>, vector<128x512xf32>
    %cst_325 = arith.constant dense<0.000000e+00> : vector<8x512xf32>
    %683 = tpu.matmul %677, %682, %cst_325 {dimension_numbers = #tpu.dot_dimension_numbers<[1], [0], [0], [1], [0, 0, 1, 1], [], []>} : vector<8x128xf32>, vector<128x512xf32>, vector<8x512xf32> -> vector<8x512xf32>
    %684 = arith.addf %681, %683 : vector<8x512xf32>
    %685 = vector.extract_strided_slice %684 {offsets = [0, 0], sizes = [8, 384], strides = [1, 1]} : vector<8x512xf32> to vector<8x384xf32>
    %686 = arith.negf %685 : vector<8x384xf32>
    %687 = math.exp %686 : vector<8x384xf32>
    %cst_326 = arith.constant 1.000000e+00 : f32
    %688 = vector.broadcast %cst_326 : f32 to vector<8x384xf32>
    %689 = arith.addf %688, %687 : vector<8x384xf32>
    %690 = arith.divf %688, %689 : vector<8x384xf32>
    %691 = vector.extract_strided_slice %690 {offsets = [0, 0], sizes = [8, 128], strides = [1, 1]} : vector<8x384xf32> to vector<8x128xf32>
    %692 = vector.extract_strided_slice %690 {offsets = [0, 128], sizes = [8, 128], strides = [1, 1]} : vector<8x384xf32> to vector<8x128xf32>
    %693 = vector.extract_strided_slice %690 {offsets = [0, 256], sizes = [8, 128], strides = [1, 1]} : vector<8x384xf32> to vector<8x128xf32>
    %694 = vector.extract_strided_slice %684 {offsets = [0, 384], sizes = [8, 128], strides = [1, 1]} : vector<8x512xf32> to vector<8x128xf32>
    %695 = math.tanh %694 : vector<8x128xf32>
    %696 = arith.mulf %692, %678 : vector<8x128xf32>
    %697 = arith.mulf %691, %695 : vector<8x128xf32>
    %698 = arith.addf %696, %697 : vector<8x128xf32>
    %699 = math.tanh %698 : vector<8x128xf32>
    %700 = arith.mulf %693, %699 : vector<8x128xf32>
    %701 = vector.broadcast %c7_i32_315 : i32 to vector<8x1xi32>
    %702 = arith.cmpi slt, %701, %24 : vector<8x1xi32>
    %703 = vector.shape_cast %702 : vector<8x1xi1> to vector<8x1xi1>
    %704 = vector.broadcast %703 : vector<8x1xi1> to vector<8x128xi1>
    %705 = arith.select %704, %700, %677 : vector<8x128xi1>, vector<8x128xf32>
    %c0_327 = arith.constant 0 : index
    %c0_328 = arith.constant 0 : index
    %706 = vector.load %arg12[%c0_327, %c0_328] : memref<8x128xf32, #tpu.memory_space<vmem>>, vector<8x128xf32>
    tpu.vector_store %arg12[%c0_327, %c0_328], %705 {strides = array<i32>} : memref<8x128xf32, #tpu.memory_space<vmem>>, vector<8x128xf32>,
    %707 = vector.shape_cast %702 : vector<8x1xi1> to vector<8x1xi1>
    %708 = vector.broadcast %707 : vector<8x1xi1> to vector<8x128xi1>
    %709 = arith.select %708, %698, %678 : vector<8x128xi1>, vector<8x128xf32>
    %c0_329 = arith.constant 0 : index
    %c0_330 = arith.constant 0 : index
    %710 = vector.load %arg13[%c0_329, %c0_330] : memref<8x128xf32, #tpu.memory_space<vmem>>, vector<8x128xf32>
    tpu.vector_store %arg13[%c0_329, %c0_330], %709 {strides = array<i32>} : memref<8x128xf32, #tpu.memory_space<vmem>>, vector<8x128xf32>,
    %cst_331 = arith.constant 0.000000e+00 : f32
    %711 = vector.shape_cast %702 : vector<8x1xi1> to vector<8x1xi1>
    %712 = vector.broadcast %711 : vector<8x1xi1> to vector<8x128xi1>
    %713 = vector.broadcast %cst_331 : f32 to vector<8x128xf32>
    %714 = arith.select %712, %700, %713 : vector<8x128xi1>, vector<8x128xf32>
    %715 = arith.index_cast %c7_i32_315 : i32 to index
    %c0_332 = arith.constant 0 : index
    %c0_333 = arith.constant 0 : index
    %716 = vector.load %arg10[%715, %c0_332, %c0_333] : memref<8x8x128xf32, #tpu.memory_space<vmem>>, vector<1x8x128xf32>
    %717 = vector.shape_cast %716 : vector<1x8x128xf32> to vector<8x128xf32>
    %718 = arith.addf %714, %717 : vector<8x128xf32>
    %c0_334 = arith.constant 0 : index
    %719 = arith.index_cast %c7_i32_315 : i32 to index
    %c0_335 = arith.constant 0 : index
    %c0_336 = arith.constant 0 : index
    %720 = vector.load %arg9[%c0_334, %719, %c0_335, %c0_336] : memref<2x8x8x128xf32, #tpu.memory_space<vmem>>, vector<1x1x8x128xf32>
    %721 = vector.shape_cast %720 : vector<1x1x8x128xf32> to vector<8x128xf32>
    %722 = vector.shape_cast %718 : vector<8x128xf32> to vector<1x1x8x128xf32>
    tpu.vector_store %arg9[%c0_334, %719, %c0_335, %c0_336], %722 {strides = array<i32>} : memref<2x8x8x128xf32, #tpu.memory_space<vmem>>, vector<1x1x8x128xf32>,
    %c0_337 = arith.constant 0 : index
    %c0_338 = arith.constant 0 : index
    %723 = vector.load %arg14[%c0_337, %c0_338] : memref<8x128xf32, #tpu.memory_space<vmem>>, vector<8x128xf32>
    %c0_339 = arith.constant 0 : index
    %c0_340 = arith.constant 0 : index
    %724 = vector.load %arg15[%c0_339, %c0_340] : memref<8x128xf32, #tpu.memory_space<vmem>>, vector<8x128xf32>
    %725 = arith.index_cast %676 : i32 to index
    %c0_341 = arith.constant 0 : index
    %c512_342 = arith.constant 512 : index
    %726 = vector.load %arg11[%725, %c0_341, %c512_342] : memref<8x8x1024xf32, #tpu.memory_space<vmem>>, vector<1x8x512xf32>
    %727 = vector.shape_cast %726 : vector<1x8x512xf32> to vector<8x512xf32>
    %c0_343 = arith.constant 0 : index
    %c0_344 = arith.constant 0 : index
    %728 = vector.load %arg7[%c0_343, %c0_344] : memref<128x512xf32, #tpu.memory_space<vmem>>, vector<128x512xf32>
    %cst_345 = arith.constant dense<0.000000e+00> : vector<8x512xf32>
    %729 = tpu.matmul %723, %728, %cst_345 {dimension_numbers = #tpu.dot_dimension_numbers<[1], [0], [0], [1], [0, 0, 1, 1], [], []>} : vector<8x128xf32>, vector<128x512xf32>, vector<8x512xf32> -> vector<8x512xf32>
    %730 = arith.addf %727, %729 : vector<8x512xf32>
    %731 = vector.extract_strided_slice %730 {offsets = [0, 0], sizes = [8, 384], strides = [1, 1]} : vector<8x512xf32> to vector<8x384xf32>
    %732 = arith.negf %731 : vector<8x384xf32>
    %733 = math.exp %732 : vector<8x384xf32>
    %cst_346 = arith.constant 1.000000e+00 : f32
    %734 = vector.broadcast %cst_346 : f32 to vector<8x384xf32>
    %735 = arith.addf %734, %733 : vector<8x384xf32>
    %736 = arith.divf %734, %735 : vector<8x384xf32>
    %737 = vector.extract_strided_slice %736 {offsets = [0, 0], sizes = [8, 128], strides = [1, 1]} : vector<8x384xf32> to vector<8x128xf32>
    %738 = vector.extract_strided_slice %736 {offsets = [0, 128], sizes = [8, 128], strides = [1, 1]} : vector<8x384xf32> to vector<8x128xf32>
    %739 = vector.extract_strided_slice %736 {offsets = [0, 256], sizes = [8, 128], strides = [1, 1]} : vector<8x384xf32> to vector<8x128xf32>
    %740 = vector.extract_strided_slice %730 {offsets = [0, 384], sizes = [8, 128], strides = [1, 1]} : vector<8x512xf32> to vector<8x128xf32>
    %741 = math.tanh %740 : vector<8x128xf32>
    %742 = arith.mulf %738, %724 : vector<8x128xf32>
    %743 = arith.mulf %737, %741 : vector<8x128xf32>
    %744 = arith.addf %742, %743 : vector<8x128xf32>
    %745 = math.tanh %744 : vector<8x128xf32>
    %746 = arith.mulf %739, %745 : vector<8x128xf32>
    %747 = vector.broadcast %676 : i32 to vector<8x1xi32>
    %748 = arith.cmpi slt, %747, %24 : vector<8x1xi32>
    %749 = vector.shape_cast %748 : vector<8x1xi1> to vector<8x1xi1>
    %750 = vector.broadcast %749 : vector<8x1xi1> to vector<8x128xi1>
    %751 = arith.select %750, %746, %723 : vector<8x128xi1>, vector<8x128xf32>
    %c0_347 = arith.constant 0 : index
    %c0_348 = arith.constant 0 : index
    %752 = vector.load %arg14[%c0_347, %c0_348] : memref<8x128xf32, #tpu.memory_space<vmem>>, vector<8x128xf32>
    tpu.vector_store %arg14[%c0_347, %c0_348], %751 {strides = array<i32>} : memref<8x128xf32, #tpu.memory_space<vmem>>, vector<8x128xf32>,
    %753 = vector.shape_cast %748 : vector<8x1xi1> to vector<8x1xi1>
    %754 = vector.broadcast %753 : vector<8x1xi1> to vector<8x128xi1>
    %755 = arith.select %754, %744, %724 : vector<8x128xi1>, vector<8x128xf32>
    %c0_349 = arith.constant 0 : index
    %c0_350 = arith.constant 0 : index
    %756 = vector.load %arg15[%c0_349, %c0_350] : memref<8x128xf32, #tpu.memory_space<vmem>>, vector<8x128xf32>
    tpu.vector_store %arg15[%c0_349, %c0_350], %755 {strides = array<i32>} : memref<8x128xf32, #tpu.memory_space<vmem>>, vector<8x128xf32>,
    %cst_351 = arith.constant 0.000000e+00 : f32
    %757 = vector.shape_cast %748 : vector<8x1xi1> to vector<8x1xi1>
    %758 = vector.broadcast %757 : vector<8x1xi1> to vector<8x128xi1>
    %759 = vector.broadcast %cst_351 : f32 to vector<8x128xf32>
    %760 = arith.select %758, %746, %759 : vector<8x128xi1>, vector<8x128xf32>
    %761 = arith.index_cast %676 : i32 to index
    %c0_352 = arith.constant 0 : index
    %c0_353 = arith.constant 0 : index
    %762 = vector.load %arg10[%761, %c0_352, %c0_353] : memref<8x8x128xf32, #tpu.memory_space<vmem>>, vector<1x8x128xf32>
    %763 = vector.shape_cast %762 : vector<1x8x128xf32> to vector<8x128xf32>
    %764 = arith.addf %760, %763 : vector<8x128xf32>
    %c1_354 = arith.constant 1 : index
    %765 = arith.index_cast %676 : i32 to index
    %c0_355 = arith.constant 0 : index
    %c0_356 = arith.constant 0 : index
    %766 = vector.load %arg9[%c1_354, %765, %c0_355, %c0_356] : memref<2x8x8x128xf32, #tpu.memory_space<vmem>>, vector<1x1x8x128xf32>
    %767 = vector.shape_cast %766 : vector<1x1x8x128xf32> to vector<8x128xf32>
    %768 = vector.shape_cast %764 : vector<8x128xf32> to vector<1x1x8x128xf32>
    tpu.vector_store %arg9[%c1_354, %765, %c0_355, %c0_356], %768 {strides = array<i32>} : memref<2x8x8x128xf32, #tpu.memory_space<vmem>>, vector<1x1x8x128xf32>,
    %c8_i32 = arith.constant 8 : i32
    return
  }
  func.func @transform_0(%arg0: i32) -> (i32, i32) {
    %c0_i32 = arith.constant 0 : i32
    %c0_i32_0 = arith.constant 0 : i32
    return %arg0, %c0_i32 : i32, i32
  }
  func.func @transform_1(%arg0: i32) -> (i32, i32, i32) {
    %c0_i32 = arith.constant 0 : i32
    %c0_i32_0 = arith.constant 0 : i32
    %c0_i32_1 = arith.constant 0 : i32
    return %c0_i32, %arg0, %c0_i32_0 : i32, i32, i32
  }
  func.func @transform_2(%arg0: i32) -> (i32, i32) {
    %c0_i32 = arith.constant 0 : i32
    %c0_i32_0 = arith.constant 0 : i32
    %c0_i32_1 = arith.constant 0 : i32
    return %c0_i32, %c0_i32_0 : i32, i32
  }
  func.func @transform_3(%arg0: i32) -> (i32, i32) {
    %c0_i32 = arith.constant 0 : i32
    %c0_i32_0 = arith.constant 0 : i32
    %c0_i32_1 = arith.constant 0 : i32
    return %c0_i32, %c0_i32_0 : i32, i32
  }
  func.func @transform_4(%arg0: i32) -> (i32, i32) {
    %c0_i32 = arith.constant 0 : i32
    %c0_i32_0 = arith.constant 0 : i32
    %c0_i32_1 = arith.constant 0 : i32
    return %c0_i32, %c0_i32_0 : i32, i32
  }
  func.func @transform_5(%arg0: i32) -> (i32, i32) {
    %c0_i32 = arith.constant 0 : i32
    %c0_i32_0 = arith.constant 0 : i32
    %c0_i32_1 = arith.constant 0 : i32
    return %c0_i32, %c0_i32_0 : i32, i32
  }
  func.func @transform_6(%arg0: i32) -> (i32, i32) {
    %c0_i32 = arith.constant 0 : i32
    %c0_i32_0 = arith.constant 0 : i32
    %c0_i32_1 = arith.constant 0 : i32
    return %c0_i32, %c0_i32_0 : i32, i32
  }
  func.func @transform_7(%arg0: i32) -> (i32, i32) {
    %c0_i32 = arith.constant 0 : i32
    %c0_i32_0 = arith.constant 0 : i32
    %c0_i32_1 = arith.constant 0 : i32
    return %c0_i32, %c0_i32_0 : i32, i32
  }
  func.func @transform_8(%arg0: i32) -> (i32, i32, i32, i32) {
    %c0_i32 = arith.constant 0 : i32
    %c0_i32_0 = arith.constant 0 : i32
    %c0_i32_1 = arith.constant 0 : i32
    %c0_i32_2 = arith.constant 0 : i32
    return %c0_i32, %c0_i32_0, %arg0, %c0_i32_1 : i32, i32, i32, i32
  }
}

</mosaic_0001>

<bundles_post_ra>
// kernel: tpu_custom_call.1
= control target key start
LH: loop header
LB: loop body
LE: loop exit
PB: predicated region body
PF: predicated region fallthrough
CT: control target
= control target key end

     0   :  { %13 = vsyncpa [#allocation9], 0  ;;  %s8330_s0 = inlined_call_operand.vmem [shape: s32[8,1], index: 0, kind: input, shape index: {}]   ;;  %s8331_s1 = inlined_call_operand.hbm [shape: f32[8,8,32], index: 1, kind: input, shape index: {}]   ;;  %s8332_s2 = inlined_call_operand.hbm [shape: f32[32,128], index: 2, kind: input, shape index: {}]   ;;  %s8333_s3 = inlined_call_operand.vmem [shape: f32[1,128], index: 3, kind: input, shape index: {}]   ;;  %s8334_s4 = inlined_call_operand.hbm [shape: f32[128,1024], index: 4, kind: input, shape index: {}]   ;;  %s8335_s5 = inlined_call_operand.hbm [shape: f32[128,512], index: 5, kind: input, shape index: {}]   ;;  %s8336_s6 = inlined_call_operand.hbm [shape: f32[128,512], index: 6, kind: input, shape index: {}]   ;;  %s8337_s7 = inlined_call_operand.vmem [shape: f32[1,1024], index: 7, kind: input, shape index: {}]   ;;  %s8338_s8 = inlined_call_operand.hbm [shape: f32[2,8,8,128], index: 8, kind: output, shape index: {}]  }
   0x1   :  { %14 = vsyncpa [#allocation12], 0 }
   0x2   :  { %15 = vsyncpa [#allocation15], 0 }
   0x3   :  { %16 = vsyncpa [#allocation10], 0  ;;  %s5503_s27 = smov [#allocation11]   ;;  %s5504_s29 = smov [#allocation14]  }
   0x4   :  { %s36_s28 = sshll.u32 %s5503_s27, 4  ;;  %s62_s30 = sshll.u32 %s5504_s29, 4  ;;  %s37_s28 = int_to_ptr.vmem [resolvable:$true] %s36_s28  ;;  %s63_s30 = int_to_ptr.vmem [resolvable:$true] %s62_s30 }
   0x5   :  { %s5383_s9 = scalar_lea.vmem %s37_s28, 512  ;;  %p5388_p1 = scmp.lt.s32.totalorder %s37_s28, %s37_s28 }
   0x6   :  { %p5384_p0 = scmp.ne.s32.totalorder %s37_s28, %s5383_s9  ;;  %p5389_p2 = scmp.lt.s32.totalorder %s5383_s9, %s5383_s9 }
   0x8   :  { %p5390_p3 = por %p5389_p2, %p5388_p1 }
   0xa   :  { %p5391_p4 = pnand %p5390_p3, %p5384_p0 }
   0xc   :  { %5394 = shalt.err (!%p5391_p4)
}
   0xd   :  { %s5505_s10 = smov 128   ;;  %s5506_s11 = smov 8  }
   0xe   :  { %42 = dma.hbm_to_vmem [thread:$0]  %s8332_s2, 512, %s37_s28, [#allocation12], %s5505_s10, %s5505_s10, %s5506_s11  }
   0xf   :  { %s5403_s14 = scalar_lea.vmem %s63_s30, 8192  ;;  %p5408_p6 = scmp.lt.s32.totalorder %s63_s30, %s63_s30 }
  0x10   :  { %p5404_p5 = scmp.ne.s32.totalorder %s63_s30, %s5403_s14  ;;  %p5409_p7 = scmp.lt.s32.totalorder %s5403_s14, %s5403_s14 }
  0x12   :  { %p5410_p8 = por %p5409_p7, %p5408_p6 }
  0x14   :  { %p5411_p9 = pnand %p5410_p8, %p5404_p5 }
  0x16   :  { %5414 = shalt.err (!%p5411_p9)
}
  0x17   :  { %s5507_s15 = smov 512   ;;  %s5508_s16 = smov 32  }
  0x18   :  { %68 = dma.hbm_to_vmem [thread:$0]  %s8335_s5, 8192, %s63_s30, [#allocation15], %s5507_s15, %s5507_s15, %s5508_s16  }
  0x19   :  { %s5509_s19 = smov [#allocation8]   ;;  %s5510_s21 = smov [#allocation13]  }
  0x1a   :  { %s24_s20 = sshll.u32 %s5509_s19, 4  ;;  %s50_s2 = sshll.u32 %s5510_s21, 4  ;;  %s25_s20 = int_to_ptr.vmem [resolvable:$true] %s24_s20  ;;  %s51_s2 = int_to_ptr.vmem [resolvable:$true] %s50_s2 }
  0x1b   :  { %s5423_s22 = scalar_lea.vmem %s25_s20, 1024  ;;  %p5428_p11 = scmp.lt.s32.totalorder %s25_s20, %s25_s20 }
  0x1c   :  { %p5424_p10 = scmp.ne.s32.totalorder %s25_s20, %s5423_s22  ;;  %p5429_p12 = scmp.lt.s32.totalorder %s5423_s22, %s5423_s22 }
  0x1e   :  { %p5430_p13 = por %p5429_p12, %p5428_p11 }
  0x20   :  { %p5431_p0 = pnand %p5430_p13, %p5424_p10 }
  0x22   :  { %5434 = shalt.err (!%p5431_p0)
}
  0x23   :  { %30 = dma.hbm_to_vmem [thread:$0]  %s8331_s1, 1024, %s25_s20, [#allocation9], %s5505_s10, %s5505_s10, %s5506_s11  }
  0x24   :  { %s5443_s5 = scalar_lea.vmem %s51_s2, 16384  ;;  %p5448_p2 = scmp.lt.s32.totalorder %s51_s2, %s51_s2 }
  0x25   :  { %p5444_p1 = scmp.ne.s32.totalorder %s51_s2, %s5443_s5  ;;  %p5449_p3 = scmp.lt.s32.totalorder %s5443_s5, %s5443_s5 }
  0x27   :  { %p5450_p4 = por %p5449_p3, %p5448_p2 }
  0x29   :  { %p5451_p5 = pnand %p5450_p4, %p5444_p1 }
  0x2b   :  { %5454 = shalt.err (!%p5451_p5)
}
  0x2c   :  { %s5511_s25 = smov 1024   ;;  %s5512_s26 = smov 64  }
  0x2d   :  { %56 = dma.hbm_to_vmem [thread:$0]  %s8334_s4, 16384, %s51_s2, [#allocation12], %s5511_s25, %s5511_s25, %s5512_s26  }
  0x2e   :  { %s5513_s29 = smov [#allocation16]  }
  0x2f   :  { %s74_s30 = sshll.u32 %s5513_s29, 4  ;;  %s75_s30 = int_to_ptr.vmem [resolvable:$true] %s74_s30 }
  0x30   :  { %s5463_s9 = scalar_lea.vmem %s75_s30, 8192  ;;  %p5468_p7 = scmp.lt.s32.totalorder %s75_s30, %s75_s30 }
  0x31   :  { %p5464_p6 = scmp.ne.s32.totalorder %s75_s30, %s5463_s9  ;;  %p5469_p8 = scmp.lt.s32.totalorder %s5463_s9, %s5463_s9 }
  0x33   :  { %p5470_p9 = por %p5469_p8, %p5468_p7 }
  0x35   :  { %p5471_p10 = pnand %p5470_p9, %p5464_p6 }
  0x37   :  { %5474 = shalt.err (!%p5471_p10)
}
  0x38   :  { %80 = dma.hbm_to_vmem [thread:$0]  %s8336_s6, 8192, %s75_s30, [#allocation15], %s5507_s15, %s5507_s15, %s5508_s16  }
  0x39   :  { %5495 = dma.done.wait [#allocation9], 1024  }
  0x3a   :  { %5496 = vsyncadd [#allocation9], 4294966272 }
  0x3b   :  { %5497 = dma.done.wait [#allocation12], 16896  }
  0x3c   :  { %5498 = vsyncadd [#allocation12], 4294950400 }
  0x3d   :  { %5499 = dma.done.wait [#allocation15], 16384  }
  0x3e   :  { %5500 = vsyncadd [#allocation15], 4294950912  ;;  %vm117_vm0 = vcmask 261120   ;;  %v109_v0 = vld [vmem:[#allocation11 + $0x18] sm:$0xff]  ;;  %v108_v1 = vld [vmem:[#allocation11 + $0x10] sm:$0xff] }
  0x3f   :  { %5083 = vmatprep.subr.mxu0 %v109_v0  ;;  %v98_v2 = vld [vmem:[#allocation8] sm:$0xff]  ;;  %v107_v3 = vld [vmem:[#allocation11 + $0x8] sm:$0xff]  ;;  %v378_v9 = vld [vmem:[#allocation13 + $0x3d8] sm:$0xff] }
  0x40   :  { %5084 = vmatpush3.msra.mxu0 %v109_v0  ;;  %5091 = vmatprep.mubr.msk.f32.mxu0 %vm117_vm0, %v98_v2  ;;  %v106_v4 = vld [vmem:[#allocation11] sm:$0xff]  ;;  %v376_v5 = vld [vmem:[#allocation13 + $0x3c8] sm:$0xff]  ;;  %v100_v11 = vld [vmem:[#allocation8 + $0x10] sm:$0xff] }
  0x41   :  { %5085 = vmatprep.subr.mxu0 %v108_v1  ;;  %v375_v6 = vld [vmem:[#allocation13 + $0x3c0] sm:$0xff]  ;;  %425 = vmatprep.subr.mxu1 %v376_v5  ;;  %v368_v7 = vld [vmem:[#allocation13 + $0x388] sm:$0xff]  ;;  %v377_v12 = vld [vmem:[#allocation13 + $0x3d0] sm:$0xff] }
  0x42   :  { %5086 = vmatpush3.msra.mxu0 %v108_v1  ;;  %v99_v8 = vld [vmem:[#allocation8 + $0x8] sm:$0xff]  ;;  %426 = vmatpush1.msra.mxu1 %v375_v6  ;;  %v367_v10 = vld [vmem:[#allocation13 + $0x380] sm:$0xff]  ;;  %v370_v13 = vld [vmem:[#allocation13 + $0x398] sm:$0xff] }
  0x43   :  { %5087 = vmatprep.subr.mxu0 %v107_v3  ;;  %427 = vmatprep.subr.mxu1 %v368_v7  ;;  %v360_v14 = vld [vmem:[#allocation13 + $0x348] sm:$0xff]  ;;  %v369_v15 = vld [vmem:[#allocation13 + $0x390] sm:$0xff]  ;;  %v359_v16 = vld [vmem:[#allocation13 + $0x340] sm:$0xff] }
  0x44   :  { %5088 = vmatpush3.msra.mxu0 %v107_v3  ;;  %428 = vmatpush1.msra.mxu1 %v367_v10  ;;  %v101_v17 = vld [vmem:[#allocation8 + $0x18] sm:$0xff]  ;;  %v102_v19 = vld [vmem:[#allocation8 + $0x20] sm:$0xff]  ;;  %v361_v20 = vld [vmem:[#allocation13 + $0x350] sm:$0xff] }
  0x45   :  { %5089 = vmatprep.subr.mxu0 %v106_v4  ;;  %v362_v18 = vld [vmem:[#allocation13 + $0x358] sm:$0xff]  ;;  %429 = vmatprep.subr.mxu1 %v360_v14  ;;  %v352_v21 = vld [vmem:[#allocation13 + $0x308] sm:$0xff]  ;;  %v351_v23 = vld [vmem:[#allocation13 + $0x300] sm:$0xff]  ;;  %v8341_v14 = vmov 0.0  }
  0x46   :  { %5090 = vmatpush3.msra.mxu0 %v106_v4  ;;  %430 = vmatpush1.msra.mxu1 %v359_v16  ;;  %v354_v22 = vld [vmem:[#allocation13 + $0x318] sm:$0xff]  ;;  %v353_v24 = vld [vmem:[#allocation13 + $0x310] sm:$0xff]  ;;  %v103_v25 = vld [vmem:[#allocation8 + $0x28] sm:$0xff] }
  0x47   :  { %5092 = vmatmul.mubr.msk.f32.vlgmr.msra.gmra.mxu0 %vm117_vm0, %v99_v8  ;;  %538 = vmatprep.subr.mxu0 %v378_v9  ;;  %v344_v26 = vld [vmem:[#allocation13 + $0x2c8] sm:$0xff]  ;;  %v104_v27 = vld [vmem:[#allocation8 + $0x30] sm:$0xff]  ;;  %v346_v28 = vld [vmem:[#allocation13 + $0x2d8] sm:$0xff] }
  0x48   :  { %5094 = vmatprep.mubr.msk.f32.mxu0 %vm117_vm0, %v100_v11  ;;  %539 = vmatpush1.msra.mxu0 %v377_v12  ;;  %v343_v29 = vld [vmem:[#allocation13 + $0x2c0] sm:$0xff]  ;;  %v345_v30 = vld [vmem:[#allocation13 + $0x2d0] sm:$0xff]  ;;  %v336_v31 = vld [vmem:[#allocation13 + $0x288] sm:$0xff] }
  0x49   :  { %540 = vmatprep.subr.mxu0 %v370_v13  ;;  %431 = vmatprep.subr.mxu1 %v352_v21  ;;  %v338_v32 = vld [vmem:[#allocation13 + $0x298] sm:$0xff]  ;;  %v335_v34 = vld [vmem:[#allocation13 + $0x280] sm:$0xff]  ;;  %v337_v35 = vld [vmem:[#allocation13 + $0x290] sm:$0xff] }
  0x4a   :  { %541 = vmatpush1.msra.mxu0 %v369_v15  ;;  %432 = vmatpush1.msra.mxu1 %v351_v23  ;;  %v105_v33 = vld [vmem:[#allocation8 + $0x38] sm:$0xff]  ;;  %v328_v36 = vld [vmem:[#allocation13 + $0x248] sm:$0xff]  ;;  %v327_v38 = vld [vmem:[#allocation13 + $0x240] sm:$0xff] }
  0x4b   :  { %5095 = vmatmul.mubr.msk.f32.gmra.mxu0 %vm117_vm0, %v101_v17  ;;  %542 = vmatprep.subr.mxu0 %v362_v18  ;;  %v330_v37 = vld [vmem:[#allocation13 + $0x258] sm:$0xff]  ;;  %v329_v39 = vld [vmem:[#allocation13 + $0x250] sm:$0xff]  ;;  %v320_v40 = vld [vmem:[#allocation13 + $0x208] sm:$0xff] }
  0x4c   :  { %5097 = vmatprep.mubr.msk.f32.mxu0 %vm117_vm0, %v102_v19  ;;  %543 = vmatpush1.msra.mxu0 %v361_v20  ;;  %v322_v41 = vld [vmem:[#allocation13 + $0x218] sm:$0xff]  ;;  %v319_v42 = vld [vmem:[#allocation13 + $0x200] sm:$0xff]  ;;  %v321_v43 = vld [vmem:[#allocation13 + $0x210] sm:$0xff] }
  0x4d   :  { %544 = vmatprep.subr.mxu0 %v354_v22  ;;  %433 = vmatprep.subr.mxu1 %v344_v26  ;;  %v312_v44 = vld [vmem:[#allocation13 + $0x1c8] sm:$0xff]  ;;  %v314_v45 = vld [vmem:[#allocation13 + $0x1d8] sm:$0xff]  ;;  %v311_v46 = vld [vmem:[#allocation13 + $0x1c0] sm:$0xff] }
  0x4e   :  { %545 = vmatpush1.msra.mxu0 %v353_v24  ;;  %434 = vmatpush1.msra.mxu1 %v343_v29  ;;  %v313_v47 = vld [vmem:[#allocation13 + $0x1d0] sm:$0xff]  ;;  %v304_v48 = vld [vmem:[#allocation13 + $0x188] sm:$0xff]  ;;  %v306_v49 = vld [vmem:[#allocation13 + $0x198] sm:$0xff] }
  0x4f   :  { %5098 = vmatmul.mubr.msk.f32.gmra.mxu0 %vm117_vm0, %v103_v25  ;;  %546 = vmatprep.subr.mxu0 %v346_v28  ;;  %v303_v50 = vld [vmem:[#allocation13 + $0x180] sm:$0xff]  ;;  %v305_v51 = vld [vmem:[#allocation13 + $0x190] sm:$0xff]  ;;  %v296_v52 = vld [vmem:[#allocation13 + $0x148] sm:$0xff] }
  0x50   :  { %5100 = vmatprep.mubr.msk.f32.mxu0 %vm117_vm0, %v104_v27  ;;  %547 = vmatpush1.msra.mxu0 %v345_v30  ;;  %v298_v53 = vld [vmem:[#allocation13 + $0x158] sm:$0xff]  ;;  %v295_v54 = vld [vmem:[#allocation13 + $0x140] sm:$0xff]  ;;  %v297_v55 = vld [vmem:[#allocation13 + $0x150] sm:$0xff] }
  0x51   :  { %435 = vmatprep.subr.mxu1 %v336_v31  ;;  %548 = vmatprep.subr.mxu0 %v338_v32  ;;  %v288_v56 = vld [vmem:[#allocation13 + $0x108] sm:$0xff]  ;;  %v290_v57 = vld [vmem:[#allocation13 + $0x118] sm:$0xff]  ;;  %v287_v58 = vld [vmem:[#allocation13 + $0x100] sm:$0xff] }
  0x52   :  { %436 = vmatpush1.msra.mxu1 %v335_v34  ;;  %549 = vmatpush1.msra.mxu0 %v337_v35  ;;  %v289_v59 = vld [vmem:[#allocation13 + $0x110] sm:$0xff]  ;;  %v280_v60 = vld [vmem:[#allocation13 + $0xc8] sm:$0xff]  ;;  %v282_v61 = vld [vmem:[#allocation13 + $0xd8] sm:$0xff] }
  0x53   :  { %5101 = vmatmul.mubr.msk.f32.gmra.mxu0 %vm117_vm0, %v105_v33  ;;  %437 = vmatprep.subr.mxu1 %v328_v36  ;;  %v279_v62 = vld [vmem:[#allocation13 + $0xc0] sm:$0xff]  ;;  %v281_v63 = vld [vmem:[#allocation13 + $0xd0] sm:$0xff]  ;;  %v272_v0 = vld [vmem:[#allocation13 + $0x88] sm:$0xff] }
  0x54   :  { %550 = vmatprep.subr.mxu0 %v330_v37  ;;  %438 = vmatpush1.msra.mxu1 %v327_v38  ;;  %v274_v1 = vld [vmem:[#allocation13 + $0x98] sm:$0xff]  ;;  %v271_v2 = vld [vmem:[#allocation13 + $0x80] sm:$0xff]  ;;  %v273_v3 = vld [vmem:[#allocation13 + $0x90] sm:$0xff] }
  0x55   :  { %551 = vmatpush1.msra.mxu0 %v329_v39  ;;  %439 = vmatprep.subr.mxu1 %v320_v40  ;;  %v264_v4 = vld [vmem:[#allocation13 + $0x48] sm:$0xff]  ;;  %v266_v5 = vld [vmem:[#allocation13 + $0x58] sm:$0xff]  ;;  %v263_v6 = vld [vmem:[#allocation13 + $0x40] sm:$0xff] }
  0x56   :  { %552 = vmatprep.subr.mxu0 %v322_v41  ;;  %440 = vmatpush1.msra.mxu1 %v319_v42  ;;  %v265_v7 = vld [vmem:[#allocation13 + $0x50] sm:$0xff]  ;;  %v256_v8 = vld [vmem:[#allocation13 + $0x8] sm:$0xff]  ;;  %v258_v9 = vld [vmem:[#allocation13 + $0x18] sm:$0xff] }
  0x57   :  { %553 = vmatpush1.msra.mxu0 %v321_v43  ;;  %441 = vmatprep.subr.mxu1 %v312_v44  ;;  %v255_v10 = vld [vmem:[#allocation13] sm:$0xff]  ;;  %v257_v11 = vld [vmem:[#allocation13 + $0x10] sm:$0xff]  ;;  %v380_v12 = vld [vmem:[#allocation13 + $0x3e8] sm:$0xff] }
  0x58   :  { %554 = vmatprep.subr.mxu0 %v314_v45  ;;  %442 = vmatpush1.msra.mxu1 %v311_v46  ;;  %v382_v13 = vld [vmem:[#allocation13 + $0x3f8] sm:$0xff]  ;;  %v5602_v16 = vld [vmem:[%s8333_s3] ss:$0 sm:$0xff]  ;;  %v381_v20 = vld [vmem:[#allocation13 + $0x3f0] sm:$0xff] }
  0x59   :  { %555 = vmatpush1.msra.mxu0 %v313_v47  ;;  %443 = vmatprep.subr.mxu1 %v304_v48  ;;  %v379_v19 = vld [vmem:[#allocation13 + $0x3e0] sm:$0xff]  ;;  %v372_v21 = vld [vmem:[#allocation13 + $0x3a8] sm:$0xff]  ;;  %v374_v22 = vld [vmem:[#allocation13 + $0x3b8] sm:$0xff] }
  0x5a   :  { %556 = vmatprep.subr.mxu0 %v306_v49  ;;  %444 = vmatpush1.msra.mxu1 %v303_v50  ;;  %v371_v23 = vld [vmem:[#allocation13 + $0x3a0] sm:$0xff]  ;;  %v373_v24 = vld [vmem:[#allocation13 + $0x3b0] sm:$0xff]  ;;  %v364_v25 = vld [vmem:[#allocation13 + $0x368] sm:$0xff] }
  0x5b   :  { %557 = vmatpush1.msra.mxu0 %v305_v51  ;;  %445 = vmatprep.subr.mxu1 %v296_v52  ;;  %v366_v26 = vld [vmem:[#allocation13 + $0x378] sm:$0xff]  ;;  %v363_v29 = vld [vmem:[#allocation13 + $0x360] sm:$0xff]  ;;  %v365_v30 = vld [vmem:[#allocation13 + $0x370] sm:$0xff] }
  0x5c   :  { %558 = vmatprep.subr.mxu0 %v298_v53  ;;  %446 = vmatpush1.msra.mxu1 %v295_v54  ;;  %v356_v31 = vld [vmem:[#allocation13 + $0x328] sm:$0xff]  ;;  %v358_v32 = vld [vmem:[#allocation13 + $0x338] sm:$0xff]  ;;  %v355_v33 = vld [vmem:[#allocation13 + $0x320] sm:$0xff] }
  0x5d   :  { %559 = vmatpush1.msra.mxu0 %v297_v55  ;;  %447 = vmatprep.subr.mxu1 %v288_v56  ;;  %v357_v34 = vld [vmem:[#allocation13 + $0x330] sm:$0xff]  ;;  %v348_v36 = vld [vmem:[#allocation13 + $0x2e8] sm:$0xff]  ;;  %v350_v37 = vld [vmem:[#allocation13 + $0x2f8] sm:$0xff] }
  0x5e   :  { %560 = vmatprep.subr.mxu0 %v290_v57  ;;  %448 = vmatpush1.msra.mxu1 %v287_v58  ;;  %v347_v39 = vld [vmem:[#allocation13 + $0x2e0] sm:$0xff]  ;;  %v349_v40 = vld [vmem:[#allocation13 + $0x2f0] sm:$0xff]  ;;  %v340_v41 = vld [vmem:[#allocation13 + $0x2a8] sm:$0xff] }
  0x5f   :  { %561 = vmatpush1.msra.mxu0 %v289_v59  ;;  %449 = vmatprep.subr.mxu1 %v280_v60  ;;  %v342_v42 = vld [vmem:[#allocation13 + $0x2b8] sm:$0xff]  ;;  %v339_v43 = vld [vmem:[#allocation13 + $0x2a0] sm:$0xff]  ;;  %v341_v44 = vld [vmem:[#allocation13 + $0x2b0] sm:$0xff] }
  0x60   :  { %562 = vmatprep.subr.mxu0 %v282_v61  ;;  %450 = vmatpush1.msra.mxu1 %v279_v62  ;;  %v332_v45 = vld [vmem:[#allocation13 + $0x268] sm:$0xff]  ;;  %v334_v46 = vld [vmem:[#allocation13 + $0x278] sm:$0xff]  ;;  %v331_v49 = vld [vmem:[#allocation13 + $0x260] sm:$0xff] }
  0x61   :  { %563 = vmatpush1.msra.mxu0 %v281_v63  ;;  %451 = vmatprep.subr.mxu1 %v272_v0  ;;  %v333_v50 = vld [vmem:[#allocation13 + $0x270] sm:$0xff]  ;;  %v324_v51 = vld [vmem:[#allocation13 + $0x228] sm:$0xff]  ;;  %v326_v52 = vld [vmem:[#allocation13 + $0x238] sm:$0xff] }
  0x62   :  { %564 = vmatprep.subr.mxu0 %v274_v1  ;;  %452 = vmatpush1.msra.mxu1 %v271_v2  ;;  %v323_v53 = vld [vmem:[#allocation13 + $0x220] sm:$0xff]  ;;  %v325_v54 = vld [vmem:[#allocation13 + $0x230] sm:$0xff]  ;;  %v316_v56 = vld [vmem:[#allocation13 + $0x1e8] sm:$0xff] }
  0x63   :  { %565 = vmatpush1.msra.mxu0 %v273_v3  ;;  %453 = vmatprep.subr.mxu1 %v264_v4  ;;  %v318_v57 = vld [vmem:[#allocation13 + $0x1f8] sm:$0xff]  ;;  %v315_v59 = vld [vmem:[#allocation13 + $0x1e0] sm:$0xff]  ;;  %v317_v60 = vld [vmem:[#allocation13 + $0x1f0] sm:$0xff] }
  0x64   :  { %566 = vmatprep.subr.mxu0 %v266_v5  ;;  %454 = vmatpush1.msra.mxu1 %v263_v6  ;;  %v308_v61 = vld [vmem:[#allocation13 + $0x1a8] sm:$0xff]  ;;  %v310_v62 = vld [vmem:[#allocation13 + $0x1b8] sm:$0xff]  ;;  %v307_v63 = vld [vmem:[#allocation13 + $0x1a0] sm:$0xff] }
  0x65   :  { %567 = vmatpush1.msra.mxu0 %v265_v7  ;;  %455 = vmatprep.subr.mxu1 %v256_v8  ;;  %v309_v0 = vld [vmem:[#allocation13 + $0x1b0] sm:$0xff]  ;;  %v300_v1 = vld [vmem:[#allocation13 + $0x168] sm:$0xff]  ;;  %v302_v2 = vld [vmem:[#allocation13 + $0x178] sm:$0xff] }
  0x66   :  { %568 = vmatprep.subr.mxu0 %v258_v9  ;;  %456 = vmatpush1.msra.mxu1 %v255_v10  ;;  %v299_v5 = vld [vmem:[#allocation13 + $0x160] sm:$0xff]  ;;  %v301_v6 = vld [vmem:[#allocation13 + $0x170] sm:$0xff]  ;;  %v292_v7 = vld [vmem:[#allocation13 + $0x128] sm:$0xff] }
  0x67   :  { %569 = vmatpush1.msra.mxu0 %v257_v11  ;;  %489 = vmatprep.mubr.f32.mxu1 %v8341_v14  ;;  %v294_v8 = vld [vmem:[#allocation13 + $0x138] sm:$0xff]  ;;  %v291_v9 = vld [vmem:[#allocation13 + $0x120] sm:$0xff]  ;;  %v293_v10 = vld [vmem:[#allocation13 + $0x130] sm:$0xff] }
  0x68   :  { %602 = vmatprep.mubr.f32.mxu0 %v8341_v14  ;;  %651 = vmatprep.subr.mxu1 %v380_v12  ;;  %v284_v12 = vld [vmem:[#allocation13 + $0xe8] sm:$0xff] }
  0x69   :  { %764 = vmatprep.subr.mxu0 %v382_v13  ;;  %v286_v13 = vld [vmem:[#allocation13 + $0xf8] sm:$0xff] }
 0x107   :  { %v5093_v15 = vpop.f32.mrf.mxu0 }
 0x108   :  { %v5610_v28 = vadd.f32 %v5093_v15, %v5602_v16 }
 0x109   :  { %v208_v17 = vpop.f32.mrf.mxu0 }
 0x10a   :  { %v5605_v18 = vadd.f32 %v5602_v16, %v208_v17  ;;  %8668 = vst [vmem:[#allocation23_spill] sm:$0xff] %v5610_v28  ;;  %v283_v17 = vld [vmem:[#allocation13 + $0xe0] sm:$0xff] }
 0x10b   :  { %v5096_v27 = vpop.f32.mrf.mxu0 }
 0x10c   :  { %8667 = vst [vmem:[#allocation22_spill] sm:$0xff] %v5605_v18  ;;  %490 = vmatmul.mubr.f32.vlgmr.msra.gmra.mxu1 %v5605_v18  ;;  %603 = vmatmul.mubr.f32.vlgmr.msra.gmra.mxu0 %v5605_v18  ;;  %v5624_v48 = vadd.f32 %v5096_v27, %v5602_v16  ;;  %v267_v27 = vld [vmem:[#allocation13 + $0x60] sm:$0xff] }
 0x10d   :  { %652 = vmatpush1.msra.mxu1 %v379_v19  ;;  %765 = vmatpush1.msra.mxu0 %v381_v20  ;;  %v218_v35 = vpop.f32.mrf.mxu0  ;;  %v285_v19 = vld [vmem:[#allocation13 + $0xf0] sm:$0xff]  ;;  %v276_v20 = vld [vmem:[#allocation13 + $0xa8] sm:$0xff] }
 0x10e   :  { %653 = vmatprep.subr.mxu1 %v372_v21  ;;  %766 = vmatprep.subr.mxu0 %v374_v22  ;;  %v5617_v38 = vadd.f32 %v5602_v16, %v218_v35  ;;  %8670 = vst [vmem:[#allocation25_spill] sm:$0xff] %v5624_v48  ;;  %v278_v21 = vld [vmem:[#allocation13 + $0xb8] sm:$0xff]  ;;  %v275_v22 = vld [vmem:[#allocation13 + $0xa0] sm:$0xff] }
 0x10f   :  { %654 = vmatpush1.msra.mxu1 %v371_v23  ;;  %767 = vmatpush1.msra.mxu0 %v373_v24  ;;  %v5099_v47 = vpop.f32.mrf.mxu0  ;;  %v277_v23 = vld [vmem:[#allocation13 + $0xb0] sm:$0xff]  ;;  %v268_v24 = vld [vmem:[#allocation13 + $0x68] sm:$0xff]  ;;  %v5664_v35 = vld [vmem:[#allocation14 + $0x1e0] sm:$0xff] }
 0x110   :  { %495 = vmatprep.mubr.f32.mxu1 %v8341_v14  ;;  %608 = vmatprep.mubr.f32.mxu0 %v8341_v14  ;;  %8669 = vst [vmem:[#allocation24_spill] sm:$0xff] %v5617_v38  ;;  %v5638_v4 = vadd.f32 %v5099_v47, %v5602_v16  ;;  %v5700_v47 = vld [vmem:[#allocation14 + $0x198] sm:$0xff] }
 0x111   :  { %655 = vmatprep.subr.mxu1 %v364_v25  ;;  %768 = vmatprep.subr.mxu0 %v366_v26  ;;  %v228_v55 = vpop.f32.mrf.mxu0  ;;  %v270_v25 = vld [vmem:[#allocation13 + $0x78] sm:$0xff] }
 0x112   :  { %496 = vmatmul.mubr.f32.gmra.mxu1 %v5610_v28  ;;  %609 = vmatmul.mubr.f32.gmra.mxu0 %v5610_v28  ;;  %v5631_v58 = vadd.f32 %v5602_v16, %v228_v55  ;;  %8672 = vst [vmem:[#allocation27_spill] sm:$0xff] %v5638_v4  ;;  %v5726_v55 = vld [vmem:[#allocation14 + $0x148] sm:$0xff] }
 0x113   :  { %656 = vmatpush1.msra.mxu1 %v363_v29  ;;  %769 = vmatpush1.msra.mxu0 %v365_v30  ;;  %v5102_v3 = vpop.f32.mrf.mxu0  ;;  %v269_v29 = vld [vmem:[#allocation13 + $0x70] sm:$0xff]  ;;  %v260_v30 = vld [vmem:[#allocation13 + $0x28] sm:$0xff] }
 0x114   :  { %657 = vmatprep.subr.mxu1 %v356_v31  ;;  %770 = vmatprep.subr.mxu0 %v358_v32  ;;  %8671 = vst [vmem:[#allocation26_spill] sm:$0xff] %v5631_v58  ;;  %v5652_v26 = vadd.f32 %v5102_v3, %v5602_v16  ;;  %v262_v31 = vld [vmem:[#allocation13 + $0x38] sm:$0xff]  ;;  %v259_v32 = vld [vmem:[#allocation13 + $0x20] sm:$0xff]  ;;  %v5762_v3 = vld [vmem:[#allocation14 + $0x110] sm:$0xff] }
 0x115   :  { %658 = vmatpush1.msra.mxu1 %v355_v33  ;;  %771 = vmatpush1.msra.mxu0 %v357_v34  ;;  %v238_v11 = vpop.f32.mrf.mxu0  ;;  %v261_v33 = vld [vmem:[#allocation13 + $0x30] sm:$0xff]  ;;  %v5660_v34 = vld [vmem:[#allocation14 + $0x1f8] sm:$0xff] }
 0x116   :  { %501 = vmatprep.mubr.f32.mxu1 %v8341_v14  ;;  %614 = vmatprep.mubr.f32.mxu0 %v8341_v14  ;;  %v5645_v15 = vadd.f32 %v5602_v16, %v238_v11  ;;  %8674 = vst [vmem:[#allocation29_spill] sm:$0xff] %v5652_v26  ;;  %v5658_v16 = vld [vmem:[#allocation14 + $0x1e8] sm:$0xff]  ;;  %v5788_v11 = vld [vmem:[#allocation14 + $0xc0] sm:$0xff] }
 0x117   :  { %659 = vmatprep.subr.mxu1 %v348_v36  ;;  %772 = vmatprep.subr.mxu0 %v350_v37  ;;  %v5666_v36 = vld [vmem:[#allocation14 + $0x1f0] sm:$0xff]  ;;  %v5670_v37 = vld [vmem:[#allocation14 + $0x1c8] sm:$0xff] }
 0x118   :  { %502 = vmatmul.mubr.f32.gmra.mxu1 %v5617_v38  ;;  %615 = vmatmul.mubr.f32.gmra.mxu0 %v5617_v38  ;;  %8673 = vst [vmem:[#allocation28_spill] sm:$0xff] %v5645_v15 }
 0x119   :  { %660 = vmatpush1.msra.mxu1 %v347_v39  ;;  %773 = vmatpush1.msra.mxu0 %v349_v40  ;;  %v5672_v39 = vld [vmem:[#allocation14 + $0x1d8] sm:$0xff]  ;;  %v5676_v40 = vld [vmem:[#allocation14 + $0x1c0] sm:$0xff] }
 0x11a   :  { %661 = vmatprep.subr.mxu1 %v340_v41  ;;  %774 = vmatprep.subr.mxu0 %v342_v42  ;;  %v5678_v41 = vld [vmem:[#allocation14 + $0x1d0] sm:$0xff]  ;;  %v5684_v42 = vld [vmem:[#allocation14 + $0x1a8] sm:$0xff] }
 0x11b   :  { %662 = vmatpush1.msra.mxu1 %v339_v43  ;;  %775 = vmatpush1.msra.mxu0 %v341_v44  ;;  %v5686_v43 = vld [vmem:[#allocation14 + $0x1b8] sm:$0xff]  ;;  %v5692_v44 = vld [vmem:[#allocation14 + $0x1a0] sm:$0xff] }
 0x11c   :  { %507 = vmatprep.mubr.f32.mxu1 %v8341_v14  ;;  %620 = vmatprep.mubr.f32.mxu0 %v8341_v14 }
 0x11d   :  { %663 = vmatprep.subr.mxu1 %v332_v45  ;;  %776 = vmatprep.subr.mxu0 %v334_v46  ;;  %v5694_v45 = vld [vmem:[#allocation14 + $0x1b0] sm:$0xff]  ;;  %v5698_v46 = vld [vmem:[#allocation14 + $0x188] sm:$0xff] }
 0x11e   :  { %508 = vmatmul.mubr.f32.gmra.mxu1 %v5624_v48  ;;  %621 = vmatmul.mubr.f32.gmra.mxu0 %v5624_v48 }
 0x11f   :  { %664 = vmatpush1.msra.mxu1 %v331_v49  ;;  %777 = vmatpush1.msra.mxu0 %v333_v50  ;;  %v5704_v49 = vld [vmem:[#allocation14 + $0x180] sm:$0xff]  ;;  %v5706_v50 = vld [vmem:[#allocation14 + $0x190] sm:$0xff] }
 0x120   :  { %665 = vmatprep.subr.mxu1 %v324_v51  ;;  %778 = vmatprep.subr.mxu0 %v326_v52  ;;  %v5712_v51 = vld [vmem:[#allocation14 + $0x168] sm:$0xff]  ;;  %v5714_v52 = vld [vmem:[#allocation14 + $0x178] sm:$0xff] }
 0x121   :  { %666 = vmatpush1.msra.mxu1 %v323_v53  ;;  %779 = vmatpush1.msra.mxu0 %v325_v54  ;;  %v5720_v53 = vld [vmem:[#allocation14 + $0x160] sm:$0xff]  ;;  %v5722_v54 = vld [vmem:[#allocation14 + $0x170] sm:$0xff] }
 0x122   :  { %513 = vmatprep.mubr.f32.mxu1 %v8341_v14  ;;  %626 = vmatprep.mubr.f32.mxu0 %v8341_v14 }
 0x123   :  { %667 = vmatprep.subr.mxu1 %v316_v56  ;;  %780 = vmatprep.subr.mxu0 %v318_v57  ;;  %v5728_v56 = vld [vmem:[#allocation14 + $0x158] sm:$0xff]  ;;  %v5732_v57 = vld [vmem:[#allocation14 + $0x140] sm:$0xff] }
 0x124   :  { %514 = vmatmul.mubr.f32.gmra.mxu1 %v5631_v58  ;;  %627 = vmatmul.mubr.f32.gmra.mxu0 %v5631_v58 }
 0x125   :  { %668 = vmatpush1.msra.mxu1 %v315_v59  ;;  %781 = vmatpush1.msra.mxu0 %v317_v60  ;;  %v5734_v59 = vld [vmem:[#allocation14 + $0x150] sm:$0xff]  ;;  %v5740_v60 = vld [vmem:[#allocation14 + $0x128] sm:$0xff] }
 0x126   :  { %669 = vmatprep.subr.mxu1 %v308_v61  ;;  %782 = vmatprep.subr.mxu0 %v310_v62  ;;  %v5742_v61 = vld [vmem:[#allocation14 + $0x138] sm:$0xff]  ;;  %v5748_v62 = vld [vmem:[#allocation14 + $0x120] sm:$0xff] }
 0x127   :  { %670 = vmatpush1.msra.mxu1 %v307_v63  ;;  %783 = vmatpush1.msra.mxu0 %v309_v0  ;;  %v5750_v63 = vld [vmem:[#allocation14 + $0x130] sm:$0xff]  ;;  %v5754_v0 = vld [vmem:[#allocation14 + $0x108] sm:$0xff] }
 0x128   :  { %519 = vmatprep.mubr.f32.mxu1 %v8341_v14  ;;  %632 = vmatprep.mubr.f32.mxu0 %v8341_v14 }
 0x129   :  { %671 = vmatprep.subr.mxu1 %v300_v1  ;;  %784 = vmatprep.subr.mxu0 %v302_v2  ;;  %v5756_v1 = vld [vmem:[#allocation14 + $0x118] sm:$0xff]  ;;  %v5760_v2 = vld [vmem:[#allocation14 + $0x100] sm:$0xff] }
 0x12a   :  { %520 = vmatmul.mubr.f32.gmra.mxu1 %v5638_v4  ;;  %633 = vmatmul.mubr.f32.gmra.mxu0 %v5638_v4 }
 0x12b   :  { %672 = vmatpush1.msra.mxu1 %v299_v5  ;;  %785 = vmatpush1.msra.mxu0 %v301_v6  ;;  %v5768_v5 = vld [vmem:[#allocation14 + $0xe8] sm:$0xff]  ;;  %v5770_v6 = vld [vmem:[#allocation14 + $0xf8] sm:$0xff] }
 0x12c   :  { %673 = vmatprep.subr.mxu1 %v292_v7  ;;  %786 = vmatprep.subr.mxu0 %v294_v8  ;;  %v5776_v7 = vld [vmem:[#allocation14 + $0xe0] sm:$0xff]  ;;  %v5778_v8 = vld [vmem:[#allocation14 + $0xf0] sm:$0xff] }
 0x12d   :  { %674 = vmatpush1.msra.mxu1 %v291_v9  ;;  %787 = vmatpush1.msra.mxu0 %v293_v10  ;;  %v5782_v9 = vld [vmem:[#allocation14 + $0xc8] sm:$0xff]  ;;  %v5784_v10 = vld [vmem:[#allocation14 + $0xd8] sm:$0xff] }
 0x12e   :  { %525 = vmatprep.mubr.f32.mxu1 %v8341_v14  ;;  %638 = vmatprep.mubr.f32.mxu0 %v8341_v14 }
 0x12f   :  { %675 = vmatprep.subr.mxu1 %v284_v12  ;;  %788 = vmatprep.subr.mxu0 %v286_v13  ;;  %v5790_v12 = vld [vmem:[#allocation14 + $0xd0] sm:$0xff]  ;;  %v5796_v13 = vld [vmem:[#allocation14 + $0xa8] sm:$0xff] }
 0x130   :  { %526 = vmatmul.mubr.f32.gmra.mxu1 %v5645_v15  ;;  %639 = vmatmul.mubr.f32.gmra.mxu0 %v5645_v15 }
 0x131   :  { %676 = vmatpush1.msra.mxu1 %v283_v17  ;;  %789 = vmatpush1.msra.mxu0 %v285_v19  ;;  %v5798_v17 = vld [vmem:[#allocation14 + $0xb8] sm:$0xff]  ;;  %v5804_v19 = vld [vmem:[#allocation14 + $0xa0] sm:$0xff] }
 0x132   :  { %677 = vmatprep.subr.mxu1 %v276_v20  ;;  %790 = vmatprep.subr.mxu0 %v278_v21  ;;  %v5806_v20 = vld [vmem:[#allocation14 + $0xb0] sm:$0xff]  ;;  %v5810_v21 = vld [vmem:[#allocation14 + $0x88] sm:$0xff] }
 0x133   :  { %678 = vmatpush1.msra.mxu1 %v275_v22  ;;  %791 = vmatpush1.msra.mxu0 %v277_v23  ;;  %v5812_v22 = vld [vmem:[#allocation14 + $0x98] sm:$0xff]  ;;  %v5816_v23 = vld [vmem:[#allocation14 + $0x80] sm:$0xff] }
 0x134   :  { %531 = vmatprep.mubr.f32.mxu1 %v8341_v14  ;;  %644 = vmatprep.mubr.f32.mxu0 %v8341_v14 }
 0x135   :  { %679 = vmatprep.subr.mxu1 %v268_v24  ;;  %792 = vmatprep.subr.mxu0 %v270_v25  ;;  %v5818_v24 = vld [vmem:[#allocation14 + $0x90] sm:$0xff]  ;;  %v5824_v25 = vld [vmem:[#allocation14 + $0x68] sm:$0xff] }
 0x136   :  { %532 = vmatmul.mubr.f32.gmra.mxu1 %v5652_v26  ;;  %645 = vmatmul.mubr.f32.gmra.mxu0 %v5652_v26 }
 0x137   :  { %680 = vmatpush1.msra.mxu1 %v267_v27  ;;  %793 = vmatpush1.msra.mxu0 %v269_v29  ;;  %v5826_v27 = vld [vmem:[#allocation14 + $0x78] sm:$0xff]  ;;  %v5832_v29 = vld [vmem:[#allocation14 + $0x60] sm:$0xff] }
 0x138   :  { %681 = vmatprep.subr.mxu1 %v260_v30  ;;  %794 = vmatprep.subr.mxu0 %v262_v31  ;;  %v5834_v30 = vld [vmem:[#allocation14 + $0x70] sm:$0xff]  ;;  %v5838_v31 = vld [vmem:[#allocation14 + $0x48] sm:$0xff] }
 0x139   :  { %682 = vmatpush1.msra.mxu1 %v259_v32  ;;  %795 = vmatpush1.msra.mxu0 %v261_v33  ;;  %8675 = vst [vmem:[#allocation30_spill] sm:$0xff] %v5838_v31  ;;  %v5840_v32 = vld [vmem:[#allocation14 + $0x58] sm:$0xff]  ;;  %v5844_v33 = vld [vmem:[#allocation14 + $0x40] sm:$0xff] }
 0x13a   :  { %715 = vmatprep.mubr.f32.mxu1 %v8341_v14  ;;  %828 = vmatprep.mubr.f32.mxu0 %v8341_v14  ;;  %8676 = vst [vmem:[#allocation31_spill] sm:$0xff] %v5840_v32  ;;  %8677 = vst [vmem:[#allocation32_spill] sm:$0xff] %v5844_v33 }
 0x13b   :  { %1016 = vmatprep.subr.mxu1 %v5658_v16  ;;  %1087 = vmatprep.subr.mxu0 %v5660_v34 }
 0x13c   :  { %716 = vmatmul.mubr.f32.vlgmr.msra.gmra.mxu1 %v5605_v18  ;;  %829 = vmatmul.mubr.f32.vlgmr.msra.gmra.mxu0 %v5605_v18  ;;  %v5868_v18 = vld [vmem:[#allocation14 + $0x18] sm:$0xff] }
 0x13d   :  { %1017 = vmatpush1.msra.mxu1 %v5664_v35  ;;  %1088 = vmatpush1.msra.mxu0 %v5666_v36  ;;  %8685 = vst [vmem:[#allocation39_spill] sm:$0xff] %v5868_v18 }
 0x13e   :  { %1018 = vmatprep.subr.mxu1 %v5670_v37  ;;  %1089 = vmatprep.subr.mxu0 %v5672_v39 }
 0x13f   :  { %1019 = vmatpush1.msra.mxu1 %v5676_v40  ;;  %1090 = vmatpush1.msra.mxu0 %v5678_v41 }
 0x140   :  { %721 = vmatprep.mubr.f32.mxu1 %v8341_v14  ;;  %834 = vmatprep.mubr.f32.mxu0 %v8341_v14 }
 0x141   :  { %1020 = vmatprep.subr.mxu1 %v5684_v42  ;;  %1091 = vmatprep.subr.mxu0 %v5686_v43 }
 0x142   :  { %722 = vmatmul.mubr.f32.gmra.mxu1 %v5610_v28  ;;  %835 = vmatmul.mubr.f32.gmra.mxu0 %v5610_v28  ;;  %v5866_v28 = vld [vmem:[#allocation14 + $0x8] sm:$0xff] }
 0x143   :  { %1021 = vmatpush1.msra.mxu1 %v5692_v44  ;;  %1092 = vmatpush1.msra.mxu0 %v5694_v45  ;;  %8684 = vst [vmem:[#allocation38_spill] sm:$0xff] %v5866_v28 }
 0x144   :  { %1022 = vmatprep.subr.mxu1 %v5698_v46  ;;  %1093 = vmatprep.subr.mxu0 %v5700_v47 }
 0x145   :  { %1023 = vmatpush1.msra.mxu1 %v5704_v49  ;;  %1094 = vmatpush1.msra.mxu0 %v5706_v50 }
 0x146   :  { %727 = vmatprep.mubr.f32.mxu1 %v8341_v14  ;;  %840 = vmatprep.mubr.f32.mxu0 %v8341_v14 }
 0x147   :  { %1024 = vmatprep.subr.mxu1 %v5712_v51  ;;  %1095 = vmatprep.subr.mxu0 %v5714_v52 }
 0x148   :  { %728 = vmatmul.mubr.f32.gmra.mxu1 %v5617_v38  ;;  %841 = vmatmul.mubr.f32.gmra.mxu0 %v5617_v38  ;;  %v5860_v38 = vld [vmem:[#allocation14 + $0x20] sm:$0xff] }
 0x149   :  { %1025 = vmatpush1.msra.mxu1 %v5720_v53  ;;  %1096 = vmatpush1.msra.mxu0 %v5722_v54  ;;  %8682 = vst [vmem:[#allocation36_spill] sm:$0xff] %v5860_v38 }
 0x14a   :  { %1026 = vmatprep.subr.mxu1 %v5726_v55  ;;  %1097 = vmatprep.subr.mxu0 %v5728_v56 }
 0x14b   :  { %1027 = vmatpush1.msra.mxu1 %v5732_v57  ;;  %1098 = vmatpush1.msra.mxu0 %v5734_v59 }
 0x14c   :  { %733 = vmatprep.mubr.f32.mxu1 %v8341_v14  ;;  %846 = vmatprep.mubr.f32.mxu0 %v8341_v14 }
 0x14d   :  { %1028 = vmatprep.subr.mxu1 %v5740_v60  ;;  %1099 = vmatprep.subr.mxu0 %v5742_v61 }
 0x14e   :  { %734 = vmatmul.mubr.f32.gmra.mxu1 %v5624_v48  ;;  %847 = vmatmul.mubr.f32.gmra.mxu0 %v5624_v48  ;;  %v5854_v48 = vld [vmem:[#allocation14 + $0x38] sm:$0xff] }
 0x14f   :  { %1029 = vmatpush1.msra.mxu1 %v5748_v62  ;;  %1100 = vmatpush1.msra.mxu0 %v5750_v63  ;;  %8680 = vst [vmem:[#allocation35_spill] sm:$0xff] %v5854_v48 }
 0x150   :  { %1030 = vmatprep.subr.mxu1 %v5754_v0  ;;  %1101 = vmatprep.subr.mxu0 %v5756_v1 }
 0x151   :  { %1031 = vmatpush1.msra.mxu1 %v5760_v2  ;;  %1102 = vmatpush1.msra.mxu0 %v5762_v3 }
 0x152   :  { %739 = vmatprep.mubr.f32.mxu1 %v8341_v14  ;;  %852 = vmatprep.mubr.f32.mxu0 %v8341_v14 }
 0x153   :  { %1032 = vmatprep.subr.mxu1 %v5768_v5  ;;  %1103 = vmatprep.subr.mxu0 %v5770_v6 }
 0x154   :  { %740 = vmatmul.mubr.f32.gmra.mxu1 %v5631_v58  ;;  %853 = vmatmul.mubr.f32.gmra.mxu0 %v5631_v58  ;;  %v5846_v58 = vld [vmem:[#allocation14 + $0x50] sm:$0xff] }
 0x155   :  { %1033 = vmatpush1.msra.mxu1 %v5776_v7  ;;  %1104 = vmatpush1.msra.mxu0 %v5778_v8  ;;  %8678 = vst [vmem:[#allocation33_spill] sm:$0xff] %v5846_v58 }
 0x156   :  { %1034 = vmatprep.subr.mxu1 %v5782_v9  ;;  %1105 = vmatprep.subr.mxu0 %v5784_v10 }
 0x157   :  { %1035 = vmatpush1.msra.mxu1 %v5788_v11  ;;  %1106 = vmatpush1.msra.mxu0 %v5790_v12 }
 0x158   :  { %745 = vmatprep.mubr.f32.mxu1 %v8341_v14  ;;  %858 = vmatprep.mubr.f32.mxu0 %v8341_v14 }
 0x159   :  { %1036 = vmatprep.subr.mxu1 %v5796_v13  ;;  %1107 = vmatprep.subr.mxu0 %v5798_v17 }
 0x15a   :  { %746 = vmatmul.mubr.f32.gmra.mxu1 %v5638_v4  ;;  %859 = vmatmul.mubr.f32.gmra.mxu0 %v5638_v4  ;;  %v8681_v4 = vmov 0.0  }
 0x15b   :  { %1037 = vmatpush1.msra.mxu1 %v5804_v19  ;;  %1108 = vmatpush1.msra.mxu0 %v5806_v20 }
 0x15c   :  { %1038 = vmatprep.subr.mxu1 %v5810_v21  ;;  %1109 = vmatprep.subr.mxu0 %v5812_v22 }
 0x15d   :  { %1039 = vmatpush1.msra.mxu1 %v5816_v23  ;;  %1110 = vmatpush1.msra.mxu0 %v5818_v24 }
 0x15e   :  { %751 = vmatprep.mubr.f32.mxu1 %v8341_v14  ;;  %864 = vmatprep.mubr.f32.mxu0 %v8341_v14  ;;  %v5852_v14 = vld [vmem:[#allocation14 + $0x28] sm:$0xff] }
 0x15f   :  { %1040 = vmatprep.subr.mxu1 %v5824_v25  ;;  %1111 = vmatprep.subr.mxu0 %v5826_v27  ;;  %8679 = vst [vmem:[#allocation34_spill] sm:$0xff] %v5852_v14 }
 0x160   :  { %752 = vmatmul.mubr.f32.gmra.mxu1 %v5645_v15  ;;  %865 = vmatmul.mubr.f32.gmra.mxu0 %v5645_v15  ;;  %v5862_v15 = vld [vmem:[#allocation14 + $0x30] sm:$0xff] }
 0x161   :  { %1041 = vmatpush1.msra.mxu1 %v5832_v29  ;;  %1112 = vmatpush1.msra.mxu0 %v5834_v30  ;;  %8683 = vst [vmem:[#allocation37_spill] sm:$0xff] %v5862_v15 }
 0x162   :  { %1042 = vmatprep.subr.mxu1 %v5838_v31  ;;  %1113 = vmatprep.subr.mxu0 %v5840_v32  ;;  %v5914_v32 = vld [vmem:[#allocation16 + $0x1b0] sm:$0xff]  ;;  %v5918_v31 = vld [vmem:[#allocation16 + $0x188] sm:$0xff] }
 0x163   :  { %1043 = vmatpush1.msra.mxu1 %v5844_v33  ;;  %1114 = vmatpush1.msra.mxu0 %v5846_v58  ;;  %v5872_v58 = vld [vmem:[#allocation14] sm:$0xff]  ;;  %v5874_v33 = vld [vmem:[#allocation14 + $0x10] sm:$0xff]  ;;  %8699 = vst [vmem:[#allocation53_spill] sm:$0xff] %v5914_v32  ;;  %8700 = vst [vmem:[#allocation54_spill] sm:$0xff] %v5918_v31 }
 0x164   :  { %757 = vmatprep.mubr.f32.mxu1 %v8681_v4  ;;  %870 = vmatprep.mubr.f32.mxu0 %v8681_v4  ;;  %8686 = vst [vmem:[#allocation40_spill] sm:$0xff] %v5872_v58  ;;  %8687 = vst [vmem:[#allocation41_spill] sm:$0xff] %v5874_v33 }
 0x165   :  { %1044 = vmatprep.subr.mxu1 %v5852_v14  ;;  %1115 = vmatprep.subr.mxu0 %v5854_v48  ;;  %v5880_v48 = vld [vmem:[#allocation16 + $0x1e8] sm:$0xff]  ;;  %v5882_v14 = vld [vmem:[#allocation16 + $0x1f8] sm:$0xff] }
 0x166   :  { %758 = vmatmul.mubr.f32.gmra.mxu1 %v5652_v26  ;;  %871 = vmatmul.mubr.f32.gmra.mxu0 %v5652_v26  ;;  %8688 = vst [vmem:[#allocation42_spill] sm:$0xff] %v5880_v48  ;;  %8689 = vst [vmem:[#allocation43_spill] sm:$0xff] %v5882_v14  ;;  %v5888_v26 = vld [vmem:[#allocation16 + $0x1e0] sm:$0xff] }
 0x167   :  { %1045 = vmatpush1.msra.mxu1 %v5860_v38  ;;  %1116 = vmatpush1.msra.mxu0 %v5862_v15  ;;  %8690 = vst [vmem:[#allocation44_spill] sm:$0xff] %v5888_v26  ;;  %v5890_v38 = vld [vmem:[#allocation16 + $0x1f0] sm:$0xff]  ;;  %v5906_v15 = vld [vmem:[#allocation16 + $0x1a8] sm:$0xff] }
 0x168   :  { %1046 = vmatprep.subr.mxu1 %v5866_v28  ;;  %1117 = vmatprep.subr.mxu0 %v5868_v18  ;;  %8691 = vst [vmem:[#allocation45_spill] sm:$0xff] %v5890_v38  ;;  %v5894_v18 = vld [vmem:[#allocation16 + $0x1c8] sm:$0xff]  ;;  %v5896_v28 = vld [vmem:[#allocation16 + $0x1d8] sm:$0xff]  ;;  %8696 = vst [vmem:[#allocation50_spill] sm:$0xff] %v5906_v15 }
 0x169   :  { %1047 = vmatpush1.msra.mxu1 %v5872_v58  ;;  %1118 = vmatpush1.msra.mxu0 %v5874_v33  ;;  %8692 = vst [vmem:[#allocation46_spill] sm:$0xff] %v5894_v18  ;;  %8693 = vst [vmem:[#allocation47_spill] sm:$0xff] %v5896_v28  ;;  %v5900_v33 = vld [vmem:[#allocation16 + $0x1c0] sm:$0xff]  ;;  %v5902_v58 = vld [vmem:[#allocation16 + $0x1d0] sm:$0xff] }
 0x16a   :  { %1080 = vmatprep.mubr.f32.mxu1 %v8681_v4  ;;  %1151 = vmatprep.mubr.f32.mxu0 %v8681_v4  ;;  %8694 = vst [vmem:[#allocation48_spill] sm:$0xff] %v5900_v33  ;;  %8695 = vst [vmem:[#allocation49_spill] sm:$0xff] %v5902_v58 }
 0x16b   :  { %1271 = vmatprep.subr.mxu1 %v5880_v48  ;;  %1342 = vmatprep.subr.mxu0 %v5882_v14  ;;  %v5908_v48 = vld [vmem:[#allocation16 + $0x1b8] sm:$0xff]  ;;  %v5912_v14 = vld [vmem:[#allocation16 + $0x1a0] sm:$0xff] }
 0x16c   :  { %1081 = vmatmul.mubr.f32.vlgmr.msra.gmra.mxu1 %v8681_v4  ;;  %1152 = vmatmul.mubr.f32.vlgmr.msra.gmra.mxu0 %v8681_v4  ;;  %8697 = vst [vmem:[#allocation51_spill] sm:$0xff] %v5908_v48  ;;  %8698 = vst [vmem:[#allocation52_spill] sm:$0xff] %v5912_v14 }
 0x16d   :  { %1272 = vmatpush1.msra.mxu1 %v5888_v26  ;;  %1343 = vmatpush1.msra.mxu0 %v5890_v38  ;;  %v5920_v26 = vld [vmem:[#allocation16 + $0x198] sm:$0xff]  ;;  %v5924_v38 = vld [vmem:[#allocation16 + $0x180] sm:$0xff] }
 0x16e   :  { %1273 = vmatprep.subr.mxu1 %v5894_v18  ;;  %1344 = vmatprep.subr.mxu0 %v5896_v28  ;;  %8701 = vst [vmem:[#allocation55_spill] sm:$0xff] %v5920_v26  ;;  %8702 = vst [vmem:[#allocation56_spill] sm:$0xff] %v5924_v38  ;;  %v5926_v18 = vld [vmem:[#allocation16 + $0x190] sm:$0xff]  ;;  %v5930_v28 = vld [vmem:[#allocation16 + $0x168] sm:$0xff] }
 0x16f   :  { %1274 = vmatpush1.msra.mxu1 %v5900_v33  ;;  %1345 = vmatpush1.msra.mxu0 %v5902_v58  ;;  %8703 = vst [vmem:[#allocation57_spill] sm:$0xff] %v5926_v18  ;;  %8704 = vst [vmem:[#allocation58_spill] sm:$0xff] %v5930_v28  ;;  %v5932_v33 = vld [vmem:[#allocation16 + $0x178] sm:$0xff]  ;;  %v5936_v58 = vld [vmem:[#allocation16 + $0x160] sm:$0xff] }
 0x170   :  { %1275 = vmatprep.subr.mxu1 %v5906_v15  ;;  %1346 = vmatprep.subr.mxu0 %v5908_v48  ;;  %8705 = vst [vmem:[#allocation59_spill] sm:$0xff] %v5932_v33  ;;  %8706 = vst [vmem:[#allocation60_spill] sm:$0xff] %v5936_v58  ;;  %v5938_v15 = vld [vmem:[#allocation16 + $0x170] sm:$0xff]  ;;  %v5942_v48 = vld [vmem:[#allocation16 + $0x148] sm:$0xff] }
 0x171   :  { %1276 = vmatpush1.msra.mxu1 %v5912_v14  ;;  %1347 = vmatpush1.msra.mxu0 %v5914_v32  ;;  %8707 = vst [vmem:[#allocation61_spill] sm:$0xff] %v5938_v15  ;;  %8708 = vst [vmem:[#allocation62_spill] sm:$0xff] %v5942_v48  ;;  %v5944_v14 = vld [vmem:[#allocation16 + $0x158] sm:$0xff]  ;;  %v5948_v32 = vld [vmem:[#allocation16 + $0x140] sm:$0xff] }
 0x172   :  { %1277 = vmatprep.subr.mxu1 %v5918_v31  ;;  %1348 = vmatprep.subr.mxu0 %v5920_v26  ;;  %8709 = vst [vmem:[#allocation63_spill] sm:$0xff] %v5944_v14  ;;  %8710 = vst [vmem:[#allocation64_spill] sm:$0xff] %v5948_v32  ;;  %v5950_v31 = vld [vmem:[#allocation16 + $0x150] sm:$0xff]  ;;  %v5954_v26 = vld [vmem:[#allocation16 + $0x128] sm:$0xff] }
 0x173   :  { %1278 = vmatpush1.msra.mxu1 %v5924_v38  ;;  %1349 = vmatpush1.msra.mxu0 %v5926_v18  ;;  %8711 = vst [vmem:[#allocation65_spill] sm:$0xff] %v5950_v31  ;;  %8712 = vst [vmem:[#allocation66_spill] sm:$0xff] %v5954_v26  ;;  %v5956_v38 = vld [vmem:[#allocation16 + $0x138] sm:$0xff]  ;;  %v5960_v18 = vld [vmem:[#allocation16 + $0x120] sm:$0xff] }
 0x174   :  { %1279 = vmatprep.subr.mxu1 %v5930_v28  ;;  %1350 = vmatprep.subr.mxu0 %v5932_v33  ;;  %8713 = vst [vmem:[#allocation67_spill] sm:$0xff] %v5956_v38  ;;  %8714 = vst [vmem:[#allocation68_spill] sm:$0xff] %v5960_v18  ;;  %v5962_v28 = vld [vmem:[#allocation16 + $0x130] sm:$0xff]  ;;  %v5966_v33 = vld [vmem:[#allocation16 + $0x108] sm:$0xff] }
 0x175   :  { %1280 = vmatpush1.msra.mxu1 %v5936_v58  ;;  %1351 = vmatpush1.msra.mxu0 %v5938_v15  ;;  %8715 = vst [vmem:[#allocation69_spill] sm:$0xff] %v5962_v28  ;;  %8716 = vst [vmem:[#allocation70_spill] sm:$0xff] %v5966_v33  ;;  %v5968_v58 = vld [vmem:[#allocation16 + $0x118] sm:$0xff]  ;;  %v5972_v15 = vld [vmem:[#allocation16 + $0x100] sm:$0xff] }
 0x176   :  { %1281 = vmatprep.subr.mxu1 %v5942_v48  ;;  %1352 = vmatprep.subr.mxu0 %v5944_v14  ;;  %8717 = vst [vmem:[#allocation71_spill] sm:$0xff] %v5968_v58  ;;  %8718 = vst [vmem:[#allocation72_spill] sm:$0xff] %v5972_v15  ;;  %v5974_v48 = vld [vmem:[#allocation16 + $0x110] sm:$0xff]  ;;  %v5978_v14 = vld [vmem:[#allocation16 + $0xe8] sm:$0xff] }
 0x177   :  { %1282 = vmatpush1.msra.mxu1 %v5948_v32  ;;  %1353 = vmatpush1.msra.mxu0 %v5950_v31  ;;  %8719 = vst [vmem:[#allocation73_spill] sm:$0xff] %v5974_v48  ;;  %8720 = vst [vmem:[#allocation74_spill] sm:$0xff] %v5978_v14  ;;  %v5980_v32 = vld [vmem:[#allocation16 + $0xf8] sm:$0xff]  ;;  %v5984_v31 = vld [vmem:[#allocation16 + $0xe0] sm:$0xff] }
 0x178   :  { %1283 = vmatprep.subr.mxu1 %v5954_v26  ;;  %1354 = vmatprep.subr.mxu0 %v5956_v38  ;;  %8721 = vst [vmem:[#allocation75_spill] sm:$0xff] %v5980_v32  ;;  %8722 = vst [vmem:[#allocation76_spill] sm:$0xff] %v5984_v31  ;;  %v5986_v26 = vld [vmem:[#allocation16 + $0xf0] sm:$0xff]  ;;  %v5990_v38 = vld [vmem:[#allocation16 + $0xc8] sm:$0xff] }
 0x179   :  { %1284 = vmatpush1.msra.mxu1 %v5960_v18  ;;  %1355 = vmatpush1.msra.mxu0 %v5962_v28  ;;  %8723 = vst [vmem:[#allocation77_spill] sm:$0xff] %v5986_v26  ;;  %8724 = vst [vmem:[#allocation78_spill] sm:$0xff] %v5990_v38  ;;  %v5992_v18 = vld [vmem:[#allocation16 + $0xd8] sm:$0xff]  ;;  %v5996_v28 = vld [vmem:[#allocation16 + $0xc0] sm:$0xff] }
 0x17a   :  { %1285 = vmatprep.subr.mxu1 %v5966_v33  ;;  %1356 = vmatprep.subr.mxu0 %v5968_v58  ;;  %8725 = vst [vmem:[#allocation79_spill] sm:$0xff] %v5992_v18  ;;  %8726 = vst [vmem:[#allocation80_spill] sm:$0xff] %v5996_v28  ;;  %v5998_v33 = vld [vmem:[#allocation16 + $0xd0] sm:$0xff]  ;;  %v6002_v58 = vld [vmem:[#allocation16 + $0xa8] sm:$0xff] }
 0x17b   :  { %1286 = vmatpush1.msra.mxu1 %v5972_v15  ;;  %1357 = vmatpush1.msra.mxu0 %v5974_v48  ;;  %8727 = vst [vmem:[#allocation81_spill] sm:$0xff] %v5998_v33  ;;  %8728 = vst [vmem:[#allocation82_spill] sm:$0xff] %v6002_v58  ;;  %v6004_v15 = vld [vmem:[#allocation16 + $0xb8] sm:$0xff]  ;;  %v6008_v48 = vld [vmem:[#allocation16 + $0xa0] sm:$0xff] }
 0x17c   :  { %1287 = vmatprep.subr.mxu1 %v5978_v14  ;;  %1358 = vmatprep.subr.mxu0 %v5980_v32  ;;  %8729 = vst [vmem:[#allocation83_spill] sm:$0xff] %v6004_v15  ;;  %8730 = vst [vmem:[#allocation84_spill] sm:$0xff] %v6008_v48  ;;  %v6010_v14 = vld [vmem:[#allocation16 + $0xb0] sm:$0xff]  ;;  %v6014_v32 = vld [vmem:[#allocation16 + $0x88] sm:$0xff] }
 0x17d   :  { %1288 = vmatpush1.msra.mxu1 %v5984_v31  ;;  %1359 = vmatpush1.msra.mxu0 %v5986_v26  ;;  %8731 = vst [vmem:[#allocation85_spill] sm:$0xff] %v6010_v14  ;;  %8732 = vst [vmem:[#allocation86_spill] sm:$0xff] %v6014_v32  ;;  %v6016_v31 = vld [vmem:[#allocation16 + $0x98] sm:$0xff]  ;;  %v6020_v26 = vld [vmem:[#allocation16 + $0x80] sm:$0xff] }
 0x17e   :  { %1289 = vmatprep.subr.mxu1 %v5990_v38  ;;  %1360 = vmatprep.subr.mxu0 %v5992_v18  ;;  %8733 = vst [vmem:[#allocation87_spill] sm:$0xff] %v6016_v31  ;;  %8734 = vst [vmem:[#allocation88_spill] sm:$0xff] %v6020_v26  ;;  %v6022_v38 = vld [vmem:[#allocation16 + $0x90] sm:$0xff]  ;;  %v6026_v18 = vld [vmem:[#allocation16 + $0x68] sm:$0xff] }
 0x17f   :  { %1290 = vmatpush1.msra.mxu1 %v5996_v28  ;;  %1361 = vmatpush1.msra.mxu0 %v5998_v33  ;;  %8735 = vst [vmem:[#allocation89_spill] sm:$0xff] %v6022_v38  ;;  %8736 = vst [vmem:[#allocation90_spill] sm:$0xff] %v6026_v18  ;;  %v6028_v28 = vld [vmem:[#allocation16 + $0x78] sm:$0xff]  ;;  %v6032_v33 = vld [vmem:[#allocation16 + $0x60] sm:$0xff] }
 0x180   :  { %1291 = vmatprep.subr.mxu1 %v6002_v58  ;;  %1362 = vmatprep.subr.mxu0 %v6004_v15  ;;  %8737 = vst [vmem:[#allocation91_spill] sm:$0xff] %v6028_v28  ;;  %8738 = vst [vmem:[#allocation92_spill] sm:$0xff] %v6032_v33  ;;  %v6034_v58 = vld [vmem:[#allocation16 + $0x70] sm:$0xff]  ;;  %v6038_v15 = vld [vmem:[#allocation16 + $0x48] sm:$0xff] }
 0x181   :  { %1292 = vmatpush1.msra.mxu1 %v6008_v48  ;;  %1363 = vmatpush1.msra.mxu0 %v6010_v14  ;;  %8739 = vst [vmem:[#allocation93_spill] sm:$0xff] %v6034_v58  ;;  %8740 = vst [vmem:[#allocation94_spill] sm:$0xff] %v6038_v15  ;;  %v6040_v48 = vld [vmem:[#allocation16 + $0x58] sm:$0xff]  ;;  %v6044_v14 = vld [vmem:[#allocation16 + $0x40] sm:$0xff] }
 0x182   :  { %1293 = vmatprep.subr.mxu1 %v6014_v32  ;;  %1364 = vmatprep.subr.mxu0 %v6016_v31  ;;  %8741 = vst [vmem:[#allocation95_spill] sm:$0xff] %v6040_v48  ;;  %v6046_v32 = vld [vmem:[#allocation16 + $0x50] sm:$0xff]  ;;  %v6050_v31 = vld [vmem:[#allocation16 + $0x28] sm:$0xff] }
 0x183   :  { %1294 = vmatpush1.msra.mxu1 %v6020_v26  ;;  %1365 = vmatpush1.msra.mxu0 %v6022_v38  ;;  %v6052_v26 = vld [vmem:[#allocation16 + $0x38] sm:$0xff]  ;;  %v6056_v38 = vld [vmem:[#allocation16 + $0x20] sm:$0xff] }
 0x184   :  { %1295 = vmatprep.subr.mxu1 %v6026_v18  ;;  %1366 = vmatprep.subr.mxu0 %v6028_v28  ;;  %8742 = vst [vmem:[#allocation96_spill] sm:$0xff] %v6052_v26  ;;  %8743 = vst [vmem:[#allocation97_spill] sm:$0xff] %v6056_v38  ;;  %v6058_v18 = vld [vmem:[#allocation16 + $0x30] sm:$0xff]  ;;  %v6063_v28 = vld [vmem:[%s8330_s0] sm:$0xff] }
 0x185   :  { %1296 = vmatpush1.msra.mxu1 %v6032_v33  ;;  %1367 = vmatpush1.msra.mxu0 %v6034_v58  ;;  %v6067_v58 = vld [vmem:[#allocation16 + $0x8] sm:$0xff]  ;;  %v6069_v33 = vld [vmem:[#allocation16 + $0x18] sm:$0xff]  ;;  %vm1186_vm1 = vcmp.gt.s32.totalorder %v6063_v28, 0  ;;  %vm1441_vm2 = vcmp.gt.s32.totalorder %v6063_v28, 7  ;;  %vm2212_vm3 = vcmp.gt.s32.totalorder %v6063_v28, 2  ;;  %vm2726_vm4 = vcmp.gt.s32.totalorder %v6063_v28, 3 }
 0x186   :  { %1297 = vmatprep.subr.mxu1 %v6038_v15  ;;  %1368 = vmatprep.subr.mxu0 %v6040_v48  ;;  %v6073_v48 = vld [vmem:[#allocation16] sm:$0xff]  ;;  %v6077_v15 = vld [vmem:[#allocation16 + $0x10] sm:$0xff]  ;;  %vm1698_vm5 = vcmp.gt.s32.totalorder %v6063_v28, 1  ;;  %vm1955_vm6 = vcmp.gt.s32.totalorder %v6063_v28, 6  ;;  %vm2469_vm7 = vcmp.gt.s32.totalorder %v6063_v28, 5  ;;  %vm2983_vm8 = vcmp.gt.s32.totalorder %v6063_v28, 4 }
 0x187   :  { %1298 = vmatpush1.msra.mxu1 %v6044_v14  ;;  %1369 = vmatpush1.msra.mxu0 %v6046_v32  ;;  %8744 = vst [vmem:[#allocation98_spill] sm:$0xff] %v6077_v15 }
 0x188   :  { %1299 = vmatprep.subr.mxu1 %v6050_v31  ;;  %1370 = vmatprep.subr.mxu0 %v6052_v26  ;;  %v5515_v26 = vmov 0  }
 0x189   :  { %1300 = vmatpush1.msra.mxu1 %v6056_v38  ;;  %1371 = vmatpush1.msra.mxu0 %v6058_v18  ;;  %v1187_v38 = vsel %vm1186_vm1, 1, %v5515_v26 }
 0x18a   :  { %1301 = vmatprep.subr.mxu1 %v6067_v58  ;;  %1372 = vmatprep.subr.mxu0 %v6069_v33 }
 0x18b   :  { %1302 = vmatpush1.msra.mxu1 %v6073_v48  ;;  %1335 = vmatprep.mubr.f32.mxu1 %v8681_v4 }
 0x18c   :  { %1373 = vmatpush1.msra.mxu0 %v6077_v15  ;;  %1406 = vmatprep.mubr.f32.mxu0 %v8681_v4  ;;  %v1442_v15 = vsel %vm1441_vm2, 1, %v5515_v26 }
 0x18d   :  { %1336 = vmatmul.mubr.f32.vlgmr.msra.gmra.mxu1 %v8681_v4  ;;  %1407 = vmatmul.mubr.f32.vlgmr.msra.gmra.mxu0 %v8681_v4 }
 0x18e   :  { %5117 = vset.pattern.permute.xlu0 %v5515_v26  ;;  %1528 = vmatprep.subr.mxu1 %v5658_v16  ;;  %v8745_v16 = vld [vmem:[#allocation30_spill] sm:$0xff] }
 0x18f   :  { %1189 = vperm.xlu0 %5117, %v1187_v38   ;;  %1599 = vmatprep.subr.mxu0 %v5660_v34  ;;  %v2213_v38 = vsel %vm2212_vm3, 1, %v5515_v26  ;;  %v8746_v34 = vld [vmem:[#allocation31_spill] sm:$0xff] }
 0x190   :  { %1529 = vmatpush1.msra.mxu1 %v5664_v35  ;;  %1600 = vmatpush1.msra.mxu0 %v5666_v36  ;;  %v8747_v35 = vld [vmem:[#allocation32_spill] sm:$0xff]  ;;  %v8748_v36 = vld [vmem:[#allocation33_spill] sm:$0xff] }
 0x191   :  { %1530 = vmatprep.subr.mxu1 %v5670_v37  ;;  %1601 = vmatprep.subr.mxu0 %v5672_v39  ;;  %v8749_v37 = vld [vmem:[#allocation34_spill] sm:$0xff]  ;;  %v8750_v39 = vld [vmem:[#allocation35_spill] sm:$0xff] }
 0x192   :  { %1531 = vmatpush1.msra.mxu1 %v5676_v40  ;;  %1602 = vmatpush1.msra.mxu0 %v5678_v41  ;;  %v8751_v40 = vld [vmem:[#allocation36_spill] sm:$0xff]  ;;  %v8752_v41 = vld [vmem:[#allocation37_spill] sm:$0xff] }
 0x193   :  { %1444 = vperm.xlu0 %5117, %v1442_v15   ;;  %1532 = vmatprep.subr.mxu1 %v5684_v42  ;;  %v2727_v15 = vsel %vm2726_vm4, 1, %v5515_v26  ;;  %v8753_v42 = vld [vmem:[#allocation38_spill] sm:$0xff] }
 0x194   :  { %1603 = vmatprep.subr.mxu0 %v5686_v43  ;;  %1533 = vmatpush1.msra.mxu1 %v5692_v44  ;;  %v8754_v43 = vld [vmem:[#allocation39_spill] sm:$0xff]  ;;  %v8755_v44 = vld [vmem:[#allocation40_spill] sm:$0xff] }
 0x195   :  { %1604 = vmatpush1.msra.mxu0 %v5694_v45  ;;  %1534 = vmatprep.subr.mxu1 %v5698_v46  ;;  %v8756_v45 = vld [vmem:[#allocation41_spill] sm:$0xff]  ;;  %v8757_v46 = vld [vmem:[#allocation42_spill] sm:$0xff] }
 0x196   :  { %1605 = vmatprep.subr.mxu0 %v5700_v47  ;;  %1535 = vmatpush1.msra.mxu1 %v5704_v49  ;;  %v8758_v47 = vld [vmem:[#allocation43_spill] sm:$0xff]  ;;  %v385_v49 = vlaneseq }
 0x197   :  { %2215 = vperm.xlu0 %5117, %v2213_v38   ;;  %1606 = vmatpush1.msra.mxu0 %v5706_v50 }
 0x198   :  { %1536 = vmatprep.subr.mxu1 %v5712_v51  ;;  %1607 = vmatprep.subr.mxu0 %v5714_v52  ;;  %v6165_v50 = vshrl.u32 %v385_v49, 7 }
 0x199   :  { %1537 = vmatpush1.msra.mxu1 %v5720_v53  ;;  %1608 = vmatpush1.msra.mxu0 %v5722_v54 }
 0x19a   :  { %1538 = vmatprep.subr.mxu1 %v5726_v55  ;;  %1609 = vmatprep.subr.mxu0 %v5728_v56  ;;  %v387_v53 = vsub.s32 0, %v6165_v50  ;;  %v395_v54 = vsub.s32 2, %v6165_v50  ;;  %v6176_v55 = vld [vmem:[%s8337_s7] sm:$0xff]  ;;  %s5516_s7 = smov [#allocation17]  }
 0x19b   :  { %2729 = vperm.xlu0 %5117, %v2727_v15   ;;  %1539 = vmatpush1.msra.mxu1 %v5732_v57  ;;  %s4996_s15 = sshll.u32 %s5516_s7, 4  ;;  %s4997_s15 = int_to_ptr.vmem [resolvable:$true] %s4996_s15 }
 0x19c   :  { %1610 = vmatpush1.msra.mxu0 %v5734_v59  ;;  %1540 = vmatprep.subr.mxu1 %v5740_v60  ;;  %v391_v59 = vsub.s32 1, %v6165_v50  ;;  %v399_v60 = vsub.s32 3, %v6165_v50  ;;  %s5475_s16 = scalar_lea.vmem %s4997_s15, 2048  ;;  %p5480_p12 = scmp.lt.s32.totalorder %s4997_s15, %s4997_s15 }
 0x19d   :  { %1611 = vmatprep.subr.mxu0 %v5742_v61  ;;  %1541 = vmatpush1.msra.mxu1 %v5748_v62  ;;  %v6185_v61 = vrot.slane %v6176_v55, %v387_v53  ;;  %v6188_v62 = vrot.slane %v6176_v55, %v395_v54  ;;  %p5476_p11 = scmp.ne.s32.totalorder %s4997_s15, %s5475_s16  ;;  %p5481_p13 = scmp.lt.s32.totalorder %s5475_s16, %s5475_s16 }
 0x19e   :  { %1612 = vmatpush1.msra.mxu0 %v5750_v63  ;;  %1542 = vmatprep.subr.mxu1 %v5754_v0 }
 0x19f   :  { %1613 = vmatprep.subr.mxu0 %v5756_v1  ;;  %1543 = vmatpush1.msra.mxu1 %v5760_v2  ;;  %v6191_v1 = vrot.slane %v6176_v55, %v391_v59  ;;  %v6194_v2 = vrot.slane %v6176_v55, %v399_v60  ;;  %p5482_p0 = por %p5481_p13, %p5480_p12 }
 0x1a0   :  { %1614 = vmatpush1.msra.mxu0 %v5762_v3  ;;  %1544 = vmatprep.subr.mxu1 %v5768_v5 }
 0x1a1   :  { %1615 = vmatprep.subr.mxu0 %v5770_v6  ;;  %1545 = vmatpush1.msra.mxu1 %v5776_v7  ;;  %p5483_p1 = pnand %p5482_p0, %p5476_p11 }
 0x1a2   :  { %1616 = vmatpush1.msra.mxu0 %v5778_v8  ;;  %1546 = vmatprep.subr.mxu1 %v5782_v9 }
 0x1a3   :  { %1617 = vmatprep.subr.mxu0 %v5784_v10  ;;  %1547 = vmatpush1.msra.mxu1 %v5788_v11 }
 0x1a4   :  { %1618 = vmatpush1.msra.mxu0 %v5790_v12  ;;  %1548 = vmatprep.subr.mxu1 %v5796_v13 }
 0x1a5   :  { %1619 = vmatprep.subr.mxu0 %v5798_v17  ;;  %1549 = vmatpush1.msra.mxu1 %v5804_v19 }
 0x1a6   :  { %1620 = vmatpush1.msra.mxu0 %v5806_v20  ;;  %1550 = vmatprep.subr.mxu1 %v5810_v21 }
 0x1a7   :  { %1621 = vmatprep.subr.mxu0 %v5812_v22  ;;  %1551 = vmatpush1.msra.mxu1 %v5816_v23 }
 0x1a8   :  { %1622 = vmatpush1.msra.mxu0 %v5818_v24  ;;  %1552 = vmatprep.subr.mxu1 %v5824_v25 }
 0x1a9   :  { %1623 = vmatprep.subr.mxu0 %v5826_v27  ;;  %1553 = vmatpush1.msra.mxu1 %v5832_v29 }
 0x1aa   :  { %1624 = vmatpush1.msra.mxu0 %v5834_v30  ;;  %1554 = vmatprep.subr.mxu1 %v8745_v16 }
 0x1ab   :  { %1625 = vmatprep.subr.mxu0 %v8746_v34  ;;  %1555 = vmatpush1.msra.mxu1 %v8747_v35 }
 0x1ac   :  { %1626 = vmatpush1.msra.mxu0 %v8748_v36  ;;  %1556 = vmatprep.subr.mxu1 %v8749_v37 }
 0x1ad   :  { %1627 = vmatprep.subr.mxu0 %v8750_v39  ;;  %1557 = vmatpush1.msra.mxu1 %v8751_v40 }
 0x1ae   :  { %1628 = vmatpush1.msra.mxu0 %v8752_v41  ;;  %1558 = vmatprep.subr.mxu1 %v8753_v42 }
 0x1af   :  { %1629 = vmatprep.subr.mxu0 %v8754_v43  ;;  %1559 = vmatpush1.msra.mxu1 %v8755_v44 }
 0x1b0   :  { %1630 = vmatpush1.msra.mxu0 %v8756_v45  ;;  %1592 = vmatprep.mubr.f32.mxu1 %v8681_v4 }
 0x1b1   :  { %1663 = vmatprep.mubr.f32.mxu0 %v8681_v4  ;;  %1785 = vmatprep.subr.mxu1 %v8757_v46 }
 0x1b2   :  { %1856 = vmatprep.subr.mxu0 %v8758_v47  ;;  %5118 = vset.pattern.permute.xlu1 %v5515_v26 }
 0x1cc   :  { %v6167_v51 = vpop.f32.mrf.mxu1  ;;  %v6169_v52 = vpop.f32.mrf.mxu0 }
 0x1ce   :  { %v6178_v56 = vpop.f32.mrf.mxu1  ;;  %v6180_v57 = vpop.f32.mrf.mxu0 }
 0x1d2   :  { %v497_v63 = vpop.f32.mrf.mxu1  ;;  %v610_v0 = vpop.f32.mrf.mxu0 }
 0x1d3   :  { %v6197_v3 = vadd.f32 %v497_v63, %v6185_v61  ;;  %v6200_v5 = vadd.f32 %v610_v0, %v6188_v62 }
 0x1d4   :  { %v499_v6 = vpop.f32.mrf.mxu1  ;;  %v612_v7 = vpop.f32.mrf.mxu0 }
 0x1d5   :  { %v6203_v8 = vadd.f32 %v499_v6, %v6191_v1  ;;  %v6206_v9 = vadd.f32 %v612_v7, %v6194_v2 }
 0x1d8   :  { %v503_v10 = vpop.f32.mrf.mxu1  ;;  %v616_v11 = vpop.f32.mrf.mxu0 }
 0x1d9   :  { %v6209_v12 = vadd.f32 %v503_v10, %v6185_v61  ;;  %v6212_v13 = vadd.f32 %v616_v11, %v6188_v62  ;;  %v403_v10 = vsub.s32 4, %v6165_v50  ;;  %v411_v11 = vsub.s32 6, %v6165_v50 }
 0x1da   :  { %v505_v17 = vpop.f32.mrf.mxu1  ;;  %v618_v19 = vpop.f32.mrf.mxu0 }
 0x1db   :  { %8759 = vst [vmem:[#allocation30_spill] sm:$0xff] %v6209_v12  ;;  %8760 = vst [vmem:[#allocation31_spill] sm:$0xff] %v6212_v13  ;;  %v6215_v20 = vadd.f32 %v505_v17, %v6191_v1  ;;  %v6218_v21 = vadd.f32 %v618_v19, %v6194_v2  ;;  %v6636_v13 = vld [vmem:[#allocation14 + $0x80] sm:$0xff]  ;;  %v6642_v12 = vld [vmem:[#allocation14 + $0x68] sm:$0xff] }
 0x1dd   :  { %8761 = vst [vmem:[#allocation32_spill] sm:$0xff] %v6215_v20  ;;  %8762 = vst [vmem:[#allocation33_spill] sm:$0xff] %v6218_v21  ;;  %v6632_v21 = vld [vmem:[#allocation14 + $0x98] sm:$0xff]  ;;  %v6638_v20 = vld [vmem:[#allocation14 + $0x90] sm:$0xff] }
 0x1de   :  { %v509_v22 = vpop.f32.mrf.mxu1  ;;  %v622_v23 = vpop.f32.mrf.mxu0 }
 0x1df   :  { %v6221_v24 = vadd.f32 %v509_v22, %v6185_v61  ;;  %v6224_v25 = vadd.f32 %v622_v23, %v6188_v62 }
 0x1e0   :  { %v511_v27 = vpop.f32.mrf.mxu1  ;;  %v624_v29 = vpop.f32.mrf.mxu0 }
 0x1e1   :  { %8763 = vst [vmem:[#allocation34_spill] sm:$0xff] %v6221_v24  ;;  %8764 = vst [vmem:[#allocation35_spill] sm:$0xff] %v6224_v25  ;;  %v6227_v30 = vadd.f32 %v511_v27, %v6191_v1  ;;  %v6230_v38 = vadd.f32 %v624_v29, %v6194_v2  ;;  %v407_v27 = vsub.s32 5, %v6165_v50  ;;  %v415_v29 = vsub.s32 7, %v6165_v50  ;;  %v6612_v25 = vld [vmem:[#allocation14 + $0xc0] sm:$0xff]  ;;  %v6618_v24 = vld [vmem:[#allocation14 + $0xa8] sm:$0xff] }
 0x1e3   :  { %8765 = vst [vmem:[#allocation36_spill] sm:$0xff] %v6227_v30  ;;  %8766 = vst [vmem:[#allocation37_spill] sm:$0xff] %v6230_v38  ;;  %v6608_v38 = vld [vmem:[#allocation14 + $0xd8] sm:$0xff]  ;;  %v6614_v30 = vld [vmem:[#allocation14 + $0xd0] sm:$0xff] }
 0x1e4   :  { %v515_v15 = vpop.f32.mrf.mxu1  ;;  %v628_v16 = vpop.f32.mrf.mxu0 }
 0x1e5   :  { %v6233_v34 = vadd.f32 %v515_v15, %v6185_v61  ;;  %v6236_v35 = vadd.f32 %v628_v16, %v6188_v62 }
 0x1e6   :  { %v517_v36 = vpop.f32.mrf.mxu1  ;;  %v630_v37 = vpop.f32.mrf.mxu0 }
 0x1e7   :  { %8767 = vst [vmem:[#allocation38_spill] sm:$0xff] %v6233_v34  ;;  %8768 = vst [vmem:[#allocation39_spill] sm:$0xff] %v6236_v35  ;;  %v6239_v39 = vadd.f32 %v517_v36, %v6191_v1  ;;  %v6242_v40 = vadd.f32 %v630_v37, %v6194_v2  ;;  %v6588_v35 = vld [vmem:[#allocation14 + $0x100] sm:$0xff]  ;;  %v6594_v34 = vld [vmem:[#allocation14 + $0xe8] sm:$0xff] }
 0x1e9   :  { %8769 = vst [vmem:[#allocation40_spill] sm:$0xff] %v6239_v39  ;;  %8770 = vst [vmem:[#allocation41_spill] sm:$0xff] %v6242_v40  ;;  %v6584_v40 = vld [vmem:[#allocation14 + $0x118] sm:$0xff]  ;;  %v6590_v39 = vld [vmem:[#allocation14 + $0x110] sm:$0xff] }
 0x1ea   :  { %v521_v41 = vpop.f32.mrf.mxu1  ;;  %v634_v42 = vpop.f32.mrf.mxu0 }
 0x1eb   :  { %v6245_v43 = vadd.f32 %v521_v41, %v6185_v61  ;;  %v6248_v44 = vadd.f32 %v634_v42, %v6188_v62  ;;  %v6285_v41 = vrot.slane %v6176_v55, %v403_v10  ;;  %v6288_v42 = vrot.slane %v6176_v55, %v411_v11 }
 0x1ec   :  { %v523_v45 = vpop.f32.mrf.mxu1  ;;  %v636_v46 = vpop.f32.mrf.mxu0 }
 0x1ed   :  { %8771 = vst [vmem:[#allocation42_spill] sm:$0xff] %v6245_v43  ;;  %8772 = vst [vmem:[#allocation43_spill] sm:$0xff] %v6248_v44  ;;  %v6251_v47 = vadd.f32 %v523_v45, %v6191_v1  ;;  %v6254_v49 = vadd.f32 %v636_v46, %v6194_v2  ;;  %v6291_v45 = vrot.slane %v6176_v55, %v407_v27 }
 0x1ee   :  { %v6294_v46 = vrot.slane %v6176_v55, %v415_v29 }
 0x1ef   :  { %8773 = vst [vmem:[#allocation99_spill] sm:$0xff] %v6251_v47  ;;  %8774 = vst [vmem:[#allocation100_spill] sm:$0xff] %v6254_v49 }
 0x1f0   :  { %v527_v53 = vpop.f32.mrf.mxu1  ;;  %v640_v54 = vpop.f32.mrf.mxu0 }
 0x1f1   :  { %v6257_v59 = vadd.f32 %v527_v53, %v6185_v61  ;;  %v6260_v60 = vadd.f32 %v640_v54, %v6188_v62 }
 0x1f2   :  { %v529_v63 = vpop.f32.mrf.mxu1  ;;  %v642_v0 = vpop.f32.mrf.mxu0 }
 0x1f3   :  { %8775 = vst [vmem:[#allocation101_spill] sm:$0xff] %v6257_v59  ;;  %8776 = vst [vmem:[#allocation102_spill] sm:$0xff] %v6260_v60  ;;  %v6263_v6 = vadd.f32 %v529_v63, %v6191_v1  ;;  %v6266_v7 = vadd.f32 %v642_v0, %v6194_v2 }
 0x1f5   :  { %8777 = vst [vmem:[#allocation103_spill] sm:$0xff] %v6263_v6  ;;  %8778 = vst [vmem:[#allocation104_spill] sm:$0xff] %v6266_v7 }
 0x1f6   :  { %v533_v17 = vpop.f32.mrf.mxu1  ;;  %v646_v19 = vpop.f32.mrf.mxu0 }
 0x1f7   :  { %v6271_v22 = vadd.f32 %v533_v17, %v6185_v61  ;;  %v6274_v23 = vadd.f32 %v646_v19, %v6188_v62 }
 0x1f8   :  { %v535_v15 = vpop.f32.mrf.mxu1  ;;  %v648_v16 = vpop.f32.mrf.mxu0 }
 0x1f9   :  { %8779 = vst [vmem:[#allocation105_spill] sm:$0xff] %v6271_v22  ;;  %8780 = vst [vmem:[#allocation106_spill] sm:$0xff] %v6274_v23  ;;  %v6279_v36 = vadd.f32 %v535_v15, %v6191_v1  ;;  %v6282_v37 = vadd.f32 %v648_v16, %v6194_v2  ;;  %v2470_v23 = vsel %vm2469_vm7, 1, %v5515_v26 }
 0x1fb   :  { %8781 = vst [vmem:[#allocation107_spill] sm:$0xff] %v6279_v36  ;;  %8782 = vst [vmem:[#allocation108_spill] sm:$0xff] %v6282_v37 }
 0x1fc   :  { %v717_v50 = vpop.f32.mrf.mxu1  ;;  %v830_v53 = vpop.f32.mrf.mxu0 }
 0x1fd   :  { %v6297_v54 = vadd.f32 %v717_v50, %v6285_v41  ;;  %v6300_v63 = vadd.f32 %v830_v53, %v6288_v42 }
 0x1fe   :  { %v719_v0 = vpop.f32.mrf.mxu1  ;;  %v832_v10 = vpop.f32.mrf.mxu0 }
 0x1ff   :  { %8783 = vst [vmem:[#allocation109_spill] sm:$0xff] %v6297_v54  ;;  %8784 = vst [vmem:[#allocation110_spill] sm:$0xff] %v6300_v63  ;;  %v6303_v17 = vadd.f32 %v719_v0, %v6291_v45  ;;  %v6306_v11 = vadd.f32 %v832_v10, %v6294_v46 }
 0x201   :  { %8785 = vst [vmem:[#allocation111_spill] sm:$0xff] %v6303_v17  ;;  %8786 = vst [vmem:[#allocation112_spill] sm:$0xff] %v6306_v11 }
 0x202   :  { %v723_v19 = vpop.f32.mrf.mxu1  ;;  %v836_v27 = vpop.f32.mrf.mxu0 }
 0x203   :  { %v6309_v55 = vadd.f32 %v723_v19, %v6285_v41  ;;  %v6312_v29 = vadd.f32 %v836_v27, %v6288_v42  ;;  %v1699_v19 = vsel %vm1698_vm5, 1, %v5515_v26 }
 0x204   :  { %v725_v15 = vpop.f32.mrf.mxu1  ;;  %v838_v16 = vpop.f32.mrf.mxu0  ;;  %1701 = vperm.xlu1 %5118, %v1699_v19  }
 0x205   :  { %8787 = vst [vmem:[#allocation113_spill] sm:$0xff] %v6309_v55  ;;  %8788 = vst [vmem:[#allocation114_spill] sm:$0xff] %v6312_v29  ;;  %v6315_v50 = vadd.f32 %v725_v15, %v6291_v45  ;;  %v6318_v53 = vadd.f32 %v838_v16, %v6294_v46  ;;  %v1956_v16 = vsel %vm1955_vm6, 1, %v5515_v26 }
 0x207   :  { %8789 = vst [vmem:[#allocation115_spill] sm:$0xff] %v6315_v50  ;;  %8790 = vst [vmem:[#allocation116_spill] sm:$0xff] %v6318_v53 }
 0x208   :  { %v729_v0 = vpop.f32.mrf.mxu1  ;;  %v842_v10 = vpop.f32.mrf.mxu0  ;;  %1958 = vperm.xlu1 %5118, %v1956_v16   ;;  %v2984_v16 = vsel %vm2983_vm8, 1, %v5515_v26 }
 0x209   :  { %v6324_v11 = vadd.f32 %v729_v0, %v6285_v41  ;;  %v6327_v27 = vadd.f32 %v842_v10, %v6288_v42 }
 0x20a   :  { %v731_v15 = vpop.f32.mrf.mxu1  ;;  %v844_v63 = vpop.f32.mrf.mxu0 }
 0x20b   :  { %8791 = vst [vmem:[#allocation117_spill] sm:$0xff] %v6324_v11  ;;  %8792 = vst [vmem:[#allocation118_spill] sm:$0xff] %v6327_v27  ;;  %v6331_v17 = vadd.f32 %v731_v15, %v6291_v45  ;;  %v6334_v54 = vadd.f32 %v844_v63, %v6294_v46 }
 0x20c   :  { %2472 = vperm.xlu1 %5118, %v2470_v23  }
 0x20d   :  { %8793 = vst [vmem:[#allocation119_spill] sm:$0xff] %v6331_v17  ;;  %8794 = vst [vmem:[#allocation120_spill] sm:$0xff] %v6334_v54 }
 0x20e   :  { %v735_v37 = vpop.f32.mrf.mxu1  ;;  %v848_v0 = vpop.f32.mrf.mxu0 }
 0x20f   :  { %v6339_v10 = vadd.f32 %v735_v37, %v6285_v41  ;;  %v6342_v19 = vadd.f32 %v848_v0, %v6288_v42 }
 0x210   :  { %v737_v15 = vpop.f32.mrf.mxu1  ;;  %v850_v36 = vpop.f32.mrf.mxu0  ;;  %2986 = vperm.xlu1 %5118, %v2984_v16  }
 0x211   :  { %8795 = vst [vmem:[#allocation121_spill] sm:$0xff] %v6339_v10  ;;  %8796 = vst [vmem:[#allocation122_spill] sm:$0xff] %v6342_v19  ;;  %v6346_v63 = vadd.f32 %v737_v15, %v6291_v45  ;;  %v6349_v22 = vadd.f32 %v850_v36, %v6294_v46  ;;  %v605_v19 = vadd.f32 %v6169_v52, %v6188_v62 }
 0x213   :  { %8797 = vst [vmem:[#allocation123_spill] sm:$0xff] %v6346_v63  ;;  %8798 = vst [vmem:[#allocation124_spill] sm:$0xff] %v6349_v22 }
 0x214   :  { %v741_v53 = vpop.f32.mrf.mxu1  ;;  %v854_v29 = vpop.f32.mrf.mxu0 }
 0x215   :  { %v6353_v37 = vadd.f32 %v741_v53, %v6285_v41  ;;  %v6356_v0 = vadd.f32 %v854_v29, %v6288_v42 }
 0x216   :  { %v743_v28 = vpop.f32.mrf.mxu1  ;;  %v856_v50 = vpop.f32.mrf.mxu0 }
 0x217   :  { %8799 = vst [vmem:[#allocation125_spill] sm:$0xff] %v6353_v37  ;;  %8800 = vst [vmem:[#allocation126_spill] sm:$0xff] %v6356_v0  ;;  %v6359_v15 = vadd.f32 %v743_v28, %v6291_v45  ;;  %v6362_v36 = vadd.f32 %v856_v50, %v6294_v46  ;;  %v6600_v0 = vld [vmem:[#allocation14 + $0xe0] sm:$0xff]  ;;  %v6606_v37 = vld [vmem:[#allocation14 + $0xc8] sm:$0xff] }
 0x219   :  { %8801 = vst [vmem:[#allocation127_spill] sm:$0xff] %v6359_v15  ;;  %8802 = vst [vmem:[#allocation128_spill] sm:$0xff] %v6362_v36  ;;  %v6596_v36 = vld [vmem:[#allocation14 + $0xf8] sm:$0xff]  ;;  %v6602_v15 = vld [vmem:[#allocation14 + $0xf0] sm:$0xff] }
 0x21a   :  { %v747_v23 = vpop.f32.mrf.mxu1  ;;  %v860_v55 = vpop.f32.mrf.mxu0 }
 0x21b   :  { %v6365_v26 = vadd.f32 %v747_v23, %v6285_v41  ;;  %v6368_v53 = vadd.f32 %v860_v55, %v6288_v42 }
 0x21c   :  { %v749_v7 = vpop.f32.mrf.mxu1  ;;  %v862_v29 = vpop.f32.mrf.mxu0 }
 0x21d   :  { %8803 = vst [vmem:[#allocation129_spill] sm:$0xff] %v6365_v26  ;;  %8804 = vst [vmem:[#allocation130_spill] sm:$0xff] %v6368_v53  ;;  %v6371_v16 = vadd.f32 %v749_v7, %v6291_v45  ;;  %v6374_v60 = vadd.f32 %v862_v29, %v6294_v46  ;;  %v492_v29 = vadd.f32 %v6167_v51, %v6185_v61  ;;  %v6624_v53 = vld [vmem:[#allocation14 + $0xa0] sm:$0xff]  ;;  %v6630_v26 = vld [vmem:[#allocation14 + $0x88] sm:$0xff] }
 0x21e   :  { %v607_v51 = vadd.f32 %v6180_v57, %v6194_v2 }
 0x21f   :  { %8805 = vst [vmem:[#allocation131_spill] sm:$0xff] %v6371_v16  ;;  %8806 = vst [vmem:[#allocation132_spill] sm:$0xff] %v6374_v60  ;;  %v6620_v60 = vld [vmem:[#allocation14 + $0xb8] sm:$0xff]  ;;  %v6626_v16 = vld [vmem:[#allocation14 + $0xb0] sm:$0xff] }
 0x220   :  { %v753_v28 = vpop.f32.mrf.mxu1  ;;  %v866_v6 = vpop.f32.mrf.mxu0 }
 0x221   :  { %v6377_v50 = vadd.f32 %v753_v28, %v6285_v41  ;;  %v6380_v59 = vadd.f32 %v866_v6, %v6288_v42  ;;  %v494_v28 = vadd.f32 %v6178_v56, %v6191_v1 }
 0x222   :  { %v755_v23 = vpop.f32.mrf.mxu1  ;;  %v868_v54 = vpop.f32.mrf.mxu0 }
 0x223   :  { %v6383_v55 = vadd.f32 %v755_v23, %v6291_v45  ;;  %v6386_v27 = vadd.f32 %v868_v54, %v6294_v46 }
 0x226   :  { %v759_v7 = vpop.f32.mrf.mxu1  ;;  %v872_v49 = vpop.f32.mrf.mxu0 }
 0x228   :  { %v761_v17 = vpop.f32.mrf.mxu1  ;;  %v874_v22 = vpop.f32.mrf.mxu0 }
 0x229   :  { %v762_v62 = vadd.f32 %v761_v17, %v6291_v45  ;;  %v873_v45 = vadd.f32 %v872_v49, %v6288_v42  ;;  %v8809_v42 = vld [vmem:[#allocation45_spill] sm:$0xff] }
 0x22a   :  { %8866 = vst [vmem:[#allocation45_spill] sm:$0xff] %v6602_v15 }
 0x22c   :  { %v1082_v11 = vpop.f32.mrf.mxu1  ;;  %v1153_v54 = vpop.f32.mrf.mxu0 }
 0x22d   :  { %v1158_v6 = vadd.f32 %v1082_v11, %v492_v29  ;;  %v1160_v63 = vadd.f32 %v1153_v54, %v605_v19 }
 0x22e   :  { %v1084_v44 = vpop.f32.mrf.mxu1  ;;  %v1155_v10 = vpop.f32.mrf.mxu0 }
 0x22f   :  { %v5019_v47 = vmul.f32 -1.442695, %v1158_v6  ;;  %v1159_v43 = vadd.f32 %v1084_v44, %v494_v28  ;;  %v5021_v61 = vmul.f32 -1.442695, %v1160_v63  ;;  %v1161_v1 = vadd.f32 %v1155_v10, %v607_v51 }
 0x231   :  { %5119 = vpow2.f32 %v5019_v47  ;;  %v5020_v23 = vmul.f32 -1.442695, %v1159_v43  ;;  %v760_v43 = vadd.f32 %v759_v7, %v6285_v41 }
 0x233   :  { %5121 = vpow2.f32 %v5020_v23 }
 0x234   :  { %5123 = vpow2.f32 %v5021_v61 }
 0x23e   :  { %v5120_v56 = vpop.eup %5119 }
 0x23f   :  { %v1171_v11 = vadd.f32 1.0, %v5120_v56 }
 0x240   :  { %v5122_v29 = vpop.eup %5121 }
 0x241   :  { %5125 = vrcp.f32 %v1171_v11  ;;  %v1172_v44 = vadd.f32 1.0, %v5122_v29  ;;  %v5124_v47 = vpop.eup %5123 }
 0x242   :  { %5127 = vtanh.f32 %v1161_v1  ;;  %v1173_v23 = vadd.f32 1.0, %v5124_v47  ;;  %v875_v1 = vadd.f32 %v874_v22, %v6294_v46  ;;  %v8808_v22 = vld [vmem:[#allocation44_spill] sm:$0xff]  ;;  %v8810_v46 = vld [vmem:[#allocation22_spill] sm:$0xff] }
 0x243   :  { %5129 = vrcp.f32 %v1172_v44 }
 0x24d   :  { %v1337_v28 = vpop.f32.mrf.mxu1  ;;  %v1408_v41 = vpop.f32.mrf.mxu0 }
 0x24e   :  { %v5126_v52 = vpop.eup %5125  ;;  %v1413_v19 = vadd.f32 %v1337_v28, %v760_v43  ;;  %v1415_v17 = vadd.f32 %v1408_v41, %v873_v45  ;;  %v8818_v41 = vld [vmem:[#allocation53_spill] sm:$0xff]  ;;  %v8819_v45 = vld [vmem:[#allocation54_spill] sm:$0xff] }
 0x24f   :  { %v5128_v6 = vpop.eup %5127  ;;  %v1339_v57 = vpop.f32.mrf.mxu1  ;;  %8874 = vst [vmem:[#allocation53_spill] sm:$0xff] %v6626_v16  ;;  %8875 = vst [vmem:[#allocation54_spill] sm:$0xff] %v6630_v26 }
 0x250   :  { %v5130_v2 = vpop.eup %5129  ;;  %v5022_v63 = vmul.f32 -1.442695, %v1413_v19  ;;  %v1414_v10 = vadd.f32 %v1339_v57, %v762_v62  ;;  %v1182_v51 = vmul.f32 %v5128_v6, %v5126_v52  ;;  %v1410_v7 = vpop.f32.mrf.mxu0  ;;  %v5024_v11 = vmul.f32 -1.442695, %v1415_v17  ;;  %v8820_v17 = vld [vmem:[#allocation55_spill] sm:$0xff] }
 0x251   :  { %v1181_v54 = vmul.f32 0.0, %v5130_v2  ;;  %v1416_v44 = vadd.f32 %v1410_v7, %v875_v1  ;;  %v6403_v62 = vpop.permute.xlu0 %1189  ;;  %v8811_v2 = vld [vmem:[#allocation46_spill] sm:$0xff]  ;;  %v8821_v7 = vld [vmem:[#allocation56_spill] sm:$0xff]  ;;  %v8822_v1 = vld [vmem:[#allocation57_spill] sm:$0xff]  ;;  %8876 = vst [vmem:[#allocation55_spill] sm:$0xff] %v6632_v21 }
 0x252   :  { %5131 = vpow2.f32 %v5022_v63  ;;  %v5023_v61 = vmul.f32 -1.442695, %v1414_v10  ;;  %8807 = vst [vmem:[#allocation133_spill] sm:$0xff] %v6403_v62  ;;  %vm1191_vm9 = vcmp.eq.s32.totalorder %v6403_v62, 1  ;;  %v8812_v63 = vld [vmem:[#allocation47_spill] sm:$0xff]  ;;  %v8813_v10 = vld [vmem:[#allocation48_spill] sm:$0xff] }
 0x253   :  { %v6398_v56 = vadd.f32 %v1182_v51, %v1181_v54  ;;  %v8815_v54 = vld [vmem:[#allocation50_spill] sm:$0xff]  ;;  %v8816_v51 = vld [vmem:[#allocation51_spill] sm:$0xff]  ;;  %8867 = vst [vmem:[#allocation46_spill] sm:$0xff] %v6606_v37  ;;  %8868 = vst [vmem:[#allocation47_spill] sm:$0xff] %v6608_v38 }
 0x254   :  { %5133 = vpow2.f32 %v5023_v61  ;;  %v8817_v61 = vld [vmem:[#allocation52_spill] sm:$0xff]  ;;  %8869 = vst [vmem:[#allocation48_spill] sm:$0xff] %v6612_v25  ;;  %8871 = vst [vmem:[#allocation50_spill] sm:$0xff] %v6618_v24  ;;  %v6774_v62 = vld [vmem:[#allocation16 + $0x148] sm:$0xff] }
 0x255   :  { %5135 = vrcp.f32 %v1173_v23  ;;  %v8814_v23 = vld [vmem:[#allocation49_spill] sm:$0xff]  ;;  %8872 = vst [vmem:[#allocation51_spill] sm:$0xff] %v6620_v60  ;;  %8873 = vst [vmem:[#allocation52_spill] sm:$0xff] %v6624_v53 }
 0x256   :  { %5137 = vtanh.f32 %v6398_v56  ;;  %8870 = vst [vmem:[#allocation49_spill] sm:$0xff] %v6614_v30  ;;  %8877 = vst [vmem:[#allocation56_spill] sm:$0xff] %v6636_v13 }
 0x257   :  { %5139 = vpow2.f32 %v5024_v11  ;;  %8878 = vst [vmem:[#allocation57_spill] sm:$0xff] %v6638_v20 }
 0x25f   :  { %v5132_v29 = vpop.eup %5131 }
 0x260   :  { %v1426_v43 = vadd.f32 1.0, %v5132_v29  ;;  %v8823_v29 = vld [vmem:[#allocation58_spill] sm:$0xff] }
 0x261   :  { %v5134_v47 = vpop.eup %5133  ;;  %8879 = vst [vmem:[#allocation58_spill] sm:$0xff] %v6642_v12 }
 0x262   :  { %v5136_v28 = vpop.eup %5135  ;;  %5141 = vrcp.f32 %v1426_v43  ;;  %v1427_v52 = vadd.f32 1.0, %v5134_v47  ;;  %v8825_v47 = vld [vmem:[#allocation60_spill] sm:$0xff] }
 0x263   :  { %v5138_v19 = vpop.eup %5137  ;;  %5143 = vtanh.f32 %v1416_v44  ;;  %v8824_v44 = vld [vmem:[#allocation59_spill] sm:$0xff] }
 0x264   :  { %5145 = vrcp.f32 %v1427_v52  ;;  %v1185_v6 = vmul.f32 %v5138_v19, %v5136_v28  ;;  %v5140_v11 = vpop.eup %5139  ;;  %v8826_v28 = vld [vmem:[#allocation61_spill] sm:$0xff]  ;;  %v8827_v19 = vld [vmem:[#allocation62_spill] sm:$0xff] }
 0x266   :  { %5067 = vmatmul.mubr.msk.f32.vlgmr.msra.gmra.mxu1 %vm1191_vm9, %v1185_v6  ;;  %5068 = vmatmul.mubr.msk.f32.vlgmr.msra.gmra.mxu0 %vm1191_vm9, %v1185_v6  ;;  %v6412_v49 = vsel %vm1191_vm9, %v1185_v6, 0.0  ;;  %v8828_v6 = vld [vmem:[#allocation63_spill] sm:$0xff] }
 0x267   :  { %1786 = vmatpush1.msra.mxu1 %v8808_v22  ;;  %1857 = vmatpush1.msra.mxu0 %v8809_v42  ;;  %v1198_v57 = vadd.f32 %v6412_v49, %v8810_v46  ;;  %v1428_v42 = vadd.f32 1.0, %v5140_v11  ;;  %v8839_v11 = vld [vmem:[#allocation74_spill] sm:$0xff]  ;;  %v6578_v46 = vld [vmem:[#allocation14 + $0x130] sm:$0xff] }
 0x268   :  { %1787 = vmatprep.subr.mxu1 %v8811_v2  ;;  %1858 = vmatprep.subr.mxu0 %v8812_v63  ;;  %v8830_v2 = vld [vmem:[#allocation65_spill] sm:$0xff] }
 0x269   :  { %1788 = vmatpush1.msra.mxu1 %v8813_v10  ;;  %1859 = vmatpush1.msra.mxu0 %v8814_v23  ;;  %1199 = vst [vmem:[#allocation17] sm:$0xff] %v1198_v57  ;;  %v8829_v57 = vld [vmem:[#allocation64_spill] sm:$0xff]  ;;  %v8831_v23 = vld [vmem:[#allocation66_spill] sm:$0xff]  ;;  %5147 = vrcp.f32 %v1428_v42 }
 0x26a   :  { %1789 = vmatprep.subr.mxu1 %v8815_v54  ;;  %1860 = vmatprep.subr.mxu0 %v8816_v51  ;;  %v8832_v54 = vld [vmem:[#allocation67_spill] sm:$0xff]  ;;  %v8833_v51 = vld [vmem:[#allocation68_spill] sm:$0xff] }
 0x26b   :  { %1790 = vmatpush1.msra.mxu1 %v8817_v61  ;;  %1861 = vmatpush1.msra.mxu0 %v8818_v41  ;;  %v8834_v61 = vld [vmem:[#allocation69_spill] sm:$0xff]  ;;  %v8849_v42 = vld [vmem:[#allocation84_spill] sm:$0xff] }
 0x26c   :  { %1791 = vmatprep.subr.mxu1 %v8819_v45  ;;  %1862 = vmatprep.subr.mxu0 %v8820_v17  ;;  %v8835_v45 = vld [vmem:[#allocation70_spill] sm:$0xff]  ;;  %v8836_v17 = vld [vmem:[#allocation71_spill] sm:$0xff] }
 0x26d   :  { %1792 = vmatpush1.msra.mxu1 %v8821_v7  ;;  %1863 = vmatpush1.msra.mxu0 %v8822_v1  ;;  %v8837_v7 = vld [vmem:[#allocation72_spill] sm:$0xff]  ;;  %v8838_v1 = vld [vmem:[#allocation73_spill] sm:$0xff] }
 0x26e   :  { %1793 = vmatprep.subr.mxu1 %v8823_v29  ;;  %1864 = vmatprep.subr.mxu0 %v8824_v44  ;;  %v8840_v29 = vld [vmem:[#allocation75_spill] sm:$0xff]  ;;  %v8841_v44 = vld [vmem:[#allocation76_spill] sm:$0xff] }
 0x26f   :  { %v5142_v43 = vpop.eup %5141  ;;  %1794 = vmatpush1.msra.mxu1 %v8825_v47  ;;  %1865 = vmatpush1.msra.mxu0 %v8826_v28  ;;  %v8843_v47 = vld [vmem:[#allocation78_spill] sm:$0xff]  ;;  %v8844_v28 = vld [vmem:[#allocation79_spill] sm:$0xff] }
 0x270   :  { %v5144_v52 = vpop.eup %5143  ;;  %1795 = vmatprep.subr.mxu1 %v8827_v19  ;;  %1866 = vmatprep.subr.mxu0 %v8828_v6  ;;  %v8846_v19 = vld [vmem:[#allocation81_spill] sm:$0xff]  ;;  %v8847_v6 = vld [vmem:[#allocation82_spill] sm:$0xff] }
 0x271   :  { %v5146_v22 = vpop.eup %5145  ;;  %1796 = vmatpush1.msra.mxu1 %v8829_v57  ;;  %1867 = vmatpush1.msra.mxu0 %v8830_v2  ;;  %v1437_v10 = vmul.f32 %v5144_v52, %v5142_v43  ;;  %v8842_v43 = vld [vmem:[#allocation77_spill] sm:$0xff]  ;;  %v8845_v52 = vld [vmem:[#allocation80_spill] sm:$0xff]  ;;  %v8851_v2 = vld [vmem:[#allocation86_spill] sm:$0xff] }
 0x272   :  { %v1436_v63 = vmul.f32 0.0, %v5146_v22  ;;  %1797 = vmatprep.subr.mxu1 %v8831_v23  ;;  %1868 = vmatprep.subr.mxu0 %v8832_v54  ;;  %v8848_v22 = vld [vmem:[#allocation83_spill] sm:$0xff]  ;;  %v8850_v57 = vld [vmem:[#allocation85_spill] sm:$0xff]  ;;  %v8855_v54 = vld [vmem:[#allocation90_spill] sm:$0xff] }
 0x273   :  { %1798 = vmatpush1.msra.mxu1 %v8833_v51  ;;  %1869 = vmatpush1.msra.mxu0 %v8834_v61  ;;  %v8854_v23 = vld [vmem:[#allocation89_spill] sm:$0xff]  ;;  %v8856_v51 = vld [vmem:[#allocation91_spill] sm:$0xff]  ;;  %v8857_v61 = vld [vmem:[#allocation92_spill] sm:$0xff] }
 0x274   :  { %v6442_v41 = vadd.f32 %v1437_v10, %v1436_v63  ;;  %1799 = vmatprep.subr.mxu1 %v8835_v45  ;;  %1870 = vmatprep.subr.mxu0 %v8836_v17  ;;  %v8852_v63 = vld [vmem:[#allocation87_spill] sm:$0xff]  ;;  %v8853_v10 = vld [vmem:[#allocation88_spill] sm:$0xff]  ;;  %v8858_v45 = vld [vmem:[#allocation93_spill] sm:$0xff] }
 0x275   :  { %1800 = vmatpush1.msra.mxu1 %v8837_v7  ;;  %1871 = vmatpush1.msra.mxu0 %v8838_v1  ;;  %v8859_v17 = vld [vmem:[#allocation94_spill] sm:$0xff]  ;;  %v8860_v7 = vld [vmem:[#allocation95_spill] sm:$0xff] }
 0x276   :  { %5149 = vtanh.f32 %v6442_v41  ;;  %1801 = vmatprep.subr.mxu1 %v8839_v11  ;;  %1872 = vmatprep.subr.mxu0 %v8840_v29  ;;  %v5148_v1 = vpop.eup %5147  ;;  %v8861_v11 = vld [vmem:[#allocation96_spill] sm:$0xff] }
 0x277   :  { %1802 = vmatpush1.msra.mxu1 %v8841_v44  ;;  %1873 = vmatpush1.msra.mxu0 %v8842_v43  ;;  %v8862_v44 = vld [vmem:[#allocation97_spill] sm:$0xff]  ;;  %v6477_v43 = vpop.permute.xlu0 %1444 }
 0x278   :  { %1803 = vmatprep.subr.mxu1 %v8843_v47  ;;  %1874 = vmatprep.subr.mxu0 %v8844_v28  ;;  %8863 = vst [vmem:[#allocation44_spill] sm:$0xff] %v6477_v43  ;;  %vm1446_vm10 = vcmp.eq.s32.totalorder %v6477_v43, 1  ;;  %v6506_v28 = vld [vmem:[#allocation14 + $0x1f0] sm:$0xff] }
 0x279   :  { %1804 = vmatpush1.msra.mxu1 %v8845_v52  ;;  %1875 = vmatpush1.msra.mxu0 %v8846_v19  ;;  %v6510_v52 = vld [vmem:[#allocation14 + $0x1c8] sm:$0xff]  ;;  %v6512_v19 = vld [vmem:[#allocation14 + $0x1d8] sm:$0xff] }
 0x27a   :  { %1805 = vmatprep.subr.mxu1 %v8847_v6  ;;  %1876 = vmatprep.subr.mxu0 %v8848_v22  ;;  %v6516_v6 = vld [vmem:[#allocation14 + $0x1c0] sm:$0xff]  ;;  %v6518_v22 = vld [vmem:[#allocation14 + $0x1d0] sm:$0xff] }
 0x27b   :  { %1806 = vmatpush1.msra.mxu1 %v8849_v42  ;;  %1877 = vmatpush1.msra.mxu0 %v8850_v57  ;;  %v6522_v42 = vld [vmem:[#allocation14 + $0x1a8] sm:$0xff]  ;;  %v6524_v57 = vld [vmem:[#allocation14 + $0x1b8] sm:$0xff] }
 0x27c   :  { %1807 = vmatprep.subr.mxu1 %v8851_v2  ;;  %1878 = vmatprep.subr.mxu0 %v8852_v63  ;;  %v6528_v2 = vld [vmem:[#allocation14 + $0x1a0] sm:$0xff]  ;;  %v6530_v63 = vld [vmem:[#allocation14 + $0x1b0] sm:$0xff] }
 0x27d   :  { %1808 = vmatpush1.msra.mxu1 %v8853_v10  ;;  %1879 = vmatpush1.msra.mxu0 %v8854_v23  ;;  %v6534_v10 = vld [vmem:[#allocation14 + $0x188] sm:$0xff]  ;;  %v6536_v23 = vld [vmem:[#allocation14 + $0x198] sm:$0xff] }
 0x27e   :  { %1809 = vmatprep.subr.mxu1 %v8855_v54  ;;  %1880 = vmatprep.subr.mxu0 %v8856_v51  ;;  %v6540_v54 = vld [vmem:[#allocation14 + $0x180] sm:$0xff]  ;;  %v6542_v51 = vld [vmem:[#allocation14 + $0x190] sm:$0xff] }
 0x27f   :  { %1810 = vmatpush1.msra.mxu1 %v8857_v61  ;;  %1881 = vmatpush1.msra.mxu0 %v8858_v45  ;;  %v6546_v61 = vld [vmem:[#allocation14 + $0x168] sm:$0xff]  ;;  %v6548_v45 = vld [vmem:[#allocation14 + $0x178] sm:$0xff] }
 0x280   :  { %1811 = vmatprep.subr.mxu1 %v8859_v17  ;;  %1882 = vmatprep.subr.mxu0 %v8860_v7  ;;  %v6552_v17 = vld [vmem:[#allocation14 + $0x160] sm:$0xff]  ;;  %v6554_v7 = vld [vmem:[#allocation14 + $0x170] sm:$0xff] }
 0x281   :  { %1812 = vmatpush1.msra.mxu1 %v6044_v14  ;;  %1883 = vmatpush1.msra.mxu0 %v6046_v32  ;;  %v8864_v14 = vld [vmem:[#allocation98_spill] sm:$0xff]  ;;  %v6500_v32 = vld [vmem:[#allocation14 + $0x1f8] sm:$0xff] }
 0x282   :  { %1813 = vmatprep.subr.mxu1 %v6050_v31  ;;  %1884 = vmatprep.subr.mxu0 %v8861_v11  ;;  %v6560_v11 = vld [vmem:[#allocation14 + $0x158] sm:$0xff] }
 0x283   :  { %v5150_v29 = vpop.eup %5149  ;;  %1814 = vmatpush1.msra.mxu1 %v8862_v44  ;;  %1885 = vmatpush1.msra.mxu0 %v6058_v18  ;;  %v6566_v44 = vld [vmem:[#allocation14 + $0x150] sm:$0xff] }
 0x284   :  { %1815 = vmatprep.subr.mxu1 %v6067_v58  ;;  %1886 = vmatprep.subr.mxu0 %v6069_v33  ;;  %v1440_v47 = vmul.f32 %v5150_v29, %v5148_v1  ;;  %v8865_v58 = vld [vmem:[#allocation29_spill] sm:$0xff]  ;;  %v6504_v33 = vld [vmem:[#allocation14 + $0x1e0] sm:$0xff]  ;;  %v6558_v1 = vld [vmem:[#allocation14 + $0x148] sm:$0xff] }
 0x285   :  { %1816 = vmatpush1.msra.mxu1 %v6073_v48  ;;  %1849 = vmatprep.mubr.f32.mxu1 %v8681_v4  ;;  %v6498_v48 = vld [vmem:[#allocation14 + $0x1e8] sm:$0xff]  ;;  %v6564_v29 = vld [vmem:[#allocation14 + $0x140] sm:$0xff] }
 0x286   :  { %1887 = vmatpush1.msra.mxu0 %v8864_v14  ;;  %1920 = vmatprep.mubr.f32.mxu0 %v8681_v4  ;;  %v6488_v18 = vsel %vm1446_vm10, %v1440_v47, 0.0  ;;  %v6572_v14 = vld [vmem:[#allocation14 + $0x138] sm:$0xff] }
 0x287   :  { %5069 = vmatmul.mubr.msk.f32.vlgmr.msra.gmra.mxu1 %vm1446_vm10, %v1440_v47  ;;  %5070 = vmatmul.mubr.msk.f32.vlgmr.msra.gmra.mxu0 %vm1446_vm10, %v1440_v47  ;;  %v1454_v31 = vadd.f32 %v6488_v18, %v8865_v58  ;;  %v6570_v47 = vld [vmem:[#allocation14 + $0x128] sm:$0xff] }
 0x288   :  { %2106 = vmatprep.mubr.f32.mxu1 %v8681_v4  ;;  %2177 = vmatprep.mubr.f32.mxu0 %v8681_v4  ;;  %v6582_v58 = vld [vmem:[#allocation14 + $0x108] sm:$0xff] }
 0x289   :  { %1456 = vst [vmem:[#allocation17 + $0x78] sm:$0xff] %v1454_v31  ;;  %2042 = vmatprep.subr.mxu1 %v6498_v48  ;;  %2113 = vmatprep.subr.mxu0 %v6500_v32  ;;  %v6576_v31 = vld [vmem:[#allocation14 + $0x120] sm:$0xff] }
 0x28a   :  { %2043 = vmatpush1.msra.mxu1 %v6504_v33  ;;  %2114 = vmatpush1.msra.mxu0 %v6506_v28 }
 0x28b   :  { %2044 = vmatprep.subr.mxu1 %v6510_v52  ;;  %2115 = vmatprep.subr.mxu0 %v6512_v19 }
 0x28c   :  { %2045 = vmatpush1.msra.mxu1 %v6516_v6  ;;  %2116 = vmatpush1.msra.mxu0 %v6518_v22 }
 0x28d   :  { %2046 = vmatprep.subr.mxu1 %v6522_v42  ;;  %2117 = vmatprep.subr.mxu0 %v6524_v57 }
 0x28e   :  { %2047 = vmatpush1.msra.mxu1 %v6528_v2  ;;  %2118 = vmatpush1.msra.mxu0 %v6530_v63 }
 0x28f   :  { %2048 = vmatprep.subr.mxu1 %v6534_v10  ;;  %2119 = vmatprep.subr.mxu0 %v6536_v23 }
 0x290   :  { %2049 = vmatpush1.msra.mxu1 %v6540_v54  ;;  %2120 = vmatpush1.msra.mxu0 %v6542_v51 }
 0x291   :  { %2050 = vmatprep.subr.mxu1 %v6546_v61  ;;  %2121 = vmatprep.subr.mxu0 %v6548_v45 }
 0x292   :  { %2051 = vmatpush1.msra.mxu1 %v6552_v17  ;;  %2122 = vmatpush1.msra.mxu0 %v6554_v7 }
 0x293   :  { %2052 = vmatprep.subr.mxu1 %v6558_v1  ;;  %2123 = vmatprep.subr.mxu0 %v6560_v11 }
 0x294   :  { %2053 = vmatpush1.msra.mxu1 %v6564_v29  ;;  %2124 = vmatpush1.msra.mxu0 %v6566_v44 }
 0x295   :  { %2054 = vmatprep.subr.mxu1 %v6570_v47  ;;  %2125 = vmatprep.subr.mxu0 %v6572_v14 }
 0x296   :  { %2055 = vmatpush1.msra.mxu1 %v6576_v31  ;;  %2126 = vmatpush1.msra.mxu0 %v6578_v46 }
 0x297   :  { %2056 = vmatprep.subr.mxu1 %v6582_v58  ;;  %2127 = vmatprep.subr.mxu0 %v6584_v40 }
 0x298   :  { %2057 = vmatpush1.msra.mxu1 %v6588_v35  ;;  %2128 = vmatpush1.msra.mxu0 %v6590_v39 }
 0x299   :  { %2058 = vmatprep.subr.mxu1 %v6594_v34  ;;  %2129 = vmatprep.subr.mxu0 %v6596_v36 }
 0x29a   :  { %2059 = vmatpush1.msra.mxu1 %v6600_v0  ;;  %2130 = vmatpush1.msra.mxu0 %v6602_v15 }
 0x29b   :  { %2060 = vmatprep.subr.mxu1 %v6606_v37  ;;  %2131 = vmatprep.subr.mxu0 %v6608_v38 }
 0x29c   :  { %2061 = vmatpush1.msra.mxu1 %v6612_v25  ;;  %2132 = vmatpush1.msra.mxu0 %v6614_v30 }
 0x29d   :  { %2062 = vmatprep.subr.mxu1 %v6618_v24  ;;  %2133 = vmatprep.subr.mxu0 %v6620_v60 }
 0x29e   :  { %2063 = vmatpush1.msra.mxu1 %v6624_v53  ;;  %2134 = vmatpush1.msra.mxu0 %v6626_v16  ;;  %v6644_v53 = vld [vmem:[#allocation14 + $0x78] sm:$0xff]  ;;  %v6648_v16 = vld [vmem:[#allocation14 + $0x60] sm:$0xff] }
 0x29f   :  { %2064 = vmatprep.subr.mxu1 %v6630_v26  ;;  %2135 = vmatprep.subr.mxu0 %v6632_v21  ;;  %8880 = vst [vmem:[#allocation59_spill] sm:$0xff] %v6644_v53  ;;  %8881 = vst [vmem:[#allocation60_spill] sm:$0xff] %v6648_v16  ;;  %v6650_v26 = vld [vmem:[#allocation14 + $0x70] sm:$0xff]  ;;  %v6654_v21 = vld [vmem:[#allocation14 + $0x48] sm:$0xff] }
 0x2a0   :  { %2065 = vmatpush1.msra.mxu1 %v6636_v13  ;;  %2136 = vmatpush1.msra.mxu0 %v6638_v20  ;;  %8882 = vst [vmem:[#allocation61_spill] sm:$0xff] %v6650_v26  ;;  %8883 = vst [vmem:[#allocation62_spill] sm:$0xff] %v6654_v21  ;;  %v6656_v13 = vld [vmem:[#allocation14 + $0x58] sm:$0xff]  ;;  %v6660_v20 = vld [vmem:[#allocation14 + $0x40] sm:$0xff] }
 0x2a1   :  { %2066 = vmatprep.subr.mxu1 %v6642_v12  ;;  %2137 = vmatprep.subr.mxu0 %v6644_v53  ;;  %8884 = vst [vmem:[#allocation63_spill] sm:$0xff] %v6656_v13  ;;  %8885 = vst [vmem:[#allocation64_spill] sm:$0xff] %v6660_v20  ;;  %v6662_v12 = vld [vmem:[#allocation14 + $0x50] sm:$0xff]  ;;  %v6666_v53 = vld [vmem:[#allocation14 + $0x28] sm:$0xff] }
 0x2a2   :  { %2067 = vmatpush1.msra.mxu1 %v6648_v16  ;;  %2138 = vmatpush1.msra.mxu0 %v6650_v26  ;;  %8886 = vst [vmem:[#allocation65_spill] sm:$0xff] %v6662_v12  ;;  %8887 = vst [vmem:[#allocation66_spill] sm:$0xff] %v6666_v53  ;;  %v6668_v16 = vld [vmem:[#allocation14 + $0x38] sm:$0xff]  ;;  %v6672_v26 = vld [vmem:[#allocation14 + $0x20] sm:$0xff] }
 0x2a3   :  { %2068 = vmatprep.subr.mxu1 %v6654_v21  ;;  %2139 = vmatprep.subr.mxu0 %v6656_v13  ;;  %8888 = vst [vmem:[#allocation67_spill] sm:$0xff] %v6668_v16  ;;  %8889 = vst [vmem:[#allocation68_spill] sm:$0xff] %v6672_v26  ;;  %v6674_v21 = vld [vmem:[#allocation14 + $0x30] sm:$0xff]  ;;  %v6678_v13 = vld [vmem:[#allocation14 + $0x8] sm:$0xff] }
 0x2a4   :  { %2069 = vmatpush1.msra.mxu1 %v6660_v20  ;;  %2140 = vmatpush1.msra.mxu0 %v6662_v12  ;;  %8890 = vst [vmem:[#allocation69_spill] sm:$0xff] %v6674_v21  ;;  %8891 = vst [vmem:[#allocation70_spill] sm:$0xff] %v6678_v13  ;;  %v6680_v20 = vld [vmem:[#allocation14 + $0x18] sm:$0xff]  ;;  %v6684_v12 = vld [vmem:[#allocation14] sm:$0xff] }
 0x2a5   :  { %2070 = vmatprep.subr.mxu1 %v6666_v53  ;;  %2141 = vmatprep.subr.mxu0 %v6668_v16  ;;  %8892 = vst [vmem:[#allocation71_spill] sm:$0xff] %v6680_v20  ;;  %8893 = vst [vmem:[#allocation72_spill] sm:$0xff] %v6684_v12  ;;  %v6686_v53 = vld [vmem:[#allocation14 + $0x10] sm:$0xff]  ;;  %v6690_v16 = vld [vmem:[#allocation16 + $0x1e8] sm:$0xff] }
 0x2a6   :  { %2071 = vmatpush1.msra.mxu1 %v6672_v26  ;;  %2142 = vmatpush1.msra.mxu0 %v6674_v21  ;;  %8894 = vst [vmem:[#allocation73_spill] sm:$0xff] %v6686_v53  ;;  %8895 = vst [vmem:[#allocation74_spill] sm:$0xff] %v6690_v16  ;;  %v6692_v26 = vld [vmem:[#allocation16 + $0x1f8] sm:$0xff] }
 0x2a7   :  { %2072 = vmatprep.subr.mxu1 %v6678_v13  ;;  %2143 = vmatprep.subr.mxu0 %v6680_v20  ;;  %8896 = vst [vmem:[#allocation75_spill] sm:$0xff] %v6692_v26 }
 0x2a8   :  { %2073 = vmatpush1.msra.mxu1 %v6684_v12  ;;  %2144 = vmatpush1.msra.mxu0 %v6686_v53 }
 0x2a9   :  { %2299 = vmatprep.subr.mxu1 %v6690_v16  ;;  %2370 = vmatprep.subr.mxu0 %v6692_v26 }
 0x326   :  { %v1594_v21 = vpop.f32.mrf.mxu1  ;;  %v1665_v12 = vpop.f32.mrf.mxu0 }
 0x327   :  { %v1670_v13 = vadd.f32 %v1594_v21, %v6197_v3  ;;  %v1672_v53 = vadd.f32 %v1665_v12, %v6200_v5  ;;  %v6701_v12 = vpop.permute.xlu1 %1701 }
 0x328   :  { %v1596_v20 = vpop.f32.mrf.mxu1  ;;  %v1667_v25 = vpop.f32.mrf.mxu0  ;;  %8897 = vst [vmem:[#allocation76_spill] sm:$0xff] %v6701_v12  ;;  %vm1703_vm11 = vcmp.eq.s32.totalorder %v6701_v12, 1 }
 0x329   :  { %v5025_v60 = vmul.f32 -1.442695, %v1670_v13  ;;  %v1671_v24 = vadd.f32 %v1596_v20, %v6203_v8  ;;  %v5027_v38 = vmul.f32 -1.442695, %v1672_v53  ;;  %v1673_v37 = vadd.f32 %v1667_v25, %v6206_v9 }
 0x32a   :  { %v1194_v9 = vsel %vm1191_vm9, %v6398_v56, 0.0 }
 0x32b   :  { %5151 = vpow2.f32 %v5025_v60  ;;  %v5026_v30 = vmul.f32 -1.442695, %v1671_v24  ;;  %v6811_v43 = vpop.permute.xlu1 %1958 }
 0x32c   :  { %8918 = vst [vmem:[#allocation96_spill] sm:$0xff] %v6811_v43  ;;  %vm1960_vm12 = vcmp.eq.s32.totalorder %v6811_v43, 1  ;;  %v7274_v43 = vld [vmem:[#allocation14 + $0x40] sm:$0xff] }
 0x32d   :  { %5153 = vpow2.f32 %v5026_v30 }
 0x32e   :  { %5155 = vpow2.f32 %v5027_v38 }
 0x32f   :  { %5157 = vtanh.f32 %v1673_v37 }
 0x338   :  { %v5152_v16 = vpop.eup %5151 }
 0x339   :  { %v1683_v15 = vadd.f32 1.0, %v5152_v16 }
 0x33a   :  { %v5154_v26 = vpop.eup %5153 }
 0x33b   :  { %5159 = vrcp.f32 %v1683_v15  ;;  %v1684_v3 = vadd.f32 1.0, %v5154_v26  ;;  %v5156_v13 = vpop.eup %5155 }
 0x33c   :  { %v5158_v8 = vpop.eup %5157  ;;  %v1685_v37 = vadd.f32 1.0, %v5156_v13 }
 0x33d   :  { %5161 = vrcp.f32 %v1684_v3 }
 0x347   :  { %v1851_v20 = vpop.f32.mrf.mxu1  ;;  %v1922_v16 = vpop.f32.mrf.mxu0 }
 0x348   :  { %v5160_v21 = vpop.eup %5159  ;;  %v1927_v24 = vadd.f32 %v1851_v20, %v6377_v50  ;;  %v1929_v56 = vadd.f32 %v1922_v16, %v6380_v59  ;;  %v6734_v16 = vld [vmem:[#allocation16 + $0x1d0] sm:$0xff] }
 0x349   :  { %v1694_v30 = vmul.f32 %v5160_v21, %v5158_v8  ;;  %v1853_v5 = vpop.f32.mrf.mxu1  ;;  %v1924_v3 = vpop.f32.mrf.mxu0 }
 0x34a   :  { %v5162_v60 = vpop.eup %5161  ;;  %v5028_v25 = vmul.f32 -1.442695, %v1927_v24  ;;  %v1928_v38 = vadd.f32 %v1853_v5, %v6383_v55  ;;  %v5030_v8 = vmul.f32 -1.442695, %v1929_v56  ;;  %v1930_v55 = vadd.f32 %v1924_v3, %v6386_v27  ;;  %v6740_v56 = vld [vmem:[#allocation16 + $0x1b8] sm:$0xff]  ;;  %v6744_v3 = vld [vmem:[#allocation16 + $0x1a0] sm:$0xff] }
 0x34b   :  { %v1693_v15 = vmul.f32 %v5162_v60, %v1194_v9  ;;  %8899 = vst [vmem:[#allocation77_spill] sm:$0xff] %v6740_v56  ;;  %8900 = vst [vmem:[#allocation78_spill] sm:$0xff] %v6744_v3 }
 0x34c   :  { %5163 = vpow2.f32 %v5028_v25  ;;  %v5029_v26 = vmul.f32 -1.442695, %v1928_v38  ;;  %v6716_v25 = vld [vmem:[#allocation16 + $0x1f0] sm:$0xff]  ;;  %v6725_v38 = vld [vmem:[#allocation16 + $0x1c8] sm:$0xff] }
 0x34d   :  { %v1695_v53 = vadd.f32 %v1694_v30, %v1693_v15  ;;  %v8898_v15 = vld [vmem:[#allocation23_spill] sm:$0xff] }
 0x34e   :  { %5165 = vpow2.f32 %v5029_v26 }
 0x34f   :  { %5167 = vrcp.f32 %v1685_v37  ;;  %v6710_v50 = vsel %vm1703_vm11, %v1695_v53, %v1194_v9  ;;  %v6714_v9 = vld [vmem:[#allocation16 + $0x1e0] sm:$0xff]  ;;  %v6727_v37 = vld [vmem:[#allocation16 + $0x1d8] sm:$0xff] }
 0x350   :  { %5169 = vtanh.f32 %v1695_v53  ;;  %v6732_v53 = vld [vmem:[#allocation16 + $0x1c0] sm:$0xff] }
 0x351   :  { %5171 = vpow2.f32 %v5030_v8  ;;  %v6746_v8 = vld [vmem:[#allocation16 + $0x1b0] sm:$0xff] }
 0x352   :  { %5173 = vtanh.f32 %v1930_v55  ;;  %8901 = vst [vmem:[#allocation79_spill] sm:$0xff] %v6746_v8  ;;  %v6750_v55 = vld [vmem:[#allocation16 + $0x188] sm:$0xff] }
 0x353   :  { %8902 = vst [vmem:[#allocation80_spill] sm:$0xff] %v6750_v55 }
 0x359   :  { %v5164_v13 = vpop.eup %5163 }
 0x35a   :  { %v1940_v20 = vadd.f32 1.0, %v5164_v13  ;;  %v6752_v13 = vld [vmem:[#allocation16 + $0x198] sm:$0xff] }
 0x35b   :  { %v5166_v21 = vpop.eup %5165  ;;  %8903 = vst [vmem:[#allocation81_spill] sm:$0xff] %v6752_v13 }
 0x35c   :  { %v5168_v24 = vpop.eup %5167  ;;  %5175 = vrcp.f32 %v1940_v20  ;;  %v1941_v30 = vadd.f32 1.0, %v5166_v21  ;;  %v6756_v20 = vld [vmem:[#allocation16 + $0x180] sm:$0xff]  ;;  %v6758_v21 = vld [vmem:[#allocation16 + $0x190] sm:$0xff] }
 0x35d   :  { %v5170_v5 = vpop.eup %5169  ;;  %8904 = vst [vmem:[#allocation82_spill] sm:$0xff] %v6756_v20  ;;  %8905 = vst [vmem:[#allocation83_spill] sm:$0xff] %v6758_v21 }
 0x35e   :  { %5177 = vrcp.f32 %v1941_v30  ;;  %v1697_v60 = vmul.f32 %v5170_v5, %v5168_v24  ;;  %v6762_v24 = vld [vmem:[#allocation16 + $0x168] sm:$0xff]  ;;  %v6764_v30 = vld [vmem:[#allocation16 + $0x178] sm:$0xff]  ;;  %v5172_v5 = vpop.eup %5171 }
 0x35f   :  { %8906 = vst [vmem:[#allocation84_spill] sm:$0xff] %v6762_v24  ;;  %8907 = vst [vmem:[#allocation85_spill] sm:$0xff] %v6764_v30 }
 0x360   :  { %v6721_v59 = vsel %vm1703_vm11, %v1697_v60, %v6412_v49  ;;  %v1708_v27 = vsel %vm1703_vm11, %v1697_v60, 0.0  ;;  %v6738_v49 = vld [vmem:[#allocation16 + $0x1a8] sm:$0xff]  ;;  %v6768_v60 = vld [vmem:[#allocation16 + $0x160] sm:$0xff] }
 0x361   :  { %v1711_v26 = vadd.f32 %v1708_v27, %v8898_v15  ;;  %2107 = vmatmul.mubr.f32.vlgmr.msra.gmra.mxu1 %v6721_v59  ;;  %2178 = vmatmul.mubr.f32.vlgmr.msra.gmra.mxu0 %v6721_v59  ;;  %8908 = vst [vmem:[#allocation86_spill] sm:$0xff] %v6768_v60  ;;  %v6770_v27 = vld [vmem:[#allocation16 + $0x170] sm:$0xff]  ;;  %v6776_v15 = vld [vmem:[#allocation16 + $0x158] sm:$0xff] }
 0x362   :  { %2300 = vmatpush1.msra.mxu1 %v6714_v9  ;;  %2371 = vmatpush1.msra.mxu0 %v6716_v25  ;;  %8909 = vst [vmem:[#allocation87_spill] sm:$0xff] %v6770_v27  ;;  %8910 = vst [vmem:[#allocation88_spill] sm:$0xff] %v6776_v15 }
 0x363   :  { %1713 = vst [vmem:[#allocation17 + $0x8] sm:$0xff] %v1711_v26  ;;  %2301 = vmatprep.subr.mxu1 %v6725_v38  ;;  %2372 = vmatprep.subr.mxu0 %v6727_v37  ;;  %v5174_v26 = vpop.eup %5173 }
 0x364   :  { %2302 = vmatpush1.msra.mxu1 %v6732_v53  ;;  %2373 = vmatpush1.msra.mxu0 %v6734_v16 }
 0x365   :  { %2303 = vmatprep.subr.mxu1 %v6738_v49  ;;  %2374 = vmatprep.subr.mxu0 %v6740_v56  ;;  %v1942_v56 = vadd.f32 1.0, %v5172_v5  ;;  %v6809_v5 = vld [vmem:[#allocation16 + $0x110] sm:$0xff] }
 0x366   :  { %2304 = vmatpush1.msra.mxu1 %v6744_v3  ;;  %2375 = vmatpush1.msra.mxu0 %v6746_v8  ;;  %8917 = vst [vmem:[#allocation95_spill] sm:$0xff] %v6809_v5 }
 0x367   :  { %2305 = vmatprep.subr.mxu1 %v6750_v55  ;;  %2376 = vmatprep.subr.mxu0 %v6752_v13  ;;  %v6780_v55 = vld [vmem:[#allocation16 + $0x140] sm:$0xff]  ;;  %v6782_v13 = vld [vmem:[#allocation16 + $0x150] sm:$0xff]  ;;  %5179 = vrcp.f32 %v1942_v56  ;;  %v6832_v56 = vld [vmem:[#allocation16 + $0xc8] sm:$0xff] }
 0x368   :  { %2306 = vmatpush1.msra.mxu1 %v6756_v20  ;;  %2377 = vmatpush1.msra.mxu0 %v6758_v21  ;;  %8911 = vst [vmem:[#allocation89_spill] sm:$0xff] %v6782_v13  ;;  %v6786_v20 = vld [vmem:[#allocation16 + $0x128] sm:$0xff]  ;;  %v6788_v21 = vld [vmem:[#allocation16 + $0x138] sm:$0xff]  ;;  %8923 = vst [vmem:[#allocation136_spill] sm:$0xff] %v6832_v56 }
 0x369   :  { %v5176_v12 = vpop.eup %5175  ;;  %2307 = vmatprep.subr.mxu1 %v6762_v24  ;;  %2378 = vmatprep.subr.mxu0 %v6764_v30  ;;  %8912 = vst [vmem:[#allocation90_spill] sm:$0xff] %v6786_v20  ;;  %8913 = vst [vmem:[#allocation91_spill] sm:$0xff] %v6788_v21  ;;  %v1449_v24 = vsel %vm1446_vm10, %v6442_v41, 0.0  ;;  %v6795_v30 = vld [vmem:[#allocation16 + $0x120] sm:$0xff] }
 0x36a   :  { %v1951_v8 = vmul.f32 %v5176_v12, %v5174_v26  ;;  %2308 = vmatpush1.msra.mxu1 %v6768_v60  ;;  %2379 = vmatpush1.msra.mxu0 %v6770_v27  ;;  %v6797_v12 = vld [vmem:[#allocation16 + $0x130] sm:$0xff]  ;;  %v6801_v27 = vld [vmem:[#allocation16 + $0x108] sm:$0xff]  ;;  %v6803_v60 = vld [vmem:[#allocation16 + $0x118] sm:$0xff] }
 0x36b   :  { %v5178_v3 = vpop.eup %5177  ;;  %2309 = vmatprep.subr.mxu1 %v6774_v62  ;;  %2380 = vmatprep.subr.mxu0 %v6776_v15  ;;  %8914 = vst [vmem:[#allocation92_spill] sm:$0xff] %v6801_v27  ;;  %8915 = vst [vmem:[#allocation93_spill] sm:$0xff] %v6803_v60  ;;  %v6807_v41 = vld [vmem:[#allocation16 + $0x100] sm:$0xff] }
 0x36c   :  { %v1950_v26 = vmul.f32 %v5178_v3, %v1449_v24  ;;  %2310 = vmatpush1.msra.mxu1 %v6780_v55  ;;  %2381 = vmatpush1.msra.mxu0 %v6782_v13  ;;  %8916 = vst [vmem:[#allocation94_spill] sm:$0xff] %v6807_v41  ;;  %v6815_v3 = vld [vmem:[#allocation16 + $0xe8] sm:$0xff]  ;;  %v6817_v13 = vld [vmem:[#allocation16 + $0xf8] sm:$0xff] }
 0x36d   :  { %2311 = vmatprep.subr.mxu1 %v6786_v20  ;;  %2382 = vmatprep.subr.mxu0 %v6788_v21  ;;  %8919 = vst [vmem:[#allocation97_spill] sm:$0xff] %v6815_v3  ;;  %8920 = vst [vmem:[#allocation98_spill] sm:$0xff] %v6817_v13  ;;  %v6822_v21 = vld [vmem:[#allocation16 + $0xe0] sm:$0xff]  ;;  %v6824_v20 = vld [vmem:[#allocation16 + $0xf0] sm:$0xff] }
 0x36e   :  { %v1952_v15 = vadd.f32 %v1951_v8, %v1950_v26  ;;  %2312 = vmatpush1.msra.mxu1 %v6795_v30  ;;  %2383 = vmatpush1.msra.mxu0 %v6797_v12  ;;  %8921 = vst [vmem:[#allocation134_spill] sm:$0xff] %v6822_v21  ;;  %8922 = vst [vmem:[#allocation135_spill] sm:$0xff] %v6824_v20  ;;  %v6834_v26 = vld [vmem:[#allocation16 + $0xd8] sm:$0xff] }
 0x36f   :  { %2313 = vmatprep.subr.mxu1 %v6801_v27  ;;  %2384 = vmatprep.subr.mxu0 %v6803_v60  ;;  %8924 = vst [vmem:[#allocation137_spill] sm:$0xff] %v6834_v26  ;;  %v6838_v60 = vld [vmem:[#allocation16 + $0xc0] sm:$0xff]  ;;  %v6840_v27 = vld [vmem:[#allocation16 + $0xd0] sm:$0xff] }
 0x370   :  { %5181 = vtanh.f32 %v1952_v15  ;;  %v6828_v8 = vsel %vm1960_vm12, %v1952_v15, %v1449_v24  ;;  %2314 = vmatpush1.msra.mxu1 %v6807_v41  ;;  %2385 = vmatpush1.msra.mxu0 %v6809_v5  ;;  %8925 = vst [vmem:[#allocation138_spill] sm:$0xff] %v6838_v60  ;;  %8926 = vst [vmem:[#allocation139_spill] sm:$0xff] %v6840_v27  ;;  %v6844_v15 = vld [vmem:[#allocation16 + $0xa8] sm:$0xff]  ;;  %v6846_v24 = vld [vmem:[#allocation16 + $0xb8] sm:$0xff] }
 0x371   :  { %2315 = vmatprep.subr.mxu1 %v6815_v3  ;;  %2386 = vmatprep.subr.mxu0 %v6817_v13  ;;  %8927 = vst [vmem:[#allocation140_spill] sm:$0xff] %v6844_v15  ;;  %8928 = vst [vmem:[#allocation141_spill] sm:$0xff] %v6846_v24  ;;  %v6850_v5 = vld [vmem:[#allocation16 + $0xa0] sm:$0xff]  ;;  %v6852_v3 = vld [vmem:[#allocation16 + $0xb0] sm:$0xff] }
 0x372   :  { %2316 = vmatpush1.msra.mxu1 %v6822_v21  ;;  %2387 = vmatpush1.msra.mxu0 %v6824_v20  ;;  %8929 = vst [vmem:[#allocation142_spill] sm:$0xff] %v6850_v5  ;;  %8930 = vst [vmem:[#allocation143_spill] sm:$0xff] %v6852_v3  ;;  %v6856_v13 = vld [vmem:[#allocation16 + $0x88] sm:$0xff]  ;;  %v6858_v21 = vld [vmem:[#allocation16 + $0x98] sm:$0xff] }
 0x373   :  { %2317 = vmatprep.subr.mxu1 %v6832_v56  ;;  %2388 = vmatprep.subr.mxu0 %v6834_v26  ;;  %8931 = vst [vmem:[#allocation144_spill] sm:$0xff] %v6856_v13  ;;  %8932 = vst [vmem:[#allocation145_spill] sm:$0xff] %v6858_v21  ;;  %v6862_v20 = vld [vmem:[#allocation16 + $0x80] sm:$0xff]  ;;  %v6864_v56 = vld [vmem:[#allocation16 + $0x90] sm:$0xff] }
 0x374   :  { %2318 = vmatpush1.msra.mxu1 %v6838_v60  ;;  %2389 = vmatpush1.msra.mxu0 %v6840_v27  ;;  %8933 = vst [vmem:[#allocation146_spill] sm:$0xff] %v6862_v20  ;;  %8934 = vst [vmem:[#allocation147_spill] sm:$0xff] %v6864_v56  ;;  %v6868_v26 = vld [vmem:[#allocation16 + $0x68] sm:$0xff]  ;;  %v6870_v60 = vld [vmem:[#allocation16 + $0x78] sm:$0xff] }
 0x375   :  { %2319 = vmatprep.subr.mxu1 %v6844_v15  ;;  %2390 = vmatprep.subr.mxu0 %v6846_v24  ;;  %8935 = vst [vmem:[#allocation148_spill] sm:$0xff] %v6868_v26  ;;  %8936 = vst [vmem:[#allocation149_spill] sm:$0xff] %v6870_v60  ;;  %v6874_v27 = vld [vmem:[#allocation16 + $0x60] sm:$0xff]  ;;  %v6876_v15 = vld [vmem:[#allocation16 + $0x70] sm:$0xff] }
 0x376   :  { %2320 = vmatpush1.msra.mxu1 %v6850_v5  ;;  %2391 = vmatpush1.msra.mxu0 %v6852_v3  ;;  %8937 = vst [vmem:[#allocation150_spill] sm:$0xff] %v6874_v27  ;;  %8938 = vst [vmem:[#allocation151_spill] sm:$0xff] %v6876_v15  ;;  %v6880_v24 = vld [vmem:[#allocation16 + $0x48] sm:$0xff]  ;;  %v6882_v5 = vld [vmem:[#allocation16 + $0x58] sm:$0xff] }
 0x377   :  { %2321 = vmatprep.subr.mxu1 %v6856_v13  ;;  %2392 = vmatprep.subr.mxu0 %v6858_v21  ;;  %8939 = vst [vmem:[#allocation152_spill] sm:$0xff] %v6880_v24  ;;  %8940 = vst [vmem:[#allocation153_spill] sm:$0xff] %v6882_v5  ;;  %v6886_v3 = vld [vmem:[#allocation16 + $0x40] sm:$0xff]  ;;  %v6888_v13 = vld [vmem:[#allocation16 + $0x50] sm:$0xff] }
 0x378   :  { %2322 = vmatpush1.msra.mxu1 %v6862_v20  ;;  %2393 = vmatpush1.msra.mxu0 %v6864_v56  ;;  %8941 = vst [vmem:[#allocation154_spill] sm:$0xff] %v6886_v3  ;;  %v6892_v21 = vld [vmem:[#allocation16 + $0x28] sm:$0xff]  ;;  %v6894_v20 = vld [vmem:[#allocation16 + $0x38] sm:$0xff]  ;;  %v6898_v56 = vld [vmem:[#allocation16 + $0x20] sm:$0xff] }
 0x379   :  { %2323 = vmatprep.subr.mxu1 %v6868_v26  ;;  %2394 = vmatprep.subr.mxu0 %v6870_v60  ;;  %8942 = vst [vmem:[#allocation155_spill] sm:$0xff] %v6894_v20  ;;  %8943 = vst [vmem:[#allocation156_spill] sm:$0xff] %v6898_v56  ;;  %v6900_v26 = vld [vmem:[#allocation16 + $0x30] sm:$0xff]  ;;  %v5180_v60 = vpop.eup %5179 }
 0x37a   :  { %2324 = vmatpush1.msra.mxu1 %v6874_v27  ;;  %2395 = vmatpush1.msra.mxu0 %v6876_v15  ;;  %v6904_v27 = vld [vmem:[#allocation16 + $0x8] sm:$0xff]  ;;  %v6906_v15 = vld [vmem:[#allocation16 + $0x18] sm:$0xff] }
 0x37b   :  { %2325 = vmatprep.subr.mxu1 %v6880_v24  ;;  %2396 = vmatprep.subr.mxu0 %v6882_v5  ;;  %v6910_v24 = vld [vmem:[#allocation16] sm:$0xff]  ;;  %v6914_v5 = vld [vmem:[#allocation16 + $0x10] sm:$0xff] }
 0x37c   :  { %2326 = vmatpush1.msra.mxu1 %v6886_v3  ;;  %2397 = vmatpush1.msra.mxu0 %v6888_v13 }
 0x37d   :  { %v5182_v41 = vpop.eup %5181  ;;  %2327 = vmatprep.subr.mxu1 %v6892_v21  ;;  %2398 = vmatprep.subr.mxu0 %v6894_v20 }
 0x37e   :  { %2328 = vmatpush1.msra.mxu1 %v6898_v56  ;;  %2399 = vmatpush1.msra.mxu0 %v6900_v26  ;;  %v1954_v3 = vmul.f32 %v5182_v41, %v5180_v60  ;;  %v8944_v60 = vld [vmem:[#allocation28_spill] sm:$0xff] }
 0x37f   :  { %2329 = vmatprep.subr.mxu1 %v6904_v27  ;;  %2400 = vmatprep.subr.mxu0 %v6906_v15 }
 0x380   :  { %2330 = vmatpush1.msra.mxu1 %v6910_v24  ;;  %2363 = vmatprep.mubr.f32.mxu1 %v8681_v4  ;;  %v6923_v20 = vsel %vm1960_vm12, %v1954_v3, %v6488_v18  ;;  %v1965_v56 = vsel %vm1960_vm12, %v1954_v3, 0.0  ;;  %v8945_v18 = vld [vmem:[#allocation45_spill] sm:$0xff]  ;;  %v8977_v3 = vld [vmem:[#allocation32_spill] sm:$0xff] }
 0x381   :  { %2401 = vmatpush1.msra.mxu0 %v6914_v5  ;;  %2434 = vmatprep.mubr.f32.mxu0 %v8681_v4  ;;  %v1968_v41 = vadd.f32 %v1965_v56, %v8944_v60  ;;  %v7270_v60 = vld [vmem:[#allocation14 + $0x58] sm:$0xff] }
 0x382   :  { %2364 = vmatmul.mubr.f32.vlgmr.msra.gmra.mxu1 %v6923_v20  ;;  %2435 = vmatmul.mubr.f32.vlgmr.msra.gmra.mxu0 %v6923_v20 }
 0x383   :  { %1970 = vst [vmem:[#allocation17 + $0x70] sm:$0xff] %v1968_v41  ;;  %2556 = vmatprep.subr.mxu1 %v6498_v48  ;;  %2627 = vmatprep.subr.mxu0 %v6500_v32  ;;  %v8946_v48 = vld [vmem:[#allocation46_spill] sm:$0xff]  ;;  %v8947_v32 = vld [vmem:[#allocation47_spill] sm:$0xff] }
 0x384   :  { %2557 = vmatpush1.msra.mxu1 %v6504_v33  ;;  %2628 = vmatpush1.msra.mxu0 %v6506_v28  ;;  %v8956_v33 = vld [vmem:[#allocation56_spill] sm:$0xff]  ;;  %v8957_v28 = vld [vmem:[#allocation57_spill] sm:$0xff] }
 0x385   :  { %2558 = vmatprep.subr.mxu1 %v6510_v52  ;;  %2629 = vmatprep.subr.mxu0 %v6512_v19  ;;  %v8958_v52 = vld [vmem:[#allocation58_spill] sm:$0xff]  ;;  %v8959_v19 = vld [vmem:[#allocation59_spill] sm:$0xff] }
 0x386   :  { %2559 = vmatpush1.msra.mxu1 %v6516_v6  ;;  %2630 = vmatpush1.msra.mxu0 %v6518_v22  ;;  %v8960_v6 = vld [vmem:[#allocation60_spill] sm:$0xff]  ;;  %v8961_v22 = vld [vmem:[#allocation61_spill] sm:$0xff] }
 0x387   :  { %2560 = vmatprep.subr.mxu1 %v6522_v42  ;;  %2631 = vmatprep.subr.mxu0 %v6524_v57  ;;  %v8962_v42 = vld [vmem:[#allocation62_spill] sm:$0xff]  ;;  %v8963_v57 = vld [vmem:[#allocation63_spill] sm:$0xff]  ;;  %9045 = vst [vmem:[#allocation60_spill] sm:$0xff] %v7270_v60  ;;  %9046 = vst [vmem:[#allocation61_spill] sm:$0xff] %v7274_v43 }
 0x388   :  { %2561 = vmatpush1.msra.mxu1 %v6528_v2  ;;  %2632 = vmatpush1.msra.mxu0 %v6530_v63  ;;  %v8964_v2 = vld [vmem:[#allocation64_spill] sm:$0xff]  ;;  %v8965_v63 = vld [vmem:[#allocation65_spill] sm:$0xff] }
 0x389   :  { %2562 = vmatprep.subr.mxu1 %v6534_v10  ;;  %2633 = vmatprep.subr.mxu0 %v6536_v23  ;;  %v8966_v10 = vld [vmem:[#allocation66_spill] sm:$0xff]  ;;  %v8967_v23 = vld [vmem:[#allocation67_spill] sm:$0xff] }
 0x38a   :  { %2563 = vmatpush1.msra.mxu1 %v6540_v54  ;;  %2634 = vmatpush1.msra.mxu0 %v6542_v51  ;;  %v8968_v54 = vld [vmem:[#allocation68_spill] sm:$0xff]  ;;  %v8969_v51 = vld [vmem:[#allocation69_spill] sm:$0xff] }
 0x38b   :  { %2564 = vmatprep.subr.mxu1 %v6546_v61  ;;  %2635 = vmatprep.subr.mxu0 %v6548_v45  ;;  %v8970_v61 = vld [vmem:[#allocation70_spill] sm:$0xff]  ;;  %v8971_v45 = vld [vmem:[#allocation71_spill] sm:$0xff] }
 0x38c   :  { %2565 = vmatpush1.msra.mxu1 %v6552_v17  ;;  %2636 = vmatpush1.msra.mxu0 %v6554_v7  ;;  %v8972_v17 = vld [vmem:[#allocation72_spill] sm:$0xff]  ;;  %v8973_v7 = vld [vmem:[#allocation73_spill] sm:$0xff] }
 0x38d   :  { %2566 = vmatprep.subr.mxu1 %v6558_v1  ;;  %2637 = vmatprep.subr.mxu0 %v6560_v11  ;;  %v8974_v1 = vld [vmem:[#allocation74_spill] sm:$0xff]  ;;  %v8975_v11 = vld [vmem:[#allocation75_spill] sm:$0xff] }
 0x38e   :  { %2567 = vmatpush1.msra.mxu1 %v6564_v29  ;;  %2638 = vmatpush1.msra.mxu0 %v6566_v44  ;;  %v8976_v44 = vld [vmem:[#allocation30_spill] sm:$0xff] }
 0x38f   :  { %2568 = vmatprep.subr.mxu1 %v6570_v47  ;;  %2639 = vmatprep.subr.mxu0 %v6572_v14 }
 0x390   :  { %2569 = vmatpush1.msra.mxu1 %v6576_v31  ;;  %2640 = vmatpush1.msra.mxu0 %v6578_v46  ;;  %v8948_v46 = vld [vmem:[#allocation48_spill] sm:$0xff] }
 0x391   :  { %2570 = vmatprep.subr.mxu1 %v6582_v58  ;;  %2641 = vmatprep.subr.mxu0 %v6584_v40  ;;  %v8949_v58 = vld [vmem:[#allocation49_spill] sm:$0xff]  ;;  %v8950_v40 = vld [vmem:[#allocation50_spill] sm:$0xff] }
 0x392   :  { %2571 = vmatpush1.msra.mxu1 %v6588_v35  ;;  %2642 = vmatpush1.msra.mxu0 %v6590_v39  ;;  %v8951_v35 = vld [vmem:[#allocation51_spill] sm:$0xff]  ;;  %v8952_v39 = vld [vmem:[#allocation52_spill] sm:$0xff] }
 0x393   :  { %2572 = vmatprep.subr.mxu1 %v6594_v34  ;;  %2643 = vmatprep.subr.mxu0 %v6596_v36  ;;  %v8953_v34 = vld [vmem:[#allocation53_spill] sm:$0xff]  ;;  %v8954_v36 = vld [vmem:[#allocation54_spill] sm:$0xff] }
 0x394   :  { %2573 = vmatpush1.msra.mxu1 %v6600_v0  ;;  %2644 = vmatpush1.msra.mxu0 %v8945_v18  ;;  %v8955_v0 = vld [vmem:[#allocation55_spill] sm:$0xff] }
 0x395   :  { %2574 = vmatprep.subr.mxu1 %v8946_v48  ;;  %2645 = vmatprep.subr.mxu0 %v8947_v32  ;;  %v8978_v48 = vld [vmem:[#allocation31_spill] sm:$0xff] }
 0x396   :  { %2575 = vmatpush1.msra.mxu1 %v8948_v46  ;;  %2646 = vmatpush1.msra.mxu0 %v8949_v58 }
 0x397   :  { %2576 = vmatprep.subr.mxu1 %v8950_v40  ;;  %2647 = vmatprep.subr.mxu0 %v8951_v35  ;;  %v8979_v40 = vld [vmem:[#allocation33_spill] sm:$0xff] }
 0x398   :  { %2577 = vmatpush1.msra.mxu1 %v8952_v39  ;;  %2648 = vmatpush1.msra.mxu0 %v8953_v34 }
 0x399   :  { %2578 = vmatprep.subr.mxu1 %v8954_v36  ;;  %2649 = vmatprep.subr.mxu0 %v8955_v0 }
 0x39a   :  { %2579 = vmatpush1.msra.mxu1 %v8956_v33  ;;  %2650 = vmatpush1.msra.mxu0 %v8957_v28 }
 0x39b   :  { %2580 = vmatprep.subr.mxu1 %v8958_v52  ;;  %2651 = vmatprep.subr.mxu0 %v8959_v19 }
 0x39c   :  { %2581 = vmatpush1.msra.mxu1 %v8960_v6  ;;  %2652 = vmatpush1.msra.mxu0 %v8961_v22  ;;  %v8980_v6 = vld [vmem:[#allocation129_spill] sm:$0xff] }
 0x39d   :  { %2582 = vmatprep.subr.mxu1 %v8962_v42  ;;  %2653 = vmatprep.subr.mxu0 %v8963_v57 }
 0x39e   :  { %2583 = vmatpush1.msra.mxu1 %v8964_v2  ;;  %2654 = vmatpush1.msra.mxu0 %v8965_v63 }
 0x39f   :  { %2584 = vmatprep.subr.mxu1 %v8966_v10  ;;  %2655 = vmatprep.subr.mxu0 %v8967_v23  ;;  %v8981_v23 = vld [vmem:[#allocation131_spill] sm:$0xff] }
 0x3a0   :  { %2585 = vmatpush1.msra.mxu1 %v8968_v54  ;;  %2656 = vmatpush1.msra.mxu0 %v8969_v51 }
 0x3a1   :  { %2586 = vmatprep.subr.mxu1 %v8970_v61  ;;  %2657 = vmatprep.subr.mxu0 %v8971_v45  ;;  %v7007_v45 = vpop.permute.xlu0 %2215 }
 0x3a2   :  { %2587 = vmatpush1.msra.mxu1 %v8972_v17  ;;  %2658 = vmatpush1.msra.mxu0 %v8973_v7  ;;  %8982 = vst [vmem:[#allocation45_spill] sm:$0xff] %v7007_v45  ;;  %vm2217_vm13 = vcmp.eq.s32.totalorder %v7007_v45, 1  ;;  %v7280_v45 = vld [vmem:[#allocation14 + $0x28] sm:$0xff] }
 0x3a3   :  { %2620 = vmatprep.mubr.f32.mxu1 %v8681_v4  ;;  %2691 = vmatprep.mubr.f32.mxu0 %v8681_v4  ;;  %9048 = vst [vmem:[#allocation63_spill] sm:$0xff] %v7280_v45 }
 0x3a4   :  { %2813 = vmatprep.subr.mxu1 %v8974_v1  ;;  %2884 = vmatprep.subr.mxu0 %v8975_v11  ;;  %v8983_v11 = vld [vmem:[#allocation130_spill] sm:$0xff] }
 0x421   :  { %v2108_v29 = vpop.f32.mrf.mxu1  ;;  %v2179_v18 = vpop.f32.mrf.mxu0 }
 0x422   :  { %v2184_v47 = vadd.f32 %v2108_v29, %v8976_v44  ;;  %v2186_v32 = vadd.f32 %v2179_v18, %v8978_v48 }
 0x423   :  { %v2110_v14 = vpop.f32.mrf.mxu1  ;;  %v2181_v46 = vpop.f32.mrf.mxu0 }
 0x424   :  { %v5031_v31 = vmul.f32 -1.442695, %v2184_v47  ;;  %v2185_v56 = vadd.f32 %v2110_v14, %v8977_v3  ;;  %v5033_v58 = vmul.f32 -1.442695, %v2186_v32  ;;  %v2187_v35 = vadd.f32 %v2181_v46, %v8979_v40  ;;  %v8984_v14 = vld [vmem:[#allocation132_spill] sm:$0xff] }
 0x425   :  { %v8985_v40 = vld [vmem:[#allocation24_spill] sm:$0xff] }
 0x426   :  { %5183 = vpow2.f32 %v5031_v31  ;;  %v5032_v41 = vmul.f32 -1.442695, %v2185_v56 }
 0x428   :  { %5185 = vpow2.f32 %v5032_v41 }
 0x429   :  { %5187 = vpow2.f32 %v5033_v58 }
 0x42a   :  { %5189 = vtanh.f32 %v2187_v35 }
 0x433   :  { %v5184_v39 = vpop.eup %5183 }
 0x434   :  { %v2197_v34 = vadd.f32 1.0, %v5184_v39  ;;  %v8987_v39 = vld [vmem:[#allocation78_spill] sm:$0xff] }
 0x435   :  { %v5186_v36 = vpop.eup %5185 }
 0x436   :  { %5191 = vrcp.f32 %v2197_v34  ;;  %v2198_v0 = vadd.f32 1.0, %v5186_v36  ;;  %v5188_v33 = vpop.eup %5187  ;;  %v8988_v34 = vld [vmem:[#allocation79_spill] sm:$0xff] }
 0x437   :  { %v5190_v28 = vpop.eup %5189  ;;  %v2199_v42 = vadd.f32 1.0, %v5188_v33  ;;  %v8995_v33 = vld [vmem:[#allocation86_spill] sm:$0xff] }
 0x438   :  { %5193 = vrcp.f32 %v2198_v0  ;;  %v8993_v0 = vld [vmem:[#allocation84_spill] sm:$0xff] }
 0x442   :  { %v2365_v52 = vpop.f32.mrf.mxu1  ;;  %v2436_v7 = vpop.f32.mrf.mxu0 }
 0x443   :  { %v5192_v19 = vpop.eup %5191  ;;  %v2441_v22 = vadd.f32 %v2365_v52, %v8980_v6  ;;  %v2443_v29 = vadd.f32 %v2436_v7, %v8983_v11  ;;  %v9009_v7 = vld [vmem:[#allocation135_spill] sm:$0xff]  ;;  %v9010_v11 = vld [vmem:[#allocation136_spill] sm:$0xff] }
 0x444   :  { %v2208_v57 = vmul.f32 %v5192_v19, %v5190_v28  ;;  %v2367_v2 = vpop.f32.mrf.mxu1  ;;  %v2438_v44 = vpop.f32.mrf.mxu0  ;;  %v8996_v28 = vld [vmem:[#allocation87_spill] sm:$0xff]  ;;  %v8997_v19 = vld [vmem:[#allocation88_spill] sm:$0xff] }
 0x445   :  { %v5194_v63 = vpop.eup %5193  ;;  %v5034_v10 = vmul.f32 -1.442695, %v2441_v22  ;;  %v2442_v54 = vadd.f32 %v2367_v2, %v8981_v23  ;;  %v5036_v47 = vmul.f32 -1.442695, %v2443_v29  ;;  %v2444_v31 = vadd.f32 %v2438_v44, %v8984_v14  ;;  %v8999_v2 = vld [vmem:[#allocation90_spill] sm:$0xff]  ;;  %v9002_v23 = vld [vmem:[#allocation92_spill] sm:$0xff] }
 0x446   :  { %v2207_v51 = vmul.f32 %v5194_v63, %v6710_v50  ;;  %v9000_v63 = vld [vmem:[#allocation91_spill] sm:$0xff]  ;;  %v9011_v29 = vld [vmem:[#allocation137_spill] sm:$0xff]  ;;  %v9012_v44 = vld [vmem:[#allocation138_spill] sm:$0xff] }
 0x447   :  { %5195 = vpow2.f32 %v5034_v10  ;;  %v5035_v61 = vmul.f32 -1.442695, %v2442_v54  ;;  %v7054_v10 = vpop.permute.xlu1 %2472  ;;  %v9003_v54 = vld [vmem:[#allocation93_spill] sm:$0xff]  ;;  %v9014_v14 = vld [vmem:[#allocation140_spill] sm:$0xff] }
 0x448   :  { %5197 = vrcp.f32 %v2199_v42  ;;  %v2209_v17 = vadd.f32 %v2208_v57, %v2207_v51  ;;  %v8998_v42 = vld [vmem:[#allocation89_spill] sm:$0xff]  ;;  %9001 = vst [vmem:[#allocation46_spill] sm:$0xff] %v7054_v10  ;;  %vm2474_vm14 = vcmp.eq.s32.totalorder %v7054_v10, 1  ;;  %v9005_v51 = vld [vmem:[#allocation95_spill] sm:$0xff]  ;;  %v7286_v10 = vld [vmem:[#allocation14 + $0x20] sm:$0xff] }
 0x449   :  { %5199 = vpow2.f32 %v5035_v61  ;;  %v9006_v61 = vld [vmem:[#allocation97_spill] sm:$0xff]  ;;  %9050 = vst [vmem:[#allocation65_spill] sm:$0xff] %v7286_v10 }
 0x44a   :  { %5201 = vtanh.f32 %v2209_v17  ;;  %v7013_v1 = vsel %vm2217_vm13, %v2209_v17, %v6710_v50  ;;  %v9008_v17 = vld [vmem:[#allocation134_spill] sm:$0xff] }
 0x44b   :  { %5203 = vpow2.f32 %v5036_v47  ;;  %v9013_v47 = vld [vmem:[#allocation139_spill] sm:$0xff] }
 0x44c   :  { %5205 = vtanh.f32 %v2444_v31  ;;  %v9015_v31 = vld [vmem:[#allocation141_spill] sm:$0xff] }
 0x454   :  { %v5196_v3 = vpop.eup %5195 }
 0x455   :  { %v5198_v56 = vpop.eup %5197  ;;  %v2454_v41 = vadd.f32 1.0, %v5196_v3  ;;  %v9016_v3 = vld [vmem:[#allocation142_spill] sm:$0xff] }
 0x456   :  { %v5200_v18 = vpop.eup %5199 }
 0x457   :  { %v5202_v48 = vpop.eup %5201  ;;  %5207 = vrcp.f32 %v2454_v41  ;;  %v2455_v32 = vadd.f32 1.0, %v5200_v18  ;;  %v9019_v41 = vld [vmem:[#allocation145_spill] sm:$0xff]  ;;  %v9020_v18 = vld [vmem:[#allocation146_spill] sm:$0xff] }
 0x458   :  { %v2211_v46 = vmul.f32 %v5202_v48, %v5198_v56  ;;  %v5204_v36 = vpop.eup %5203  ;;  %v9018_v56 = vld [vmem:[#allocation144_spill] sm:$0xff]  ;;  %v9021_v48 = vld [vmem:[#allocation147_spill] sm:$0xff] }
 0x459   :  { %5209 = vrcp.f32 %v2455_v32  ;;  %v2456_v22 = vadd.f32 1.0, %v5204_v36  ;;  %v9022_v32 = vld [vmem:[#allocation148_spill] sm:$0xff] }
 0x45a   :  { %v7020_v50 = vsel %vm2217_vm13, %v2211_v46, %v6721_v59  ;;  %v2222_v58 = vsel %vm2217_vm13, %v2211_v46, 0.0  ;;  %v8986_v59 = vld [vmem:[#allocation77_spill] sm:$0xff] }
 0x45b   :  { %v2225_v35 = vadd.f32 %v2222_v58, %v8985_v40  ;;  %2621 = vmatmul.mubr.f32.vlgmr.msra.gmra.mxu1 %v7020_v50  ;;  %2692 = vmatmul.mubr.f32.vlgmr.msra.gmra.mxu0 %v7020_v50  ;;  %5211 = vrcp.f32 %v2456_v22  ;;  %v9023_v46 = vld [vmem:[#allocation149_spill] sm:$0xff]  ;;  %v9024_v58 = vld [vmem:[#allocation150_spill] sm:$0xff]  ;;  %v7276_v40 = vld [vmem:[#allocation14 + $0x50] sm:$0xff] }
 0x45c   :  { %2814 = vmatpush1.msra.mxu1 %v6714_v9  ;;  %2885 = vmatpush1.msra.mxu0 %v6716_v25  ;;  %v8989_v9 = vld [vmem:[#allocation80_spill] sm:$0xff]  ;;  %v8990_v25 = vld [vmem:[#allocation81_spill] sm:$0xff]  ;;  %9047 = vst [vmem:[#allocation62_spill] sm:$0xff] %v7276_v40 }
 0x45d   :  { %2227 = vst [vmem:[#allocation17 + $0x10] sm:$0xff] %v2225_v35  ;;  %2815 = vmatprep.subr.mxu1 %v6725_v38  ;;  %2886 = vmatprep.subr.mxu0 %v6727_v37  ;;  %v8991_v38 = vld [vmem:[#allocation82_spill] sm:$0xff]  ;;  %v8992_v37 = vld [vmem:[#allocation83_spill] sm:$0xff]  ;;  %v7150_v22 = vld [vmem:[#allocation14 + $0x198] sm:$0xff] }
 0x45e   :  { %2816 = vmatpush1.msra.mxu1 %v6732_v53  ;;  %2887 = vmatpush1.msra.mxu0 %v6734_v16  ;;  %v5206_v53 = vpop.eup %5205  ;;  %v8994_v16 = vld [vmem:[#allocation85_spill] sm:$0xff]  ;;  %v9025_v35 = vld [vmem:[#allocation151_spill] sm:$0xff] }
 0x45f   :  { %2817 = vmatprep.subr.mxu1 %v6738_v49  ;;  %2888 = vmatprep.subr.mxu0 %v8986_v59  ;;  %v9026_v59 = vld [vmem:[#allocation152_spill] sm:$0xff] }
 0x460   :  { %2818 = vmatpush1.msra.mxu1 %v8987_v39  ;;  %2889 = vmatpush1.msra.mxu0 %v8988_v34  ;;  %v9027_v39 = vld [vmem:[#allocation153_spill] sm:$0xff]  ;;  %v9028_v34 = vld [vmem:[#allocation154_spill] sm:$0xff] }
 0x461   :  { %2819 = vmatprep.subr.mxu1 %v8989_v9  ;;  %2890 = vmatprep.subr.mxu0 %v8990_v25  ;;  %v9029_v25 = vld [vmem:[#allocation155_spill] sm:$0xff] }
 0x462   :  { %2820 = vmatpush1.msra.mxu1 %v8991_v38  ;;  %2891 = vmatpush1.msra.mxu0 %v8992_v37  ;;  %v9030_v38 = vld [vmem:[#allocation156_spill] sm:$0xff] }
 0x463   :  { %2821 = vmatprep.subr.mxu1 %v8993_v0  ;;  %2892 = vmatprep.subr.mxu0 %v8994_v16  ;;  %v7126_v0 = vld [vmem:[#allocation14 + $0x1d8] sm:$0xff]  ;;  %v7130_v16 = vld [vmem:[#allocation14 + $0x1c0] sm:$0xff] }
 0x464   :  { %v5208_v49 = vpop.eup %5207  ;;  %2822 = vmatpush1.msra.mxu1 %v8995_v33  ;;  %2893 = vmatpush1.msra.mxu0 %v8996_v28  ;;  %v7136_v33 = vld [vmem:[#allocation14 + $0x1a8] sm:$0xff]  ;;  %v7138_v28 = vld [vmem:[#allocation14 + $0x1b8] sm:$0xff] }
 0x465   :  { %v2465_v52 = vmul.f32 %v5208_v49, %v5206_v53  ;;  %2823 = vmatprep.subr.mxu1 %v6774_v62  ;;  %2894 = vmatprep.subr.mxu0 %v8997_v19  ;;  %v7124_v53 = vld [vmem:[#allocation14 + $0x1c8] sm:$0xff]  ;;  %v7132_v49 = vld [vmem:[#allocation14 + $0x1d0] sm:$0xff] }
 0x466   :  { %v5210_v6 = vpop.eup %5209  ;;  %2824 = vmatpush1.msra.mxu1 %v6780_v55  ;;  %2895 = vmatpush1.msra.mxu0 %v8998_v42  ;;  %v9004_v55 = vld [vmem:[#allocation94_spill] sm:$0xff]  ;;  %v7144_v19 = vld [vmem:[#allocation14 + $0x1b0] sm:$0xff] }
 0x467   :  { %v2464_v57 = vmul.f32 %v5210_v6, %v6828_v8  ;;  %2825 = vmatprep.subr.mxu1 %v8999_v2  ;;  %2896 = vmatprep.subr.mxu0 %v9000_v63  ;;  %v7148_v6 = vld [vmem:[#allocation14 + $0x188] sm:$0xff]  ;;  %v7154_v42 = vld [vmem:[#allocation14 + $0x180] sm:$0xff]  ;;  %v7162_v63 = vld [vmem:[#allocation14 + $0x178] sm:$0xff] }
 0x468   :  { %2826 = vmatpush1.msra.mxu1 %v6795_v30  ;;  %2897 = vmatpush1.msra.mxu0 %v6797_v12  ;;  %v9007_v30 = vld [vmem:[#allocation98_spill] sm:$0xff]  ;;  %v5212_v9 = vpop.eup %5211  ;;  %v7160_v2 = vld [vmem:[#allocation14 + $0x168] sm:$0xff] }
 0x469   :  { %v2466_v62 = vadd.f32 %v2465_v52, %v2464_v57  ;;  %2827 = vmatprep.subr.mxu1 %v9002_v23  ;;  %2898 = vmatprep.subr.mxu0 %v9003_v54  ;;  %v7142_v52 = vld [vmem:[#allocation14 + $0x1a0] sm:$0xff]  ;;  %v7156_v57 = vld [vmem:[#allocation14 + $0x190] sm:$0xff]  ;;  %v7172_v54 = vld [vmem:[#allocation14 + $0x148] sm:$0xff] }
 0x46a   :  { %2828 = vmatpush1.msra.mxu1 %v9004_v55  ;;  %2899 = vmatpush1.msra.mxu0 %v9005_v51  ;;  %v7168_v23 = vld [vmem:[#allocation14 + $0x170] sm:$0xff]  ;;  %v7174_v55 = vld [vmem:[#allocation14 + $0x158] sm:$0xff]  ;;  %v7178_v51 = vld [vmem:[#allocation14 + $0x140] sm:$0xff] }
 0x46b   :  { %5213 = vtanh.f32 %v2466_v62  ;;  %2829 = vmatprep.subr.mxu1 %v9006_v61  ;;  %2900 = vmatprep.subr.mxu0 %v9007_v30  ;;  %v7066_v12 = vsel %vm2474_vm14, %v2466_v62, %v6828_v8  ;;  %v9017_v8 = vld [vmem:[#allocation143_spill] sm:$0xff]  ;;  %v7166_v62 = vld [vmem:[#allocation14 + $0x160] sm:$0xff]  ;;  %v7180_v61 = vld [vmem:[#allocation14 + $0x150] sm:$0xff] }
 0x46c   :  { %2830 = vmatpush1.msra.mxu1 %v9008_v17  ;;  %2901 = vmatpush1.msra.mxu0 %v9009_v7  ;;  %v7184_v30 = vld [vmem:[#allocation14 + $0x128] sm:$0xff]  ;;  %v7186_v17 = vld [vmem:[#allocation14 + $0x138] sm:$0xff]  ;;  %v7190_v7 = vld [vmem:[#allocation14 + $0x120] sm:$0xff] }
 0x46d   :  { %2831 = vmatprep.subr.mxu1 %v9010_v11  ;;  %2902 = vmatprep.subr.mxu0 %v9011_v29  ;;  %v7192_v11 = vld [vmem:[#allocation14 + $0x130] sm:$0xff]  ;;  %v7196_v29 = vld [vmem:[#allocation14 + $0x108] sm:$0xff] }
 0x46e   :  { %2832 = vmatpush1.msra.mxu1 %v9012_v44  ;;  %2903 = vmatpush1.msra.mxu0 %v9013_v47  ;;  %v7198_v44 = vld [vmem:[#allocation14 + $0x118] sm:$0xff]  ;;  %v7202_v47 = vld [vmem:[#allocation14 + $0x100] sm:$0xff] }
 0x46f   :  { %2833 = vmatprep.subr.mxu1 %v9014_v14  ;;  %2904 = vmatprep.subr.mxu0 %v9015_v31  ;;  %v7204_v14 = vld [vmem:[#allocation14 + $0x110] sm:$0xff]  ;;  %v7208_v31 = vld [vmem:[#allocation14 + $0xe8] sm:$0xff] }
 0x470   :  { %2834 = vmatpush1.msra.mxu1 %v9016_v3  ;;  %2905 = vmatpush1.msra.mxu0 %v9017_v8  ;;  %v7210_v3 = vld [vmem:[#allocation14 + $0xf8] sm:$0xff]  ;;  %v7214_v8 = vld [vmem:[#allocation14 + $0xe0] sm:$0xff] }
 0x471   :  { %2835 = vmatprep.subr.mxu1 %v9018_v56  ;;  %2906 = vmatprep.subr.mxu0 %v9019_v41  ;;  %v7216_v56 = vld [vmem:[#allocation14 + $0xf0] sm:$0xff]  ;;  %v7220_v41 = vld [vmem:[#allocation14 + $0xc8] sm:$0xff] }
 0x472   :  { %2836 = vmatpush1.msra.mxu1 %v9020_v18  ;;  %2907 = vmatpush1.msra.mxu0 %v9021_v48  ;;  %v7222_v18 = vld [vmem:[#allocation14 + $0xd8] sm:$0xff]  ;;  %v7226_v48 = vld [vmem:[#allocation14 + $0xc0] sm:$0xff] }
 0x473   :  { %2837 = vmatprep.subr.mxu1 %v9022_v32  ;;  %2908 = vmatprep.subr.mxu0 %v9023_v46  ;;  %v7228_v32 = vld [vmem:[#allocation14 + $0xd0] sm:$0xff]  ;;  %v7232_v46 = vld [vmem:[#allocation14 + $0xa8] sm:$0xff] }
 0x474   :  { %2838 = vmatpush1.msra.mxu1 %v9024_v58  ;;  %2909 = vmatpush1.msra.mxu0 %v9025_v35  ;;  %9032 = vst [vmem:[#allocation47_spill] sm:$0xff] %v7232_v46  ;;  %v7234_v58 = vld [vmem:[#allocation14 + $0xb8] sm:$0xff]  ;;  %v7238_v35 = vld [vmem:[#allocation14 + $0xa0] sm:$0xff] }
 0x475   :  { %2839 = vmatprep.subr.mxu1 %v9026_v59  ;;  %2910 = vmatprep.subr.mxu0 %v9027_v39  ;;  %9033 = vst [vmem:[#allocation48_spill] sm:$0xff] %v7234_v58  ;;  %9034 = vst [vmem:[#allocation49_spill] sm:$0xff] %v7238_v35  ;;  %v7240_v59 = vld [vmem:[#allocation14 + $0xb0] sm:$0xff]  ;;  %v7244_v39 = vld [vmem:[#allocation14 + $0x88] sm:$0xff] }
 0x476   :  { %2840 = vmatpush1.msra.mxu1 %v9028_v34  ;;  %2911 = vmatpush1.msra.mxu0 %v6888_v13  ;;  %9035 = vst [vmem:[#allocation50_spill] sm:$0xff] %v7240_v59  ;;  %9036 = vst [vmem:[#allocation51_spill] sm:$0xff] %v7244_v39  ;;  %v7246_v34 = vld [vmem:[#allocation14 + $0x98] sm:$0xff] }
 0x477   :  { %2841 = vmatprep.subr.mxu1 %v6892_v21  ;;  %2912 = vmatprep.subr.mxu0 %v9029_v25  ;;  %9037 = vst [vmem:[#allocation52_spill] sm:$0xff] %v7246_v34  ;;  %v7252_v25 = vld [vmem:[#allocation14 + $0x90] sm:$0xff] }
 0x478   :  { %v5214_v36 = vpop.eup %5213  ;;  %2842 = vmatpush1.msra.mxu1 %v9030_v38  ;;  %2913 = vmatpush1.msra.mxu0 %v6900_v26  ;;  %9039 = vst [vmem:[#allocation54_spill] sm:$0xff] %v7252_v25  ;;  %v7258_v38 = vld [vmem:[#allocation14 + $0x78] sm:$0xff] }
 0x479   :  { %2843 = vmatprep.subr.mxu1 %v6904_v27  ;;  %2914 = vmatprep.subr.mxu0 %v6906_v15  ;;  %v2468_v37 = vmul.f32 %v5214_v36, %v5212_v9  ;;  %v9031_v27 = vld [vmem:[#allocation27_spill] sm:$0xff]  ;;  %v7114_v15 = vld [vmem:[#allocation14 + $0x1f8] sm:$0xff]  ;;  %v7250_v9 = vld [vmem:[#allocation14 + $0x80] sm:$0xff]  ;;  %9041 = vst [vmem:[#allocation56_spill] sm:$0xff] %v7258_v38 }
 0x47a   :  { %2844 = vmatpush1.msra.mxu1 %v6910_v24  ;;  %2877 = vmatprep.mubr.f32.mxu1 %v8681_v4  ;;  %v7120_v24 = vld [vmem:[#allocation14 + $0x1f0] sm:$0xff]  ;;  %9038 = vst [vmem:[#allocation53_spill] sm:$0xff] %v7250_v9  ;;  %v7256_v36 = vld [vmem:[#allocation14 + $0x68] sm:$0xff] }
 0x47b   :  { %2915 = vmatpush1.msra.mxu0 %v6914_v5  ;;  %2948 = vmatprep.mubr.f32.mxu0 %v8681_v4  ;;  %v7103_v13 = vsel %vm2474_vm14, %v2468_v37, %v6923_v20  ;;  %v2479_v21 = vsel %vm2474_vm14, %v2468_v37, 0.0  ;;  %v7112_v5 = vld [vmem:[#allocation14 + $0x1e8] sm:$0xff]  ;;  %v7118_v20 = vld [vmem:[#allocation14 + $0x1e0] sm:$0xff]  ;;  %9040 = vst [vmem:[#allocation55_spill] sm:$0xff] %v7256_v36 }
 0x47c   :  { %v2482_v26 = vadd.f32 %v2479_v21, %v9031_v27  ;;  %2878 = vmatmul.mubr.f32.vlgmr.msra.gmra.mxu1 %v7103_v13  ;;  %2949 = vmatmul.mubr.f32.vlgmr.msra.gmra.mxu0 %v7103_v13  ;;  %v7262_v37 = vld [vmem:[#allocation14 + $0x60] sm:$0xff]  ;;  %v7264_v21 = vld [vmem:[#allocation14 + $0x70] sm:$0xff]  ;;  %v7282_v27 = vld [vmem:[#allocation14 + $0x38] sm:$0xff] }
 0x47d   :  { %3133 = vmatprep.mubr.f32.mxu1 %v8681_v4  ;;  %3204 = vmatprep.mubr.f32.mxu0 %v8681_v4  ;;  %9042 = vst [vmem:[#allocation57_spill] sm:$0xff] %v7262_v37  ;;  %9043 = vst [vmem:[#allocation58_spill] sm:$0xff] %v7264_v21 }
 0x47e   :  { %2484 = vst [vmem:[#allocation17 + $0x68] sm:$0xff] %v2482_v26  ;;  %3069 = vmatprep.subr.mxu1 %v7112_v5  ;;  %3140 = vmatprep.subr.mxu0 %v7114_v15  ;;  %v7268_v26 = vld [vmem:[#allocation14 + $0x48] sm:$0xff]  ;;  %9049 = vst [vmem:[#allocation64_spill] sm:$0xff] %v7282_v27 }
 0x47f   :  { %3070 = vmatpush1.msra.mxu1 %v7118_v20  ;;  %3141 = vmatpush1.msra.mxu0 %v7120_v24  ;;  %9044 = vst [vmem:[#allocation59_spill] sm:$0xff] %v7268_v26 }
 0x480   :  { %3071 = vmatprep.subr.mxu1 %v7124_v53  ;;  %3142 = vmatprep.subr.mxu0 %v7126_v0 }
 0x481   :  { %3072 = vmatpush1.msra.mxu1 %v7130_v16  ;;  %3143 = vmatpush1.msra.mxu0 %v7132_v49 }
 0x482   :  { %3073 = vmatprep.subr.mxu1 %v7136_v33  ;;  %3144 = vmatprep.subr.mxu0 %v7138_v28 }
 0x483   :  { %3074 = vmatpush1.msra.mxu1 %v7142_v52  ;;  %3145 = vmatpush1.msra.mxu0 %v7144_v19 }
 0x484   :  { %3075 = vmatprep.subr.mxu1 %v7148_v6  ;;  %3146 = vmatprep.subr.mxu0 %v7150_v22 }
 0x485   :  { %3076 = vmatpush1.msra.mxu1 %v7154_v42  ;;  %3147 = vmatpush1.msra.mxu0 %v7156_v57 }
 0x486   :  { %3077 = vmatprep.subr.mxu1 %v7160_v2  ;;  %3148 = vmatprep.subr.mxu0 %v7162_v63 }
 0x487   :  { %3078 = vmatpush1.msra.mxu1 %v7166_v62  ;;  %3149 = vmatpush1.msra.mxu0 %v7168_v23 }
 0x488   :  { %3079 = vmatprep.subr.mxu1 %v7172_v54  ;;  %3150 = vmatprep.subr.mxu0 %v7174_v55 }
 0x489   :  { %3080 = vmatpush1.msra.mxu1 %v7178_v51  ;;  %3151 = vmatpush1.msra.mxu0 %v7180_v61 }
 0x48a   :  { %3081 = vmatprep.subr.mxu1 %v7184_v30  ;;  %3152 = vmatprep.subr.mxu0 %v7186_v17 }
 0x48b   :  { %3082 = vmatpush1.msra.mxu1 %v7190_v7  ;;  %3153 = vmatpush1.msra.mxu0 %v7192_v11 }
 0x48c   :  { %3083 = vmatprep.subr.mxu1 %v7196_v29  ;;  %3154 = vmatprep.subr.mxu0 %v7198_v44 }
 0x48d   :  { %3084 = vmatpush1.msra.mxu1 %v7202_v47  ;;  %3155 = vmatpush1.msra.mxu0 %v7204_v14 }
 0x48e   :  { %3085 = vmatprep.subr.mxu1 %v7208_v31  ;;  %3156 = vmatprep.subr.mxu0 %v7210_v3 }
 0x48f   :  { %3086 = vmatpush1.msra.mxu1 %v7214_v8  ;;  %3157 = vmatpush1.msra.mxu0 %v7216_v56 }
 0x490   :  { %3087 = vmatprep.subr.mxu1 %v7220_v41  ;;  %3158 = vmatprep.subr.mxu0 %v7222_v18 }
 0x491   :  { %3088 = vmatpush1.msra.mxu1 %v7226_v48  ;;  %3159 = vmatpush1.msra.mxu0 %v7228_v32 }
 0x492   :  { %3089 = vmatprep.subr.mxu1 %v7232_v46  ;;  %3160 = vmatprep.subr.mxu0 %v7234_v58 }
 0x493   :  { %3090 = vmatpush1.msra.mxu1 %v7238_v35  ;;  %3161 = vmatpush1.msra.mxu0 %v7240_v59  ;;  %v9061_v59 = vld [vmem:[#allocation37_spill] sm:$0xff] }
 0x494   :  { %3091 = vmatprep.subr.mxu1 %v7244_v39  ;;  %3162 = vmatprep.subr.mxu0 %v7246_v34 }
 0x495   :  { %3092 = vmatpush1.msra.mxu1 %v7250_v9  ;;  %3163 = vmatpush1.msra.mxu0 %v7252_v25 }
 0x496   :  { %3093 = vmatprep.subr.mxu1 %v7256_v36  ;;  %3164 = vmatprep.subr.mxu0 %v7258_v38  ;;  %v9059_v38 = vld [vmem:[#allocation36_spill] sm:$0xff] }
 0x497   :  { %3094 = vmatpush1.msra.mxu1 %v7262_v37  ;;  %3165 = vmatpush1.msra.mxu0 %v7264_v21 }
 0x498   :  { %3095 = vmatprep.subr.mxu1 %v7268_v26  ;;  %3166 = vmatprep.subr.mxu0 %v7270_v60  ;;  %v7288_v26 = vld [vmem:[#allocation14 + $0x30] sm:$0xff]  ;;  %v7292_v60 = vld [vmem:[#allocation14 + $0x8] sm:$0xff] }
 0x499   :  { %3096 = vmatpush1.msra.mxu1 %v7274_v43  ;;  %3167 = vmatpush1.msra.mxu0 %v7276_v40  ;;  %9051 = vst [vmem:[#allocation66_spill] sm:$0xff] %v7288_v26  ;;  %9052 = vst [vmem:[#allocation67_spill] sm:$0xff] %v7292_v60  ;;  %v7294_v43 = vld [vmem:[#allocation14 + $0x18] sm:$0xff]  ;;  %v7298_v40 = vld [vmem:[#allocation14] sm:$0xff] }
 0x49a   :  { %3097 = vmatprep.subr.mxu1 %v7280_v45  ;;  %3168 = vmatprep.subr.mxu0 %v7282_v27  ;;  %9053 = vst [vmem:[#allocation68_spill] sm:$0xff] %v7294_v43  ;;  %9054 = vst [vmem:[#allocation69_spill] sm:$0xff] %v7298_v40  ;;  %v7300_v45 = vld [vmem:[#allocation14 + $0x10] sm:$0xff]  ;;  %v7304_v27 = vld [vmem:[#allocation16 + $0x1e8] sm:$0xff] }
 0x49b   :  { %3098 = vmatpush1.msra.mxu1 %v7286_v10  ;;  %3169 = vmatpush1.msra.mxu0 %v7288_v26  ;;  %9055 = vst [vmem:[#allocation70_spill] sm:$0xff] %v7300_v45  ;;  %9056 = vst [vmem:[#allocation71_spill] sm:$0xff] %v7304_v27  ;;  %v7306_v10 = vld [vmem:[#allocation16 + $0x1f8] sm:$0xff] }
 0x49c   :  { %3099 = vmatprep.subr.mxu1 %v7292_v60  ;;  %3170 = vmatprep.subr.mxu0 %v7294_v43  ;;  %9057 = vst [vmem:[#allocation72_spill] sm:$0xff] %v7306_v10  ;;  %v9058_v60 = vld [vmem:[#allocation34_spill] sm:$0xff] }
 0x49d   :  { %3100 = vmatpush1.msra.mxu1 %v7298_v40  ;;  %3171 = vmatpush1.msra.mxu0 %v7300_v45  ;;  %v9060_v45 = vld [vmem:[#allocation35_spill] sm:$0xff] }
 0x49e   :  { %3318 = vmatprep.subr.mxu1 %v7304_v27  ;;  %3389 = vmatprep.subr.mxu0 %v7306_v10 }
 0x51b   :  { %v2622_v26 = vpop.f32.mrf.mxu1  ;;  %v2693_v40 = vpop.f32.mrf.mxu0 }
 0x51c   :  { %v2698_v21 = vadd.f32 %v2622_v26, %v9058_v60  ;;  %v2700_v9 = vadd.f32 %v2693_v40, %v9060_v45 }
 0x51d   :  { %v2624_v43 = vpop.f32.mrf.mxu1  ;;  %v2695_v34 = vpop.f32.mrf.mxu0 }
 0x51e   :  { %v5037_v37 = vmul.f32 -1.442695, %v2698_v21  ;;  %v2699_v36 = vadd.f32 %v2624_v43, %v9059_v38  ;;  %v5039_v39 = vmul.f32 -1.442695, %v2700_v9  ;;  %v2701_v35 = vadd.f32 %v2695_v34, %v9061_v59  ;;  %v9063_v59 = vld [vmem:[#allocation127_spill] sm:$0xff] }
 0x520   :  { %5215 = vpow2.f32 %v5037_v37  ;;  %v5038_v25 = vmul.f32 -1.442695, %v2699_v36 }
 0x522   :  { %5217 = vpow2.f32 %v5038_v25  ;;  %v9062_v25 = vld [vmem:[#allocation125_spill] sm:$0xff] }
 0x523   :  { %5219 = vpow2.f32 %v5039_v39 }
 0x524   :  { %5221 = vtanh.f32 %v2701_v35 }
 0x52d   :  { %v5216_v27 = vpop.eup %5215 }
 0x52e   :  { %v2711_v58 = vadd.f32 1.0, %v5216_v27  ;;  %v7316_v27 = vpop.permute.xlu0 %2729 }
 0x52f   :  { %v5218_v10 = vpop.eup %5217  ;;  %9064 = vst [vmem:[#allocation73_spill] sm:$0xff] %v7316_v27  ;;  %vm2731_vm15 = vcmp.eq.s32.totalorder %v7316_v27, 1 }
 0x530   :  { %5223 = vrcp.f32 %v2711_v58  ;;  %v2712_v60 = vadd.f32 1.0, %v5218_v10  ;;  %v5220_v21 = vpop.eup %5219 }
 0x531   :  { %v5222_v43 = vpop.eup %5221  ;;  %v2713_v26 = vadd.f32 1.0, %v5220_v21  ;;  %v9065_v21 = vld [vmem:[#allocation126_spill] sm:$0xff] }
 0x532   :  { %5225 = vrcp.f32 %v2712_v60 }
 0x53c   :  { %v2879_v38 = vpop.f32.mrf.mxu1  ;;  %v2950_v39 = vpop.f32.mrf.mxu0 }
 0x53d   :  { %v5224_v36 = vpop.eup %5223  ;;  %v2955_v37 = vadd.f32 %v2879_v38, %v9062_v25  ;;  %v9066_v25 = vld [vmem:[#allocation128_spill] sm:$0xff] }
 0x53e   :  { %v2722_v45 = vmul.f32 %v5224_v36, %v5222_v43  ;;  %v2881_v40 = vpop.f32.mrf.mxu1  ;;  %v2957_v43 = vadd.f32 %v2950_v39, %v9065_v21  ;;  %v2952_v38 = vpop.f32.mrf.mxu0  ;;  %v7338_v39 = vld [vmem:[#allocation16 + $0x1c8] sm:$0xff]  ;;  %v7340_v21 = vld [vmem:[#allocation16 + $0x1d8] sm:$0xff] }
 0x53f   :  { %v5226_v9 = vpop.eup %5225  ;;  %v5040_v46 = vmul.f32 -1.442695, %v2955_v37  ;;  %v2956_v34 = vadd.f32 %v2881_v40, %v9063_v59  ;;  %v2958_v37 = vadd.f32 %v2952_v38, %v9066_v25  ;;  %9067 = vst [vmem:[#allocation74_spill] sm:$0xff] %v7338_v39  ;;  %9068 = vst [vmem:[#allocation75_spill] sm:$0xff] %v7340_v21  ;;  %v7347_v25 = vld [vmem:[#allocation16 + $0x1d0] sm:$0xff] }
 0x540   :  { %v2721_v35 = vmul.f32 %v5226_v9, %v7013_v1  ;;  %v5042_v36 = vmul.f32 -1.442695, %v2957_v43  ;;  %v9069_v43 = vld [vmem:[#allocation25_spill] sm:$0xff]  ;;  %9071 = vst [vmem:[#allocation32_spill] sm:$0xff] %v7347_v25 }
 0x541   :  { %5227 = vpow2.f32 %v5040_v46  ;;  %v5041_v10 = vmul.f32 -1.442695, %v2956_v34 }
 0x542   :  { %5229 = vrcp.f32 %v2713_v26  ;;  %v2723_v58 = vadd.f32 %v2722_v45, %v2721_v35  ;;  %v7327_v35 = vld [vmem:[#allocation16 + $0x1e0] sm:$0xff] }
 0x543   :  { %5231 = vpow2.f32 %v5041_v10 }
 0x544   :  { %5233 = vtanh.f32 %v2723_v58  ;;  %v7323_v60 = vsel %vm2731_vm15, %v2723_v58, %v7013_v1  ;;  %v7329_v1 = vld [vmem:[#allocation16 + $0x1f0] sm:$0xff] }
 0x545   :  { %5235 = vpow2.f32 %v5042_v36  ;;  %v7345_v36 = vld [vmem:[#allocation16 + $0x1c0] sm:$0xff] }
 0x546   :  { %5237 = vtanh.f32 %v2958_v37  ;;  %9070 = vst [vmem:[#allocation30_spill] sm:$0xff] %v7345_v36  ;;  %v7353_v37 = vld [vmem:[#allocation16 + $0x1b8] sm:$0xff] }
 0x547   :  { %9073 = vst [vmem:[#allocation33_spill] sm:$0xff] %v7353_v37 }
 0x54e   :  { %v5228_v46 = vpop.eup %5227 }
 0x54f   :  { %v5230_v40 = vpop.eup %5229  ;;  %v2968_v26 = vadd.f32 1.0, %v5228_v46  ;;  %v7357_v46 = vld [vmem:[#allocation16 + $0x1a0] sm:$0xff] }
 0x550   :  { %v5232_v45 = vpop.eup %5231  ;;  %9074 = vst [vmem:[#allocation129_spill] sm:$0xff] %v7357_v46 }
 0x551   :  { %v5234_v9 = vpop.eup %5233  ;;  %5239 = vrcp.f32 %v2968_v26  ;;  %v2969_v59 = vadd.f32 1.0, %v5232_v45  ;;  %v7363_v26 = vld [vmem:[#allocation16 + $0x188] sm:$0xff]  ;;  %v7365_v45 = vld [vmem:[#allocation16 + $0x198] sm:$0xff] }
 0x552   :  { %v2725_v34 = vmul.f32 %v5234_v9, %v5230_v40  ;;  %v7359_v40 = vld [vmem:[#allocation16 + $0x1b0] sm:$0xff]  ;;  %9076 = vst [vmem:[#allocation130_spill] sm:$0xff] %v7363_v26  ;;  %9077 = vst [vmem:[#allocation132_spill] sm:$0xff] %v7365_v45  ;;  %v7369_v9 = vld [vmem:[#allocation16 + $0x180] sm:$0xff]  ;;  %v5236_v27 = vpop.eup %5235 }
 0x553   :  { %5241 = vrcp.f32 %v2969_v59  ;;  %9075 = vst [vmem:[#allocation131_spill] sm:$0xff] %v7359_v40  ;;  %9078 = vst [vmem:[#allocation77_spill] sm:$0xff] %v7369_v9  ;;  %v7371_v59 = vld [vmem:[#allocation16 + $0x190] sm:$0xff] }
 0x554   :  { %v7334_v10 = vsel %vm2731_vm15, %v2725_v34, %v7020_v50  ;;  %v2736_v58 = vsel %vm2731_vm15, %v2725_v34, 0.0  ;;  %v7351_v50 = vld [vmem:[#allocation16 + $0x1a8] sm:$0xff]  ;;  %9079 = vst [vmem:[#allocation78_spill] sm:$0xff] %v7371_v59 }
 0x555   :  { %v2739_v38 = vadd.f32 %v2736_v58, %v9069_v43  ;;  %3134 = vmatmul.mubr.f32.vlgmr.msra.gmra.mxu1 %v7334_v10  ;;  %3205 = vmatmul.mubr.f32.vlgmr.msra.gmra.mxu0 %v7334_v10  ;;  %9072 = vst [vmem:[#allocation31_spill] sm:$0xff] %v7351_v50  ;;  %v7375_v34 = vld [vmem:[#allocation16 + $0x168] sm:$0xff]  ;;  %v7377_v58 = vld [vmem:[#allocation16 + $0x178] sm:$0xff]  ;;  %v7383_v43 = vld [vmem:[#allocation16 + $0x170] sm:$0xff] }
 0x556   :  { %3319 = vmatpush1.msra.mxu1 %v7327_v35  ;;  %3390 = vmatpush1.msra.mxu0 %v7329_v1  ;;  %9080 = vst [vmem:[#allocation79_spill] sm:$0xff] %v7375_v34  ;;  %9081 = vst [vmem:[#allocation80_spill] sm:$0xff] %v7377_v58 }
 0x557   :  { %2741 = vst [vmem:[#allocation17 + $0x18] sm:$0xff] %v2739_v38  ;;  %3320 = vmatprep.subr.mxu1 %v7338_v39  ;;  %3391 = vmatprep.subr.mxu0 %v7340_v21  ;;  %v7381_v38 = vld [vmem:[#allocation16 + $0x160] sm:$0xff]  ;;  %9083 = vst [vmem:[#allocation82_spill] sm:$0xff] %v7383_v43  ;;  %v2970_v21 = vadd.f32 1.0, %v5236_v27  ;;  %v7415_v39 = vpop.permute.xlu1 %2986  ;;  %v7426_v27 = vld [vmem:[#allocation16 + $0xe8] sm:$0xff] }
 0x558   :  { %3321 = vmatpush1.msra.mxu1 %v7345_v36  ;;  %3392 = vmatpush1.msra.mxu0 %v7347_v25  ;;  %9082 = vst [vmem:[#allocation81_spill] sm:$0xff] %v7381_v38  ;;  %9092 = vst [vmem:[#allocation91_spill] sm:$0xff] %v7426_v27  ;;  %vm2988_vm0 = vcmp.eq.s32.totalorder %v7415_v39, 1 }
 0x559   :  { %3322 = vmatprep.subr.mxu1 %v7351_v50  ;;  %3393 = vmatprep.subr.mxu0 %v7353_v37  ;;  %v5238_v37 = vpop.eup %5237  ;;  %5243 = vrcp.f32 %v2970_v21 }
 0x55a   :  { %3323 = vmatpush1.msra.mxu1 %v7357_v46  ;;  %3394 = vmatpush1.msra.mxu0 %v7359_v40  ;;  %v7387_v46 = vld [vmem:[#allocation16 + $0x148] sm:$0xff]  ;;  %v7389_v40 = vld [vmem:[#allocation16 + $0x158] sm:$0xff] }
 0x55b   :  { %3324 = vmatprep.subr.mxu1 %v7363_v26  ;;  %3395 = vmatprep.subr.mxu0 %v7365_v45  ;;  %9084 = vst [vmem:[#allocation83_spill] sm:$0xff] %v7389_v40  ;;  %v7393_v26 = vld [vmem:[#allocation16 + $0x140] sm:$0xff]  ;;  %v7395_v45 = vld [vmem:[#allocation16 + $0x150] sm:$0xff] }
 0x55c   :  { %3325 = vmatpush1.msra.mxu1 %v7369_v9  ;;  %3396 = vmatpush1.msra.mxu0 %v7371_v59  ;;  %9085 = vst [vmem:[#allocation84_spill] sm:$0xff] %v7393_v26  ;;  %9086 = vst [vmem:[#allocation85_spill] sm:$0xff] %v7395_v45  ;;  %v7399_v9 = vld [vmem:[#allocation16 + $0x128] sm:$0xff]  ;;  %v7401_v59 = vld [vmem:[#allocation16 + $0x138] sm:$0xff] }
 0x55d   :  { %3326 = vmatprep.subr.mxu1 %v7375_v34  ;;  %3397 = vmatprep.subr.mxu0 %v7377_v58  ;;  %9087 = vst [vmem:[#allocation86_spill] sm:$0xff] %v7401_v59  ;;  %v7405_v34 = vld [vmem:[#allocation16 + $0x120] sm:$0xff]  ;;  %v7407_v58 = vld [vmem:[#allocation16 + $0x130] sm:$0xff]  ;;  %v9158_v39 = vld [vmem:[#allocation31_spill] sm:$0xff] }
 0x55e   :  { %v5240_v50 = vpop.eup %5239  ;;  %3327 = vmatpush1.msra.mxu1 %v7381_v38  ;;  %3398 = vmatpush1.msra.mxu0 %v7383_v43  ;;  %9088 = vst [vmem:[#allocation87_spill] sm:$0xff] %v7405_v34  ;;  %9089 = vst [vmem:[#allocation88_spill] sm:$0xff] %v7407_v58  ;;  %v7411_v43 = vld [vmem:[#allocation16 + $0x108] sm:$0xff]  ;;  %v7413_v38 = vld [vmem:[#allocation16 + $0x118] sm:$0xff] }
 0x55f   :  { %v2979_v25 = vmul.f32 %v5240_v50, %v5238_v37  ;;  %3328 = vmatprep.subr.mxu1 %v7387_v46  ;;  %3399 = vmatprep.subr.mxu0 %v7389_v40  ;;  %v7420_v37 = vld [vmem:[#allocation16 + $0x100] sm:$0xff]  ;;  %v7422_v40 = vld [vmem:[#allocation16 + $0x110] sm:$0xff] }
 0x560   :  { %v5242_v36 = vpop.eup %5241  ;;  %3329 = vmatpush1.msra.mxu1 %v7393_v26  ;;  %3400 = vmatpush1.msra.mxu0 %v7395_v45  ;;  %9090 = vst [vmem:[#allocation89_spill] sm:$0xff] %v7420_v37  ;;  %9091 = vst [vmem:[#allocation90_spill] sm:$0xff] %v7422_v40  ;;  %v7428_v45 = vld [vmem:[#allocation16 + $0xf8] sm:$0xff] }
 0x561   :  { %v2978_v50 = vmul.f32 %v5242_v36, %v7066_v12  ;;  %3330 = vmatprep.subr.mxu1 %v7399_v9  ;;  %3401 = vmatprep.subr.mxu0 %v7401_v59  ;;  %9093 = vst [vmem:[#allocation92_spill] sm:$0xff] %v7428_v45  ;;  %v7432_v36 = vld [vmem:[#allocation16 + $0xe0] sm:$0xff]  ;;  %v7434_v59 = vld [vmem:[#allocation16 + $0xf0] sm:$0xff] }
 0x562   :  { %3331 = vmatpush1.msra.mxu1 %v7405_v34  ;;  %3402 = vmatpush1.msra.mxu0 %v7407_v58  ;;  %9094 = vst [vmem:[#allocation93_spill] sm:$0xff] %v7432_v36  ;;  %9095 = vst [vmem:[#allocation94_spill] sm:$0xff] %v7434_v59  ;;  %v7439_v58 = vld [vmem:[#allocation16 + $0xc8] sm:$0xff]  ;;  %v7441_v34 = vld [vmem:[#allocation16 + $0xd8] sm:$0xff] }
 0x563   :  { %v2980_v26 = vadd.f32 %v2979_v25, %v2978_v50  ;;  %3332 = vmatprep.subr.mxu1 %v7411_v43  ;;  %3403 = vmatprep.subr.mxu0 %v7413_v38  ;;  %9096 = vst [vmem:[#allocation95_spill] sm:$0xff] %v7439_v58  ;;  %9097 = vst [vmem:[#allocation97_spill] sm:$0xff] %v7441_v34  ;;  %v7445_v25 = vld [vmem:[#allocation16 + $0xc0] sm:$0xff]  ;;  %v7447_v50 = vld [vmem:[#allocation16 + $0xd0] sm:$0xff] }
 0x564   :  { %3333 = vmatpush1.msra.mxu1 %v7420_v37  ;;  %3404 = vmatpush1.msra.mxu0 %v7422_v40  ;;  %9098 = vst [vmem:[#allocation98_spill] sm:$0xff] %v7445_v25  ;;  %9099 = vst [vmem:[#allocation134_spill] sm:$0xff] %v7447_v50  ;;  %v7456_v40 = vld [vmem:[#allocation16 + $0xa8] sm:$0xff]  ;;  %v7458_v37 = vld [vmem:[#allocation16 + $0xb8] sm:$0xff] }
 0x565   :  { %5245 = vtanh.f32 %v2980_v26  ;;  %3334 = vmatprep.subr.mxu1 %v7426_v27  ;;  %3405 = vmatprep.subr.mxu0 %v7428_v45  ;;  %v7452_v21 = vsel %vm2988_vm0, %v2980_v26, %v7066_v12  ;;  %9100 = vst [vmem:[#allocation135_spill] sm:$0xff] %v7456_v40  ;;  %9101 = vst [vmem:[#allocation136_spill] sm:$0xff] %v7458_v37  ;;  %v7462_v45 = vld [vmem:[#allocation16 + $0xa0] sm:$0xff]  ;;  %v7464_v27 = vld [vmem:[#allocation16 + $0xb0] sm:$0xff] }
 0x566   :  { %3335 = vmatpush1.msra.mxu1 %v7432_v36  ;;  %3406 = vmatpush1.msra.mxu0 %v7434_v59  ;;  %9102 = vst [vmem:[#allocation137_spill] sm:$0xff] %v7462_v45  ;;  %9103 = vst [vmem:[#allocation138_spill] sm:$0xff] %v7464_v27  ;;  %v7468_v12 = vld [vmem:[#allocation16 + $0x88] sm:$0xff]  ;;  %v7470_v26 = vld [vmem:[#allocation16 + $0x98] sm:$0xff] }
 0x567   :  { %3336 = vmatprep.subr.mxu1 %v7439_v58  ;;  %3407 = vmatprep.subr.mxu0 %v7441_v34  ;;  %9104 = vst [vmem:[#allocation139_spill] sm:$0xff] %v7468_v12  ;;  %9105 = vst [vmem:[#allocation140_spill] sm:$0xff] %v7470_v26  ;;  %v7474_v59 = vld [vmem:[#allocation16 + $0x80] sm:$0xff]  ;;  %v7476_v58 = vld [vmem:[#allocation16 + $0x90] sm:$0xff] }
 0x568   :  { %3337 = vmatpush1.msra.mxu1 %v7445_v25  ;;  %3408 = vmatpush1.msra.mxu0 %v7447_v50  ;;  %9106 = vst [vmem:[#allocation141_spill] sm:$0xff] %v7474_v59  ;;  %9107 = vst [vmem:[#allocation142_spill] sm:$0xff] %v7476_v58  ;;  %v7480_v34 = vld [vmem:[#allocation16 + $0x68] sm:$0xff]  ;;  %v7482_v25 = vld [vmem:[#allocation16 + $0x78] sm:$0xff] }
 0x569   :  { %3338 = vmatprep.subr.mxu1 %v7456_v40  ;;  %3409 = vmatprep.subr.mxu0 %v7458_v37  ;;  %9108 = vst [vmem:[#allocation143_spill] sm:$0xff] %v7480_v34  ;;  %9109 = vst [vmem:[#allocation144_spill] sm:$0xff] %v7482_v25  ;;  %v7486_v50 = vld [vmem:[#allocation16 + $0x60] sm:$0xff]  ;;  %v7488_v40 = vld [vmem:[#allocation16 + $0x70] sm:$0xff] }
 0x56a   :  { %3339 = vmatpush1.msra.mxu1 %v7462_v45  ;;  %3410 = vmatpush1.msra.mxu0 %v7464_v27  ;;  %9110 = vst [vmem:[#allocation145_spill] sm:$0xff] %v7486_v50  ;;  %9111 = vst [vmem:[#allocation146_spill] sm:$0xff] %v7488_v40  ;;  %v7492_v37 = vld [vmem:[#allocation16 + $0x48] sm:$0xff]  ;;  %v7494_v45 = vld [vmem:[#allocation16 + $0x58] sm:$0xff] }
 0x56b   :  { %3340 = vmatprep.subr.mxu1 %v7468_v12  ;;  %3411 = vmatprep.subr.mxu0 %v7470_v26  ;;  %9112 = vst [vmem:[#allocation147_spill] sm:$0xff] %v7492_v37  ;;  %9113 = vst [vmem:[#allocation148_spill] sm:$0xff] %v7494_v45  ;;  %v7498_v27 = vld [vmem:[#allocation16 + $0x40] sm:$0xff]  ;;  %v7500_v12 = vld [vmem:[#allocation16 + $0x50] sm:$0xff] }
 0x56c   :  { %3341 = vmatpush1.msra.mxu1 %v7474_v59  ;;  %3412 = vmatpush1.msra.mxu0 %v7476_v58  ;;  %9114 = vst [vmem:[#allocation149_spill] sm:$0xff] %v7500_v12  ;;  %v7504_v26 = vld [vmem:[#allocation16 + $0x28] sm:$0xff]  ;;  %v7506_v59 = vld [vmem:[#allocation16 + $0x38] sm:$0xff]  ;;  %v7510_v58 = vld [vmem:[#allocation16 + $0x20] sm:$0xff] }
 0x56d   :  { %3342 = vmatprep.subr.mxu1 %v7480_v34  ;;  %3413 = vmatprep.subr.mxu0 %v7482_v25  ;;  %9115 = vst [vmem:[#allocation150_spill] sm:$0xff] %v7506_v59  ;;  %9116 = vst [vmem:[#allocation151_spill] sm:$0xff] %v7510_v58  ;;  %v7512_v34 = vld [vmem:[#allocation16 + $0x30] sm:$0xff]  ;;  %v7516_v25 = vld [vmem:[#allocation16 + $0x8] sm:$0xff] }
 0x56e   :  { %3343 = vmatpush1.msra.mxu1 %v7486_v50  ;;  %3414 = vmatpush1.msra.mxu0 %v7488_v40  ;;  %9117 = vst [vmem:[#allocation152_spill] sm:$0xff] %v7512_v34  ;;  %9118 = vst [vmem:[#allocation153_spill] sm:$0xff] %v7516_v25  ;;  %v7518_v50 = vld [vmem:[#allocation16 + $0x18] sm:$0xff]  ;;  %v5244_v40 = vpop.eup %5243  ;;  %v7526_v36 = vld [vmem:[#allocation16 + $0x10] sm:$0xff] }
 0x56f   :  { %3344 = vmatprep.subr.mxu1 %v7492_v37  ;;  %3415 = vmatprep.subr.mxu0 %v7494_v45  ;;  %v7522_v37 = vld [vmem:[#allocation16] sm:$0xff] }
 0x570   :  { %3345 = vmatpush1.msra.mxu1 %v7498_v27  ;;  %3416 = vmatpush1.msra.mxu0 %v7500_v12 }
 0x571   :  { %3346 = vmatprep.subr.mxu1 %v7504_v26  ;;  %3417 = vmatprep.subr.mxu0 %v7506_v59 }
 0x572   :  { %v5246_v45 = vpop.eup %5245  ;;  %3347 = vmatpush1.msra.mxu1 %v7510_v58  ;;  %3418 = vmatpush1.msra.mxu0 %v7512_v34 }
 0x573   :  { %3348 = vmatprep.subr.mxu1 %v7516_v25  ;;  %3419 = vmatprep.subr.mxu0 %v7518_v50  ;;  %v2982_v12 = vmul.f32 %v5246_v45, %v5244_v40  ;;  %v9119_v25 = vld [vmem:[#allocation26_spill] sm:$0xff] }
 0x574   :  { %3349 = vmatpush1.msra.mxu1 %v7522_v37  ;;  %3382 = vmatprep.mubr.f32.mxu1 %v8681_v4 }
 0x575   :  { %3420 = vmatpush1.msra.mxu0 %v7526_v36  ;;  %3453 = vmatprep.mubr.f32.mxu0 %v8681_v4  ;;  %v7537_v58 = vsel %vm2988_vm0, %v2982_v12, %v7103_v13  ;;  %v2993_v34 = vsel %vm2988_vm0, %v2982_v12, 0.0  ;;  %v9120_v13 = vld [vmem:[#allocation47_spill] sm:$0xff] }
 0x576   :  { %v2996_v59 = vadd.f32 %v2993_v34, %v9119_v25  ;;  %3383 = vmatmul.mubr.f32.vlgmr.msra.gmra.mxu1 %v7537_v58  ;;  %3454 = vmatmul.mubr.f32.vlgmr.msra.gmra.mxu0 %v7537_v58 }
 0x577   :  { %3567 = vmatprep.subr.mxu1 %v7112_v5  ;;  %3638 = vmatprep.subr.mxu0 %v7114_v15  ;;  %v9121_v5 = vld [vmem:[#allocation48_spill] sm:$0xff]  ;;  %v9122_v15 = vld [vmem:[#allocation49_spill] sm:$0xff] }
 0x578   :  { %2998 = vst [vmem:[#allocation17 + $0x60] sm:$0xff] %v2996_v59  ;;  %3568 = vmatpush1.msra.mxu1 %v7118_v20  ;;  %3639 = vmatpush1.msra.mxu0 %v7120_v24  ;;  %v9123_v20 = vld [vmem:[#allocation50_spill] sm:$0xff]  ;;  %v9124_v24 = vld [vmem:[#allocation51_spill] sm:$0xff] }
 0x579   :  { %3569 = vmatprep.subr.mxu1 %v7124_v53  ;;  %3640 = vmatprep.subr.mxu0 %v7126_v0  ;;  %v9125_v53 = vld [vmem:[#allocation52_spill] sm:$0xff]  ;;  %v9126_v0 = vld [vmem:[#allocation53_spill] sm:$0xff] }
 0x57a   :  { %3570 = vmatpush1.msra.mxu1 %v7130_v16  ;;  %3641 = vmatpush1.msra.mxu0 %v7132_v49  ;;  %v9127_v16 = vld [vmem:[#allocation54_spill] sm:$0xff]  ;;  %v9128_v49 = vld [vmem:[#allocation55_spill] sm:$0xff] }
 0x57b   :  { %3571 = vmatprep.subr.mxu1 %v7136_v33  ;;  %3642 = vmatprep.subr.mxu0 %v7138_v28  ;;  %v9129_v33 = vld [vmem:[#allocation56_spill] sm:$0xff]  ;;  %v9130_v28 = vld [vmem:[#allocation57_spill] sm:$0xff] }
 0x57c   :  { %3572 = vmatpush1.msra.mxu1 %v7142_v52  ;;  %3643 = vmatpush1.msra.mxu0 %v7144_v19  ;;  %v9131_v52 = vld [vmem:[#allocation58_spill] sm:$0xff]  ;;  %v9132_v19 = vld [vmem:[#allocation59_spill] sm:$0xff] }
 0x57d   :  { %3573 = vmatprep.subr.mxu1 %v7148_v6  ;;  %3644 = vmatprep.subr.mxu0 %v7150_v22  ;;  %v9133_v6 = vld [vmem:[#allocation60_spill] sm:$0xff]  ;;  %v9134_v22 = vld [vmem:[#allocation61_spill] sm:$0xff] }
 0x57e   :  { %3574 = vmatpush1.msra.mxu1 %v7154_v42  ;;  %3645 = vmatpush1.msra.mxu0 %v7156_v57  ;;  %v9135_v42 = vld [vmem:[#allocation62_spill] sm:$0xff]  ;;  %v9136_v57 = vld [vmem:[#allocation63_spill] sm:$0xff] }
 0x57f   :  { %3575 = vmatprep.subr.mxu1 %v7160_v2  ;;  %3646 = vmatprep.subr.mxu0 %v7162_v63  ;;  %v9137_v2 = vld [vmem:[#allocation64_spill] sm:$0xff]  ;;  %v9138_v63 = vld [vmem:[#allocation65_spill] sm:$0xff] }
 0x580   :  { %3576 = vmatpush1.msra.mxu1 %v7166_v62  ;;  %3647 = vmatpush1.msra.mxu0 %v7168_v23  ;;  %v9139_v62 = vld [vmem:[#allocation66_spill] sm:$0xff]  ;;  %v9140_v23 = vld [vmem:[#allocation67_spill] sm:$0xff] }
 0x581   :  { %3577 = vmatprep.subr.mxu1 %v7172_v54  ;;  %3648 = vmatprep.subr.mxu0 %v7174_v55  ;;  %v9141_v54 = vld [vmem:[#allocation68_spill] sm:$0xff]  ;;  %v9142_v55 = vld [vmem:[#allocation69_spill] sm:$0xff] }
 0x582   :  { %3578 = vmatpush1.msra.mxu1 %v7178_v51  ;;  %3649 = vmatpush1.msra.mxu0 %v7180_v61  ;;  %v9143_v51 = vld [vmem:[#allocation70_spill] sm:$0xff]  ;;  %v9144_v61 = vld [vmem:[#allocation71_spill] sm:$0xff] }
 0x583   :  { %3579 = vmatprep.subr.mxu1 %v7184_v30  ;;  %3650 = vmatprep.subr.mxu0 %v7186_v17  ;;  %v9145_v30 = vld [vmem:[#allocation72_spill] sm:$0xff] }
 0x584   :  { %3580 = vmatpush1.msra.mxu1 %v7190_v7  ;;  %3651 = vmatpush1.msra.mxu0 %v7192_v11  ;;  %v9146_v7 = vld [vmem:[#allocation38_spill] sm:$0xff] }
 0x585   :  { %3581 = vmatprep.subr.mxu1 %v7196_v29  ;;  %3652 = vmatprep.subr.mxu0 %v7198_v44 }
 0x586   :  { %3582 = vmatpush1.msra.mxu1 %v7202_v47  ;;  %3653 = vmatpush1.msra.mxu0 %v7204_v14  ;;  %v9147_v47 = vld [vmem:[#allocation40_spill] sm:$0xff] }
 0x587   :  { %3583 = vmatprep.subr.mxu1 %v7208_v31  ;;  %3654 = vmatprep.subr.mxu0 %v7210_v3 }
 0x588   :  { %3584 = vmatpush1.msra.mxu1 %v7214_v8  ;;  %3655 = vmatpush1.msra.mxu0 %v7216_v56  ;;  %v9148_v8 = vld [vmem:[#allocation39_spill] sm:$0xff] }
 0x589   :  { %3585 = vmatprep.subr.mxu1 %v7220_v41  ;;  %3656 = vmatprep.subr.mxu0 %v7222_v18 }
 0x58a   :  { %3586 = vmatpush1.msra.mxu1 %v7226_v48  ;;  %3657 = vmatpush1.msra.mxu0 %v7228_v32  ;;  %v9149_v48 = vld [vmem:[#allocation41_spill] sm:$0xff] }
 0x58b   :  { %3587 = vmatprep.subr.mxu1 %v9120_v13  ;;  %3658 = vmatprep.subr.mxu0 %v9121_v5 }
 0x58c   :  { %3588 = vmatpush1.msra.mxu1 %v9122_v15  ;;  %3659 = vmatpush1.msra.mxu0 %v9123_v20  ;;  %v9150_v20 = vld [vmem:[#allocation121_spill] sm:$0xff] }
 0x58d   :  { %3589 = vmatprep.subr.mxu1 %v9124_v24  ;;  %3660 = vmatprep.subr.mxu0 %v9125_v53 }
 0x58e   :  { %3590 = vmatpush1.msra.mxu1 %v9126_v0  ;;  %3661 = vmatpush1.msra.mxu0 %v9127_v16 }
 0x58f   :  { %3591 = vmatprep.subr.mxu1 %v9128_v49  ;;  %3662 = vmatprep.subr.mxu0 %v9129_v33 }
 0x590   :  { %3592 = vmatpush1.msra.mxu1 %v9130_v28  ;;  %3663 = vmatpush1.msra.mxu0 %v9131_v52  ;;  %v9151_v28 = vld [vmem:[#allocation123_spill] sm:$0xff] }
 0x591   :  { %3593 = vmatprep.subr.mxu1 %v9132_v19  ;;  %3664 = vmatprep.subr.mxu0 %v9133_v6 }
 0x592   :  { %3594 = vmatpush1.msra.mxu1 %v9134_v22  ;;  %3665 = vmatpush1.msra.mxu0 %v9135_v42 }
 0x593   :  { %3595 = vmatprep.subr.mxu1 %v9136_v57  ;;  %3666 = vmatprep.subr.mxu0 %v9137_v2  ;;  %v9152_v2 = vld [vmem:[#allocation122_spill] sm:$0xff] }
 0x594   :  { %3596 = vmatpush1.msra.mxu1 %v9138_v63  ;;  %3667 = vmatpush1.msra.mxu0 %v9139_v62 }
 0x595   :  { %3597 = vmatprep.subr.mxu1 %v9140_v23  ;;  %3668 = vmatprep.subr.mxu0 %v9141_v54  ;;  %v9153_v54 = vld [vmem:[#allocation124_spill] sm:$0xff] }
 0x596   :  { %3598 = vmatpush1.msra.mxu1 %v9142_v55  ;;  %3669 = vmatpush1.msra.mxu0 %v9143_v51 }
 0x597   :  { %3631 = vmatprep.mubr.f32.mxu1 %v8681_v4  ;;  %3702 = vmatprep.mubr.f32.mxu0 %v8681_v4 }
 0x598   :  { %3816 = vmatprep.subr.mxu1 %v9144_v61  ;;  %3887 = vmatprep.subr.mxu0 %v9145_v30 }
 0x615   :  { %v3135_v17 = vpop.f32.mrf.mxu1  ;;  %v3206_v3 = vpop.f32.mrf.mxu0 }
 0x616   :  { %v3211_v11 = vadd.f32 %v3135_v17, %v9146_v7  ;;  %v3213_v56 = vadd.f32 %v3206_v3, %v9148_v8  ;;  %v9157_v3 = vld [vmem:[#allocation32_spill] sm:$0xff]  ;;  %v9160_v8 = vld [vmem:[#allocation129_spill] sm:$0xff] }
 0x617   :  { %v3137_v29 = vpop.f32.mrf.mxu1  ;;  %v3208_v41 = vpop.f32.mrf.mxu0 }
 0x618   :  { %v5043_v44 = vmul.f32 -1.442695, %v3211_v11  ;;  %v3212_v14 = vadd.f32 %v3137_v29, %v9147_v47  ;;  %v5045_v18 = vmul.f32 -1.442695, %v3213_v56  ;;  %v3214_v32 = vadd.f32 %v3208_v41, %v9149_v48  ;;  %v9161_v56 = vld [vmem:[#allocation131_spill] sm:$0xff]  ;;  %v9165_v48 = vld [vmem:[#allocation78_spill] sm:$0xff] }
 0x61a   :  { %5247 = vpow2.f32 %v5043_v44  ;;  %v5044_v31 = vmul.f32 -1.442695, %v3212_v14  ;;  %v9154_v14 = vld [vmem:[#allocation74_spill] sm:$0xff] }
 0x61c   :  { %5249 = vpow2.f32 %v5044_v31  ;;  %v9155_v31 = vld [vmem:[#allocation75_spill] sm:$0xff] }
 0x61d   :  { %5251 = vpow2.f32 %v5045_v18  ;;  %v9164_v18 = vld [vmem:[#allocation77_spill] sm:$0xff] }
 0x61e   :  { %5253 = vtanh.f32 %v3214_v32 }
 0x627   :  { %v5248_v40 = vpop.eup %5247 }
 0x628   :  { %v3224_v45 = vadd.f32 1.0, %v5248_v40  ;;  %v9166_v40 = vld [vmem:[#allocation79_spill] sm:$0xff] }
 0x629   :  { %v5250_v59 = vpop.eup %5249 }
 0x62a   :  { %5255 = vrcp.f32 %v3224_v45  ;;  %v3225_v34 = vadd.f32 1.0, %v5250_v59  ;;  %v5252_v12 = vpop.eup %5251  ;;  %v9167_v45 = vld [vmem:[#allocation80_spill] sm:$0xff] }
 0x62b   :  { %v5254_v13 = vpop.eup %5253  ;;  %v3226_v53 = vadd.f32 1.0, %v5252_v12  ;;  %v9169_v12 = vld [vmem:[#allocation82_spill] sm:$0xff] }
 0x62c   :  { %5257 = vrcp.f32 %v3225_v34  ;;  %v9168_v34 = vld [vmem:[#allocation81_spill] sm:$0xff] }
 0x636   :  { %v3384_v5 = vpop.f32.mrf.mxu1  ;;  %v3455_v42 = vpop.f32.mrf.mxu0 }
 0x637   :  { %v5256_v15 = vpop.eup %5255  ;;  %v3460_v24 = vadd.f32 %v3384_v5, %v9150_v20  ;;  %v3462_v63 = vadd.f32 %v3455_v42, %v9152_v2  ;;  %v9170_v5 = vld [vmem:[#allocation83_spill] sm:$0xff]  ;;  %v9181_v42 = vld [vmem:[#allocation93_spill] sm:$0xff] }
 0x638   :  { %v3235_v0 = vmul.f32 %v5256_v15, %v5254_v13  ;;  %v3386_v16 = vpop.f32.mrf.mxu1  ;;  %v3457_v62 = vpop.f32.mrf.mxu0  ;;  %v9184_v2 = vld [vmem:[#allocation97_spill] sm:$0xff] }
 0x639   :  { %v5258_v49 = vpop.eup %5257  ;;  %v5046_v33 = vmul.f32 -1.442695, %v3460_v24  ;;  %v3461_v52 = vadd.f32 %v3386_v16, %v9151_v28  ;;  %v5048_v23 = vmul.f32 -1.442695, %v3462_v63  ;;  %v3463_v55 = vadd.f32 %v3457_v62, %v9153_v54  ;;  %v9171_v24 = vld [vmem:[#allocation84_spill] sm:$0xff]  ;;  %v9173_v16 = vld [vmem:[#allocation86_spill] sm:$0xff] }
 0x63a   :  { %v3234_v19 = vmul.f32 %v5258_v49, %v7323_v60  ;;  %v9174_v49 = vld [vmem:[#allocation87_spill] sm:$0xff]  ;;  %v9185_v63 = vld [vmem:[#allocation98_spill] sm:$0xff]  ;;  %v9188_v54 = vld [vmem:[#allocation136_spill] sm:$0xff] }
 0x63b   :  { %5259 = vpow2.f32 %v5046_v33  ;;  %v5047_v6 = vmul.f32 -1.442695, %v3461_v52  ;;  %v9175_v33 = vld [vmem:[#allocation88_spill] sm:$0xff]  ;;  %v9177_v52 = vld [vmem:[#allocation90_spill] sm:$0xff] }
 0x63c   :  { %5261 = vrcp.f32 %v3226_v53  ;;  %v3236_v22 = vadd.f32 %v3235_v0, %v3234_v19  ;;  %v9172_v53 = vld [vmem:[#allocation85_spill] sm:$0xff]  ;;  %v9178_v19 = vld [vmem:[#allocation91_spill] sm:$0xff]  ;;  %v9186_v62 = vld [vmem:[#allocation134_spill] sm:$0xff] }
 0x63d   :  { %5263 = vpow2.f32 %v5047_v6  ;;  %v7798_v6 = vld [vmem:[#allocation14 + $0x130] sm:$0xff] }
 0x63e   :  { %5265 = vtanh.f32 %v3236_v22  ;;  %v7622_v57 = vsel %vm2988_vm0, %v3236_v22, %v7323_v60 }
 0x63f   :  { %5267 = vpow2.f32 %v5048_v23  ;;  %v9187_v23 = vld [vmem:[#allocation135_spill] sm:$0xff] }
 0x640   :  { %5269 = vtanh.f32 %v3463_v55  ;;  %v9189_v55 = vld [vmem:[#allocation137_spill] sm:$0xff] }
 0x648   :  { %v5260_v51 = vpop.eup %5259 }
 0x649   :  { %v5262_v61 = vpop.eup %5261  ;;  %v3473_v30 = vadd.f32 1.0, %v5260_v51  ;;  %v9191_v51 = vld [vmem:[#allocation139_spill] sm:$0xff] }
 0x64a   :  { %v5264_v17 = vpop.eup %5263 }
 0x64b   :  { %v5266_v7 = vpop.eup %5265  ;;  %5271 = vrcp.f32 %v3473_v30  ;;  %v3474_v11 = vadd.f32 1.0, %v5264_v17  ;;  %v9193_v30 = vld [vmem:[#allocation141_spill] sm:$0xff]  ;;  %v9194_v17 = vld [vmem:[#allocation142_spill] sm:$0xff] }
 0x64c   :  { %v3238_v29 = vmul.f32 %v5266_v7, %v5262_v61  ;;  %v5268_v41 = vpop.eup %5267  ;;  %v9192_v61 = vld [vmem:[#allocation140_spill] sm:$0xff]  ;;  %v9195_v7 = vld [vmem:[#allocation143_spill] sm:$0xff] }
 0x64d   :  { %5273 = vrcp.f32 %v3474_v11  ;;  %v5270_v32 = vpop.eup %5269  ;;  %v3475_v20 = vadd.f32 1.0, %v5268_v41  ;;  %v9196_v11 = vld [vmem:[#allocation144_spill] sm:$0xff] }
 0x64e   :  { %v7629_v60 = vsel %vm2988_vm0, %v3238_v29, %v7334_v10  ;;  %v3243_v44 = vsel %vm2988_vm0, %v3238_v29, 0.0  ;;  %v9156_v10 = vld [vmem:[#allocation30_spill] sm:$0xff]  ;;  %v9197_v29 = vld [vmem:[#allocation145_spill] sm:$0xff] }
 0x64f   :  { %v3245_v47 = vadd.f32 %v3243_v44, %v9119_v25  ;;  %3632 = vmatmul.mubr.f32.vlgmr.msra.gmra.mxu1 %v7629_v60  ;;  %3703 = vmatmul.mubr.f32.vlgmr.msra.gmra.mxu0 %v7629_v60  ;;  %v9159_v25 = vld [vmem:[#allocation33_spill] sm:$0xff]  ;;  %5275 = vrcp.f32 %v3475_v20  ;;  %v9198_v44 = vld [vmem:[#allocation146_spill] sm:$0xff]  ;;  %v7762_v20 = vld [vmem:[#allocation14 + $0x190] sm:$0xff] }
 0x650   :  { %3817 = vmatpush1.msra.mxu1 %v7327_v35  ;;  %3888 = vmatpush1.msra.mxu0 %v7329_v1  ;;  %v9162_v35 = vld [vmem:[#allocation130_spill] sm:$0xff]  ;;  %v9163_v1 = vld [vmem:[#allocation132_spill] sm:$0xff] }
 0x651   :  { %3247 = vst [vmem:[#allocation17 + $0x20] sm:$0xff] %v3245_v47  ;;  %3818 = vmatprep.subr.mxu1 %v9154_v14  ;;  %3889 = vmatprep.subr.mxu0 %v9155_v31  ;;  %v9199_v47 = vld [vmem:[#allocation147_spill] sm:$0xff]  ;;  %v9200_v14 = vld [vmem:[#allocation148_spill] sm:$0xff]  ;;  %v9201_v31 = vld [vmem:[#allocation149_spill] sm:$0xff] }
 0x652   :  { %3819 = vmatpush1.msra.mxu1 %v9156_v10  ;;  %3890 = vmatpush1.msra.mxu0 %v9157_v3  ;;  %v9202_v3 = vld [vmem:[#allocation150_spill] sm:$0xff] }
 0x653   :  { %3820 = vmatprep.subr.mxu1 %v9158_v39  ;;  %3891 = vmatprep.subr.mxu0 %v9159_v25  ;;  %v9203_v25 = vld [vmem:[#allocation151_spill] sm:$0xff] }
 0x654   :  { %3821 = vmatpush1.msra.mxu1 %v9160_v8  ;;  %3892 = vmatpush1.msra.mxu0 %v9161_v56  ;;  %v9204_v8 = vld [vmem:[#allocation152_spill] sm:$0xff]  ;;  %v9205_v56 = vld [vmem:[#allocation153_spill] sm:$0xff] }
 0x655   :  { %3822 = vmatprep.subr.mxu1 %v9162_v35  ;;  %3893 = vmatprep.subr.mxu0 %v9163_v1  ;;  %v9206_v1 = vld [vmem:[#allocation25_spill] sm:$0xff] }
 0x656   :  { %3823 = vmatpush1.msra.mxu1 %v9164_v18  ;;  %3894 = vmatpush1.msra.mxu0 %v9165_v48  ;;  %v7730_v18 = vld [vmem:[#allocation14 + $0x1c8] sm:$0xff]  ;;  %v7732_v48 = vld [vmem:[#allocation14 + $0x1d8] sm:$0xff] }
 0x657   :  { %3824 = vmatprep.subr.mxu1 %v9166_v40  ;;  %3895 = vmatprep.subr.mxu0 %v9167_v45  ;;  %v7738_v40 = vld [vmem:[#allocation14 + $0x1d0] sm:$0xff]  ;;  %v7742_v45 = vld [vmem:[#allocation14 + $0x1a8] sm:$0xff] }
 0x658   :  { %v5272_v59 = vpop.eup %5271  ;;  %3825 = vmatpush1.msra.mxu1 %v9168_v34  ;;  %3896 = vmatpush1.msra.mxu0 %v9169_v12  ;;  %v7748_v34 = vld [vmem:[#allocation14 + $0x1a0] sm:$0xff]  ;;  %v7750_v12 = vld [vmem:[#allocation14 + $0x1b0] sm:$0xff] }
 0x659   :  { %v3484_v13 = vmul.f32 %v5272_v59, %v5270_v32  ;;  %3826 = vmatprep.subr.mxu1 %v7387_v46  ;;  %3897 = vmatprep.subr.mxu0 %v9170_v5  ;;  %v9176_v46 = vld [vmem:[#allocation89_spill] sm:$0xff]  ;;  %v7736_v32 = vld [vmem:[#allocation14 + $0x1c0] sm:$0xff] }
 0x65a   :  { %v5274_v15 = vpop.eup %5273  ;;  %3827 = vmatpush1.msra.mxu1 %v9171_v24  ;;  %3898 = vmatpush1.msra.mxu0 %v9172_v53  ;;  %v7744_v59 = vld [vmem:[#allocation14 + $0x1b8] sm:$0xff]  ;;  %v7766_v24 = vld [vmem:[#allocation14 + $0x168] sm:$0xff] }
 0x65b   :  { %v3483_v0 = vmul.f32 %v5274_v15, %v7452_v21  ;;  %3828 = vmatprep.subr.mxu1 %v7399_v9  ;;  %3899 = vmatprep.subr.mxu0 %v9173_v16  ;;  %v9179_v9 = vld [vmem:[#allocation92_spill] sm:$0xff]  ;;  %v7756_v5 = vld [vmem:[#allocation14 + $0x198] sm:$0xff]  ;;  %v7760_v15 = vld [vmem:[#allocation14 + $0x180] sm:$0xff] }
 0x65c   :  { %3829 = vmatpush1.msra.mxu1 %v9174_v49  ;;  %3900 = vmatpush1.msra.mxu0 %v9175_v33  ;;  %v5276_v10 = vpop.eup %5275  ;;  %v7768_v53 = vld [vmem:[#allocation14 + $0x178] sm:$0xff]  ;;  %v7774_v16 = vld [vmem:[#allocation14 + $0x170] sm:$0xff]  ;;  %v7778_v49 = vld [vmem:[#allocation14 + $0x148] sm:$0xff] }
 0x65d   :  { %v3485_v28 = vadd.f32 %v3484_v13, %v3483_v0  ;;  %3830 = vmatprep.subr.mxu1 %v7411_v43  ;;  %3901 = vmatprep.subr.mxu0 %v7413_v38  ;;  %v9182_v43 = vld [vmem:[#allocation94_spill] sm:$0xff]  ;;  %v9183_v38 = vld [vmem:[#allocation95_spill] sm:$0xff]  ;;  %v7780_v33 = vld [vmem:[#allocation14 + $0x158] sm:$0xff] }
 0x65e   :  { %3831 = vmatpush1.msra.mxu1 %v9176_v46  ;;  %3902 = vmatpush1.msra.mxu0 %v9177_v52  ;;  %v7754_v13 = vld [vmem:[#allocation14 + $0x188] sm:$0xff]  ;;  %v7772_v0 = vld [vmem:[#allocation14 + $0x160] sm:$0xff]  ;;  %v7786_v46 = vld [vmem:[#allocation14 + $0x150] sm:$0xff] }
 0x65f   :  { %5277 = vtanh.f32 %v3485_v28  ;;  %3832 = vmatprep.subr.mxu1 %v9178_v19  ;;  %3903 = vmatprep.subr.mxu0 %v9179_v9  ;;  %v7672_v22 = vsel %vm2731_vm15, %v3485_v28, %v7452_v21  ;;  %v9190_v21 = vld [vmem:[#allocation138_spill] sm:$0xff]  ;;  %v7790_v52 = vld [vmem:[#allocation14 + $0x128] sm:$0xff]  ;;  %v7792_v19 = vld [vmem:[#allocation14 + $0x138] sm:$0xff] }
 0x660   :  { %3833 = vmatpush1.msra.mxu1 %v9181_v42  ;;  %3904 = vmatpush1.msra.mxu0 %v9182_v43  ;;  %v7784_v28 = vld [vmem:[#allocation14 + $0x140] sm:$0xff]  ;;  %v7802_v42 = vld [vmem:[#allocation14 + $0x108] sm:$0xff]  ;;  %v7804_v43 = vld [vmem:[#allocation14 + $0x118] sm:$0xff] }
 0x661   :  { %3834 = vmatprep.subr.mxu1 %v9183_v38  ;;  %3905 = vmatprep.subr.mxu0 %v9184_v2  ;;  %v7796_v9 = vld [vmem:[#allocation14 + $0x120] sm:$0xff]  ;;  %v7810_v2 = vld [vmem:[#allocation14 + $0x110] sm:$0xff] }
 0x662   :  { %3835 = vmatpush1.msra.mxu1 %v9185_v63  ;;  %3906 = vmatpush1.msra.mxu0 %v9186_v62  ;;  %v7808_v38 = vld [vmem:[#allocation14 + $0x100] sm:$0xff]  ;;  %v7814_v63 = vld [vmem:[#allocation14 + $0xe8] sm:$0xff]  ;;  %v7816_v62 = vld [vmem:[#allocation14 + $0xf8] sm:$0xff] }
 0x663   :  { %3836 = vmatprep.subr.mxu1 %v9187_v23  ;;  %3907 = vmatprep.subr.mxu0 %v9188_v54  ;;  %v7820_v23 = vld [vmem:[#allocation14 + $0xe0] sm:$0xff]  ;;  %v7822_v54 = vld [vmem:[#allocation14 + $0xf0] sm:$0xff] }
 0x664   :  { %3837 = vmatpush1.msra.mxu1 %v9189_v55  ;;  %3908 = vmatpush1.msra.mxu0 %v9190_v21  ;;  %v7826_v55 = vld [vmem:[#allocation14 + $0xc8] sm:$0xff]  ;;  %v7828_v21 = vld [vmem:[#allocation14 + $0xd8] sm:$0xff] }
 0x665   :  { %3838 = vmatprep.subr.mxu1 %v9191_v51  ;;  %3909 = vmatprep.subr.mxu0 %v9192_v61  ;;  %v7832_v51 = vld [vmem:[#allocation14 + $0xc0] sm:$0xff]  ;;  %v7834_v61 = vld [vmem:[#allocation14 + $0xd0] sm:$0xff] }
 0x666   :  { %3839 = vmatpush1.msra.mxu1 %v9193_v30  ;;  %3910 = vmatpush1.msra.mxu0 %v9194_v17  ;;  %v7838_v30 = vld [vmem:[#allocation14 + $0xa8] sm:$0xff]  ;;  %v7840_v17 = vld [vmem:[#allocation14 + $0xb8] sm:$0xff] }
 0x667   :  { %3840 = vmatprep.subr.mxu1 %v9195_v7  ;;  %3911 = vmatprep.subr.mxu0 %v9196_v11  ;;  %9207 = vst [vmem:[#allocation154_spill] sm:$0xff] %v7838_v30  ;;  %9208 = vst [vmem:[#allocation155_spill] sm:$0xff] %v7840_v17  ;;  %v7844_v7 = vld [vmem:[#allocation14 + $0xa0] sm:$0xff]  ;;  %v7846_v11 = vld [vmem:[#allocation14 + $0xb0] sm:$0xff] }
 0x668   :  { %3841 = vmatpush1.msra.mxu1 %v9197_v29  ;;  %3912 = vmatpush1.msra.mxu0 %v9198_v44  ;;  %9209 = vst [vmem:[#allocation156_spill] sm:$0xff] %v7844_v7  ;;  %9210 = vst [vmem:[#allocation34_spill] sm:$0xff] %v7846_v11  ;;  %v7850_v29 = vld [vmem:[#allocation14 + $0x88] sm:$0xff]  ;;  %v7852_v44 = vld [vmem:[#allocation14 + $0x98] sm:$0xff] }
 0x669   :  { %3842 = vmatprep.subr.mxu1 %v9199_v47  ;;  %3913 = vmatprep.subr.mxu0 %v9200_v14  ;;  %9211 = vst [vmem:[#allocation36_spill] sm:$0xff] %v7850_v29  ;;  %9212 = vst [vmem:[#allocation35_spill] sm:$0xff] %v7852_v44  ;;  %v7856_v47 = vld [vmem:[#allocation14 + $0x80] sm:$0xff]  ;;  %v7858_v14 = vld [vmem:[#allocation14 + $0x90] sm:$0xff] }
 0x66a   :  { %3843 = vmatpush1.msra.mxu1 %v7498_v27  ;;  %3914 = vmatpush1.msra.mxu0 %v9201_v31  ;;  %9213 = vst [vmem:[#allocation37_spill] sm:$0xff] %v7856_v47  ;;  %9214 = vst [vmem:[#allocation125_spill] sm:$0xff] %v7858_v14  ;;  %v7862_v31 = vld [vmem:[#allocation14 + $0x68] sm:$0xff] }
 0x66b   :  { %3844 = vmatprep.subr.mxu1 %v7504_v26  ;;  %3915 = vmatprep.subr.mxu0 %v9202_v3  ;;  %9215 = vst [vmem:[#allocation127_spill] sm:$0xff] %v7862_v31  ;;  %v7868_v3 = vld [vmem:[#allocation14 + $0x60] sm:$0xff] }
 0x66c   :  { %v5278_v39 = vpop.eup %5277  ;;  %3845 = vmatpush1.msra.mxu1 %v9203_v25  ;;  %3916 = vmatpush1.msra.mxu0 %v9204_v8  ;;  %9217 = vst [vmem:[#allocation128_spill] sm:$0xff] %v7868_v3  ;;  %v7874_v25 = vld [vmem:[#allocation14 + $0x48] sm:$0xff]  ;;  %v7876_v8 = vld [vmem:[#allocation14 + $0x58] sm:$0xff] }
 0x66d   :  { %3846 = vmatprep.subr.mxu1 %v9205_v56  ;;  %3917 = vmatprep.subr.mxu0 %v7518_v50  ;;  %v3487_v35 = vmul.f32 %v5278_v39, %v5276_v10  ;;  %v7726_v50 = vld [vmem:[#allocation14 + $0x1f0] sm:$0xff]  ;;  %v7864_v10 = vld [vmem:[#allocation14 + $0x78] sm:$0xff]  ;;  %9219 = vst [vmem:[#allocation47_spill] sm:$0xff] %v7874_v25  ;;  %9220 = vst [vmem:[#allocation48_spill] sm:$0xff] %v7876_v8 }
 0x66e   :  { %3847 = vmatpush1.msra.mxu1 %v7522_v37  ;;  %3880 = vmatprep.mubr.f32.mxu1 %v8681_v4  ;;  %v7718_v37 = vld [vmem:[#allocation14 + $0x1e8] sm:$0xff]  ;;  %9216 = vst [vmem:[#allocation126_spill] sm:$0xff] %v7864_v10  ;;  %v7870_v39 = vld [vmem:[#allocation14 + $0x70] sm:$0xff]  ;;  %v7880_v56 = vld [vmem:[#allocation14 + $0x40] sm:$0xff] }
 0x66f   :  { %3918 = vmatpush1.msra.mxu0 %v7526_v36  ;;  %3951 = vmatprep.mubr.f32.mxu0 %v8681_v4  ;;  %v7709_v27 = vsel %vm2731_vm15, %v3487_v35, %v7537_v58  ;;  %v3492_v26 = vsel %vm2731_vm15, %v3487_v35, 0.0  ;;  %v7720_v36 = vld [vmem:[#allocation14 + $0x1f8] sm:$0xff]  ;;  %v7724_v58 = vld [vmem:[#allocation14 + $0x1e0] sm:$0xff]  ;;  %9218 = vst [vmem:[#allocation26_spill] sm:$0xff] %v7870_v39  ;;  %9221 = vst [vmem:[#allocation49_spill] sm:$0xff] %v7880_v56 }
 0x670   :  { %v3494_v41 = vadd.f32 %v3492_v26, %v9206_v1  ;;  %3881 = vmatmul.mubr.f32.vlgmr.msra.gmra.mxu1 %v7709_v27  ;;  %3952 = vmatmul.mubr.f32.vlgmr.msra.gmra.mxu0 %v7709_v27  ;;  %v7882_v35 = vld [vmem:[#allocation14 + $0x50] sm:$0xff]  ;;  %v7886_v26 = vld [vmem:[#allocation14 + $0x28] sm:$0xff]  ;;  %v7888_v1 = vld [vmem:[#allocation14 + $0x38] sm:$0xff] }
 0x671   :  { %4129 = vmatprep.mubr.f32.mxu1 %v8681_v4  ;;  %4200 = vmatprep.mubr.f32.mxu0 %v8681_v4  ;;  %9222 = vst [vmem:[#allocation50_spill] sm:$0xff] %v7882_v35  ;;  %9223 = vst [vmem:[#allocation51_spill] sm:$0xff] %v7886_v26 }
 0x672   :  { %3496 = vst [vmem:[#allocation17 + $0x58] sm:$0xff] %v3494_v41  ;;  %4065 = vmatprep.subr.mxu1 %v7718_v37  ;;  %4136 = vmatprep.subr.mxu0 %v7720_v36  ;;  %9224 = vst [vmem:[#allocation52_spill] sm:$0xff] %v7888_v1  ;;  %v7892_v41 = vld [vmem:[#allocation14 + $0x20] sm:$0xff] }
 0x673   :  { %4066 = vmatpush1.msra.mxu1 %v7724_v58  ;;  %4137 = vmatpush1.msra.mxu0 %v7726_v50  ;;  %9225 = vst [vmem:[#allocation53_spill] sm:$0xff] %v7892_v41 }
 0x674   :  { %4067 = vmatprep.subr.mxu1 %v7730_v18  ;;  %4138 = vmatprep.subr.mxu0 %v7732_v48 }
 0x675   :  { %4068 = vmatpush1.msra.mxu1 %v7736_v32  ;;  %4139 = vmatpush1.msra.mxu0 %v7738_v40 }
 0x676   :  { %4069 = vmatprep.subr.mxu1 %v7742_v45  ;;  %4140 = vmatprep.subr.mxu0 %v7744_v59 }
 0x677   :  { %4070 = vmatpush1.msra.mxu1 %v7748_v34  ;;  %4141 = vmatpush1.msra.mxu0 %v7750_v12 }
 0x678   :  { %4071 = vmatprep.subr.mxu1 %v7754_v13  ;;  %4142 = vmatprep.subr.mxu0 %v7756_v5 }
 0x679   :  { %4072 = vmatpush1.msra.mxu1 %v7760_v15  ;;  %4143 = vmatpush1.msra.mxu0 %v7762_v20 }
 0x67a   :  { %4073 = vmatprep.subr.mxu1 %v7766_v24  ;;  %4144 = vmatprep.subr.mxu0 %v7768_v53 }
 0x67b   :  { %4074 = vmatpush1.msra.mxu1 %v7772_v0  ;;  %4145 = vmatpush1.msra.mxu0 %v7774_v16 }
 0x67c   :  { %4075 = vmatprep.subr.mxu1 %v7778_v49  ;;  %4146 = vmatprep.subr.mxu0 %v7780_v33 }
 0x67d   :  { %4076 = vmatpush1.msra.mxu1 %v7784_v28  ;;  %4147 = vmatpush1.msra.mxu0 %v7786_v46 }
 0x67e   :  { %4077 = vmatprep.subr.mxu1 %v7790_v52  ;;  %4148 = vmatprep.subr.mxu0 %v7792_v19 }
 0x67f   :  { %4078 = vmatpush1.msra.mxu1 %v7796_v9  ;;  %4149 = vmatpush1.msra.mxu0 %v7798_v6 }
 0x680   :  { %4079 = vmatprep.subr.mxu1 %v7802_v42  ;;  %4150 = vmatprep.subr.mxu0 %v7804_v43 }
 0x681   :  { %4080 = vmatpush1.msra.mxu1 %v7808_v38  ;;  %4151 = vmatpush1.msra.mxu0 %v7810_v2 }
 0x682   :  { %4081 = vmatprep.subr.mxu1 %v7814_v63  ;;  %4152 = vmatprep.subr.mxu0 %v7816_v62 }
 0x683   :  { %4082 = vmatpush1.msra.mxu1 %v7820_v23  ;;  %4153 = vmatpush1.msra.mxu0 %v7822_v54 }
 0x684   :  { %4083 = vmatprep.subr.mxu1 %v7826_v55  ;;  %4154 = vmatprep.subr.mxu0 %v7828_v21 }
 0x685   :  { %4084 = vmatpush1.msra.mxu1 %v7832_v51  ;;  %4155 = vmatpush1.msra.mxu0 %v7834_v61 }
 0x686   :  { %4085 = vmatprep.subr.mxu1 %v7838_v30  ;;  %4156 = vmatprep.subr.mxu0 %v7840_v17 }
 0x687   :  { %4086 = vmatpush1.msra.mxu1 %v7844_v7  ;;  %4157 = vmatpush1.msra.mxu0 %v7846_v11  ;;  %v9236_v11 = vld [vmem:[#allocation100_spill] sm:$0xff] }
 0x688   :  { %4087 = vmatprep.subr.mxu1 %v7850_v29  ;;  %4158 = vmatprep.subr.mxu0 %v7852_v44 }
 0x689   :  { %4088 = vmatpush1.msra.mxu1 %v7856_v47  ;;  %4159 = vmatpush1.msra.mxu0 %v7858_v14 }
 0x68a   :  { %4089 = vmatprep.subr.mxu1 %v7862_v31  ;;  %4160 = vmatprep.subr.mxu0 %v7864_v10  ;;  %v9234_v10 = vld [vmem:[#allocation99_spill] sm:$0xff] }
 0x68b   :  { %4090 = vmatpush1.msra.mxu1 %v7868_v3  ;;  %4161 = vmatpush1.msra.mxu0 %v7870_v39 }
 0x68c   :  { %4091 = vmatprep.subr.mxu1 %v7874_v25  ;;  %4162 = vmatprep.subr.mxu0 %v7876_v8  ;;  %v7894_v25 = vld [vmem:[#allocation14 + $0x30] sm:$0xff]  ;;  %v7898_v8 = vld [vmem:[#allocation14 + $0x8] sm:$0xff] }
 0x68d   :  { %4092 = vmatpush1.msra.mxu1 %v7880_v56  ;;  %4163 = vmatpush1.msra.mxu0 %v7882_v35  ;;  %9226 = vst [vmem:[#allocation54_spill] sm:$0xff] %v7894_v25  ;;  %9227 = vst [vmem:[#allocation55_spill] sm:$0xff] %v7898_v8  ;;  %v7900_v56 = vld [vmem:[#allocation14 + $0x18] sm:$0xff]  ;;  %v7904_v35 = vld [vmem:[#allocation14] sm:$0xff] }
 0x68e   :  { %4093 = vmatprep.subr.mxu1 %v7886_v26  ;;  %4164 = vmatprep.subr.mxu0 %v7888_v1  ;;  %9228 = vst [vmem:[#allocation56_spill] sm:$0xff] %v7900_v56  ;;  %9229 = vst [vmem:[#allocation57_spill] sm:$0xff] %v7904_v35  ;;  %v7906_v26 = vld [vmem:[#allocation14 + $0x10] sm:$0xff]  ;;  %v7910_v1 = vld [vmem:[#allocation16 + $0x1e8] sm:$0xff] }
 0x68f   :  { %4094 = vmatpush1.msra.mxu1 %v7892_v41  ;;  %4165 = vmatpush1.msra.mxu0 %v7894_v25  ;;  %9230 = vst [vmem:[#allocation58_spill] sm:$0xff] %v7906_v26  ;;  %9231 = vst [vmem:[#allocation59_spill] sm:$0xff] %v7910_v1  ;;  %v7912_v41 = vld [vmem:[#allocation16 + $0x1f8] sm:$0xff] }
 0x690   :  { %4095 = vmatprep.subr.mxu1 %v7898_v8  ;;  %4166 = vmatprep.subr.mxu0 %v7900_v56  ;;  %9232 = vst [vmem:[#allocation60_spill] sm:$0xff] %v7912_v41  ;;  %v9233_v8 = vld [vmem:[#allocation42_spill] sm:$0xff] }
 0x691   :  { %4096 = vmatpush1.msra.mxu1 %v7904_v35  ;;  %4167 = vmatpush1.msra.mxu0 %v7906_v26  ;;  %v9235_v26 = vld [vmem:[#allocation43_spill] sm:$0xff] }
 0x692   :  { %4314 = vmatprep.subr.mxu1 %v7910_v1  ;;  %4385 = vmatprep.subr.mxu0 %v7912_v41 }
 0x70f   :  { %v3633_v25 = vpop.f32.mrf.mxu1  ;;  %v3704_v35 = vpop.f32.mrf.mxu0 }
 0x710   :  { %v3709_v39 = vadd.f32 %v3633_v25, %v9233_v8  ;;  %v3711_v47 = vadd.f32 %v3704_v35, %v9235_v26 }
 0x711   :  { %v3635_v56 = vpop.f32.mrf.mxu1  ;;  %v3706_v44 = vpop.f32.mrf.mxu0 }
 0x712   :  { %v5049_v3 = vmul.f32 -1.442695, %v3709_v39  ;;  %v3710_v31 = vadd.f32 %v3635_v56, %v9234_v10  ;;  %v5051_v29 = vmul.f32 -1.442695, %v3711_v47  ;;  %v3712_v7 = vadd.f32 %v3706_v44, %v9236_v11  ;;  %v9238_v11 = vld [vmem:[#allocation119_spill] sm:$0xff] }
 0x714   :  { %5279 = vpow2.f32 %v5049_v3  ;;  %v5050_v14 = vmul.f32 -1.442695, %v3710_v31 }
 0x716   :  { %5281 = vpow2.f32 %v5050_v14  ;;  %v9237_v14 = vld [vmem:[#allocation117_spill] sm:$0xff] }
 0x717   :  { %5283 = vpow2.f32 %v5051_v29 }
 0x718   :  { %5285 = vtanh.f32 %v3712_v7 }
 0x721   :  { %v5280_v1 = vpop.eup %5279 }
 0x722   :  { %v3722_v17 = vadd.f32 1.0, %v5280_v1 }
 0x723   :  { %v5282_v41 = vpop.eup %5281 }
 0x724   :  { %5287 = vrcp.f32 %v3722_v17  ;;  %v3723_v25 = vadd.f32 1.0, %v5282_v41  ;;  %v5284_v39 = vpop.eup %5283  ;;  %v7956_v41 = vld [vmem:[#allocation16 + $0x1b8] sm:$0xff] }
 0x725   :  { %v5286_v10 = vpop.eup %5285  ;;  %v3724_v56 = vadd.f32 1.0, %v5284_v39  ;;  %v9240_v39 = vld [vmem:[#allocation118_spill] sm:$0xff]  ;;  %9247 = vst [vmem:[#allocation65_spill] sm:$0xff] %v7956_v41 }
 0x726   :  { %5289 = vrcp.f32 %v3723_v25 }
 0x730   :  { %v3882_v3 = vpop.f32.mrf.mxu1  ;;  %v3953_v1 = vpop.f32.mrf.mxu0 }
 0x731   :  { %v5288_v31 = vpop.eup %5287  ;;  %v3958_v8 = vadd.f32 %v3882_v3, %v9237_v14  ;;  %v9241_v14 = vld [vmem:[#allocation120_spill] sm:$0xff] }
 0x732   :  { %v3733_v35 = vmul.f32 %v5288_v31, %v5286_v10  ;;  %v3884_v26 = vpop.f32.mrf.mxu1  ;;  %v3960_v10 = vadd.f32 %v3953_v1, %v9240_v39  ;;  %v3955_v3 = vpop.f32.mrf.mxu0  ;;  %v7941_v1 = vld [vmem:[#allocation16 + $0x1c8] sm:$0xff]  ;;  %v7943_v39 = vld [vmem:[#allocation16 + $0x1d8] sm:$0xff] }
 0x733   :  { %v5290_v47 = vpop.eup %5289  ;;  %v5052_v30 = vmul.f32 -1.442695, %v3958_v8  ;;  %v3959_v44 = vadd.f32 %v3884_v26, %v9238_v11  ;;  %v3961_v8 = vadd.f32 %v3955_v3, %v9241_v14  ;;  %9242 = vst [vmem:[#allocation61_spill] sm:$0xff] %v7943_v39  ;;  %v7950_v14 = vld [vmem:[#allocation16 + $0x1d0] sm:$0xff] }
 0x734   :  { %v3732_v29 = vmul.f32 %v5290_v47, %v7622_v57  ;;  %v5054_v31 = vmul.f32 -1.442695, %v3960_v10  ;;  %v9243_v10 = vld [vmem:[#allocation27_spill] sm:$0xff]  ;;  %9245 = vst [vmem:[#allocation63_spill] sm:$0xff] %v7950_v14 }
 0x735   :  { %5291 = vpow2.f32 %v5052_v30  ;;  %v5053_v7 = vmul.f32 -1.442695, %v3959_v44 }
 0x736   :  { %5293 = vrcp.f32 %v3724_v56  ;;  %v3734_v17 = vadd.f32 %v3733_v35, %v3732_v29  ;;  %v7930_v29 = vld [vmem:[#allocation16 + $0x1e0] sm:$0xff] }
 0x737   :  { %5295 = vpow2.f32 %v5053_v7 }
 0x738   :  { %5297 = vtanh.f32 %v3734_v17  ;;  %v7926_v25 = vsel %vm2474_vm14, %v3734_v17, %v7622_v57  ;;  %v7932_v57 = vld [vmem:[#allocation16 + $0x1f0] sm:$0xff] }
 0x739   :  { %5299 = vpow2.f32 %v5054_v31  ;;  %v7948_v31 = vld [vmem:[#allocation16 + $0x1c0] sm:$0xff] }
 0x73a   :  { %5301 = vtanh.f32 %v3961_v8  ;;  %9244 = vst [vmem:[#allocation62_spill] sm:$0xff] %v7948_v31  ;;  %v7960_v8 = vld [vmem:[#allocation16 + $0x1a0] sm:$0xff] }
 0x73b   :  { %9248 = vst [vmem:[#allocation66_spill] sm:$0xff] %v7960_v8 }
 0x742   :  { %v5292_v26 = vpop.eup %5291 }
 0x743   :  { %v5294_v47 = vpop.eup %5293  ;;  %v3971_v30 = vadd.f32 1.0, %v5292_v26  ;;  %v7962_v26 = vld [vmem:[#allocation16 + $0x1b0] sm:$0xff] }
 0x744   :  { %v5296_v56 = vpop.eup %5295  ;;  %9249 = vst [vmem:[#allocation67_spill] sm:$0xff] %v7962_v26 }
 0x745   :  { %v5298_v35 = vpop.eup %5297  ;;  %5303 = vrcp.f32 %v3971_v30  ;;  %v3972_v11 = vadd.f32 1.0, %v5296_v56  ;;  %v7968_v30 = vld [vmem:[#allocation16 + $0x198] sm:$0xff]  ;;  %v7972_v56 = vld [vmem:[#allocation16 + $0x180] sm:$0xff] }
 0x746   :  { %v3736_v44 = vmul.f32 %v5298_v35, %v5294_v47  ;;  %v7966_v47 = vld [vmem:[#allocation16 + $0x188] sm:$0xff]  ;;  %9251 = vst [vmem:[#allocation69_spill] sm:$0xff] %v7968_v30  ;;  %9252 = vst [vmem:[#allocation70_spill] sm:$0xff] %v7972_v56  ;;  %v7974_v35 = vld [vmem:[#allocation16 + $0x190] sm:$0xff] }
 0x747   :  { %5305 = vrcp.f32 %v3972_v11  ;;  %9250 = vst [vmem:[#allocation68_spill] sm:$0xff] %v7966_v47  ;;  %9253 = vst [vmem:[#allocation71_spill] sm:$0xff] %v7974_v35  ;;  %v7978_v11 = vld [vmem:[#allocation16 + $0x168] sm:$0xff] }
 0x748   :  { %v7937_v7 = vsel %vm2474_vm14, %v3736_v44, %v7629_v60  ;;  %v3741_v17 = vsel %vm2474_vm14, %v3736_v44, 0.0  ;;  %v7954_v60 = vld [vmem:[#allocation16 + $0x1a8] sm:$0xff]  ;;  %9254 = vst [vmem:[#allocation72_spill] sm:$0xff] %v7978_v11  ;;  %v7980_v44 = vld [vmem:[#allocation16 + $0x178] sm:$0xff] }
 0x749   :  { %v3743_v3 = vadd.f32 %v3741_v17, %v9243_v10  ;;  %4130 = vmatmul.mubr.f32.vlgmr.msra.gmra.mxu1 %v7937_v7  ;;  %4201 = vmatmul.mubr.f32.vlgmr.msra.gmra.mxu0 %v7937_v7  ;;  %9246 = vst [vmem:[#allocation64_spill] sm:$0xff] %v7954_v60  ;;  %9255 = vst [vmem:[#allocation38_spill] sm:$0xff] %v7980_v44  ;;  %v7984_v17 = vld [vmem:[#allocation16 + $0x160] sm:$0xff]  ;;  %v7986_v10 = vld [vmem:[#allocation16 + $0x170] sm:$0xff] }
 0x74a   :  { %4315 = vmatpush1.msra.mxu1 %v7930_v29  ;;  %4386 = vmatpush1.msra.mxu0 %v7932_v57  ;;  %9256 = vst [vmem:[#allocation40_spill] sm:$0xff] %v7984_v17  ;;  %9257 = vst [vmem:[#allocation39_spill] sm:$0xff] %v7986_v10 }
 0x74b   :  { %3745 = vst [vmem:[#allocation17 + $0x28] sm:$0xff] %v3743_v3  ;;  %4316 = vmatprep.subr.mxu1 %v7941_v1  ;;  %4387 = vmatprep.subr.mxu0 %v7943_v39  ;;  %v5300_v3 = vpop.eup %5299 }
 0x74c   :  { %4317 = vmatpush1.msra.mxu1 %v7948_v31  ;;  %4388 = vmatpush1.msra.mxu0 %v7950_v14  ;;  %v3973_v39 = vadd.f32 1.0, %v5300_v3  ;;  %v8027_v3 = vld [vmem:[#allocation16 + $0xe8] sm:$0xff] }
 0x74d   :  { %4318 = vmatprep.subr.mxu1 %v7954_v60  ;;  %4389 = vmatprep.subr.mxu0 %v7956_v41  ;;  %v5302_v41 = vpop.eup %5301  ;;  %9267 = vst [vmem:[#allocation31_spill] sm:$0xff] %v8027_v3 }
 0x74e   :  { %4319 = vmatpush1.msra.mxu1 %v7960_v8  ;;  %4390 = vmatpush1.msra.mxu0 %v7962_v26  ;;  %v7990_v8 = vld [vmem:[#allocation16 + $0x148] sm:$0xff]  ;;  %v7992_v26 = vld [vmem:[#allocation16 + $0x158] sm:$0xff]  ;;  %5307 = vrcp.f32 %v3973_v39 }
 0x74f   :  { %4320 = vmatprep.subr.mxu1 %v7966_v47  ;;  %4391 = vmatprep.subr.mxu0 %v7968_v30  ;;  %9258 = vst [vmem:[#allocation41_spill] sm:$0xff] %v7992_v26  ;;  %v7996_v47 = vld [vmem:[#allocation16 + $0x140] sm:$0xff]  ;;  %v7998_v30 = vld [vmem:[#allocation16 + $0x150] sm:$0xff] }
 0x750   :  { %4321 = vmatpush1.msra.mxu1 %v7972_v56  ;;  %4392 = vmatpush1.msra.mxu0 %v7974_v35  ;;  %9259 = vst [vmem:[#allocation121_spill] sm:$0xff] %v7996_v47  ;;  %9260 = vst [vmem:[#allocation123_spill] sm:$0xff] %v7998_v30  ;;  %v8002_v56 = vld [vmem:[#allocation16 + $0x128] sm:$0xff]  ;;  %v8004_v35 = vld [vmem:[#allocation16 + $0x138] sm:$0xff] }
 0x751   :  { %4322 = vmatprep.subr.mxu1 %v7978_v11  ;;  %4393 = vmatprep.subr.mxu0 %v7980_v44  ;;  %9261 = vst [vmem:[#allocation122_spill] sm:$0xff] %v8004_v35  ;;  %v8008_v11 = vld [vmem:[#allocation16 + $0x120] sm:$0xff]  ;;  %v8010_v44 = vld [vmem:[#allocation16 + $0x130] sm:$0xff] }
 0x752   :  { %v5304_v60 = vpop.eup %5303  ;;  %4323 = vmatpush1.msra.mxu1 %v7984_v17  ;;  %4394 = vmatpush1.msra.mxu0 %v7986_v10  ;;  %9262 = vst [vmem:[#allocation124_spill] sm:$0xff] %v8008_v11  ;;  %9263 = vst [vmem:[#allocation74_spill] sm:$0xff] %v8010_v44  ;;  %v8014_v10 = vld [vmem:[#allocation16 + $0x108] sm:$0xff]  ;;  %v8016_v17 = vld [vmem:[#allocation16 + $0x118] sm:$0xff] }
 0x753   :  { %v3982_v14 = vmul.f32 %v5304_v60, %v5302_v41  ;;  %4324 = vmatprep.subr.mxu1 %v7990_v8  ;;  %4395 = vmatprep.subr.mxu0 %v7992_v26  ;;  %9264 = vst [vmem:[#allocation75_spill] sm:$0xff] %v8016_v17  ;;  %v8021_v41 = vld [vmem:[#allocation16 + $0x100] sm:$0xff]  ;;  %v8023_v26 = vld [vmem:[#allocation16 + $0x110] sm:$0xff] }
 0x754   :  { %v5306_v31 = vpop.eup %5305  ;;  %4325 = vmatpush1.msra.mxu1 %v7996_v47  ;;  %4396 = vmatpush1.msra.mxu0 %v7998_v30  ;;  %9265 = vst [vmem:[#allocation30_spill] sm:$0xff] %v8021_v41  ;;  %9266 = vst [vmem:[#allocation32_spill] sm:$0xff] %v8023_v26  ;;  %v8029_v30 = vld [vmem:[#allocation16 + $0xf8] sm:$0xff] }
 0x755   :  { %v3981_v60 = vmul.f32 %v5306_v31, %v7672_v22  ;;  %4326 = vmatprep.subr.mxu1 %v8002_v56  ;;  %4397 = vmatprep.subr.mxu0 %v8004_v35  ;;  %9268 = vst [vmem:[#allocation33_spill] sm:$0xff] %v8029_v30  ;;  %v8033_v31 = vld [vmem:[#allocation16 + $0xe0] sm:$0xff]  ;;  %v8035_v35 = vld [vmem:[#allocation16 + $0xf0] sm:$0xff] }
 0x756   :  { %4327 = vmatpush1.msra.mxu1 %v8008_v11  ;;  %4398 = vmatpush1.msra.mxu0 %v8010_v44  ;;  %9269 = vst [vmem:[#allocation129_spill] sm:$0xff] %v8033_v31  ;;  %9270 = vst [vmem:[#allocation131_spill] sm:$0xff] %v8035_v35  ;;  %v8039_v11 = vld [vmem:[#allocation16 + $0xc8] sm:$0xff]  ;;  %v8041_v44 = vld [vmem:[#allocation16 + $0xd8] sm:$0xff] }
 0x757   :  { %v3983_v47 = vadd.f32 %v3982_v14, %v3981_v60  ;;  %4328 = vmatprep.subr.mxu1 %v8014_v10  ;;  %4399 = vmatprep.subr.mxu0 %v8016_v17  ;;  %9271 = vst [vmem:[#allocation130_spill] sm:$0xff] %v8039_v11  ;;  %9272 = vst [vmem:[#allocation132_spill] sm:$0xff] %v8041_v44  ;;  %v8045_v14 = vld [vmem:[#allocation16 + $0xc0] sm:$0xff]  ;;  %v8047_v60 = vld [vmem:[#allocation16 + $0xd0] sm:$0xff] }
 0x758   :  { %4329 = vmatpush1.msra.mxu1 %v8021_v41  ;;  %4400 = vmatpush1.msra.mxu0 %v8023_v26  ;;  %9273 = vst [vmem:[#allocation77_spill] sm:$0xff] %v8045_v14  ;;  %9274 = vst [vmem:[#allocation78_spill] sm:$0xff] %v8047_v60  ;;  %v8056_v26 = vld [vmem:[#allocation16 + $0xa8] sm:$0xff]  ;;  %v8058_v41 = vld [vmem:[#allocation16 + $0xb8] sm:$0xff] }
 0x759   :  { %5309 = vtanh.f32 %v3983_v47  ;;  %4330 = vmatprep.subr.mxu1 %v8027_v3  ;;  %4401 = vmatprep.subr.mxu0 %v8029_v30  ;;  %v8052_v39 = vsel %vm2217_vm13, %v3983_v47, %v7672_v22  ;;  %9276 = vst [vmem:[#allocation79_spill] sm:$0xff] %v8056_v26  ;;  %9277 = vst [vmem:[#allocation80_spill] sm:$0xff] %v8058_v41  ;;  %v8062_v30 = vld [vmem:[#allocation16 + $0xa0] sm:$0xff]  ;;  %v8064_v3 = vld [vmem:[#allocation16 + $0xb0] sm:$0xff] }
 0x75a   :  { %4331 = vmatpush1.msra.mxu1 %v8033_v31  ;;  %4402 = vmatpush1.msra.mxu0 %v8035_v35  ;;  %9278 = vst [vmem:[#allocation81_spill] sm:$0xff] %v8062_v30  ;;  %9279 = vst [vmem:[#allocation82_spill] sm:$0xff] %v8064_v3  ;;  %v8068_v22 = vld [vmem:[#allocation16 + $0x88] sm:$0xff]  ;;  %v8070_v47 = vld [vmem:[#allocation16 + $0x98] sm:$0xff] }
 0x75b   :  { %4332 = vmatprep.subr.mxu1 %v8039_v11  ;;  %4403 = vmatprep.subr.mxu0 %v8041_v44  ;;  %9280 = vst [vmem:[#allocation83_spill] sm:$0xff] %v8068_v22  ;;  %9281 = vst [vmem:[#allocation84_spill] sm:$0xff] %v8070_v47  ;;  %v8074_v35 = vld [vmem:[#allocation16 + $0x80] sm:$0xff]  ;;  %v8076_v11 = vld [vmem:[#allocation16 + $0x90] sm:$0xff] }
 0x75c   :  { %4333 = vmatpush1.msra.mxu1 %v8045_v14  ;;  %4404 = vmatpush1.msra.mxu0 %v8047_v60  ;;  %9282 = vst [vmem:[#allocation85_spill] sm:$0xff] %v8074_v35  ;;  %9283 = vst [vmem:[#allocation86_spill] sm:$0xff] %v8076_v11  ;;  %v8080_v44 = vld [vmem:[#allocation16 + $0x68] sm:$0xff]  ;;  %v8082_v14 = vld [vmem:[#allocation16 + $0x78] sm:$0xff] }
 0x75d   :  { %4334 = vmatprep.subr.mxu1 %v8056_v26  ;;  %4405 = vmatprep.subr.mxu0 %v8058_v41  ;;  %9284 = vst [vmem:[#allocation87_spill] sm:$0xff] %v8080_v44  ;;  %9285 = vst [vmem:[#allocation88_spill] sm:$0xff] %v8082_v14  ;;  %v8086_v60 = vld [vmem:[#allocation16 + $0x60] sm:$0xff]  ;;  %v8088_v26 = vld [vmem:[#allocation16 + $0x70] sm:$0xff] }
 0x75e   :  { %4335 = vmatpush1.msra.mxu1 %v8062_v30  ;;  %4406 = vmatpush1.msra.mxu0 %v8064_v3  ;;  %9286 = vst [vmem:[#allocation89_spill] sm:$0xff] %v8086_v60  ;;  %9287 = vst [vmem:[#allocation90_spill] sm:$0xff] %v8088_v26  ;;  %v8092_v41 = vld [vmem:[#allocation16 + $0x48] sm:$0xff]  ;;  %v8094_v30 = vld [vmem:[#allocation16 + $0x58] sm:$0xff] }
 0x75f   :  { %4336 = vmatprep.subr.mxu1 %v8068_v22  ;;  %4407 = vmatprep.subr.mxu0 %v8070_v47  ;;  %9288 = vst [vmem:[#allocation91_spill] sm:$0xff] %v8092_v41  ;;  %9289 = vst [vmem:[#allocation92_spill] sm:$0xff] %v8094_v30  ;;  %v8098_v3 = vld [vmem:[#allocation16 + $0x40] sm:$0xff]  ;;  %v8100_v22 = vld [vmem:[#allocation16 + $0x50] sm:$0xff] }
 0x760   :  { %4337 = vmatpush1.msra.mxu1 %v8074_v35  ;;  %4408 = vmatpush1.msra.mxu0 %v8076_v11  ;;  %9290 = vst [vmem:[#allocation73_spill] sm:$0xff] %v8100_v22  ;;  %v8104_v47 = vld [vmem:[#allocation16 + $0x28] sm:$0xff]  ;;  %v8106_v35 = vld [vmem:[#allocation16 + $0x38] sm:$0xff]  ;;  %v8110_v11 = vld [vmem:[#allocation16 + $0x20] sm:$0xff] }
 0x761   :  { %4338 = vmatprep.subr.mxu1 %v8080_v44  ;;  %4409 = vmatprep.subr.mxu0 %v8082_v14  ;;  %9291 = vst [vmem:[#allocation93_spill] sm:$0xff] %v8106_v35  ;;  %9292 = vst [vmem:[#allocation94_spill] sm:$0xff] %v8110_v11  ;;  %v8112_v44 = vld [vmem:[#allocation16 + $0x30] sm:$0xff]  ;;  %v8116_v14 = vld [vmem:[#allocation16 + $0x8] sm:$0xff] }
 0x762   :  { %4339 = vmatpush1.msra.mxu1 %v8086_v60  ;;  %4410 = vmatpush1.msra.mxu0 %v8088_v26  ;;  %9293 = vst [vmem:[#allocation95_spill] sm:$0xff] %v8112_v44  ;;  %9294 = vst [vmem:[#allocation97_spill] sm:$0xff] %v8116_v14  ;;  %v8118_v60 = vld [vmem:[#allocation16 + $0x18] sm:$0xff]  ;;  %v5308_v26 = vpop.eup %5307  ;;  %v8126_v31 = vld [vmem:[#allocation16 + $0x10] sm:$0xff] }
 0x763   :  { %4340 = vmatprep.subr.mxu1 %v8092_v41  ;;  %4411 = vmatprep.subr.mxu0 %v8094_v30  ;;  %v8122_v41 = vld [vmem:[#allocation16] sm:$0xff] }
 0x764   :  { %4341 = vmatpush1.msra.mxu1 %v8098_v3  ;;  %4412 = vmatpush1.msra.mxu0 %v8100_v22 }
 0x765   :  { %4342 = vmatprep.subr.mxu1 %v8104_v47  ;;  %4413 = vmatprep.subr.mxu0 %v8106_v35 }
 0x766   :  { %v5310_v30 = vpop.eup %5309  ;;  %4343 = vmatpush1.msra.mxu1 %v8110_v11  ;;  %4414 = vmatpush1.msra.mxu0 %v8112_v44 }
 0x767   :  { %4344 = vmatprep.subr.mxu1 %v8116_v14  ;;  %4415 = vmatprep.subr.mxu0 %v8118_v60  ;;  %v3985_v22 = vmul.f32 %v5310_v30, %v5308_v26  ;;  %v9295_v14 = vld [vmem:[#allocation24_spill] sm:$0xff] }
 0x768   :  { %4345 = vmatpush1.msra.mxu1 %v8122_v41  ;;  %4378 = vmatprep.mubr.f32.mxu1 %v8681_v4 }
 0x769   :  { %4416 = vmatpush1.msra.mxu0 %v8126_v31  ;;  %4449 = vmatprep.mubr.f32.mxu0 %v8681_v4  ;;  %v8137_v11 = vsel %vm2217_vm13, %v3985_v22, %v7709_v27  ;;  %v3990_v44 = vsel %vm2217_vm13, %v3985_v22, 0.0  ;;  %v9296_v27 = vld [vmem:[#allocation154_spill] sm:$0xff] }
 0x76a   :  { %v3992_v35 = vadd.f32 %v3990_v44, %v9295_v14  ;;  %4379 = vmatmul.mubr.f32.vlgmr.msra.gmra.mxu1 %v8137_v11  ;;  %4450 = vmatmul.mubr.f32.vlgmr.msra.gmra.mxu0 %v8137_v11 }
 0x76b   :  { %4563 = vmatprep.subr.mxu1 %v7718_v37  ;;  %4634 = vmatprep.subr.mxu0 %v7720_v36  ;;  %v9297_v37 = vld [vmem:[#allocation155_spill] sm:$0xff]  ;;  %v9298_v36 = vld [vmem:[#allocation156_spill] sm:$0xff] }
 0x76c   :  { %3994 = vst [vmem:[#allocation17 + $0x50] sm:$0xff] %v3992_v35  ;;  %4564 = vmatpush1.msra.mxu1 %v7724_v58  ;;  %4635 = vmatpush1.msra.mxu0 %v7726_v50  ;;  %v9299_v58 = vld [vmem:[#allocation34_spill] sm:$0xff]  ;;  %v9300_v50 = vld [vmem:[#allocation36_spill] sm:$0xff] }
 0x76d   :  { %4565 = vmatprep.subr.mxu1 %v7730_v18  ;;  %4636 = vmatprep.subr.mxu0 %v7732_v48  ;;  %v9301_v18 = vld [vmem:[#allocation35_spill] sm:$0xff]  ;;  %v9302_v48 = vld [vmem:[#allocation37_spill] sm:$0xff] }
 0x76e   :  { %4566 = vmatpush1.msra.mxu1 %v7736_v32  ;;  %4637 = vmatpush1.msra.mxu0 %v7738_v40  ;;  %v9303_v32 = vld [vmem:[#allocation125_spill] sm:$0xff]  ;;  %v9304_v40 = vld [vmem:[#allocation127_spill] sm:$0xff] }
 0x76f   :  { %4567 = vmatprep.subr.mxu1 %v7742_v45  ;;  %4638 = vmatprep.subr.mxu0 %v7744_v59  ;;  %v9305_v45 = vld [vmem:[#allocation126_spill] sm:$0xff]  ;;  %v9306_v59 = vld [vmem:[#allocation128_spill] sm:$0xff] }
 0x770   :  { %4568 = vmatpush1.msra.mxu1 %v7748_v34  ;;  %4639 = vmatpush1.msra.mxu0 %v7750_v12  ;;  %v9307_v34 = vld [vmem:[#allocation26_spill] sm:$0xff]  ;;  %v9308_v12 = vld [vmem:[#allocation47_spill] sm:$0xff] }
 0x771   :  { %4569 = vmatprep.subr.mxu1 %v7754_v13  ;;  %4640 = vmatprep.subr.mxu0 %v7756_v5  ;;  %v9309_v13 = vld [vmem:[#allocation48_spill] sm:$0xff]  ;;  %v9310_v5 = vld [vmem:[#allocation49_spill] sm:$0xff] }
 0x772   :  { %4570 = vmatpush1.msra.mxu1 %v7760_v15  ;;  %4641 = vmatpush1.msra.mxu0 %v7762_v20  ;;  %v9311_v15 = vld [vmem:[#allocation50_spill] sm:$0xff]  ;;  %v9312_v20 = vld [vmem:[#allocation51_spill] sm:$0xff] }
 0x773   :  { %4571 = vmatprep.subr.mxu1 %v7766_v24  ;;  %4642 = vmatprep.subr.mxu0 %v7768_v53  ;;  %v9313_v24 = vld [vmem:[#allocation52_spill] sm:$0xff]  ;;  %v9314_v53 = vld [vmem:[#allocation53_spill] sm:$0xff] }
 0x774   :  { %4572 = vmatpush1.msra.mxu1 %v7772_v0  ;;  %4643 = vmatpush1.msra.mxu0 %v7774_v16  ;;  %v9315_v0 = vld [vmem:[#allocation54_spill] sm:$0xff]  ;;  %v9316_v16 = vld [vmem:[#allocation55_spill] sm:$0xff] }
 0x775   :  { %4573 = vmatprep.subr.mxu1 %v7778_v49  ;;  %4644 = vmatprep.subr.mxu0 %v7780_v33  ;;  %v9317_v49 = vld [vmem:[#allocation56_spill] sm:$0xff]  ;;  %v9318_v33 = vld [vmem:[#allocation57_spill] sm:$0xff] }
 0x776   :  { %4574 = vmatpush1.msra.mxu1 %v7784_v28  ;;  %4645 = vmatpush1.msra.mxu0 %v7786_v46  ;;  %v9319_v28 = vld [vmem:[#allocation58_spill] sm:$0xff]  ;;  %v9320_v46 = vld [vmem:[#allocation59_spill] sm:$0xff] }
 0x777   :  { %4575 = vmatprep.subr.mxu1 %v7790_v52  ;;  %4646 = vmatprep.subr.mxu0 %v7792_v19  ;;  %v9321_v52 = vld [vmem:[#allocation60_spill] sm:$0xff] }
 0x778   :  { %4576 = vmatpush1.msra.mxu1 %v7796_v9  ;;  %4647 = vmatpush1.msra.mxu0 %v7798_v6  ;;  %v9322_v9 = vld [vmem:[#allocation101_spill] sm:$0xff] }
 0x779   :  { %4577 = vmatprep.subr.mxu1 %v7802_v42  ;;  %4648 = vmatprep.subr.mxu0 %v7804_v43 }
 0x77a   :  { %4578 = vmatpush1.msra.mxu1 %v7808_v38  ;;  %4649 = vmatpush1.msra.mxu0 %v7810_v2  ;;  %v9323_v38 = vld [vmem:[#allocation103_spill] sm:$0xff] }
 0x77b   :  { %4579 = vmatprep.subr.mxu1 %v7814_v63  ;;  %4650 = vmatprep.subr.mxu0 %v7816_v62 }
 0x77c   :  { %4580 = vmatpush1.msra.mxu1 %v7820_v23  ;;  %4651 = vmatpush1.msra.mxu0 %v7822_v54  ;;  %v9324_v23 = vld [vmem:[#allocation102_spill] sm:$0xff] }
 0x77d   :  { %4581 = vmatprep.subr.mxu1 %v7826_v55  ;;  %4652 = vmatprep.subr.mxu0 %v7828_v21 }
 0x77e   :  { %4582 = vmatpush1.msra.mxu1 %v7832_v51  ;;  %4653 = vmatpush1.msra.mxu0 %v7834_v61  ;;  %v9325_v51 = vld [vmem:[#allocation104_spill] sm:$0xff] }
 0x77f   :  { %4583 = vmatprep.subr.mxu1 %v9296_v27  ;;  %4654 = vmatprep.subr.mxu0 %v9297_v37  ;;  %v9326_v37 = vld [vmem:[#allocation113_spill] sm:$0xff] }
 0x780   :  { %4584 = vmatpush1.msra.mxu1 %v9298_v36  ;;  %4655 = vmatpush1.msra.mxu0 %v9299_v58 }
 0x781   :  { %4585 = vmatprep.subr.mxu1 %v9300_v50  ;;  %4656 = vmatprep.subr.mxu0 %v9301_v18 }
 0x782   :  { %4586 = vmatpush1.msra.mxu1 %v9302_v48  ;;  %4657 = vmatpush1.msra.mxu0 %v9303_v32 }
 0x783   :  { %4587 = vmatprep.subr.mxu1 %v9304_v40  ;;  %4658 = vmatprep.subr.mxu0 %v9305_v45  ;;  %v9327_v40 = vld [vmem:[#allocation115_spill] sm:$0xff] }
 0x784   :  { %4588 = vmatpush1.msra.mxu1 %v9306_v59  ;;  %4659 = vmatpush1.msra.mxu0 %v9307_v34 }
 0x785   :  { %4589 = vmatprep.subr.mxu1 %v9308_v12  ;;  %4660 = vmatprep.subr.mxu0 %v9309_v13 }
 0x786   :  { %4590 = vmatpush1.msra.mxu1 %v9310_v5  ;;  %4661 = vmatpush1.msra.mxu0 %v9311_v15  ;;  %v9359_v5 = vld [vmem:[#allocation129_spill] sm:$0xff] }
 0x787   :  { %4591 = vmatprep.subr.mxu1 %v9312_v20  ;;  %4662 = vmatprep.subr.mxu0 %v9313_v24  ;;  %v9329_v20 = vld [vmem:[#allocation114_spill] sm:$0xff] }
 0x788   :  { %4592 = vmatpush1.msra.mxu1 %v9314_v53  ;;  %4663 = vmatpush1.msra.mxu0 %v9315_v0 }
 0x789   :  { %4593 = vmatprep.subr.mxu1 %v9316_v16  ;;  %4664 = vmatprep.subr.mxu0 %v9317_v49  ;;  %v9330_v16 = vld [vmem:[#allocation116_spill] sm:$0xff] }
 0x78a   :  { %4594 = vmatpush1.msra.mxu1 %v9318_v33  ;;  %4665 = vmatpush1.msra.mxu0 %v9319_v28 }
 0x78b   :  { %4627 = vmatprep.mubr.f32.mxu1 %v8681_v4  ;;  %4698 = vmatprep.mubr.f32.mxu0 %v8681_v4 }
 0x78c   :  { %4812 = vmatprep.subr.mxu1 %v9320_v46  ;;  %4883 = vmatprep.subr.mxu0 %v9321_v52 }
 0x809   :  { %v4131_v19 = vpop.f32.mrf.mxu1  ;;  %v4202_v62 = vpop.f32.mrf.mxu0 }
 0x80a   :  { %v4207_v6 = vadd.f32 %v4131_v19, %v9322_v9  ;;  %v4209_v54 = vadd.f32 %v4202_v62, %v9324_v23  ;;  %v9334_v62 = vld [vmem:[#allocation63_spill] sm:$0xff]  ;;  %v9336_v23 = vld [vmem:[#allocation65_spill] sm:$0xff] }
 0x80b   :  { %v4133_v42 = vpop.f32.mrf.mxu1  ;;  %v4204_v55 = vpop.f32.mrf.mxu0 }
 0x80c   :  { %v5055_v43 = vmul.f32 -1.442695, %v4207_v6  ;;  %v4208_v2 = vadd.f32 %v4133_v42, %v9323_v38  ;;  %v5057_v21 = vmul.f32 -1.442695, %v4209_v54  ;;  %v4210_v61 = vadd.f32 %v4204_v55, %v9325_v51  ;;  %v9337_v54 = vld [vmem:[#allocation66_spill] sm:$0xff]  ;;  %v9338_v55 = vld [vmem:[#allocation67_spill] sm:$0xff] }
 0x80d   :  { %v9342_v51 = vld [vmem:[#allocation71_spill] sm:$0xff] }
 0x80e   :  { %5311 = vpow2.f32 %v5055_v43  ;;  %v5056_v63 = vmul.f32 -1.442695, %v4208_v2  ;;  %v9331_v43 = vld [vmem:[#allocation28_spill] sm:$0xff]  ;;  %v9332_v2 = vld [vmem:[#allocation61_spill] sm:$0xff] }
 0x810   :  { %5313 = vpow2.f32 %v5056_v63  ;;  %v9333_v63 = vld [vmem:[#allocation62_spill] sm:$0xff] }
 0x811   :  { %5315 = vpow2.f32 %v5057_v21 }
 0x812   :  { %5317 = vtanh.f32 %v4210_v61 }
 0x81b   :  { %v5312_v26 = vpop.eup %5311 }
 0x81c   :  { %v4220_v30 = vadd.f32 1.0, %v5312_v26  ;;  %v9343_v26 = vld [vmem:[#allocation72_spill] sm:$0xff] }
 0x81d   :  { %v5314_v35 = vpop.eup %5313 }
 0x81e   :  { %5319 = vrcp.f32 %v4220_v30  ;;  %v4221_v44 = vadd.f32 1.0, %v5314_v35  ;;  %v5316_v17 = vpop.eup %5315  ;;  %v9344_v30 = vld [vmem:[#allocation38_spill] sm:$0xff] }
 0x81f   :  { %v5318_v14 = vpop.eup %5317  ;;  %v4222_v58 = vadd.f32 1.0, %v5316_v17  ;;  %v9346_v17 = vld [vmem:[#allocation39_spill] sm:$0xff] }
 0x820   :  { %5321 = vrcp.f32 %v4221_v44  ;;  %v9345_v44 = vld [vmem:[#allocation40_spill] sm:$0xff] }
 0x82a   :  { %v4380_v22 = vpop.f32.mrf.mxu1  ;;  %v4451_v13 = vpop.f32.mrf.mxu0 }
 0x82b   :  { %v5320_v27 = vpop.eup %5319  ;;  %v4456_v36 = vadd.f32 %v4380_v22, %v9326_v37  ;;  %v4458_v24 = vadd.f32 %v4451_v13, %v9329_v20  ;;  %v9347_v22 = vld [vmem:[#allocation41_spill] sm:$0xff]  ;;  %v9361_v20 = vld [vmem:[#allocation130_spill] sm:$0xff] }
 0x82c   :  { %v4231_v50 = vmul.f32 %v5320_v27, %v5318_v14  ;;  %v4382_v18 = vpop.f32.mrf.mxu1  ;;  %v4453_v53 = vpop.f32.mrf.mxu0 }
 0x82d   :  { %v5322_v48 = vpop.eup %5321  ;;  %v5058_v32 = vmul.f32 -1.442695, %v4456_v36  ;;  %v4457_v45 = vadd.f32 %v4382_v18, %v9327_v40  ;;  %v5060_v0 = vmul.f32 -1.442695, %v4458_v24  ;;  %v4459_v49 = vadd.f32 %v4453_v53, %v9330_v16  ;;  %v9348_v36 = vld [vmem:[#allocation121_spill] sm:$0xff]  ;;  %v9350_v18 = vld [vmem:[#allocation122_spill] sm:$0xff] }
 0x82e   :  { %v4230_v59 = vmul.f32 %v5322_v48, %v7926_v25  ;;  %v9351_v48 = vld [vmem:[#allocation124_spill] sm:$0xff]  ;;  %v9363_v53 = vld [vmem:[#allocation77_spill] sm:$0xff]  ;;  %v9365_v16 = vld [vmem:[#allocation79_spill] sm:$0xff] }
 0x82f   :  { %5323 = vpow2.f32 %v5058_v32  ;;  %v5059_v34 = vmul.f32 -1.442695, %v4457_v45  ;;  %v9352_v32 = vld [vmem:[#allocation74_spill] sm:$0xff]  ;;  %v9362_v24 = vld [vmem:[#allocation132_spill] sm:$0xff] }
 0x830   :  { %5325 = vrcp.f32 %v4222_v58  ;;  %v4232_v12 = vadd.f32 %v4231_v50, %v4230_v59  ;;  %v9349_v58 = vld [vmem:[#allocation123_spill] sm:$0xff]  ;;  %v9354_v45 = vld [vmem:[#allocation30_spill] sm:$0xff]  ;;  %v9355_v59 = vld [vmem:[#allocation32_spill] sm:$0xff] }
 0x831   :  { %5327 = vpow2.f32 %v5059_v34  ;;  %v9356_v34 = vld [vmem:[#allocation31_spill] sm:$0xff] }
 0x832   :  { %5329 = vtanh.f32 %v4232_v12  ;;  %v8222_v15 = vsel %vm1960_vm12, %v4232_v12, %v7926_v25 }
 0x833   :  { %5331 = vpow2.f32 %v5060_v0  ;;  %v9364_v0 = vld [vmem:[#allocation78_spill] sm:$0xff] }
 0x834   :  { %5333 = vtanh.f32 %v4459_v49  ;;  %v9366_v49 = vld [vmem:[#allocation80_spill] sm:$0xff] }
 0x83c   :  { %v5324_v33 = vpop.eup %5323 }
 0x83d   :  { %v5326_v28 = vpop.eup %5325  ;;  %v4469_v46 = vadd.f32 1.0, %v5324_v33  ;;  %v9367_v33 = vld [vmem:[#allocation81_spill] sm:$0xff] }
 0x83e   :  { %v5328_v52 = vpop.eup %5327 }
 0x83f   :  { %v5330_v19 = vpop.eup %5329  ;;  %5335 = vrcp.f32 %v4469_v46  ;;  %v4470_v9 = vadd.f32 1.0, %v5328_v52  ;;  %v9370_v46 = vld [vmem:[#allocation84_spill] sm:$0xff]  ;;  %v9371_v52 = vld [vmem:[#allocation85_spill] sm:$0xff] }
 0x840   :  { %v4234_v6 = vmul.f32 %v5330_v19, %v5326_v28  ;;  %v5332_v21 = vpop.eup %5331  ;;  %v9369_v28 = vld [vmem:[#allocation83_spill] sm:$0xff]  ;;  %v9372_v19 = vld [vmem:[#allocation86_spill] sm:$0xff] }
 0x841   :  { %5337 = vrcp.f32 %v4470_v9  ;;  %v5334_v61 = vpop.eup %5333  ;;  %v4471_v37 = vadd.f32 1.0, %v5332_v21  ;;  %v9373_v9 = vld [vmem:[#allocation87_spill] sm:$0xff] }
 0x842   :  { %v4235_v25 = vsel %vm1960_vm12, %v4234_v6, %v7937_v7  ;;  %v4239_v42 = vsel %vm1960_vm12, %v4234_v6, 0.0  ;;  %v9335_v7 = vld [vmem:[#allocation64_spill] sm:$0xff] }
 0x843   :  { %v4241_v38 = vadd.f32 %v4239_v42, %v9331_v43  ;;  %4628 = vmatmul.mubr.f32.vlgmr.msra.gmra.mxu1 %v4235_v25  ;;  %4699 = vmatmul.mubr.f32.vlgmr.msra.gmra.mxu0 %v4235_v25  ;;  %5339 = vrcp.f32 %v4471_v37  ;;  %v9374_v6 = vld [vmem:[#allocation88_spill] sm:$0xff]  ;;  %v9375_v25 = vld [vmem:[#allocation89_spill] sm:$0xff]  ;;  %v9376_v42 = vld [vmem:[#allocation90_spill] sm:$0xff] }
 0x844   :  { %4813 = vmatpush1.msra.mxu1 %v7930_v29  ;;  %4884 = vmatpush1.msra.mxu0 %v7932_v57  ;;  %v9339_v29 = vld [vmem:[#allocation68_spill] sm:$0xff]  ;;  %v9340_v57 = vld [vmem:[#allocation69_spill] sm:$0xff]  ;;  %v9377_v43 = vld [vmem:[#allocation91_spill] sm:$0xff] }
 0x845   :  { %4243 = vst [vmem:[#allocation17 + $0x30] sm:$0xff] %v4241_v38  ;;  %4814 = vmatprep.subr.mxu1 %v7941_v1  ;;  %4885 = vmatprep.subr.mxu0 %v9332_v2  ;;  %v9341_v1 = vld [vmem:[#allocation70_spill] sm:$0xff]  ;;  %v9378_v38 = vld [vmem:[#allocation92_spill] sm:$0xff]  ;;  %v9379_v2 = vld [vmem:[#allocation73_spill] sm:$0xff] }
 0x846   :  { %4815 = vmatpush1.msra.mxu1 %v9333_v63  ;;  %4886 = vmatpush1.msra.mxu0 %v9334_v62  ;;  %v9380_v62 = vld [vmem:[#allocation93_spill] sm:$0xff] }
 0x847   :  { %4816 = vmatprep.subr.mxu1 %v9335_v7  ;;  %4887 = vmatprep.subr.mxu0 %v9336_v23  ;;  %v9381_v23 = vld [vmem:[#allocation94_spill] sm:$0xff] }
 0x848   :  { %4817 = vmatpush1.msra.mxu1 %v9337_v54  ;;  %4888 = vmatpush1.msra.mxu0 %v9338_v55  ;;  %v9382_v54 = vld [vmem:[#allocation95_spill] sm:$0xff]  ;;  %v9383_v55 = vld [vmem:[#allocation97_spill] sm:$0xff] }
 0x849   :  { %4818 = vmatprep.subr.mxu1 %v9339_v29  ;;  %4889 = vmatprep.subr.mxu0 %v9340_v57  ;;  %v9384_v57 = vld [vmem:[#allocation23_spill] sm:$0xff] }
 0x84a   :  { %4819 = vmatpush1.msra.mxu1 %v9341_v1  ;;  %4890 = vmatpush1.msra.mxu0 %v9342_v51 }
 0x84b   :  { %4820 = vmatprep.subr.mxu1 %v9343_v26  ;;  %4891 = vmatprep.subr.mxu0 %v9344_v30 }
 0x84c   :  { %v5336_v35 = vpop.eup %5335  ;;  %4821 = vmatpush1.msra.mxu1 %v9345_v44  ;;  %4892 = vmatpush1.msra.mxu0 %v9346_v17 }
 0x84d   :  { %v4480_v14 = vmul.f32 %v5336_v35, %v5334_v61  ;;  %4822 = vmatprep.subr.mxu1 %v7990_v8  ;;  %4893 = vmatprep.subr.mxu0 %v9347_v22  ;;  %v9353_v8 = vld [vmem:[#allocation75_spill] sm:$0xff] }
 0x84e   :  { %v5338_v27 = vpop.eup %5337  ;;  %4823 = vmatpush1.msra.mxu1 %v9348_v36  ;;  %4894 = vmatpush1.msra.mxu0 %v9349_v58 }
 0x84f   :  { %v4479_v50 = vmul.f32 %v5338_v27, %v8052_v39  ;;  %4824 = vmatprep.subr.mxu1 %v8002_v56  ;;  %4895 = vmatprep.subr.mxu0 %v9350_v18  ;;  %v9357_v56 = vld [vmem:[#allocation33_spill] sm:$0xff] }
 0x850   :  { %4825 = vmatpush1.msra.mxu1 %v9351_v48  ;;  %4896 = vmatpush1.msra.mxu0 %v9352_v32  ;;  %v5340_v63 = vpop.eup %5339 }
 0x851   :  { %v4481_v40 = vadd.f32 %v4480_v14, %v4479_v50  ;;  %4826 = vmatprep.subr.mxu1 %v8014_v10  ;;  %4897 = vmatprep.subr.mxu0 %v9353_v8  ;;  %v9360_v10 = vld [vmem:[#allocation131_spill] sm:$0xff]  ;;  %v9388_v14 = vld [vmem:[#allocation108_spill] sm:$0xff] }
 0x852   :  { %4827 = vmatpush1.msra.mxu1 %v9354_v45  ;;  %4898 = vmatpush1.msra.mxu0 %v9355_v59 }
 0x853   :  { %5341 = vtanh.f32 %v4481_v40  ;;  %4828 = vmatprep.subr.mxu1 %v9356_v34  ;;  %4899 = vmatprep.subr.mxu0 %v9357_v56  ;;  %v8268_v13 = vsel %vm1703_vm11, %v4481_v40, %v8052_v39  ;;  %v9368_v39 = vld [vmem:[#allocation82_spill] sm:$0xff]  ;;  %v9389_v40 = vld [vmem:[#allocation109_spill] sm:$0xff] }
 0x854   :  { %4829 = vmatpush1.msra.mxu1 %v9359_v5  ;;  %4900 = vmatpush1.msra.mxu0 %v9360_v10  ;;  %v9390_v5 = vld [vmem:[#allocation111_spill] sm:$0xff] }
 0x855   :  { %4830 = vmatprep.subr.mxu1 %v9361_v20  ;;  %4901 = vmatprep.subr.mxu0 %v9362_v24 }
 0x856   :  { %4831 = vmatpush1.msra.mxu1 %v9363_v53  ;;  %4902 = vmatpush1.msra.mxu0 %v9364_v0 }
 0x857   :  { %4832 = vmatprep.subr.mxu1 %v9365_v16  ;;  %4903 = vmatprep.subr.mxu0 %v9366_v49  ;;  %v9391_v16 = vld [vmem:[#allocation110_spill] sm:$0xff] }
 0x858   :  { %4833 = vmatpush1.msra.mxu1 %v9367_v33  ;;  %4904 = vmatpush1.msra.mxu0 %v9368_v39 }
 0x859   :  { %4834 = vmatprep.subr.mxu1 %v9369_v28  ;;  %4905 = vmatprep.subr.mxu0 %v9370_v46  ;;  %v9392_v28 = vld [vmem:[#allocation112_spill] sm:$0xff] }
 0x85a   :  { %4835 = vmatpush1.msra.mxu1 %v9371_v52  ;;  %4906 = vmatpush1.msra.mxu0 %v9372_v19 }
 0x85b   :  { %4836 = vmatprep.subr.mxu1 %v9373_v9  ;;  %4907 = vmatprep.subr.mxu0 %v9374_v6 }
 0x85c   :  { %4837 = vmatpush1.msra.mxu1 %v9375_v25  ;;  %4908 = vmatpush1.msra.mxu0 %v9376_v42 }
 0x85d   :  { %4838 = vmatprep.subr.mxu1 %v9377_v43  ;;  %4909 = vmatprep.subr.mxu0 %v9378_v38 }
 0x85e   :  { %4839 = vmatpush1.msra.mxu1 %v8098_v3  ;;  %4910 = vmatpush1.msra.mxu0 %v9379_v2  ;;  %v9394_v2 = vld [vmem:[#allocation29_spill] sm:$0xff] }
 0x85f   :  { %4840 = vmatprep.subr.mxu1 %v8104_v47  ;;  %4911 = vmatprep.subr.mxu0 %v9380_v62 }
 0x860   :  { %v5342_v7 = vpop.eup %5341  ;;  %4841 = vmatpush1.msra.mxu1 %v9381_v23  ;;  %4912 = vmatpush1.msra.mxu0 %v9382_v54 }
 0x861   :  { %4842 = vmatprep.subr.mxu1 %v9383_v55  ;;  %4913 = vmatprep.subr.mxu0 %v8118_v60  ;;  %v4483_v29 = vmul.f32 %v5342_v7, %v5340_v63 }
 0x862   :  { %4843 = vmatpush1.msra.mxu1 %v8122_v41  ;;  %4876 = vmatprep.mubr.f32.mxu1 %v8681_v4  ;;  %v9385_v41 = vld [vmem:[#allocation105_spill] sm:$0xff] }
 0x863   :  { %4914 = vmatpush1.msra.mxu0 %v8126_v31  ;;  %4947 = vmatprep.mubr.f32.mxu0 %v8681_v4  ;;  %v4484_v3 = vsel %vm1703_vm11, %v4483_v29, %v8137_v11  ;;  %v4488_v47 = vsel %vm1703_vm11, %v4483_v29, 0.0  ;;  %v9386_v31 = vld [vmem:[#allocation107_spill] sm:$0xff]  ;;  %v9387_v11 = vld [vmem:[#allocation106_spill] sm:$0xff] }
 0x864   :  { %v4490_v21 = vadd.f32 %v4488_v47, %v9384_v57  ;;  %4877 = vmatmul.mubr.f32.vlgmr.msra.gmra.mxu1 %v4484_v3  ;;  %4948 = vmatmul.mubr.f32.vlgmr.msra.gmra.mxu0 %v4484_v3 }
 0x866   :  { %4492 = vst [vmem:[#allocation17 + $0x48] sm:$0xff] %v4490_v21 }
 0x903   :  { %v4629_v60 = vpop.f32.mrf.mxu1  ;;  %v4700_v30 = vpop.f32.mrf.mxu0 }
 0x904   :  { %v4705_v1 = vadd.f32 %v4629_v60, %v9385_v41  ;;  %v4707_v35 = vadd.f32 %v4700_v30, %v9387_v11 }
 0x905   :  { %v4631_v51 = vpop.f32.mrf.mxu1  ;;  %v4702_v44 = vpop.f32.mrf.mxu0 }
 0x906   :  { %v5061_v61 = vmul.f32 -1.442695, %v4705_v1  ;;  %v4706_v26 = vadd.f32 %v4631_v51, %v9386_v31  ;;  %v5063_v17 = vmul.f32 -1.442695, %v4707_v35  ;;  %v4708_v22 = vadd.f32 %v4702_v44, %v9388_v14  ;;  %v9396_v51 = vld [vmem:[#allocation22_spill] sm:$0xff] }
 0x908   :  { %5343 = vpow2.f32 %v5061_v61  ;;  %v5062_v4 = vmul.f32 -1.442695, %v4706_v26 }
 0x90a   :  { %5345 = vpow2.f32 %v5062_v4 }
 0x90b   :  { %5347 = vpow2.f32 %v5063_v17 }
 0x90c   :  { %5349 = vtanh.f32 %v4708_v22 }
 0x915   :  { %v5344_v27 = vpop.eup %5343 }
 0x916   :  { %v4718_v37 = vadd.f32 1.0, %v5344_v27 }
 0x917   :  { %v5346_v36 = vpop.eup %5345 }
 0x918   :  { %5351 = vrcp.f32 %v4718_v37  ;;  %v4719_v58 = vadd.f32 1.0, %v5346_v36  ;;  %v5348_v50 = vpop.eup %5347 }
 0x919   :  { %v5350_v18 = vpop.eup %5349  ;;  %v4720_v45 = vadd.f32 1.0, %v5348_v50 }
 0x91a   :  { %5353 = vrcp.f32 %v4719_v58 }
 0x924   :  { %v4878_v48 = vpop.f32.mrf.mxu1  ;;  %v4949_v0 = vpop.f32.mrf.mxu0 }
 0x925   :  { %v5352_v32 = vpop.eup %5351  ;;  %v4954_v8 = vadd.f32 %v4878_v48, %v9389_v40  ;;  %v4956_v49 = vadd.f32 %v4949_v0, %v9391_v16 }
 0x926   :  { %v4729_v59 = vmul.f32 %v5352_v32, %v5350_v18  ;;  %v4880_v34 = vpop.f32.mrf.mxu1  ;;  %v4951_v33 = vpop.f32.mrf.mxu0 }
 0x927   :  { %v5354_v56 = vpop.eup %5353  ;;  %v5064_v12 = vmul.f32 -1.442695, %v4954_v8  ;;  %v4955_v10 = vadd.f32 %v4880_v34, %v9390_v5  ;;  %v5066_v39 = vmul.f32 -1.442695, %v4956_v49  ;;  %v4957_v46 = vadd.f32 %v4951_v33, %v9392_v28 }
 0x928   :  { %v4728_v20 = vmul.f32 %v5354_v56, %v8222_v15 }
 0x929   :  { %5355 = vpow2.f32 %v5064_v12  ;;  %v5065_v24 = vmul.f32 -1.442695, %v4955_v10 }
 0x92a   :  { %5357 = vrcp.f32 %v4720_v45  ;;  %v4730_v53 = vadd.f32 %v4729_v59, %v4728_v20 }
 0x92b   :  { %5359 = vpow2.f32 %v5065_v24 }
 0x92c   :  { %5361 = vtanh.f32 %v4730_v53 }
 0x92d   :  { %5363 = vpow2.f32 %v5066_v39 }
 0x92e   :  { %5365 = vtanh.f32 %v4957_v46 }
 0x936   :  { %v5356_v52 = vpop.eup %5355 }
 0x937   :  { %v5358_v19 = vpop.eup %5357  ;;  %v4967_v9 = vadd.f32 1.0, %v5356_v52 }
 0x938   :  { %v5360_v6 = vpop.eup %5359 }
 0x939   :  { %v5362_v15 = vpop.eup %5361  ;;  %5367 = vrcp.f32 %v4967_v9  ;;  %v4968_v25 = vadd.f32 1.0, %v5360_v6 }
 0x93a   :  { %v4732_v42 = vmul.f32 %v5362_v15, %v5358_v19  ;;  %v5364_v62 = vpop.eup %5363 }
 0x93b   :  { %5369 = vrcp.f32 %v4968_v25  ;;  %v5366_v7 = vpop.eup %5365  ;;  %v4969_v29 = vadd.f32 1.0, %v5364_v62 }
 0x93c   :  { %v4737_v38 = vsel %vm1446_vm10, %v4732_v42, 0.0 }
 0x93d   :  { %v4739_v63 = vadd.f32 %v4737_v38, %v9394_v2  ;;  %5371 = vrcp.f32 %v4969_v29 }
 0x93f   :  { %4741 = vst [vmem:[#allocation17 + $0x38] sm:$0xff] %v4739_v63 }
 0x946   :  { %v5368_v23 = vpop.eup %5367 }
 0x947   :  { %v4978_v54 = vmul.f32 %v5368_v23, %v5366_v7 }
 0x948   :  { %v5370_v55 = vpop.eup %5369 }
 0x949   :  { %v4977_v3 = vmul.f32 %v5370_v55, %v8268_v13 }
 0x94a   :  { %v5372_v57 = vpop.eup %5371 }
 0x94b   :  { %v4979_v47 = vadd.f32 %v4978_v54, %v4977_v3 }
 0x94d   :  { %5373 = vtanh.f32 %v4979_v47 }
 0x95a   :  { %v5374_v21 = vpop.eup %5373 }
 0x95b   :  { %v4981_v60 = vmul.f32 %v5374_v21, %v5372_v57 }
 0x95d   :  { %v4986_v1 = vsel %vm1191_vm9, %v4981_v60, 0.0 }
 0x95e   :  { %v4988_v61 = vadd.f32 %v4986_v1, %v9396_v51 }
 0x960   :  { %4990 = vst [vmem:[#allocation17 + $0x40] sm:$0xff] %v4988_v61 }
 0x961   :  { %5486 = shalt.err (!%p5483_p1)
}
 0x962   :  { %5002 = dma.vmem_to_hbm [thread:$0]  %s4997_s15, 2048, %s8338_s8, [#allocation10], %s5505_s10, %s5505_s10, %s5506_s11  }
 0x963   :  { %5501 = dma.done.wait [#allocation10], 2048  }
 0x964   :  { %5502 = vsyncadd [#allocation10], 4294965248 }
 0x965   :  { %5006 = vsyncpa [#allocation9], 1 }
 0x966   :  { %5007 = vsyncpa [#allocation12], 1 }
 0x967   :  { %5008 = vsyncpa [#allocation15], 1 }
 0x968   :  { %5009 = vsyncpa [#allocation10], 1 }

</bundles_post_ra>
